<compile_context>
chip_gen: v6e
topology: v6e:2x2x1
jax: 0.10.0
libtpu: 0.0.40
codegen_flags: <defaults>
</compile_context>

<pallas_src>
import jax
import jax.numpy as jnp
from jax.experimental import pallas as pl
from jax.experimental.pallas import tpu as pltpu


# ----------------------------- small helpers ---------------------------------

def _round_up(x, m):
    return ((x + m - 1) // m) * m


def _largest_tile(n, candidates):
    for c in candidates:
        if n % c == 0:
            return c
    return n


def _pick_tn(np_, candidates):
    """Largest lane tile dividing np_, but keep >= 2 blocks on the parallel
    j axis when np_ >= 256 so v7x's second TensorCore gets work."""
    if np_ >= 256:
        return _largest_tile(np_, tuple(c for c in candidates if c <= np_ // 2))
    return np_


def _pad2(x, rows, cols):
    r, c = x.shape
    if r == rows and c == cols:
        return x
    return jnp.pad(x, ((0, rows - r), (0, cols - c)))


def _gemm_tiles(mp, kp, np_):
    tm = _largest_tile(mp, (256, 128, 64, 32, 16))
    tk = kp if kp <= 2048 else _largest_tile(kp, (2048, 1024, 512, 256, 128))
    tn = _pick_tn(np_, (4096, 2048, 1024, 512, 256, 128))
    return tm, tk, tn


# ------------------- Pallas GEMM kernels (conv hot path) ---------------------

def _matmul_stats_kernel(a_ref, b_ref, o_ref, stats_ref, acc_ref):
    """out = A @ B (bf16 store).  On the last K step also writes the per-row
    sum / sum-of-squares of the f32 accumulator into lanes 0/1 of the
    (tm, 128) stats block (fused BatchNorm batch statistics)."""
    k = pl.program_id(2)

    @pl.when(k == 0)
    def _():
        acc_ref[...] = jnp.zeros_like(acc_ref)

    tk = b_ref.shape[0]
    if a_ref.shape[1] == tk:           # single K chunk: use resident block as-is
        a_blk = a_ref[...]
    else:                              # slice k-chunk from the resident A block
        a_blk = a_ref[:, pl.ds(pl.multiple_of(k * tk, 128), tk)]
    acc_ref[...] += jnp.dot(a_blk, b_ref[...],
                            preferred_element_type=jnp.float32)

    @pl.when(k == pl.num_programs(2) - 1)
    def _():
        acc = acc_ref[...]
        o_ref[...] = acc.astype(o_ref.dtype)
        row_sum = jnp.sum(acc, axis=1, keepdims=True)
        row_sumsq = jnp.sum(acc * acc, axis=1, keepdims=True)
        lane = jax.lax.broadcasted_iota(jnp.int32, stats_ref.shape, 1)
        stats_ref[...] = jnp.where(lane == 0, row_sum,
                                   jnp.where(lane == 1, row_sumsq, 0.0))


def _matmul_bias_tanh_kernel(a_ref, b_ref, bias_ref, o_ref, acc_ref):
    """Final layer: out = tanh(A @ B + per-row bias), f32 store."""
    k = pl.program_id(2)

    @pl.when(k == 0)
    def _():
        acc_ref[...] = jnp.zeros_like(acc_ref)

    tk = b_ref.shape[0]
    if a_ref.shape[1] == tk:
        a_blk = a_ref[...]
    else:
        a_blk = a_ref[:, pl.ds(pl.multiple_of(k * tk, 128), tk)]
    acc_ref[...] += jnp.dot(a_blk, b_ref[...],
                            preferred_element_type=jnp.float32)

    @pl.when(k == pl.num_programs(2) - 1)
    def _():
        o_ref[...] = jnp.tanh(acc_ref[...] + bias_ref[...]).astype(o_ref.dtype)


def matmul_stats_pallas(a_p, b_p):
    """a_p: (Mp, Kp) bf16, b_p: (Kp, Np) bf16 — already padded/aligned.

    Returns (out (Mp, Np) bf16, row_sum (Mp,) f32, row_sumsq (Mp,) f32).
    Padded rows/columns of the GEMM are exactly zero, so the fused statistics
    stay correct when divided by the real element count.
    """
    mp, kp = a_p.shape
    kp2, np_ = b_p.shape
    assert kp == kp2 and mp % 16 == 0 and kp % 128 == 0 and np_ % 128 == 0
    tm, tk, tn = _gemm_tiles(mp, kp, np_)
    jn = np_ // tn

    cost = pl.CostEstimate(flops=2 * mp * kp * np_, transcendentals=0,
                           bytes_accessed=2 * (mp * kp + kp * np_ + mp * np_))

    out, stats = pl.pallas_call(
        _matmul_stats_kernel,
        out_shape=(jax.ShapeDtypeStruct((mp, np_), jnp.bfloat16),
                   jax.ShapeDtypeStruct((mp, jn * 128), jnp.float32)),
        grid_spec=pltpu.PrefetchScalarGridSpec(
            num_scalar_prefetch=0,
            grid=(mp // tm, jn, kp // tk),
            in_specs=[
                # weight operand stays VMEM-resident across the whole (j,k) loop
                pl.BlockSpec((tm, kp), lambda i, j, k: (i, 0)),
                pl.BlockSpec((tk, tn), lambda i, j, k: (k, j)),
            ],
            out_specs=[
                pl.BlockSpec((tm, tn), lambda i, j, k: (i, j)),
                pl.BlockSpec((tm, 128), lambda i, j, k: (i, j)),
            ],
            scratch_shapes=[pltpu.VMEM((tm, tn), jnp.float32)]),
        compiler_params=pltpu.CompilerParams(
            dimension_semantics=("parallel", "parallel", "arbitrary")),
        cost_estimate=cost,
    )(a_p, b_p)

    stats = stats.reshape(mp, jn, 128)
    return out, jnp.sum(stats[:, :, 0], axis=1), jnp.sum(stats[:, :, 1], axis=1)


def matmul_bias_tanh_pallas(a_p, b_p, bias_p):
    """Final-layer GEMM with fused per-row bias + tanh epilogue (f32 output)."""
    mp, kp = a_p.shape
    kp2, np_ = b_p.shape
    assert kp == kp2 and mp % 16 == 0 and kp % 128 == 0 and np_ % 128 == 0
    tm, tk, tn = _gemm_tiles(mp, kp, np_)

    cost = pl.CostEstimate(flops=2 * mp * kp * np_, transcendentals=mp * np_,
                           bytes_accessed=2 * (mp * kp + kp * np_) + 4 * mp * np_)

    return pl.pallas_call(
        _matmul_bias_tanh_kernel,
        out_shape=jax.ShapeDtypeStruct((mp, np_), jnp.float32),
        grid_spec=pltpu.PrefetchScalarGridSpec(
            num_scalar_prefetch=0,
            grid=(mp // tm, np_ // tn, kp // tk),
            in_specs=[
                pl.BlockSpec((tm, kp), lambda i, j, k: (i, 0)),
                pl.BlockSpec((tk, tn), lambda i, j, k: (k, j)),
                pl.BlockSpec((tm, 1), lambda i, j, k: (i, 0)),
            ],
            out_specs=pl.BlockSpec((tm, tn), lambda i, j, k: (i, j)),
            scratch_shapes=[pltpu.VMEM((tm, tn), jnp.float32)]),
        compiler_params=pltpu.CompilerParams(
            dimension_semantics=("parallel", "parallel", "arbitrary")),
        cost_estimate=cost,
    )(a_p, b_p, bias_p)


# --------------- Pallas fused BatchNorm(affine) + ReLU kernel ----------------

def _affine_relu_kernel(x_ref, s_ref, b_ref, o_ref):
    # s_ref/b_ref are (Mp, 1): per-row (= per channel & parity) scale/shift
    # broadcast over the lane (spatial) dimension.
    y = x_ref[...].astype(jnp.float32) * s_ref[...] + b_ref[...]
    o_ref[...] = jnp.maximum(y, 0.0).astype(o_ref.dtype)


def affine_relu_pallas(x, scale, shift):
    """x: (Mp, Np) bf16 GEMM output; scale/shift: (Mp,) f32.  Emits bf16."""
    mp, np_ = x.shape
    tn = _pick_tn(np_, (4096, 2048, 1024, 512, 256, 128))
    s = scale.astype(jnp.float32).reshape(mp, 1)
    b = shift.astype(jnp.float32).reshape(mp, 1)
    return pl.pallas_call(
        _affine_relu_kernel,
        out_shape=jax.ShapeDtypeStruct((mp, np_), jnp.bfloat16),
        grid_spec=pltpu.PrefetchScalarGridSpec(
            num_scalar_prefetch=0,
            grid=(np_ // tn,),
            in_specs=[pl.BlockSpec((mp, tn), lambda j: (0, j)),
                      pl.BlockSpec((mp, 1), lambda j: (0, 0)),
                      pl.BlockSpec((mp, 1), lambda j: (0, 0))],
            out_specs=pl.BlockSpec((mp, tn), lambda j: (0, j))),
        compiler_params=pltpu.CompilerParams(
            dimension_semantics=("parallel",)),
    )(x, s, b)


# -------------- ConvTranspose2d -> padded bf16 GEMM operands -----------------

def _conv_transpose_operands_generic(x, w_t, stride, padding):
    """Generic (dilate + edge-pad + k*k im2col) formulation; used for the
    stride-1 first layer.  x: (Cin, N, Hin, Win) bf16; w_t: (Cin, Cout, k, k).
    Returns padded bf16 A (Mp, Kp), B (Kp, Np) with (A@B)[:Cout, :N*Ho*Wo]
    being the ConvTranspose2d output in channel-major order."""
    cin, n, hin, win = x.shape
    _, cout, k, _ = w_t.shape
    ho = (hin - 1) * stride - 2 * padding + k
    wo = (win - 1) * stride - 2 * padding + k

    if stride > 1:
        hd, wd = (hin - 1) * stride + 1, (win - 1) * stride + 1
        x_dil = jnp.zeros((cin, n, hd, wd), x.dtype)
        x_dil = x_dil.at[:, :, ::stride, ::stride].set(x)
    else:
        x_dil = x
    pad = k - 1 - padding
    x_pad = jnp.pad(x_dil, ((0, 0), (0, 0), (pad, pad), (pad, pad)))

    cols = []
    for i in range(k):
        for j in range(k):
            cols.append(x_pad[:, :, i:i + ho, j:j + wo])
    b_mat = jnp.stack(cols, axis=1).reshape(cin * k * k, n * ho * wo)

    w_eq = jnp.flip(w_t, axis=(2, 3)).transpose(1, 0, 2, 3)   # (Cout, Cin, k, k)
    a_mat = w_eq.reshape(cout, cin * k * k)

    mp = _round_up(cout, 16)
    kp = _round_up(cin * k * k, 128)
    np_ = _round_up(n * ho * wo, 128)
    return (_pad2(a_mat.astype(jnp.bfloat16), mp, kp),
            _pad2(b_mat.astype(jnp.bfloat16), kp, np_),
            (cout, n, ho, wo))


# parity -> ((input-offset, flipped-kernel-tap), ...) for stride=2 / k=4 / p=1
_TAP_OFFSETS = {0: ((0, 0), (1, 2)),
                1: ((1, 1), (2, 3))}


def _conv_transpose_operands_stride2(x, w_t):
    """stride=2 / padding=1 / k=4 ConvTranspose2d via the 2x2 output-parity
    decomposition.  The four parity sub-problems share one 9-tap im2col B and
    are stacked along M (row = (ph*2+pw)*Cout + cout); the column (n, oh', ow')
    holds the output value at spatial position (2*oh'+ph, 2*ow'+pw)."""
    cin, n, hin, win = x.shape
    _, cout, k, _ = w_t.shape
    assert k == 4
    ho, wo = 2 * hin, 2 * win

    # shared 9-tap im2col over the 1-pixel edge-padded input (no dilation)
    xp = jnp.pad(x, ((0, 0), (0, 0), (1, 1), (1, 1)))
    taps = []
    for a in range(3):
        for b in range(3):
            taps.append(xp[:, :, a:a + hin, b:b + win])
    b_mat = jnp.stack(taps, axis=1).reshape(cin * 9, n * hin * win)

    # equivalent regular-conv weights: flip spatially, swap in/out channels
    w_eq = jnp.flip(w_t, axis=(2, 3)).transpose(1, 0, 2, 3)   # (Cout, Cin, 4, 4)
    a_mat = jnp.zeros((2, 2, cout, cin, 3, 3), jnp.float32)
    for ph in (0, 1):
        for pw in (0, 1):
            for (ah, kh) in _TAP_OFFSETS[ph]:
                for (aw, kw) in _TAP_OFFSETS[pw]:
                    a_mat = a_mat.at[ph, pw, :, :, ah, aw].set(w_eq[:, :, kh, kw])
    a_mat = a_mat.reshape(4 * cout, cin * 9)

    mp = _round_up(4 * cout, 16)
    kp = _round_up(cin * 9, 128)
    np_ = _round_up(n * hin * win, 128)
    return (_pad2(a_mat.astype(jnp.bfloat16), mp, kp),
            _pad2(b_mat.astype(jnp.bfloat16), kp, np_),
            (cout, n, ho, wo))


def _uninterleave_parity(y, cout, n, ho, wo):
    """Parity-major GEMM output rows -> channel-major (Cout, N, Ho, Wo)."""
    hin, win = ho // 2, wo // 2
    y = y[:4 * cout, :n * hin * win].reshape(2, 2, cout, n, hin, win)
    y = y.transpose(2, 3, 4, 0, 5, 1)            # (Cout, N, Hin, 2, Win, 2)
    return y.reshape(cout, n, ho, wo)


# ------------------------------- Generator -----------------------------------

def init_generator_params(key, z_dim, channel_img, features_g):
    ks = jax.random.split(key, 6)
    cfg = [(z_dim, features_g * 16),
           (features_g * 16, features_g * 8),
           (features_g * 8, features_g * 4),
           (features_g * 4, features_g * 2)]
    blocks = []
    for idx, (cin, cout) in enumerate(cfg):
        w = 0.02 * jax.random.normal(ks[idx], (cin, cout, 4, 4), jnp.float32)
        blocks.append({"w": w,
                       "gamma": jnp.ones((cout,), jnp.float32),   # BN default
                       "beta": jnp.zeros((cout,), jnp.float32)})
    w_fin = 0.02 * jax.random.normal(ks[4], (features_g * 2, channel_img, 4, 4),
                                     jnp.float32)
    b_fin = 0.02 * jax.random.normal(ks[5], (channel_img,), jnp.float32)
    return {"blocks": blocks, "final": {"w": w_fin, "b": b_fin}}


def generator_forward(x, params, eps=1e-5):
    """x: (N, z_dim, 1, 1) NCHW f32 -> (N, channel_img, 64, 64) NCHW f32."""
    # single relayout at the input: NCHW -> channel-major (C, N, H, W) bf16
    h = jnp.transpose(x, (1, 0, 2, 3)).astype(jnp.bfloat16)

    for idx, blk in enumerate(params["blocks"]):
        if idx == 0:
            # ConvTranspose2d(z_dim, fg*16, 4, stride=1, padding=0)
            a_p, b_p, (cout, n, ho, wo) = _conv_transpose_operands_generic(
                h, blk["w"], stride=1, padding=0)
            groups = 1
        else:
            # stride-2 / padding-1 blocks via the output-parity decomposition
            a_p, b_p, (cout, n, ho, wo) = _conv_transpose_operands_stride2(
                h, blk["w"])
            groups = 4

        out_p, row_sum, row_sumsq = matmul_stats_pallas(a_p, b_p)
        mp = out_p.shape[0]
        nhw = n * ho * wo

        # BatchNorm2d training-mode batch statistics (biased variance) from the
        # fused epilogue sums; padded GEMM rows/cols contribute exact zeros.
        ch_sum = row_sum[:groups * cout].reshape(groups, cout).sum(axis=0)
        ch_sumsq = row_sumsq[:groups * cout].reshape(groups, cout).sum(axis=0)
        mean = ch_sum / nhw
        var = jnp.maximum(ch_sumsq / nhw - mean * mean, 0.0)
        scale = blk["gamma"] / jnp.sqrt(var + eps)
        shift = blk["beta"] - mean * scale

        row_scale = jnp.pad(jnp.tile(scale, groups), (0, mp - groups * cout))
        row_shift = jnp.pad(jnp.tile(shift, groups), (0, mp - groups * cout))
        out_p = affine_relu_pallas(out_p, row_scale, row_shift)

        if groups == 4:
            h = _uninterleave_parity(out_p, cout, n, ho, wo)
        else:
            h = out_p[:cout, :nhw].reshape(cout, n, ho, wo)

    # final ConvTranspose2d(fg*2, channel_img, 4, stride=2, padding=1) + tanh
    fin = params["final"]
    a_p, b_p, (cout, n, ho, wo) = _conv_transpose_operands_stride2(h, fin["w"])
    mp = a_p.shape[0]
    bias_rows = jnp.pad(jnp.tile(fin["b"].astype(jnp.float32), 4),
                        (0, mp - 4 * cout)).reshape(mp, 1)
    out_p = matmul_bias_tanh_pallas(a_p, b_p, bias_rows)
    out = _uninterleave_parity(out_p, cout, n, ho, wo)
    # single relayout at the output: channel-major -> NCHW
    return jnp.transpose(out, (1, 0, 2, 3)).astype(jnp.float32)


# ----------------------- pure-JAX f32 reference (check) ----------------------

def _conv_transpose_ref(x, w_t, stride, padding):
    k = w_t.shape[-1]
    w_eq = jnp.flip(w_t, axis=(2, 3)).transpose(1, 0, 2, 3)   # (Cout, Cin, k, k)
    pad = k - 1 - padding
    return jax.lax.conv_general_dilated(
        x, w_eq, window_strides=(1, 1), padding=[(pad, pad), (pad, pad)],
        lhs_dilation=(stride, stride),
        dimension_numbers=("NCHW", "OIHW", "NCHW"),
        precision=jax.lax.Precision.HIGHEST)


def generator_reference(x, params, eps=1e-5):
    h = x.astype(jnp.float32)
    strides = [(1, 0), (2, 1), (2, 1), (2, 1)]
    for (s, p), blk in zip(strides, params["blocks"]):
        h = _conv_transpose_ref(h, blk["w"], s, p)
        mean = jnp.mean(h, axis=(0, 2, 3), keepdims=True)
        var = jnp.mean(jnp.square(h - mean), axis=(0, 2, 3), keepdims=True)
        h = (h - mean) / jnp.sqrt(var + eps)
        h = h * blk["gamma"].reshape(1, -1, 1, 1) + blk["beta"].reshape(1, -1, 1, 1)
        h = jnp.maximum(h, 0.0)
    fin = params["final"]
    h = _conv_transpose_ref(h, fin["w"], 2, 1) + fin["b"].reshape(1, -1, 1, 1)
    return jnp.tanh(h)


if __name__ == "__main__":
    # small DCGAN config: z_dim=16, channel_img=3, features_g=8, batch=2
    z_dim, channel_img, features_g, batch = 16, 3, 8, 2
    key = jax.random.PRNGKey(0)
    k_param, k_x = jax.random.split(key)
    params = init_generator_params(k_param, z_dim, channel_img, features_g)
    x = jax.random.normal(k_x, (batch, z_dim, 1, 1), jnp.float32)

    fwd = jax.jit(generator_forward)
    y = jax.block_until_ready(fwd(x, params))

    assert y.shape == (batch, channel_img, 64, 64), y.shape
    assert bool(jnp.all(jnp.isfinite(y)))
    assert bool(jnp.all(jnp.abs(y) <= 1.0))          # tanh output range

    # structural correctness check vs pure-JAX f32 reference (bf16 GEMM noise)
    y_ref = jax.block_until_ready(jax.jit(generator_reference)(x, params))
    max_err = float(jnp.max(jnp.abs(y - y_ref)))
    assert max_err < 0.1, f"max |err| vs reference = {max_err}"
    print("KERNEL_OK")
</pallas_src>

<mosaic_0001>
module attributes {stable_mosaic.version = 11 : i64} {
  func.func @_matmul_stats_kernel(%arg0: i32, %arg1: i32, %arg2: i32, %arg3: memref<128x256xbf16, #tpu.memory_space<vmem>>, %arg4: memref<256x128xbf16, #tpu.memory_space<vmem>>, %arg5: memref<128x128xbf16, #tpu.memory_space<vmem>>, %arg6: memref<128x128xf32, #tpu.memory_space<vmem>>, %arg7: memref<128x128xf32, #tpu.memory_space<vmem>>) attributes {dimension_semantics = [#tpu.dimension_semantics<parallel>, #tpu.dimension_semantics<parallel>, #tpu.dimension_semantics<arbitrary>], iteration_bounds = array<i64: 1, 1, 1>, scalar_prefetch = 0 : i64, scratch_operands = 1 : i64, tpu.core_type = #tpu.core_type<tc>, window_params = [{transform_indices = @transform_0, window_bounds = array<i64: 128, 256>}, {transform_indices = @transform_1, window_bounds = array<i64: 256, 128>}, {transform_indices = @transform_2, window_bounds = array<i64: 128, 128>}, {transform_indices = @transform_3, window_bounds = array<i64: 128, 128>}]} {
    %c0_i32 = arith.constant 0 : i32
    %0 = arith.cmpi eq, %arg2, %c0_i32 : i32
    %1 = arith.extui %0 : i1 to i32
    %c0_i32_0 = arith.constant 0 : i32
    %2 = arith.cmpi ne, %1, %c0_i32_0 : i32
    scf.if %2 {
      %cst_10 = arith.constant 0.000000e+00 : f32
      %12 = vector.broadcast %cst_10 : f32 to vector<128x128xf32>
      %c0_11 = arith.constant 0 : index
      %c0_12 = arith.constant 0 : index
      %13 = vector.load %arg7[%c0_11, %c0_12] : memref<128x128xf32, #tpu.memory_space<vmem>>, vector<128x128xf32>
      tpu.vector_store %arg7[%c0_11, %c0_12], %12 {strides = array<i32>} : memref<128x128xf32, #tpu.memory_space<vmem>>, vector<128x128xf32>,
    } else {
    }
    %c0 = arith.constant 0 : index
    %c0_1 = arith.constant 0 : index
    %3 = vector.load %arg3[%c0, %c0_1] : memref<128x256xbf16, #tpu.memory_space<vmem>>, vector<128x256xbf16>
    %c0_2 = arith.constant 0 : index
    %c0_3 = arith.constant 0 : index
    %4 = vector.load %arg7[%c0_2, %c0_3] : memref<128x128xf32, #tpu.memory_space<vmem>>, vector<128x128xf32>
    %c0_4 = arith.constant 0 : index
    %c0_5 = arith.constant 0 : index
    %5 = vector.load %arg4[%c0_4, %c0_5] : memref<256x128xbf16, #tpu.memory_space<vmem>>, vector<256x128xbf16>
    %cst = arith.constant dense<0.000000e+00> : vector<128x128xf32>
    %6 = tpu.matmul %3, %5, %cst {dimension_numbers = #tpu.dot_dimension_numbers<[1], [0], [0], [1], [0, 0, 1, 1], [], []>} : vector<128x256xbf16>, vector<256x128xbf16>, vector<128x128xf32> -> vector<128x128xf32>
    %7 = arith.addf %4, %6 : vector<128x128xf32>
    %c0_6 = arith.constant 0 : index
    %c0_7 = arith.constant 0 : index
    %8 = vector.load %arg7[%c0_6, %c0_7] : memref<128x128xf32, #tpu.memory_space<vmem>>, vector<128x128xf32>
    tpu.vector_store %arg7[%c0_6, %c0_7], %7 {strides = array<i32>} : memref<128x128xf32, #tpu.memory_space<vmem>>, vector<128x128xf32>,
    %c0_i32_8 = arith.constant 0 : i32
    %9 = arith.cmpi eq, %arg2, %c0_i32_8 : i32
    %10 = arith.extui %9 : i1 to i32
    %c0_i32_9 = arith.constant 0 : i32
    %11 = arith.cmpi ne, %10, %c0_i32_9 : i32
    scf.if %11 {
      %c0_10 = arith.constant 0 : index
      %c0_11 = arith.constant 0 : index
      %12 = vector.load %arg7[%c0_10, %c0_11] : memref<128x128xf32, #tpu.memory_space<vmem>>, vector<128x128xf32>
      %13 = arith.truncf %12 : vector<128x128xf32> to vector<128x128xbf16>
      %c0_12 = arith.constant 0 : index
      %c0_13 = arith.constant 0 : index
      %14 = vector.load %arg5[%c0_12, %c0_13] : memref<128x128xbf16, #tpu.memory_space<vmem>>, vector<128x128xbf16>
      tpu.vector_store %arg5[%c0_12, %c0_13], %13 {strides = array<i32>} : memref<128x128xbf16, #tpu.memory_space<vmem>>, vector<128x128xbf16>,
      %cst_14 = arith.constant dense<0.000000e+00> : vector<128xf32>
      %15 = vector.multi_reduction <add>, %12, %cst_14 [1] : vector<128x128xf32> to vector<128xf32>
      %16 = vector.shape_cast %15 : vector<128xf32> to vector<128x1xf32>
      %17 = arith.mulf %12, %12 : vector<128x128xf32>
      %cst_15 = arith.constant dense<0.000000e+00> : vector<128xf32>
      %18 = vector.multi_reduction <add>, %17, %cst_15 [1] : vector<128x128xf32> to vector<128xf32>
      %19 = vector.shape_cast %18 : vector<128xf32> to vector<128x1xf32>
      %20 = tpu.iota {dimensions = array<i32: 1>} : vector<128x128xi32>
      %c0_i32_16 = arith.constant 0 : i32
      %21 = vector.broadcast %c0_i32_16 : i32 to vector<128x128xi32>
      %22 = arith.cmpi eq, %20, %21 : vector<128x128xi32>
      %c1_i32 = arith.constant 1 : i32
      %23 = vector.broadcast %c1_i32 : i32 to vector<128x128xi32>
      %24 = arith.cmpi eq, %20, %23 : vector<128x128xi32>
      %cst_17 = arith.constant 0.000000e+00 : f32
      %25 = vector.shape_cast %19 : vector<128x1xf32> to vector<128x1xf32>
      %26 = vector.broadcast %25 : vector<128x1xf32> to vector<128x128xf32>
      %27 = vector.broadcast %cst_17 : f32 to vector<128x128xf32>
      %28 = arith.select %24, %26, %27 : vector<128x128xi1>, vector<128x128xf32>
      %29 = vector.shape_cast %16 : vector<128x1xf32> to vector<128x1xf32>
      %30 = vector.broadcast %29 : vector<128x1xf32> to vector<128x128xf32>
      %31 = arith.select %22, %30, %28 : vector<128x128xi1>, vector<128x128xf32>
      %c0_18 = arith.constant 0 : index
      %c0_19 = arith.constant 0 : index
      %32 = vector.load %arg6[%c0_18, %c0_19] : memref<128x128xf32, #tpu.memory_space<vmem>>, vector<128x128xf32>
      tpu.vector_store %arg6[%c0_18, %c0_19], %31 {strides = array<i32>} : memref<128x128xf32, #tpu.memory_space<vmem>>, vector<128x128xf32>,
    } else {
    }
    return
  }
  func.func @transform_0(%arg0: i32, %arg1: i32, %arg2: i32) -> (i32, i32) {
    %c0_i32 = arith.constant 0 : i32
    %c0_i32_0 = arith.constant 0 : i32
    return %arg0, %c0_i32 : i32, i32
  }
  func.func @transform_1(%arg0: i32, %arg1: i32, %arg2: i32) -> (i32, i32) {
    %c0_i32 = arith.constant 0 : i32
    return %arg2, %arg1 : i32, i32
  }
  func.func @transform_2(%arg0: i32, %arg1: i32, %arg2: i32) -> (i32, i32) {
    %c0_i32 = arith.constant 0 : i32
    return %arg0, %arg1 : i32, i32
  }
  func.func @transform_3(%arg0: i32, %arg1: i32, %arg2: i32) -> (i32, i32) {
    %c0_i32 = arith.constant 0 : i32
    return %arg0, %arg1 : i32, i32
  }
}

module attributes {stable_mosaic.version = 11 : i64} {
  func.func @_affine_relu_kernel(%arg0: i32, %arg1: memref<128x128xbf16, #tpu.memory_space<vmem>>, %arg2: memref<128x1xf32, #tpu.memory_space<vmem>>, %arg3: memref<128x1xf32, #tpu.memory_space<vmem>>, %arg4: memref<128x128xbf16, #tpu.memory_space<vmem>>) attributes {dimension_semantics = [#tpu.dimension_semantics<parallel>], iteration_bounds = array<i64: 1>, scalar_prefetch = 0 : i64, scratch_operands = 0 : i64, tpu.core_type = #tpu.core_type<tc>, window_params = [{transform_indices = @transform_0, window_bounds = array<i64: 128, 128>}, {pipeline_mode = #tpu.pipeline_mode<synchronous>, transform_indices = @transform_1, window_bounds = array<i64: 128, 1>}, {pipeline_mode = #tpu.pipeline_mode<synchronous>, transform_indices = @transform_2, window_bounds = array<i64: 128, 1>}, {transform_indices = @transform_3, window_bounds = array<i64: 128, 128>}]} {
    %c0 = arith.constant 0 : index
    %c0_0 = arith.constant 0 : index
    %0 = vector.load %arg1[%c0, %c0_0] : memref<128x128xbf16, #tpu.memory_space<vmem>>, vector<128x128xbf16>
    %1 = arith.extf %0 : vector<128x128xbf16> to vector<128x128xf32>
    %c0_1 = arith.constant 0 : index
    %c0_2 = arith.constant 0 : index
    %2 = vector.load %arg2[%c0_1, %c0_2] : memref<128x1xf32, #tpu.memory_space<vmem>>, vector<128x1xf32>
    %3 = vector.broadcast %2 : vector<128x1xf32> to vector<128x128xf32>
    %4 = arith.mulf %1, %3 : vector<128x128xf32>
    %c0_3 = arith.constant 0 : index
    %c0_4 = arith.constant 0 : index
    %5 = vector.load %arg3[%c0_3, %c0_4] : memref<128x1xf32, #tpu.memory_space<vmem>>, vector<128x1xf32>
    %6 = vector.broadcast %5 : vector<128x1xf32> to vector<128x128xf32>
    %7 = arith.addf %4, %6 : vector<128x128xf32>
    %cst = arith.constant 0.000000e+00 : f32
    %8 = vector.broadcast %cst : f32 to vector<128x128xf32>
    %9 = arith.maximumf %7, %8 : vector<128x128xf32>
    %10 = arith.truncf %9 : vector<128x128xf32> to vector<128x128xbf16>
    %c0_5 = arith.constant 0 : index
    %c0_6 = arith.constant 0 : index
    %11 = vector.load %arg4[%c0_5, %c0_6] : memref<128x128xbf16, #tpu.memory_space<vmem>>, vector<128x128xbf16>
    tpu.vector_store %arg4[%c0_5, %c0_6], %10 {strides = array<i32>} : memref<128x128xbf16, #tpu.memory_space<vmem>>, vector<128x128xbf16>,
    return
  }
  func.func @transform_0(%arg0: i32) -> (i32, i32) {
    %c0_i32 = arith.constant 0 : i32
    %c0_i32_0 = arith.constant 0 : i32
    return %c0_i32, %arg0 : i32, i32
  }
  func.func @transform_1(%arg0: i32) -> (i32, i32) {
    %c0_i32 = arith.constant 0 : i32
    %c0_i32_0 = arith.constant 0 : i32
    %c0_i32_1 = arith.constant 0 : i32
    return %c0_i32, %c0_i32_0 : i32, i32
  }
  func.func @transform_2(%arg0: i32) -> (i32, i32) {
    %c0_i32 = arith.constant 0 : i32
    %c0_i32_0 = arith.constant 0 : i32
    %c0_i32_1 = arith.constant 0 : i32
    return %c0_i32, %c0_i32_0 : i32, i32
  }
  func.func @transform_3(%arg0: i32) -> (i32, i32) {
    %c0_i32 = arith.constant 0 : i32
    %c0_i32_0 = arith.constant 0 : i32
    return %c0_i32, %arg0 : i32, i32
  }
}

module attributes {stable_mosaic.version = 11 : i64} {
  func.func @_matmul_stats_kernel(%arg0: i32, %arg1: i32, %arg2: i32, %arg3: memref<256x1152xbf16, #tpu.memory_space<vmem>>, %arg4: memref<1152x128xbf16, #tpu.memory_space<vmem>>, %arg5: memref<256x128xbf16, #tpu.memory_space<vmem>>, %arg6: memref<256x128xf32, #tpu.memory_space<vmem>>, %arg7: memref<256x128xf32, #tpu.memory_space<vmem>>) attributes {dimension_semantics = [#tpu.dimension_semantics<parallel>, #tpu.dimension_semantics<parallel>, #tpu.dimension_semantics<arbitrary>], iteration_bounds = array<i64: 1, 1, 1>, scalar_prefetch = 0 : i64, scratch_operands = 1 : i64, tpu.core_type = #tpu.core_type<tc>, window_params = [{transform_indices = @transform_0, window_bounds = array<i64: 256, 1152>}, {transform_indices = @transform_1, window_bounds = array<i64: 1152, 128>}, {transform_indices = @transform_2, window_bounds = array<i64: 256, 128>}, {transform_indices = @transform_3, window_bounds = array<i64: 256, 128>}]} {
    %c0_i32 = arith.constant 0 : i32
    %0 = arith.cmpi eq, %arg2, %c0_i32 : i32
    %1 = arith.extui %0 : i1 to i32
    %c0_i32_0 = arith.constant 0 : i32
    %2 = arith.cmpi ne, %1, %c0_i32_0 : i32
    scf.if %2 {
      %cst_10 = arith.constant 0.000000e+00 : f32
      %12 = vector.broadcast %cst_10 : f32 to vector<256x128xf32>
      %c0_11 = arith.constant 0 : index
      %c0_12 = arith.constant 0 : index
      %13 = vector.load %arg7[%c0_11, %c0_12] : memref<256x128xf32, #tpu.memory_space<vmem>>, vector<256x128xf32>
      tpu.vector_store %arg7[%c0_11, %c0_12], %12 {strides = array<i32>} : memref<256x128xf32, #tpu.memory_space<vmem>>, vector<256x128xf32>,
    } else {
    }
    %c0 = arith.constant 0 : index
    %c0_1 = arith.constant 0 : index
    %3 = vector.load %arg3[%c0, %c0_1] : memref<256x1152xbf16, #tpu.memory_space<vmem>>, vector<256x1152xbf16>
    %c0_2 = arith.constant 0 : index
    %c0_3 = arith.constant 0 : index
    %4 = vector.load %arg7[%c0_2, %c0_3] : memref<256x128xf32, #tpu.memory_space<vmem>>, vector<256x128xf32>
    %c0_4 = arith.constant 0 : index
    %c0_5 = arith.constant 0 : index
    %5 = vector.load %arg4[%c0_4, %c0_5] : memref<1152x128xbf16, #tpu.memory_space<vmem>>, vector<1152x128xbf16>
    %cst = arith.constant dense<0.000000e+00> : vector<256x128xf32>
    %6 = tpu.matmul %3, %5, %cst {dimension_numbers = #tpu.dot_dimension_numbers<[1], [0], [0], [1], [0, 0, 1, 1], [], []>} : vector<256x1152xbf16>, vector<1152x128xbf16>, vector<256x128xf32> -> vector<256x128xf32>
    %7 = arith.addf %4, %6 : vector<256x128xf32>
    %c0_6 = arith.constant 0 : index
    %c0_7 = arith.constant 0 : index
    %8 = vector.load %arg7[%c0_6, %c0_7] : memref<256x128xf32, #tpu.memory_space<vmem>>, vector<256x128xf32>
    tpu.vector_store %arg7[%c0_6, %c0_7], %7 {strides = array<i32>} : memref<256x128xf32, #tpu.memory_space<vmem>>, vector<256x128xf32>,
    %c0_i32_8 = arith.constant 0 : i32
    %9 = arith.cmpi eq, %arg2, %c0_i32_8 : i32
    %10 = arith.extui %9 : i1 to i32
    %c0_i32_9 = arith.constant 0 : i32
    %11 = arith.cmpi ne, %10, %c0_i32_9 : i32
    scf.if %11 {
      %c0_10 = arith.constant 0 : index
      %c0_11 = arith.constant 0 : index
      %12 = vector.load %arg7[%c0_10, %c0_11] : memref<256x128xf32, #tpu.memory_space<vmem>>, vector<256x128xf32>
      %13 = arith.truncf %12 : vector<256x128xf32> to vector<256x128xbf16>
      %c0_12 = arith.constant 0 : index
      %c0_13 = arith.constant 0 : index
      %14 = vector.load %arg5[%c0_12, %c0_13] : memref<256x128xbf16, #tpu.memory_space<vmem>>, vector<256x128xbf16>
      tpu.vector_store %arg5[%c0_12, %c0_13], %13 {strides = array<i32>} : memref<256x128xbf16, #tpu.memory_space<vmem>>, vector<256x128xbf16>,
      %cst_14 = arith.constant dense<0.000000e+00> : vector<256xf32>
      %15 = vector.multi_reduction <add>, %12, %cst_14 [1] : vector<256x128xf32> to vector<256xf32>
      %16 = vector.shape_cast %15 : vector<256xf32> to vector<256x1xf32>
      %17 = arith.mulf %12, %12 : vector<256x128xf32>
      %cst_15 = arith.constant dense<0.000000e+00> : vector<256xf32>
      %18 = vector.multi_reduction <add>, %17, %cst_15 [1] : vector<256x128xf32> to vector<256xf32>
      %19 = vector.shape_cast %18 : vector<256xf32> to vector<256x1xf32>
      %20 = tpu.iota {dimensions = array<i32: 1>} : vector<256x128xi32>
      %c0_i32_16 = arith.constant 0 : i32
      %21 = vector.broadcast %c0_i32_16 : i32 to vector<256x128xi32>
      %22 = arith.cmpi eq, %20, %21 : vector<256x128xi32>
      %c1_i32 = arith.constant 1 : i32
      %23 = vector.broadcast %c1_i32 : i32 to vector<256x128xi32>
      %24 = arith.cmpi eq, %20, %23 : vector<256x128xi32>
      %cst_17 = arith.constant 0.000000e+00 : f32
      %25 = vector.shape_cast %19 : vector<256x1xf32> to vector<256x1xf32>
      %26 = vector.broadcast %25 : vector<256x1xf32> to vector<256x128xf32>
      %27 = vector.broadcast %cst_17 : f32 to vector<256x128xf32>
      %28 = arith.select %24, %26, %27 : vector<256x128xi1>, vector<256x128xf32>
      %29 = vector.shape_cast %16 : vector<256x1xf32> to vector<256x1xf32>
      %30 = vector.broadcast %29 : vector<256x1xf32> to vector<256x128xf32>
      %31 = arith.select %22, %30, %28 : vector<256x128xi1>, vector<256x128xf32>
      %c0_18 = arith.constant 0 : index
      %c0_19 = arith.constant 0 : index
      %32 = vector.load %arg6[%c0_18, %c0_19] : memref<256x128xf32, #tpu.memory_space<vmem>>, vector<256x128xf32>
      tpu.vector_store %arg6[%c0_18, %c0_19], %31 {strides = array<i32>} : memref<256x128xf32, #tpu.memory_space<vmem>>, vector<256x128xf32>,
    } else {
    }
    return
  }
  func.func @transform_0(%arg0: i32, %arg1: i32, %arg2: i32) -> (i32, i32) {
    %c0_i32 = arith.constant 0 : i32
    %c0_i32_0 = arith.constant 0 : i32
    return %arg0, %c0_i32 : i32, i32
  }
  func.func @transform_1(%arg0: i32, %arg1: i32, %arg2: i32) -> (i32, i32) {
    %c0_i32 = arith.constant 0 : i32
    return %arg2, %arg1 : i32, i32
  }
  func.func @transform_2(%arg0: i32, %arg1: i32, %arg2: i32) -> (i32, i32) {
    %c0_i32 = arith.constant 0 : i32
    return %arg0, %arg1 : i32, i32
  }
  func.func @transform_3(%arg0: i32, %arg1: i32, %arg2: i32) -> (i32, i32) {
    %c0_i32 = arith.constant 0 : i32
    return %arg0, %arg1 : i32, i32
  }
}

module attributes {stable_mosaic.version = 11 : i64} {
  func.func @_affine_relu_kernel(%arg0: i32, %arg1: memref<256x128xbf16, #tpu.memory_space<vmem>>, %arg2: memref<256x1xf32, #tpu.memory_space<vmem>>, %arg3: memref<256x1xf32, #tpu.memory_space<vmem>>, %arg4: memref<256x128xbf16, #tpu.memory_space<vmem>>) attributes {dimension_semantics = [#tpu.dimension_semantics<parallel>], iteration_bounds = array<i64: 1>, scalar_prefetch = 0 : i64, scratch_operands = 0 : i64, tpu.core_type = #tpu.core_type<tc>, window_params = [{transform_indices = @transform_0, window_bounds = array<i64: 256, 128>}, {pipeline_mode = #tpu.pipeline_mode<synchronous>, transform_indices = @transform_1, window_bounds = array<i64: 256, 1>}, {pipeline_mode = #tpu.pipeline_mode<synchronous>, transform_indices = @transform_2, window_bounds = array<i64: 256, 1>}, {transform_indices = @transform_3, window_bounds = array<i64: 256, 128>}]} {
    %c0 = arith.constant 0 : index
    %c0_0 = arith.constant 0 : index
    %0 = vector.load %arg1[%c0, %c0_0] : memref<256x128xbf16, #tpu.memory_space<vmem>>, vector<256x128xbf16>
    %1 = arith.extf %0 : vector<256x128xbf16> to vector<256x128xf32>
    %c0_1 = arith.constant 0 : index
    %c0_2 = arith.constant 0 : index
    %2 = vector.load %arg2[%c0_1, %c0_2] : memref<256x1xf32, #tpu.memory_space<vmem>>, vector<256x1xf32>
    %3 = vector.broadcast %2 : vector<256x1xf32> to vector<256x128xf32>
    %4 = arith.mulf %1, %3 : vector<256x128xf32>
    %c0_3 = arith.constant 0 : index
    %c0_4 = arith.constant 0 : index
    %5 = vector.load %arg3[%c0_3, %c0_4] : memref<256x1xf32, #tpu.memory_space<vmem>>, vector<256x1xf32>
    %6 = vector.broadcast %5 : vector<256x1xf32> to vector<256x128xf32>
    %7 = arith.addf %4, %6 : vector<256x128xf32>
    %cst = arith.constant 0.000000e+00 : f32
    %8 = vector.broadcast %cst : f32 to vector<256x128xf32>
    %9 = arith.maximumf %7, %8 : vector<256x128xf32>
    %10 = arith.truncf %9 : vector<256x128xf32> to vector<256x128xbf16>
    %c0_5 = arith.constant 0 : index
    %c0_6 = arith.constant 0 : index
    %11 = vector.load %arg4[%c0_5, %c0_6] : memref<256x128xbf16, #tpu.memory_space<vmem>>, vector<256x128xbf16>
    tpu.vector_store %arg4[%c0_5, %c0_6], %10 {strides = array<i32>} : memref<256x128xbf16, #tpu.memory_space<vmem>>, vector<256x128xbf16>,
    return
  }
  func.func @transform_0(%arg0: i32) -> (i32, i32) {
    %c0_i32 = arith.constant 0 : i32
    %c0_i32_0 = arith.constant 0 : i32
    return %c0_i32, %arg0 : i32, i32
  }
  func.func @transform_1(%arg0: i32) -> (i32, i32) {
    %c0_i32 = arith.constant 0 : i32
    %c0_i32_0 = arith.constant 0 : i32
    %c0_i32_1 = arith.constant 0 : i32
    return %c0_i32, %c0_i32_0 : i32, i32
  }
  func.func @transform_2(%arg0: i32) -> (i32, i32) {
    %c0_i32 = arith.constant 0 : i32
    %c0_i32_0 = arith.constant 0 : i32
    %c0_i32_1 = arith.constant 0 : i32
    return %c0_i32, %c0_i32_0 : i32, i32
  }
  func.func @transform_3(%arg0: i32) -> (i32, i32) {
    %c0_i32 = arith.constant 0 : i32
    %c0_i32_0 = arith.constant 0 : i32
    return %c0_i32, %arg0 : i32, i32
  }
}

module attributes {stable_mosaic.version = 11 : i64} {
  func.func @_matmul_stats_kernel(%arg0: i32, %arg1: i32, %arg2: i32, %arg3: memref<128x640xbf16, #tpu.memory_space<vmem>>, %arg4: memref<640x128xbf16, #tpu.memory_space<vmem>>, %arg5: memref<128x128xbf16, #tpu.memory_space<vmem>>, %arg6: memref<128x128xf32, #tpu.memory_space<vmem>>, %arg7: memref<128x128xf32, #tpu.memory_space<vmem>>) attributes {dimension_semantics = [#tpu.dimension_semantics<parallel>, #tpu.dimension_semantics<parallel>, #tpu.dimension_semantics<arbitrary>], iteration_bounds = array<i64: 1, 1, 1>, scalar_prefetch = 0 : i64, scratch_operands = 1 : i64, tpu.core_type = #tpu.core_type<tc>, window_params = [{transform_indices = @transform_0, window_bounds = array<i64: 128, 640>}, {transform_indices = @transform_1, window_bounds = array<i64: 640, 128>}, {transform_indices = @transform_2, window_bounds = array<i64: 128, 128>}, {transform_indices = @transform_3, window_bounds = array<i64: 128, 128>}]} {
    %c0_i32 = arith.constant 0 : i32
    %0 = arith.cmpi eq, %arg2, %c0_i32 : i32
    %1 = arith.extui %0 : i1 to i32
    %c0_i32_0 = arith.constant 0 : i32
    %2 = arith.cmpi ne, %1, %c0_i32_0 : i32
    scf.if %2 {
      %cst_10 = arith.constant 0.000000e+00 : f32
      %12 = vector.broadcast %cst_10 : f32 to vector<128x128xf32>
      %c0_11 = arith.constant 0 : index
      %c0_12 = arith.constant 0 : index
      %13 = vector.load %arg7[%c0_11, %c0_12] : memref<128x128xf32, #tpu.memory_space<vmem>>, vector<128x128xf32>
      tpu.vector_store %arg7[%c0_11, %c0_12], %12 {strides = array<i32>} : memref<128x128xf32, #tpu.memory_space<vmem>>, vector<128x128xf32>,
    } else {
    }
    %c0 = arith.constant 0 : index
    %c0_1 = arith.constant 0 : index
    %3 = vector.load %arg3[%c0, %c0_1] : memref<128x640xbf16, #tpu.memory_space<vmem>>, vector<128x640xbf16>
    %c0_2 = arith.constant 0 : index
    %c0_3 = arith.constant 0 : index
    %4 = vector.load %arg7[%c0_2, %c0_3] : memref<128x128xf32, #tpu.memory_space<vmem>>, vector<128x128xf32>
    %c0_4 = arith.constant 0 : index
    %c0_5 = arith.constant 0 : index
    %5 = vector.load %arg4[%c0_4, %c0_5] : memref<640x128xbf16, #tpu.memory_space<vmem>>, vector<640x128xbf16>
    %cst = arith.constant dense<0.000000e+00> : vector<128x128xf32>
    %6 = tpu.matmul %3, %5, %cst {dimension_numbers = #tpu.dot_dimension_numbers<[1], [0], [0], [1], [0, 0, 1, 1], [], []>} : vector<128x640xbf16>, vector<640x128xbf16>, vector<128x128xf32> -> vector<128x128xf32>
    %7 = arith.addf %4, %6 : vector<128x128xf32>
    %c0_6 = arith.constant 0 : index
    %c0_7 = arith.constant 0 : index
    %8 = vector.load %arg7[%c0_6, %c0_7] : memref<128x128xf32, #tpu.memory_space<vmem>>, vector<128x128xf32>
    tpu.vector_store %arg7[%c0_6, %c0_7], %7 {strides = array<i32>} : memref<128x128xf32, #tpu.memory_space<vmem>>, vector<128x128xf32>,
    %c0_i32_8 = arith.constant 0 : i32
    %9 = arith.cmpi eq, %arg2, %c0_i32_8 : i32
    %10 = arith.extui %9 : i1 to i32
    %c0_i32_9 = arith.constant 0 : i32
    %11 = arith.cmpi ne, %10, %c0_i32_9 : i32
    scf.if %11 {
      %c0_10 = arith.constant 0 : index
      %c0_11 = arith.constant 0 : index
      %12 = vector.load %arg7[%c0_10, %c0_11] : memref<128x128xf32, #tpu.memory_space<vmem>>, vector<128x128xf32>
      %13 = arith.truncf %12 : vector<128x128xf32> to vector<128x128xbf16>
      %c0_12 = arith.constant 0 : index
      %c0_13 = arith.constant 0 : index
      %14 = vector.load %arg5[%c0_12, %c0_13] : memref<128x128xbf16, #tpu.memory_space<vmem>>, vector<128x128xbf16>
      tpu.vector_store %arg5[%c0_12, %c0_13], %13 {strides = array<i32>} : memref<128x128xbf16, #tpu.memory_space<vmem>>, vector<128x128xbf16>,
      %cst_14 = arith.constant dense<0.000000e+00> : vector<128xf32>
      %15 = vector.multi_reduction <add>, %12, %cst_14 [1] : vector<128x128xf32> to vector<128xf32>
      %16 = vector.shape_cast %15 : vector<128xf32> to vector<128x1xf32>
      %17 = arith.mulf %12, %12 : vector<128x128xf32>
      %cst_15 = arith.constant dense<0.000000e+00> : vector<128xf32>
      %18 = vector.multi_reduction <add>, %17, %cst_15 [1] : vector<128x128xf32> to vector<128xf32>
      %19 = vector.shape_cast %18 : vector<128xf32> to vector<128x1xf32>
      %20 = tpu.iota {dimensions = array<i32: 1>} : vector<128x128xi32>
      %c0_i32_16 = arith.constant 0 : i32
      %21 = vector.broadcast %c0_i32_16 : i32 to vector<128x128xi32>
      %22 = arith.cmpi eq, %20, %21 : vector<128x128xi32>
      %c1_i32 = arith.constant 1 : i32
      %23 = vector.broadcast %c1_i32 : i32 to vector<128x128xi32>
      %24 = arith.cmpi eq, %20, %23 : vector<128x128xi32>
      %cst_17 = arith.constant 0.000000e+00 : f32
      %25 = vector.shape_cast %19 : vector<128x1xf32> to vector<128x1xf32>
      %26 = vector.broadcast %25 : vector<128x1xf32> to vector<128x128xf32>
      %27 = vector.broadcast %cst_17 : f32 to vector<128x128xf32>
      %28 = arith.select %24, %26, %27 : vector<128x128xi1>, vector<128x128xf32>
      %29 = vector.shape_cast %16 : vector<128x1xf32> to vector<128x1xf32>
      %30 = vector.broadcast %29 : vector<128x1xf32> to vector<128x128xf32>
      %31 = arith.select %22, %30, %28 : vector<128x128xi1>, vector<128x128xf32>
      %c0_18 = arith.constant 0 : index
      %c0_19 = arith.constant 0 : index
      %32 = vector.load %arg6[%c0_18, %c0_19] : memref<128x128xf32, #tpu.memory_space<vmem>>, vector<128x128xf32>
      tpu.vector_store %arg6[%c0_18, %c0_19], %31 {strides = array<i32>} : memref<128x128xf32, #tpu.memory_space<vmem>>, vector<128x128xf32>,
    } else {
    }
    return
  }
  func.func @transform_0(%arg0: i32, %arg1: i32, %arg2: i32) -> (i32, i32) {
    %c0_i32 = arith.constant 0 : i32
    %c0_i32_0 = arith.constant 0 : i32
    return %arg0, %c0_i32 : i32, i32
  }
  func.func @transform_1(%arg0: i32, %arg1: i32, %arg2: i32) -> (i32, i32) {
    %c0_i32 = arith.constant 0 : i32
    return %arg2, %arg1 : i32, i32
  }
  func.func @transform_2(%arg0: i32, %arg1: i32, %arg2: i32) -> (i32, i32) {
    %c0_i32 = arith.constant 0 : i32
    return %arg0, %arg1 : i32, i32
  }
  func.func @transform_3(%arg0: i32, %arg1: i32, %arg2: i32) -> (i32, i32) {
    %c0_i32 = arith.constant 0 : i32
    return %arg0, %arg1 : i32, i32
  }
}

module attributes {stable_mosaic.version = 11 : i64} {
  func.func @_matmul_stats_kernel(%arg0: i32, %arg1: i32, %arg2: i32, %arg3: memref<64x384xbf16, #tpu.memory_space<vmem>>, %arg4: memref<384x256xbf16, #tpu.memory_space<vmem>>, %arg5: memref<64x256xbf16, #tpu.memory_space<vmem>>, %arg6: memref<64x128xf32, #tpu.memory_space<vmem>>, %arg7: memref<64x256xf32, #tpu.memory_space<vmem>>) attributes {dimension_semantics = [#tpu.dimension_semantics<parallel>, #tpu.dimension_semantics<parallel>, #tpu.dimension_semantics<arbitrary>], iteration_bounds = array<i64: 1, 2, 1>, scalar_prefetch = 0 : i64, scratch_operands = 1 : i64, tpu.core_type = #tpu.core_type<tc>, window_params = [{transform_indices = @transform_0, window_bounds = array<i64: 64, 384>}, {transform_indices = @transform_1, window_bounds = array<i64: 384, 256>}, {transform_indices = @transform_2, window_bounds = array<i64: 64, 256>}, {transform_indices = @transform_3, window_bounds = array<i64: 64, 128>}]} {
    %c0_i32 = arith.constant 0 : i32
    %0 = arith.cmpi eq, %arg2, %c0_i32 : i32
    %1 = arith.extui %0 : i1 to i32
    %c0_i32_0 = arith.constant 0 : i32
    %2 = arith.cmpi ne, %1, %c0_i32_0 : i32
    scf.if %2 {
      %cst_10 = arith.constant 0.000000e+00 : f32
      %12 = vector.broadcast %cst_10 : f32 to vector<64x256xf32>
      %c0_11 = arith.constant 0 : index
      %c0_12 = arith.constant 0 : index
      %13 = vector.load %arg7[%c0_11, %c0_12] : memref<64x256xf32, #tpu.memory_space<vmem>>, vector<64x256xf32>
      tpu.vector_store %arg7[%c0_11, %c0_12], %12 {strides = array<i32>} : memref<64x256xf32, #tpu.memory_space<vmem>>, vector<64x256xf32>,
    } else {
    }
    %c0 = arith.constant 0 : index
    %c0_1 = arith.constant 0 : index
    %3 = vector.load %arg3[%c0, %c0_1] : memref<64x384xbf16, #tpu.memory_space<vmem>>, vector<64x384xbf16>
    %c0_2 = arith.constant 0 : index
    %c0_3 = arith.constant 0 : index
    %4 = vector.load %arg7[%c0_2, %c0_3] : memref<64x256xf32, #tpu.memory_space<vmem>>, vector<64x256xf32>
    %c0_4 = arith.constant 0 : index
    %c0_5 = arith.constant 0 : index
    %5 = vector.load %arg4[%c0_4, %c0_5] : memref<384x256xbf16, #tpu.memory_space<vmem>>, vector<384x256xbf16>
    %cst = arith.constant dense<0.000000e+00> : vector<64x256xf32>
    %6 = tpu.matmul %3, %5, %cst {dimension_numbers = #tpu.dot_dimension_numbers<[1], [0], [0], [1], [0, 0, 1, 1], [], []>} : vector<64x384xbf16>, vector<384x256xbf16>, vector<64x256xf32> -> vector<64x256xf32>
    %7 = arith.addf %4, %6 : vector<64x256xf32>
    %c0_6 = arith.constant 0 : index
    %c0_7 = arith.constant 0 : index
    %8 = vector.load %arg7[%c0_6, %c0_7] : memref<64x256xf32, #tpu.memory_space<vmem>>, vector<64x256xf32>
    tpu.vector_store %arg7[%c0_6, %c0_7], %7 {strides = array<i32>} : memref<64x256xf32, #tpu.memory_space<vmem>>, vector<64x256xf32>,
    %c0_i32_8 = arith.constant 0 : i32
    %9 = arith.cmpi eq, %arg2, %c0_i32_8 : i32
    %10 = arith.extui %9 : i1 to i32
    %c0_i32_9 = arith.constant 0 : i32
    %11 = arith.cmpi ne, %10, %c0_i32_9 : i32
    scf.if %11 {
      %c0_10 = arith.constant 0 : index
      %c0_11 = arith.constant 0 : index
      %12 = vector.load %arg7[%c0_10, %c0_11] : memref<64x256xf32, #tpu.memory_space<vmem>>, vector<64x256xf32>
      %13 = arith.truncf %12 : vector<64x256xf32> to vector<64x256xbf16>
      %c0_12 = arith.constant 0 : index
      %c0_13 = arith.constant 0 : index
      %14 = vector.load %arg5[%c0_12, %c0_13] : memref<64x256xbf16, #tpu.memory_space<vmem>>, vector<64x256xbf16>
      tpu.vector_store %arg5[%c0_12, %c0_13], %13 {strides = array<i32>} : memref<64x256xbf16, #tpu.memory_space<vmem>>, vector<64x256xbf16>,
      %cst_14 = arith.constant dense<0.000000e+00> : vector<64xf32>
      %15 = vector.multi_reduction <add>, %12, %cst_14 [1] : vector<64x256xf32> to vector<64xf32>
      %16 = vector.shape_cast %15 : vector<64xf32> to vector<64x1xf32>
      %17 = arith.mulf %12, %12 : vector<64x256xf32>
      %cst_15 = arith.constant dense<0.000000e+00> : vector<64xf32>
      %18 = vector.multi_reduction <add>, %17, %cst_15 [1] : vector<64x256xf32> to vector<64xf32>
      %19 = vector.shape_cast %18 : vector<64xf32> to vector<64x1xf32>
      %20 = tpu.iota {dimensions = array<i32: 1>} : vector<64x128xi32>
      %c0_i32_16 = arith.constant 0 : i32
      %21 = vector.broadcast %c0_i32_16 : i32 to vector<64x128xi32>
      %22 = arith.cmpi eq, %20, %21 : vector<64x128xi32>
      %c1_i32 = arith.constant 1 : i32
      %23 = vector.broadcast %c1_i32 : i32 to vector<64x128xi32>
      %24 = arith.cmpi eq, %20, %23 : vector<64x128xi32>
      %cst_17 = arith.constant 0.000000e+00 : f32
      %25 = vector.shape_cast %19 : vector<64x1xf32> to vector<64x1xf32>
      %26 = vector.broadcast %25 : vector<64x1xf32> to vector<64x128xf32>
      %27 = vector.broadcast %cst_17 : f32 to vector<64x128xf32>
      %28 = arith.select %24, %26, %27 : vector<64x128xi1>, vector<64x128xf32>
      %29 = vector.shape_cast %16 : vector<64x1xf32> to vector<64x1xf32>
      %30 = vector.broadcast %29 : vector<64x1xf32> to vector<64x128xf32>
      %31 = arith.select %22, %30, %28 : vector<64x128xi1>, vector<64x128xf32>
      %c0_18 = arith.constant 0 : index
      %c0_19 = arith.constant 0 : index
      %32 = vector.load %arg6[%c0_18, %c0_19] : memref<64x128xf32, #tpu.memory_space<vmem>>, vector<64x128xf32>
      tpu.vector_store %arg6[%c0_18, %c0_19], %31 {strides = array<i32>} : memref<64x128xf32, #tpu.memory_space<vmem>>, vector<64x128xf32>,
    } else {
    }
    return
  }
  func.func @transform_0(%arg0: i32, %arg1: i32, %arg2: i32) -> (i32, i32) {
    %c0_i32 = arith.constant 0 : i32
    %c0_i32_0 = arith.constant 0 : i32
    return %arg0, %c0_i32 : i32, i32
  }
  func.func @transform_1(%arg0: i32, %arg1: i32, %arg2: i32) -> (i32, i32) {
    %c0_i32 = arith.constant 0 : i32
    return %arg2, %arg1 : i32, i32
  }
  func.func @transform_2(%arg0: i32, %arg1: i32, %arg2: i32) -> (i32, i32) {
    %c0_i32 = arith.constant 0 : i32
    return %arg0, %arg1 : i32, i32
  }
  func.func @transform_3(%arg0: i32, %arg1: i32, %arg2: i32) -> (i32, i32) {
    %c0_i32 = arith.constant 0 : i32
    return %arg0, %arg1 : i32, i32
  }
}

module attributes {stable_mosaic.version = 11 : i64} {
  func.func @_affine_relu_kernel(%arg0: i32, %arg1: memref<64x256xbf16, #tpu.memory_space<vmem>>, %arg2: memref<64x1xf32, #tpu.memory_space<vmem>>, %arg3: memref<64x1xf32, #tpu.memory_space<vmem>>, %arg4: memref<64x256xbf16, #tpu.memory_space<vmem>>) attributes {dimension_semantics = [#tpu.dimension_semantics<parallel>], iteration_bounds = array<i64: 2>, scalar_prefetch = 0 : i64, scratch_operands = 0 : i64, tpu.core_type = #tpu.core_type<tc>, window_params = [{transform_indices = @transform_0, window_bounds = array<i64: 64, 256>}, {pipeline_mode = #tpu.pipeline_mode<synchronous>, transform_indices = @transform_1, window_bounds = array<i64: 64, 1>}, {pipeline_mode = #tpu.pipeline_mode<synchronous>, transform_indices = @transform_2, window_bounds = array<i64: 64, 1>}, {transform_indices = @transform_3, window_bounds = array<i64: 64, 256>}]} {
    %c0 = arith.constant 0 : index
    %c0_0 = arith.constant 0 : index
    %0 = vector.load %arg1[%c0, %c0_0] : memref<64x256xbf16, #tpu.memory_space<vmem>>, vector<64x256xbf16>
    %1 = arith.extf %0 : vector<64x256xbf16> to vector<64x256xf32>
    %c0_1 = arith.constant 0 : index
    %c0_2 = arith.constant 0 : index
    %2 = vector.load %arg2[%c0_1, %c0_2] : memref<64x1xf32, #tpu.memory_space<vmem>>, vector<64x1xf32>
    %3 = vector.broadcast %2 : vector<64x1xf32> to vector<64x256xf32>
    %4 = arith.mulf %1, %3 : vector<64x256xf32>
    %c0_3 = arith.constant 0 : index
    %c0_4 = arith.constant 0 : index
    %5 = vector.load %arg3[%c0_3, %c0_4] : memref<64x1xf32, #tpu.memory_space<vmem>>, vector<64x1xf32>
    %6 = vector.broadcast %5 : vector<64x1xf32> to vector<64x256xf32>
    %7 = arith.addf %4, %6 : vector<64x256xf32>
    %cst = arith.constant 0.000000e+00 : f32
    %8 = vector.broadcast %cst : f32 to vector<64x256xf32>
    %9 = arith.maximumf %7, %8 : vector<64x256xf32>
    %10 = arith.truncf %9 : vector<64x256xf32> to vector<64x256xbf16>
    %c0_5 = arith.constant 0 : index
    %c0_6 = arith.constant 0 : index
    %11 = vector.load %arg4[%c0_5, %c0_6] : memref<64x256xbf16, #tpu.memory_space<vmem>>, vector<64x256xbf16>
    tpu.vector_store %arg4[%c0_5, %c0_6], %10 {strides = array<i32>} : memref<64x256xbf16, #tpu.memory_space<vmem>>, vector<64x256xbf16>,
    return
  }
  func.func @transform_0(%arg0: i32) -> (i32, i32) {
    %c0_i32 = arith.constant 0 : i32
    %c0_i32_0 = arith.constant 0 : i32
    return %c0_i32, %arg0 : i32, i32
  }
  func.func @transform_1(%arg0: i32) -> (i32, i32) {
    %c0_i32 = arith.constant 0 : i32
    %c0_i32_0 = arith.constant 0 : i32
    %c0_i32_1 = arith.constant 0 : i32
    return %c0_i32, %c0_i32_0 : i32, i32
  }
  func.func @transform_2(%arg0: i32) -> (i32, i32) {
    %c0_i32 = arith.constant 0 : i32
    %c0_i32_0 = arith.constant 0 : i32
    %c0_i32_1 = arith.constant 0 : i32
    return %c0_i32, %c0_i32_0 : i32, i32
  }
  func.func @transform_3(%arg0: i32) -> (i32, i32) {
    %c0_i32 = arith.constant 0 : i32
    %c0_i32_0 = arith.constant 0 : i32
    return %c0_i32, %arg0 : i32, i32
  }
}

module attributes {stable_mosaic.version = 11 : i64} {
  func.func @_matmul_bias_tanh_kernel(%arg0: i32, %arg1: i32, %arg2: i32, %arg3: memref<16x256xbf16, #tpu.memory_space<vmem>>, %arg4: memref<256x1024xbf16, #tpu.memory_space<vmem>>, %arg5: memref<16x1xf32, #tpu.memory_space<vmem>>, %arg6: memref<16x1024xf32, #tpu.memory_space<vmem>>, %arg7: memref<16x1024xf32, #tpu.memory_space<vmem>>) attributes {dimension_semantics = [#tpu.dimension_semantics<parallel>, #tpu.dimension_semantics<parallel>, #tpu.dimension_semantics<arbitrary>], iteration_bounds = array<i64: 1, 2, 1>, scalar_prefetch = 0 : i64, scratch_operands = 1 : i64, tpu.core_type = #tpu.core_type<tc>, window_params = [{transform_indices = @transform_0, window_bounds = array<i64: 16, 256>}, {transform_indices = @transform_1, window_bounds = array<i64: 256, 1024>}, {transform_indices = @transform_2, window_bounds = array<i64: 16, 1>}, {transform_indices = @transform_3, window_bounds = array<i64: 16, 1024>}]} {
    %c0_i32 = arith.constant 0 : i32
    %0 = arith.cmpi eq, %arg2, %c0_i32 : i32
    %1 = arith.extui %0 : i1 to i32
    %c0_i32_0 = arith.constant 0 : i32
    %2 = arith.cmpi ne, %1, %c0_i32_0 : i32
    scf.if %2 {
      %cst_10 = arith.constant 0.000000e+00 : f32
      %12 = vector.broadcast %cst_10 : f32 to vector<16x1024xf32>
      %c0_11 = arith.constant 0 : index
      %c0_12 = arith.constant 0 : index
      %13 = vector.load %arg7[%c0_11, %c0_12] : memref<16x1024xf32, #tpu.memory_space<vmem>>, vector<16x1024xf32>
      tpu.vector_store %arg7[%c0_11, %c0_12], %12 {strides = array<i32>} : memref<16x1024xf32, #tpu.memory_space<vmem>>, vector<16x1024xf32>,
    } else {
    }
    %c0 = arith.constant 0 : index
    %c0_1 = arith.constant 0 : index
    %3 = vector.load %arg3[%c0, %c0_1] : memref<16x256xbf16, #tpu.memory_space<vmem>>, vector<16x256xbf16>
    %c0_2 = arith.constant 0 : index
    %c0_3 = arith.constant 0 : index
    %4 = vector.load %arg7[%c0_2, %c0_3] : memref<16x1024xf32, #tpu.memory_space<vmem>>, vector<16x1024xf32>
    %c0_4 = arith.constant 0 : index
    %c0_5 = arith.constant 0 : index
    %5 = vector.load %arg4[%c0_4, %c0_5] : memref<256x1024xbf16, #tpu.memory_space<vmem>>, vector<256x1024xbf16>
    %cst = arith.constant dense<0.000000e+00> : vector<16x1024xf32>
    %6 = tpu.matmul %3, %5, %cst {dimension_numbers = #tpu.dot_dimension_numbers<[1], [0], [0], [1], [0, 0, 1, 1], [], []>} : vector<16x256xbf16>, vector<256x1024xbf16>, vector<16x1024xf32> -> vector<16x1024xf32>
    %7 = arith.addf %4, %6 : vector<16x1024xf32>
    %c0_6 = arith.constant 0 : index
    %c0_7 = arith.constant 0 : index
    %8 = vector.load %arg7[%c0_6, %c0_7] : memref<16x1024xf32, #tpu.memory_space<vmem>>, vector<16x1024xf32>
    tpu.vector_store %arg7[%c0_6, %c0_7], %7 {strides = array<i32>} : memref<16x1024xf32, #tpu.memory_space<vmem>>, vector<16x1024xf32>,
    %c0_i32_8 = arith.constant 0 : i32
    %9 = arith.cmpi eq, %arg2, %c0_i32_8 : i32
    %10 = arith.extui %9 : i1 to i32
    %c0_i32_9 = arith.constant 0 : i32
    %11 = arith.cmpi ne, %10, %c0_i32_9 : i32
    scf.if %11 {
      %c0_10 = arith.constant 0 : index
      %c0_11 = arith.constant 0 : index
      %12 = vector.load %arg7[%c0_10, %c0_11] : memref<16x1024xf32, #tpu.memory_space<vmem>>, vector<16x1024xf32>
      %c0_12 = arith.constant 0 : index
      %c0_13 = arith.constant 0 : index
      %13 = vector.load %arg5[%c0_12, %c0_13] : memref<16x1xf32, #tpu.memory_space<vmem>>, vector<16x1xf32>
      %14 = vector.broadcast %13 : vector<16x1xf32> to vector<16x1024xf32>
      %15 = arith.addf %12, %14 : vector<16x1024xf32>
      %16 = math.tanh %15 : vector<16x1024xf32>
      %c0_14 = arith.constant 0 : index
      %c0_15 = arith.constant 0 : index
      %17 = vector.load %arg6[%c0_14, %c0_15] : memref<16x1024xf32, #tpu.memory_space<vmem>>, vector<16x1024xf32>
      tpu.vector_store %arg6[%c0_14, %c0_15], %16 {strides = array<i32>} : memref<16x1024xf32, #tpu.memory_space<vmem>>, vector<16x1024xf32>,
    } else {
    }
    return
  }
  func.func @transform_0(%arg0: i32, %arg1: i32, %arg2: i32) -> (i32, i32) {
    %c0_i32 = arith.constant 0 : i32
    %c0_i32_0 = arith.constant 0 : i32
    return %arg0, %c0_i32 : i32, i32
  }
  func.func @transform_1(%arg0: i32, %arg1: i32, %arg2: i32) -> (i32, i32) {
    %c0_i32 = arith.constant 0 : i32
    return %arg2, %arg1 : i32, i32
  }
  func.func @transform_2(%arg0: i32, %arg1: i32, %arg2: i32) -> (i32, i32) {
    %c0_i32 = arith.constant 0 : i32
    %c0_i32_0 = arith.constant 0 : i32
    return %arg0, %c0_i32 : i32, i32
  }
  func.func @transform_3(%arg0: i32, %arg1: i32, %arg2: i32) -> (i32, i32) {
    %c0_i32 = arith.constant 0 : i32
    return %arg0, %arg1 : i32, i32
  }
}

</mosaic_0001>

<bundles_post_ra>
// kernel: generator_forward.9
= control target key start
LH: loop header
LB: loop body
LE: loop exit
PB: predicated region body
PF: predicated region fallthrough
CT: control target
= control target key end

     0   :  { %s1129_s1 = inlined_call_operand.vmem [shape: bf16[256,128], index: 1, kind: input, shape index: {}]   ;;  %s1130_s0 = inlined_call_operand.vmem [shape: bf16[128,256], index: 0, kind: input, shape index: {}]   ;;  %s1131_s2 = inlined_call_operand.vmem [shape: bf16[128,128], index: 2, kind: output, shape index: {0}]   ;;  %s1132_s3 = inlined_call_operand.vmem [shape: f32[128,128], index: 3, kind: output, shape index: {1}]  }
   0x1   :  { %v833_v0 = vld [vmem:[%s1129_s1 + $0x78] sm:$0xff]   ;;  %v835_v2 = vld [vmem:[%s1129_s1 + $0x70] sm:$0xff]   ;;  %v837_v4 = vld [vmem:[%s1129_s1 + $0x68] sm:$0xff]  }
   0x2   :  { %v834_v1 = vld [vmem:[%s1129_s1 + $0x38] sm:$0xff]   ;;  %753 = vmatprep.subr.bf16.mxu0 %v833_v0  ;;  %817 = vmatprep.subr.bf16.mxu1 %v833_v0  ;;  %v836_v3 = vld [vmem:[%s1129_s1 + $0x30] sm:$0xff]   ;;  %v838_v5 = vld [vmem:[%s1129_s1 + $0x28] sm:$0xff]  }
   0x3   :  { %754 = vmatpush3.bf16.msra.mxu0 %v834_v1  ;;  %825 = vmatpush3.bf16.msra.mxu1 %v834_v1  ;;  %v839_v6 = vld [vmem:[%s1129_s1 + $0x60] sm:$0xff]   ;;  %v841_v8 = vld [vmem:[%s1129_s1 + $0x58] sm:$0xff]   ;;  %v843_v10 = vld [vmem:[%s1129_s1 + $0x50] sm:$0xff]  }
   0x4   :  { %755 = vmatprep.subr.bf16.mxu0 %v835_v2  ;;  %818 = vmatprep.subr.bf16.mxu1 %v835_v2  ;;  %v840_v7 = vld [vmem:[%s1129_s1 + $0x20] sm:$0xff]   ;;  %v842_v9 = vld [vmem:[%s1129_s1 + $0x18] sm:$0xff]   ;;  %v844_v13 = vld [vmem:[%s1129_s1 + $0x10] sm:$0xff]  }
   0x5   :  { %v851_v11 = vld [vmem:[%s1130_s0 + $0x4] ss:$8 sps:$4 sm:$0xff]   ;;  %v849_v18 = vld [vmem:[%s1130_s0] ss:$8 sps:$4 sm:$0xff]   ;;  %v855_v20 = vld [vmem:[%s1130_s0 + $0x14] ss:$8 sps:$4 sm:$0xff]  }
   0x6   :  { %v854_v12 = vld [vmem:[%s1130_s0 + $0x44] ss:$8 sps:$4 sm:$0xff]   ;;  %306 = vmatprep.mubr.bf16.mxu0 %v851_v11  ;;  %v852_v19 = vld [vmem:[%s1130_s0 + $0x40] ss:$8 sps:$4 sm:$0xff]   ;;  %v858_v21 = vld [vmem:[%s1130_s0 + $0x54] ss:$8 sps:$4 sm:$0xff]  }
   0x7   :  { %756 = vmatpush3.bf16.msra.mxu0 %v836_v3  ;;  %826 = vmatpush3.bf16.msra.mxu1 %v836_v3  ;;  %v845_v14 = vld [vmem:[%s1129_s1 + $0x48] sm:$0xff]   ;;  %v847_v16 = vld [vmem:[%s1129_s1 + $0x40] sm:$0xff]   ;;  %v857_v22 = vld [vmem:[%s1130_s0 + $0x10] ss:$8 sps:$4 sm:$0xff]  }
   0x8   :  { %757 = vmatprep.subr.bf16.mxu0 %v837_v4  ;;  %819 = vmatprep.subr.bf16.mxu1 %v837_v4  ;;  %v846_v15 = vld [vmem:[%s1129_s1 + $0x8] sm:$0xff]   ;;  %v848_v17 = vld [vmem:[%s1129_s1] sm:$0xff]   ;;  %v860_v23 = vld [vmem:[%s1130_s0 + $0x50] ss:$8 sps:$4 sm:$0xff]  }
   0x9   :  { %338 = vmatprep.mubr.bf16.mxu1 %v854_v12  ;;  %v861_v24 = vld [vmem:[%s1130_s0 + $0x24] ss:$8 sps:$4 sm:$0xff]   ;;  %v863_v26 = vld [vmem:[%s1130_s0 + $0x20] ss:$8 sps:$4 sm:$0xff]   ;;  %v867_v28 = vld [vmem:[%s1130_s0 + $0x34] ss:$8 sps:$4 sm:$0xff]  }
   0xa   :  { %v864_v25 = vld [vmem:[%s1130_s0 + $0x64] ss:$8 sps:$4 sm:$0xff]   ;;  %v866_v27 = vld [vmem:[%s1130_s0 + $0x60] ss:$8 sps:$4 sm:$0xff]   ;;  %v870_v29 = vld [vmem:[%s1130_s0 + $0x74] ss:$8 sps:$4 sm:$0xff]  }
   0xb   :  { %758 = vmatpush3.bf16.msra.mxu0 %v838_v5  ;;  %827 = vmatpush3.bf16.msra.mxu1 %v838_v5  ;;  %v869_v30 = vld [vmem:[%s1130_s0 + $0x30] ss:$8 sps:$4 sm:$0xff]  }
   0xc   :  { %759 = vmatprep.subr.bf16.mxu0 %v839_v6  ;;  %820 = vmatprep.subr.bf16.mxu1 %v839_v6  ;;  %v872_v31 = vld [vmem:[%s1130_s0 + $0x70] ss:$8 sps:$4 sm:$0xff]  }
   0xf   :  { %760 = vmatpush3.bf16.msra.mxu0 %v840_v7  ;;  %828 = vmatpush3.bf16.msra.mxu1 %v840_v7 }
  0x10   :  { %761 = vmatprep.subr.bf16.mxu0 %v841_v8  ;;  %821 = vmatprep.subr.bf16.mxu1 %v841_v8 }
  0x13   :  { %762 = vmatpush3.bf16.msra.mxu0 %v842_v9  ;;  %829 = vmatpush3.bf16.msra.mxu1 %v842_v9 }
  0x14   :  { %763 = vmatprep.subr.bf16.mxu0 %v843_v10  ;;  %822 = vmatprep.subr.bf16.mxu1 %v843_v10 }
  0x17   :  { %764 = vmatpush3.bf16.msra.mxu0 %v844_v13  ;;  %830 = vmatpush3.bf16.msra.mxu1 %v844_v13 }
  0x18   :  { %765 = vmatprep.subr.bf16.mxu0 %v845_v14  ;;  %823 = vmatprep.subr.bf16.mxu1 %v845_v14 }
  0x1b   :  { %766 = vmatpush3.bf16.msra.mxu0 %v846_v15  ;;  %831 = vmatpush3.bf16.msra.mxu1 %v846_v15 }
  0x1c   :  { %767 = vmatprep.subr.bf16.mxu0 %v847_v16  ;;  %824 = vmatprep.subr.bf16.mxu1 %v847_v16 }
  0x1f   :  { %768 = vmatpush3.bf16.msra.mxu0 %v848_v17  ;;  %832 = vmatpush3.bf16.msra.mxu1 %v848_v17 }
  0x22   :  { %307 = vmatmul.mubr.bf16.vlgmr.msra.gmra.mxu0 %v849_v18  ;;  %339 = vmatmul.mubr.bf16.vlgmr.msra.gmra.mxu1 %v852_v19 }
  0x23   :  { %314 = vmatprep.mubr.bf16.mxu0 %v855_v20  ;;  %346 = vmatprep.mubr.bf16.mxu1 %v858_v21 }
  0x2a   :  { %315 = vmatmul.mubr.bf16.gmra.mxu0 %v857_v22  ;;  %347 = vmatmul.mubr.bf16.gmra.mxu1 %v860_v23 }
  0x2b   :  { %322 = vmatprep.mubr.bf16.mxu0 %v861_v24  ;;  %354 = vmatprep.mubr.bf16.mxu1 %v864_v25 }
  0x32   :  { %323 = vmatmul.mubr.bf16.gmra.mxu0 %v863_v26  ;;  %355 = vmatmul.mubr.bf16.gmra.mxu1 %v866_v27 }
  0x33   :  { %330 = vmatprep.mubr.bf16.mxu0 %v867_v28  ;;  %362 = vmatprep.mubr.bf16.mxu1 %v870_v29 }
  0x3a   :  { %331 = vmatmul.mubr.bf16.gmra.mxu0 %v869_v30  ;;  %363 = vmatmul.mubr.bf16.gmra.mxu1 %v872_v31 }
  0xe2   :  { %v769_v32 = vpop.f32.mrf.mxu0  ;;  %v793_v33 = vpop.f32.mrf.mxu1 }
  0xe4   :  { %v770_v34 = vpop.f32.mrf.mxu0  ;;  %v794_v35 = vpop.f32.mrf.mxu1 }
  0xe5   :  { %v771_v36 = vadd.f32 %v770_v34, %v769_v32  ;;  %v795_v41 = vadd.f32 %v794_v35, %v793_v33 }
  0xe6   :  { %v772_v37 = vpop.f32.mrf.mxu0  ;;  %v796_v38 = vpop.f32.mrf.mxu1 }
  0xe7   :  { %502 = vadd.xlane.f32.xlu0 %v771_v36  ;;  %v534_v50 = vmul.f32 %v771_v36, %v771_v36  ;;  %v542_v59 = vmul.f32 %v795_v41, %v795_v41 }
  0xe8   :  { %v773_v39 = vpop.f32.mrf.mxu0  ;;  %v797_v40 = vpop.f32.mrf.mxu1 }
  0xe9   :  { %v774_v42 = vadd.f32 %v773_v39, %v772_v37  ;;  %v798_v43 = vadd.f32 %v797_v40, %v796_v38  ;;  %v582_v40 = vlaneseq }
  0xea   :  { %v775_v44 = vpop.f32.mrf.mxu0  ;;  %v799_v45 = vpop.f32.mrf.mxu1 }
  0xeb   :  { %v709_v46 = vpack.c.bf16 %v774_v42, %v771_v36  ;;  %v729_v47 = vpack.c.bf16 %v798_v43, %v795_v41  ;;  %504 = vadd.xlane.f32.xlu1 %v774_v42  ;;  %518 = vadd.xlane.f32.xlu0 %v795_v41  ;;  %v543_v58 = vmul.f32 %v798_v43, %v798_v43 }
  0xec   :  { %v776_v48 = vpop.f32.mrf.mxu0  ;;  %v800_v49 = vpop.f32.mrf.mxu1  ;;  %v535_v4 = vmul.f32 %v774_v42, %v774_v42  ;;  %v1013_v42 = vand.u32 127, %v582_v40 }
  0xed   :  { %710 = vst [vmem:[%s1131_s2] sm:$0xff] %v709_v46   ;;  %749 = vst [vmem:[%s1131_s2 + $0x20] sm:$0xff] %v729_v47   ;;  %v777_v53 = vadd.f32 %v776_v48, %v775_v44  ;;  %v801_v54 = vadd.f32 %v800_v49, %v799_v45 }
  0xee   :  { %v778_v51 = vpop.f32.mrf.mxu0  ;;  %v802_v52 = vpop.f32.mrf.mxu1  ;;  %vm585_vm0 = vcmp.eq.s32.totalorder %v1013_v42, 1  ;;  %vm584_vm1 = vcmp.eq.s32.totalorder %v1013_v42, 0 }
  0xef   :  { %520 = vadd.xlane.f32.xlu1 %v798_v43  ;;  %550 = vadd.xlane.f32.xlu0 %v534_v50  ;;  %v536_v3 = vmul.f32 %v777_v53, %v777_v53  ;;  %v544_v26 = vmul.f32 %v801_v54, %v801_v54 }
  0xf0   :  { %v779_v55 = vpop.f32.mrf.mxu0  ;;  %v803_v56 = vpop.f32.mrf.mxu1 }
  0xf1   :  { %v780_v57 = vadd.f32 %v779_v55, %v778_v51  ;;  %v804_v60 = vadd.f32 %v803_v56, %v802_v52 }
  0xf2   :  { %v781_v61 = vpop.f32.mrf.mxu0  ;;  %v805_v62 = vpop.f32.mrf.mxu1 }
  0xf3   :  { %v714_v63 = vpack.c.bf16 %v780_v57, %v777_v53  ;;  %568 = vadd.xlane.f32.xlu1 %v543_v58  ;;  %566 = vadd.xlane.f32.xlu0 %v542_v59  ;;  %v734_v0 = vpack.c.bf16 %v804_v60, %v801_v54  ;;  %v537_v25 = vmul.f32 %v780_v57, %v780_v57 }
  0xf4   :  { %v782_v1 = vpop.f32.mrf.mxu0  ;;  %v806_v2 = vpop.f32.mrf.mxu1  ;;  %v545_v31 = vmul.f32 %v804_v60, %v804_v60 }
  0xf5   :  { %746 = vst [vmem:[%s1131_s2 + $0x8] sm:$0xff] %v714_v63   ;;  %750 = vst [vmem:[%s1131_s2 + $0x28] sm:$0xff] %v734_v0   ;;  %v783_v7 = vadd.f32 %v782_v1, %v781_v61  ;;  %v807_v8 = vadd.f32 %v806_v2, %v805_v62 }
  0xf6   :  { %v784_v5 = vpop.f32.mrf.mxu0  ;;  %v808_v6 = vpop.f32.mrf.mxu1 }
  0xf7   :  { %554 = vadd.xlane.f32.xlu1 %v536_v3  ;;  %552 = vadd.xlane.f32.xlu0 %v535_v4  ;;  %v538_v32 = vmul.f32 %v783_v7, %v783_v7  ;;  %v546_v34 = vmul.f32 %v807_v8, %v807_v8 }
  0xf8   :  { %v785_v9 = vpop.f32.mrf.mxu0  ;;  %v809_v10 = vpop.f32.mrf.mxu1 }
  0xf9   :  { %v786_v11 = vadd.f32 %v785_v9, %v784_v5  ;;  %v810_v12 = vadd.f32 %v809_v10, %v808_v6 }
  0xfa   :  { %v787_v13 = vpop.f32.mrf.mxu0  ;;  %v811_v14 = vpop.f32.mrf.mxu1 }
  0xfb   :  { %508 = vadd.xlane.f32.xlu1 %v780_v57  ;;  %506 = vadd.xlane.f32.xlu0 %v777_v53  ;;  %v719_v15 = vpack.c.bf16 %v786_v11, %v783_v7  ;;  %v739_v16 = vpack.c.bf16 %v810_v12, %v807_v8  ;;  %v539_v33 = vmul.f32 %v786_v11, %v786_v11 }
  0xfc   :  { %v788_v17 = vpop.f32.mrf.mxu0  ;;  %v812_v18 = vpop.f32.mrf.mxu1  ;;  %v547_v35 = vmul.f32 %v810_v12, %v810_v12 }
  0xfd   :  { %747 = vst [vmem:[%s1131_s2 + $0x10] sm:$0xff] %v719_v15   ;;  %751 = vst [vmem:[%s1131_s2 + $0x30] sm:$0xff] %v739_v16   ;;  %v789_v21 = vadd.f32 %v788_v17, %v787_v13  ;;  %v813_v22 = vadd.f32 %v812_v18, %v811_v14 }
  0xfe   :  { %v790_v19 = vpop.f32.mrf.mxu0  ;;  %v814_v20 = vpop.f32.mrf.mxu1 }
  0xff   :  { %524 = vadd.xlane.f32.xlu1 %v804_v60  ;;  %522 = vadd.xlane.f32.xlu0 %v801_v54  ;;  %v540_v36 = vmul.f32 %v789_v21, %v789_v21  ;;  %v548_v38 = vmul.f32 %v813_v22, %v813_v22 }
 0x100   :  { %v791_v23 = vpop.f32.mrf.mxu0  ;;  %v815_v24 = vpop.f32.mrf.mxu1 }
 0x101   :  { %v792_v27 = vadd.f32 %v791_v23, %v790_v19  ;;  %v816_v28 = vadd.f32 %v815_v24, %v814_v20 }
 0x103   :  { %556 = vadd.xlane.f32.xlu1 %v537_v25  ;;  %570 = vadd.xlane.f32.xlu0 %v544_v26  ;;  %v724_v29 = vpack.c.bf16 %v792_v27, %v789_v21  ;;  %v744_v30 = vpack.c.bf16 %v816_v28, %v813_v22  ;;  %v541_v37 = vmul.f32 %v792_v27, %v792_v27 }
 0x104   :  { %v549_v39 = vmul.f32 %v816_v28, %v816_v28 }
 0x105   :  { %748 = vst [vmem:[%s1131_s2 + $0x18] sm:$0xff] %v724_v29   ;;  %752 = vst [vmem:[%s1131_s2 + $0x38] sm:$0xff] %v744_v30  }
 0x107   :  { %572 = vadd.xlane.f32.xlu1 %v545_v31  ;;  %510 = vadd.xlane.f32.xlu0 %v783_v7 }
 0x10b   :  { %512 = vadd.xlane.f32.xlu1 %v786_v11  ;;  %526 = vadd.xlane.f32.xlu0 %v807_v8 }
 0x10f   :  { %528 = vadd.xlane.f32.xlu1 %v810_v12  ;;  %558 = vadd.xlane.f32.xlu0 %v538_v32 }
 0x113   :  { %560 = vadd.xlane.f32.xlu1 %v539_v33  ;;  %574 = vadd.xlane.f32.xlu0 %v546_v34 }
 0x117   :  { %576 = vadd.xlane.f32.xlu1 %v547_v35  ;;  %514 = vadd.xlane.f32.xlu0 %v789_v21 }
 0x11b   :  { %516 = vadd.xlane.f32.xlu1 %v792_v27  ;;  %562 = vadd.xlane.f32.xlu0 %v540_v36 }
 0x11f   :  { %564 = vadd.xlane.f32.xlu1 %v541_v37  ;;  %578 = vadd.xlane.f32.xlu0 %v548_v38 }
 0x123   :  { %580 = vadd.xlane.f32.xlu1 %v549_v39  ;;  %530 = vadd.xlane.f32.xlu0 %v813_v22 }
 0x127   :  { %532 = vadd.xlane.f32.xlu1 %v816_v28 }
 0x170   :  { %v503_v41 = vpop.xlane.xlu0 %502 }
 0x174   :  { %v505_v43 = vpop.xlane.xlu1 %504  ;;  %v519_v44 = vpop.xlane.xlu0 %518 }
 0x178   :  { %v521_v45 = vpop.xlane.xlu1 %520  ;;  %v551_v46 = vpop.xlane.xlu0 %550 }
 0x179   :  { %v586_v47 = vsel %vm585_vm0, %v551_v46, 0.0 }
 0x17a   :  { %v602_v48 = vsel %vm584_vm1, %v503_v41, %v586_v47 }
 0x17b   :  { %618 = vst [vmem:[%s1132_s3] sm:$0xff] %v602_v48 }
 0x17c   :  { %v569_v49 = vpop.xlane.xlu1 %568  ;;  %v567_v50 = vpop.xlane.xlu0 %566 }
 0x17d   :  { %v595_v51 = vsel %vm585_vm0, %v569_v49, 0.0  ;;  %v594_v52 = vsel %vm585_vm0, %v567_v50, 0.0 }
 0x17e   :  { %v611_v53 = vsel %vm584_vm1, %v521_v45, %v595_v51  ;;  %v610_v54 = vsel %vm584_vm1, %v519_v44, %v594_v52 }
 0x17f   :  { %627 = vst [vmem:[%s1132_s3 + $0x48] sm:$0xff] %v611_v53  ;;  %626 = vst [vmem:[%s1132_s3 + $0x40] sm:$0xff] %v610_v54 }
 0x180   :  { %v555_v55 = vpop.xlane.xlu1 %554  ;;  %v553_v56 = vpop.xlane.xlu0 %552 }
 0x181   :  { %v587_v57 = vsel %vm585_vm0, %v553_v56, 0.0  ;;  %v588_v59 = vsel %vm585_vm0, %v555_v55, 0.0 }
 0x182   :  { %v603_v58 = vsel %vm584_vm1, %v505_v43, %v587_v57 }
 0x183   :  { %619 = vst [vmem:[%s1132_s3 + $0x8] sm:$0xff] %v603_v58 }
 0x184   :  { %v509_v60 = vpop.xlane.xlu1 %508  ;;  %v507_v61 = vpop.xlane.xlu0 %506 }
 0x185   :  { %v604_v62 = vsel %vm584_vm1, %v507_v61, %v588_v59 }
 0x186   :  { %620 = vst [vmem:[%s1132_s3 + $0x10] sm:$0xff] %v604_v62 }
 0x188   :  { %v525_v63 = vpop.xlane.xlu1 %524  ;;  %v523_v0 = vpop.xlane.xlu0 %522 }
 0x18c   :  { %v557_v1 = vpop.xlane.xlu1 %556  ;;  %v571_v2 = vpop.xlane.xlu0 %570 }
 0x18d   :  { %v589_v3 = vsel %vm585_vm0, %v557_v1, 0.0  ;;  %v596_v4 = vsel %vm585_vm0, %v571_v2, 0.0 }
 0x18e   :  { %v605_v5 = vsel %vm584_vm1, %v509_v60, %v589_v3  ;;  %v612_v6 = vsel %vm584_vm1, %v523_v0, %v596_v4 }
 0x18f   :  { %621 = vst [vmem:[%s1132_s3 + $0x18] sm:$0xff] %v605_v5  ;;  %628 = vst [vmem:[%s1132_s3 + $0x50] sm:$0xff] %v612_v6 }
 0x190   :  { %v573_v7 = vpop.xlane.xlu1 %572  ;;  %v511_v8 = vpop.xlane.xlu0 %510 }
 0x191   :  { %v597_v9 = vsel %vm585_vm0, %v573_v7, 0.0 }
 0x192   :  { %v613_v10 = vsel %vm584_vm1, %v525_v63, %v597_v9 }
 0x193   :  { %629 = vst [vmem:[%s1132_s3 + $0x58] sm:$0xff] %v613_v10 }
 0x194   :  { %v513_v11 = vpop.xlane.xlu1 %512  ;;  %v527_v12 = vpop.xlane.xlu0 %526 }
 0x198   :  { %v529_v13 = vpop.xlane.xlu1 %528  ;;  %v559_v14 = vpop.xlane.xlu0 %558 }
 0x199   :  { %v590_v15 = vsel %vm585_vm0, %v559_v14, 0.0 }
 0x19a   :  { %v606_v16 = vsel %vm584_vm1, %v511_v8, %v590_v15 }
 0x19b   :  { %622 = vst [vmem:[%s1132_s3 + $0x20] sm:$0xff] %v606_v16 }
 0x19c   :  { %v561_v17 = vpop.xlane.xlu1 %560  ;;  %v575_v18 = vpop.xlane.xlu0 %574 }
 0x19d   :  { %v591_v19 = vsel %vm585_vm0, %v561_v17, 0.0  ;;  %v598_v20 = vsel %vm585_vm0, %v575_v18, 0.0 }
 0x19e   :  { %v607_v21 = vsel %vm584_vm1, %v513_v11, %v591_v19  ;;  %v614_v22 = vsel %vm584_vm1, %v527_v12, %v598_v20 }
 0x19f   :  { %623 = vst [vmem:[%s1132_s3 + $0x28] sm:$0xff] %v607_v21  ;;  %630 = vst [vmem:[%s1132_s3 + $0x60] sm:$0xff] %v614_v22 }
 0x1a0   :  { %v577_v23 = vpop.xlane.xlu1 %576  ;;  %v515_v24 = vpop.xlane.xlu0 %514 }
 0x1a1   :  { %v599_v25 = vsel %vm585_vm0, %v577_v23, 0.0 }
 0x1a2   :  { %v615_v26 = vsel %vm584_vm1, %v529_v13, %v599_v25 }
 0x1a3   :  { %631 = vst [vmem:[%s1132_s3 + $0x68] sm:$0xff] %v615_v26 }
 0x1a4   :  { %v517_v27 = vpop.xlane.xlu1 %516  ;;  %v563_v28 = vpop.xlane.xlu0 %562 }
 0x1a5   :  { %v592_v29 = vsel %vm585_vm0, %v563_v28, 0.0 }
 0x1a6   :  { %v608_v30 = vsel %vm584_vm1, %v515_v24, %v592_v29 }
 0x1a7   :  { %624 = vst [vmem:[%s1132_s3 + $0x30] sm:$0xff] %v608_v30 }
 0x1a8   :  { %v565_v31 = vpop.xlane.xlu1 %564  ;;  %v579_v32 = vpop.xlane.xlu0 %578 }
 0x1a9   :  { %v593_v33 = vsel %vm585_vm0, %v565_v31, 0.0  ;;  %v600_v35 = vsel %vm585_vm0, %v579_v32, 0.0 }
 0x1aa   :  { %v609_v34 = vsel %vm584_vm1, %v517_v27, %v593_v33 }
 0x1ab   :  { %625 = vst [vmem:[%s1132_s3 + $0x38] sm:$0xff] %v609_v34 }
 0x1ac   :  { %v581_v36 = vpop.xlane.xlu1 %580  ;;  %v531_v37 = vpop.xlane.xlu0 %530 }
 0x1ad   :  { %v616_v38 = vsel %vm584_vm1, %v531_v37, %v600_v35  ;;  %v601_v39 = vsel %vm585_vm0, %v581_v36, 0.0 }
 0x1ae   :  { %632 = vst [vmem:[%s1132_s3 + $0x70] sm:$0xff] %v616_v38 }
 0x1b0   :  { %v533_v40 = vpop.xlane.xlu1 %532 }
 0x1b1   :  { %v617_v41 = vsel %vm584_vm1, %v533_v40, %v601_v39 }
 0x1b2   :  { %633 = vst [vmem:[%s1132_s3 + $0x78] sm:$0xff] %v617_v41 }

// kernel: generator_forward.10
= control target key start
LH: loop header
LB: loop body
LE: loop exit
PB: predicated region body
PF: predicated region fallthrough
CT: control target
= control target key end

     0   :  { %v491_v0 = vmov 0   ;;  %s680_s1 = inlined_call_operand.vmem [shape: f32[128,1], index: 1, kind: input, shape index: {}]   ;;  %s681_s2 = inlined_call_operand.vmem [shape: f32[128,1], index: 2, kind: input, shape index: {}]   ;;  %s682_s0 = inlined_call_operand.vmem [shape: bf16[128,128], index: 0, kind: input, shape index: {}]   ;;  %s683_s3 = inlined_call_operand.vmem [shape: bf16[128,128], index: 3, kind: output, shape index: {}]  }
   0x1   :  { %490 = vset.pattern.permute.xlu1 %v491_v0  ;;  %489 = vset.pattern.permute.xlu0 %v491_v0  ;;  %v48_v1 = vld [vmem:[%s680_s1 + $0x10] sm:$0xff]  ;;  %v46_v2 = vld [vmem:[%s680_s1] sm:$0xff]  ;;  %v49_v3 = vld [vmem:[%s680_s1 + $0x18] sm:$0xff] }
   0x2   :  { %74 = vperm.xlu1 %490, %v48_v1   ;;  %64 = vperm.xlu0 %489, %v46_v2   ;;  %v47_v4 = vld [vmem:[%s680_s1 + $0x8] sm:$0xff]  ;;  %v50_v6 = vld [vmem:[%s680_s1 + $0x20] sm:$0xff]  ;;  %v53_v7 = vld [vmem:[%s680_s1 + $0x38] sm:$0xff] }
   0x3   :  { %v51_v5 = vld [vmem:[%s680_s1 + $0x28] sm:$0xff]  ;;  %v52_v8 = vld [vmem:[%s680_s1 + $0x30] sm:$0xff]  ;;  %v54_v10 = vld [vmem:[%s680_s1 + $0x40] sm:$0xff] }
   0x4   :  { %v55_v9 = vld [vmem:[%s680_s1 + $0x48] sm:$0xff]  ;;  %v57_v11 = vld [vmem:[%s680_s1 + $0x58] sm:$0xff]  ;;  %v56_v12 = vld [vmem:[%s680_s1 + $0x50] sm:$0xff] }
   0x5   :  { %v59_v13 = vld [vmem:[%s680_s1 + $0x68] sm:$0xff]  ;;  %v58_v14 = vld [vmem:[%s680_s1 + $0x60] sm:$0xff]  ;;  %v61_v15 = vld [vmem:[%s680_s1 + $0x78] sm:$0xff] }
   0x6   :  { %79 = vperm.xlu1 %490, %v49_v3   ;;  %69 = vperm.xlu0 %489, %v47_v4   ;;  %v60_v16 = vld [vmem:[%s680_s1 + $0x70] sm:$0xff]  ;;  %v159_v17 = vld [vmem:[%s681_s2 + $0x8] sm:$0xff]  ;;  %v158_v18 = vld [vmem:[%s681_s2] sm:$0xff] }
   0x7   :  { %v161_v19 = vld [vmem:[%s681_s2 + $0x18] sm:$0xff]  ;;  %v160_v20 = vld [vmem:[%s681_s2 + $0x10] sm:$0xff]  ;;  %v163_v21 = vld [vmem:[%s681_s2 + $0x28] sm:$0xff] }
   0x8   :  { %v162_v22 = vld [vmem:[%s681_s2 + $0x20] sm:$0xff]  ;;  %v165_v23 = vld [vmem:[%s681_s2 + $0x38] sm:$0xff]  ;;  %v164_v24 = vld [vmem:[%s681_s2 + $0x30] sm:$0xff] }
   0x9   :  { %v167_v25 = vld [vmem:[%s681_s2 + $0x48] sm:$0xff]  ;;  %v166_v26 = vld [vmem:[%s681_s2 + $0x40] sm:$0xff]  ;;  %v169_v27 = vld [vmem:[%s681_s2 + $0x58] sm:$0xff] }
   0xa   :  { %89 = vperm.xlu1 %490, %v51_v5   ;;  %84 = vperm.xlu0 %489, %v50_v6   ;;  %v168_v28 = vld [vmem:[%s681_s2 + $0x50] sm:$0xff]  ;;  %v171_v29 = vld [vmem:[%s681_s2 + $0x68] sm:$0xff]  ;;  %v170_v30 = vld [vmem:[%s681_s2 + $0x60] sm:$0xff] }
   0xb   :  { %v173_v31 = vld [vmem:[%s681_s2 + $0x78] sm:$0xff]  ;;  %v172_v32 = vld [vmem:[%s681_s2 + $0x70] sm:$0xff]  ;;  %v403_v45 = vld [vmem:[%s682_s0] sm:$0xff]  }
   0xc   :  { %v404_v48 = vunpack.c.l.bf16 %v403_v45  ;;  %v405_v49 = vunpack.c.h.bf16 %v403_v45  ;;  %v474_v50 = vld [vmem:[%s682_s0 + $0x8] sm:$0xff]   ;;  %v475_v57 = vld [vmem:[%s682_s0 + $0x10] sm:$0xff]   ;;  %v476_v2 = vld [vmem:[%s682_s0 + $0x18] sm:$0xff]  }
   0xd   :  { %v408_v53 = vunpack.c.l.bf16 %v474_v50  ;;  %v409_v55 = vunpack.c.h.bf16 %v474_v50  ;;  %v413_v62 = vunpack.c.h.bf16 %v475_v57  ;;  %v412_v63 = vunpack.c.l.bf16 %v475_v57 }
   0xe   :  { %99 = vperm.xlu1 %490, %v53_v7   ;;  %94 = vperm.xlu0 %489, %v52_v8  }
  0x12   :  { %109 = vperm.xlu1 %490, %v55_v9   ;;  %104 = vperm.xlu0 %489, %v54_v10   ;;  %v417_v10 = vunpack.c.h.bf16 %v476_v2 }
  0x16   :  { %119 = vperm.xlu1 %490, %v57_v11   ;;  %114 = vperm.xlu0 %489, %v56_v12   ;;  %v416_v11 = vunpack.c.l.bf16 %v476_v2 }
  0x1a   :  { %129 = vperm.xlu1 %490, %v59_v13   ;;  %124 = vperm.xlu0 %489, %v58_v14   ;;  %v477_v14 = vld [vmem:[%s682_s0 + $0x20] sm:$0xff]  }
  0x1e   :  { %139 = vperm.xlu1 %490, %v61_v15   ;;  %134 = vperm.xlu0 %489, %v60_v16  }
  0x22   :  { %181 = vperm.xlu1 %490, %v159_v17   ;;  %176 = vperm.xlu0 %489, %v158_v18  }
  0x26   :  { %191 = vperm.xlu1 %490, %v161_v19   ;;  %186 = vperm.xlu0 %489, %v160_v20  }
  0x2a   :  { %201 = vperm.xlu1 %490, %v163_v21   ;;  %196 = vperm.xlu0 %489, %v162_v22   ;;  %v421_v22 = vunpack.c.h.bf16 %v477_v14 }
  0x2e   :  { %211 = vperm.xlu1 %490, %v165_v23   ;;  %206 = vperm.xlu0 %489, %v164_v24   ;;  %v420_v23 = vunpack.c.l.bf16 %v477_v14 }
  0x32   :  { %221 = vperm.xlu1 %490, %v167_v25   ;;  %216 = vperm.xlu0 %489, %v166_v26   ;;  %v478_v26 = vld [vmem:[%s682_s0 + $0x28] sm:$0xff]  }
  0x36   :  { %231 = vperm.xlu1 %490, %v169_v27   ;;  %226 = vperm.xlu0 %489, %v168_v28  }
  0x3a   :  { %241 = vperm.xlu1 %490, %v171_v29   ;;  %236 = vperm.xlu0 %489, %v170_v30  }
  0x3e   :  { %251 = vperm.xlu1 %490, %v173_v31   ;;  %246 = vperm.xlu0 %489, %v172_v32  }
  0x7d   :  { %v75_v33 = vpop.permute.xlu1 %74  ;;  %v65_v34 = vpop.permute.xlu0 %64 }
  0x7e   :  { %v142_v54 = vmul.f32 %v404_v48, %v65_v34  ;;  %v144_v0 = vmul.f32 %v408_v53, %v75_v33  ;;  %v425_v34 = vunpack.c.h.bf16 %v478_v26 }
  0x81   :  { %v80_v35 = vpop.permute.xlu1 %79  ;;  %v70_v36 = vpop.permute.xlu0 %69 }
  0x82   :  { %v143_v56 = vmul.f32 %v405_v49, %v70_v36  ;;  %v145_v1 = vmul.f32 %v409_v55, %v80_v35  ;;  %v424_v35 = vunpack.c.l.bf16 %v478_v26 }
  0x85   :  { %v90_v37 = vpop.permute.xlu1 %89  ;;  %v85_v38 = vpop.permute.xlu0 %84 }
  0x86   :  { %v147_v12 = vmul.f32 %v413_v62, %v90_v37  ;;  %v146_v13 = vmul.f32 %v412_v63, %v85_v38  ;;  %v479_v38 = vld [vmem:[%s682_s0 + $0x30] sm:$0xff]  }
  0x87   :  { %v428_v55 = vunpack.c.l.bf16 %v479_v38 }
  0x89   :  { %v100_v39 = vpop.permute.xlu1 %99  ;;  %v95_v40 = vpop.permute.xlu0 %94 }
  0x8a   :  { %v149_v24 = vmul.f32 %v417_v10, %v100_v39  ;;  %v148_v25 = vmul.f32 %v416_v11, %v95_v40 }
  0x8d   :  { %v608_v41 = vpop.permute.xlu1 %109  ;;  %v610_v42 = vpop.permute.xlu0 %104 }
  0x8e   :  { %v151_v36 = vmul.f32 %v421_v22, %v608_v41  ;;  %v150_v37 = vmul.f32 %v420_v23, %v610_v42 }
  0x91   :  { %v612_v43 = vpop.permute.xlu1 %119  ;;  %v614_v44 = vpop.permute.xlu0 %114 }
  0x92   :  { %v153_v41 = vmul.f32 %v425_v34, %v612_v43  ;;  %v152_v42 = vmul.f32 %v424_v35, %v614_v44 }
  0x95   :  { %v619_v46 = vpop.permute.xlu1 %129  ;;  %v621_v47 = vpop.permute.xlu0 %124 }
  0x96   :  { %v154_v44 = vmul.f32 %v428_v55, %v621_v47 }
  0x99   :  { %v626_v51 = vpop.permute.xlu1 %139  ;;  %v628_v52 = vpop.permute.xlu0 %134 }
  0x9d   :  { %v182_v58 = vpop.permute.xlu1 %181  ;;  %v177_v59 = vpop.permute.xlu0 %176 }
  0x9e   :  { %v255_v60 = vadd.f32 %v182_v58, %v143_v56  ;;  %v254_v61 = vadd.f32 %v177_v59, %v142_v54  ;;  %v429_v54 = vunpack.c.h.bf16 %v479_v38  ;;  %v480_v56 = vld [vmem:[%s682_s0 + $0x38] sm:$0xff]  }
  0xa0   :  { %v271_v3 = vmax.f32 %v255_v60, 0.0  ;;  %v270_v4 = vmax.f32 %v254_v61, 0.0  ;;  %v155_v43 = vmul.f32 %v429_v54, %v619_v46 }
  0xa1   :  { %v192_v5 = vpop.permute.xlu1 %191  ;;  %v187_v6 = vpop.permute.xlu0 %186 }
  0xa2   :  { %v437_v7 = vpack.c.bf16 %v271_v3, %v270_v4  ;;  %v257_v8 = vadd.f32 %v192_v5, %v145_v1  ;;  %v256_v9 = vadd.f32 %v187_v6, %v144_v0  ;;  %v433_v0 = vunpack.c.h.bf16 %v480_v56 }
  0xa3   :  { %v432_v1 = vunpack.c.l.bf16 %v480_v56 }
  0xa4   :  { %438 = vst [vmem:[%s683_s3] sm:$0xff] %v437_v7   ;;  %v273_v15 = vmax.f32 %v257_v8, 0.0  ;;  %v272_v16 = vmax.f32 %v256_v9, 0.0  ;;  %v157_v9 = vmul.f32 %v433_v0, %v626_v51 }
  0xa5   :  { %v202_v17 = vpop.permute.xlu1 %201  ;;  %v197_v18 = vpop.permute.xlu0 %196  ;;  %v156_v10 = vmul.f32 %v432_v1, %v628_v52 }
  0xa6   :  { %v442_v19 = vpack.c.bf16 %v273_v15, %v272_v16  ;;  %v259_v20 = vadd.f32 %v202_v17, %v147_v12  ;;  %v258_v21 = vadd.f32 %v197_v18, %v146_v13 }
  0xa8   :  { %481 = vst [vmem:[%s683_s3 + $0x8] sm:$0xff] %v442_v19   ;;  %v275_v27 = vmax.f32 %v259_v20, 0.0  ;;  %v274_v28 = vmax.f32 %v258_v21, 0.0 }
  0xa9   :  { %v212_v29 = vpop.permute.xlu1 %211  ;;  %v207_v30 = vpop.permute.xlu0 %206 }
  0xaa   :  { %v447_v31 = vpack.c.bf16 %v275_v27, %v274_v28  ;;  %v261_v32 = vadd.f32 %v212_v29, %v149_v24  ;;  %v260_v33 = vadd.f32 %v207_v30, %v148_v25 }
  0xac   :  { %482 = vst [vmem:[%s683_s3 + $0x10] sm:$0xff] %v447_v31   ;;  %v277_v39 = vmax.f32 %v261_v32, 0.0  ;;  %v276_v40 = vmax.f32 %v260_v33, 0.0 }
  0xad   :  { %v222_v45 = vpop.permute.xlu1 %221  ;;  %v217_v48 = vpop.permute.xlu0 %216 }
  0xae   :  { %v452_v49 = vpack.c.bf16 %v277_v39, %v276_v40  ;;  %v263_v50 = vadd.f32 %v222_v45, %v151_v36  ;;  %v262_v53 = vadd.f32 %v217_v48, %v150_v37 }
  0xb0   :  { %483 = vst [vmem:[%s683_s3 + $0x18] sm:$0xff] %v452_v49   ;;  %v279_v57 = vmax.f32 %v263_v50, 0.0  ;;  %v278_v58 = vmax.f32 %v262_v53, 0.0 }
  0xb1   :  { %v232_v59 = vpop.permute.xlu1 %231  ;;  %v227_v60 = vpop.permute.xlu0 %226 }
  0xb2   :  { %v457_v61 = vpack.c.bf16 %v279_v57, %v278_v58  ;;  %v265_v62 = vadd.f32 %v232_v59, %v153_v41  ;;  %v264_v63 = vadd.f32 %v227_v60, %v152_v42 }
  0xb4   :  { %484 = vst [vmem:[%s683_s3 + $0x20] sm:$0xff] %v457_v61   ;;  %v281_v2 = vmax.f32 %v265_v62, 0.0  ;;  %v280_v3 = vmax.f32 %v264_v63, 0.0 }
  0xb5   :  { %v242_v4 = vpop.permute.xlu1 %241  ;;  %v237_v5 = vpop.permute.xlu0 %236 }
  0xb6   :  { %v462_v6 = vpack.c.bf16 %v281_v2, %v280_v3  ;;  %v267_v7 = vadd.f32 %v242_v4, %v155_v43  ;;  %v266_v8 = vadd.f32 %v237_v5, %v154_v44 }
  0xb8   :  { %485 = vst [vmem:[%s683_s3 + $0x28] sm:$0xff] %v462_v6   ;;  %v283_v46 = vmax.f32 %v267_v7, 0.0  ;;  %v282_v47 = vmax.f32 %v266_v8, 0.0 }
  0xb9   :  { %v252_v11 = vpop.permute.xlu1 %251  ;;  %v247_v12 = vpop.permute.xlu0 %246 }
  0xba   :  { %v467_v13 = vpack.c.bf16 %v283_v46, %v282_v47  ;;  %v269_v14 = vadd.f32 %v252_v11, %v157_v9  ;;  %v268_v15 = vadd.f32 %v247_v12, %v156_v10 }
  0xbc   :  { %486 = vst [vmem:[%s683_s3 + $0x30] sm:$0xff] %v467_v13   ;;  %v285_v16 = vmax.f32 %v269_v14, 0.0  ;;  %v284_v17 = vmax.f32 %v268_v15, 0.0 }
  0xbe   :  { %v472_v51 = vpack.c.bf16 %v285_v16, %v284_v17 }
  0xc0   :  { %487 = vst [vmem:[%s683_s3 + $0x38] sm:$0xff] %v472_v51  }

// kernel: tile.38
= control target key start
LH: loop header
LB: loop body
LE: loop exit
PB: predicated region body
PF: predicated region fallthrough
CT: control target
= control target key end

     0   :  { %s22_s0 = inlined_call_operand.vmem [shape: f32[64], index: 0, kind: input, shape index: {}]   ;;  %s23_s1 = inlined_call_operand.vmem [shape: f32[4,64], index: 1, kind: output, shape index: {}]  }
   0x1   :  { %v4_v0 = vld [vmem:[%s22_s0] ss:$0 sm:$0xff] }
   0x2   :  { %5 = vst [vmem:[%s23_s1] sm:$0xf] %v4_v0 }

// kernel: generator_forward.12
= control target key start
LH: loop header
LB: loop body
LE: loop exit
PB: predicated region body
PF: predicated region fallthrough
CT: control target
= control target key end

     0   :  { %v963_v0 = vmov 0   ;;  %s1350_s1 = inlined_call_operand.vmem [shape: f32[256,1], index: 1, kind: input, shape index: {}]   ;;  %s1351_s2 = inlined_call_operand.vmem [shape: f32[256,1], index: 2, kind: input, shape index: {}]   ;;  %s1352_s0 = inlined_call_operand.vmem [shape: bf16[256,128], index: 0, kind: input, shape index: {}]   ;;  %s1353_s3 = inlined_call_operand.vmem [shape: bf16[256,128], index: 3, kind: output, shape index: {}]  }
   0x1   :  { %962 = vset.pattern.permute.xlu1 %v963_v0  ;;  %961 = vset.pattern.permute.xlu0 %v963_v0  ;;  %v80_v1 = vld [vmem:[%s1350_s1 + $0x10] sm:$0xff]  ;;  %v78_v2 = vld [vmem:[%s1350_s1] sm:$0xff]  ;;  %v81_v3 = vld [vmem:[%s1350_s1 + $0x18] sm:$0xff] }
   0x2   :  { %122 = vperm.xlu1 %962, %v80_v1   ;;  %112 = vperm.xlu0 %961, %v78_v2   ;;  %v79_v4 = vld [vmem:[%s1350_s1 + $0x8] sm:$0xff]  ;;  %v82_v6 = vld [vmem:[%s1350_s1 + $0x20] sm:$0xff]  ;;  %v85_v7 = vld [vmem:[%s1350_s1 + $0x38] sm:$0xff] }
   0x3   :  { %v83_v5 = vld [vmem:[%s1350_s1 + $0x28] sm:$0xff]  ;;  %v84_v8 = vld [vmem:[%s1350_s1 + $0x30] sm:$0xff]  ;;  %v86_v10 = vld [vmem:[%s1350_s1 + $0x40] sm:$0xff] }
   0x4   :  { %v87_v9 = vld [vmem:[%s1350_s1 + $0x48] sm:$0xff]  ;;  %v89_v11 = vld [vmem:[%s1350_s1 + $0x58] sm:$0xff]  ;;  %v88_v12 = vld [vmem:[%s1350_s1 + $0x50] sm:$0xff] }
   0x5   :  { %v91_v13 = vld [vmem:[%s1350_s1 + $0x68] sm:$0xff]  ;;  %v90_v14 = vld [vmem:[%s1350_s1 + $0x60] sm:$0xff]  ;;  %v93_v15 = vld [vmem:[%s1350_s1 + $0x78] sm:$0xff] }
   0x6   :  { %127 = vperm.xlu1 %962, %v81_v3   ;;  %117 = vperm.xlu0 %961, %v79_v4   ;;  %v92_v16 = vld [vmem:[%s1350_s1 + $0x70] sm:$0xff]  ;;  %v95_v17 = vld [vmem:[%s1350_s1 + $0x88] sm:$0xff]  ;;  %v94_v18 = vld [vmem:[%s1350_s1 + $0x80] sm:$0xff] }
   0x7   :  { %v97_v19 = vld [vmem:[%s1350_s1 + $0x98] sm:$0xff]  ;;  %v96_v20 = vld [vmem:[%s1350_s1 + $0x90] sm:$0xff]  ;;  %v99_v21 = vld [vmem:[%s1350_s1 + $0xa8] sm:$0xff] }
   0x8   :  { %v98_v22 = vld [vmem:[%s1350_s1 + $0xa0] sm:$0xff]  ;;  %v101_v23 = vld [vmem:[%s1350_s1 + $0xb8] sm:$0xff]  ;;  %v100_v24 = vld [vmem:[%s1350_s1 + $0xb0] sm:$0xff] }
   0x9   :  { %v103_v25 = vld [vmem:[%s1350_s1 + $0xc8] sm:$0xff]  ;;  %v102_v26 = vld [vmem:[%s1350_s1 + $0xc0] sm:$0xff]  ;;  %v105_v27 = vld [vmem:[%s1350_s1 + $0xd8] sm:$0xff] }
   0xa   :  { %137 = vperm.xlu1 %962, %v83_v5   ;;  %132 = vperm.xlu0 %961, %v82_v6   ;;  %v104_v28 = vld [vmem:[%s1350_s1 + $0xd0] sm:$0xff]  ;;  %v107_v29 = vld [vmem:[%s1350_s1 + $0xe8] sm:$0xff]  ;;  %v106_v30 = vld [vmem:[%s1350_s1 + $0xe0] sm:$0xff] }
   0xb   :  { %v109_v31 = vld [vmem:[%s1350_s1 + $0xf8] sm:$0xff]  ;;  %v108_v32 = vld [vmem:[%s1350_s1 + $0xf0] sm:$0xff]  ;;  %v303_v33 = vld [vmem:[%s1351_s2 + $0x8] sm:$0xff] }
   0xc   :  { %v302_v34 = vld [vmem:[%s1351_s2] sm:$0xff]  ;;  %v305_v35 = vld [vmem:[%s1351_s2 + $0x18] sm:$0xff]  ;;  %v304_v36 = vld [vmem:[%s1351_s2 + $0x10] sm:$0xff] }
   0xd   :  { %v307_v37 = vld [vmem:[%s1351_s2 + $0x28] sm:$0xff]  ;;  %v306_v38 = vld [vmem:[%s1351_s2 + $0x20] sm:$0xff]  ;;  %v309_v39 = vld [vmem:[%s1351_s2 + $0x38] sm:$0xff] }
   0xe   :  { %147 = vperm.xlu1 %962, %v85_v7   ;;  %142 = vperm.xlu0 %961, %v84_v8   ;;  %v308_v40 = vld [vmem:[%s1351_s2 + $0x30] sm:$0xff]  ;;  %v311_v41 = vld [vmem:[%s1351_s2 + $0x48] sm:$0xff]  ;;  %v310_v42 = vld [vmem:[%s1351_s2 + $0x40] sm:$0xff] }
   0xf   :  { %v313_v43 = vld [vmem:[%s1351_s2 + $0x58] sm:$0xff]  ;;  %v312_v44 = vld [vmem:[%s1351_s2 + $0x50] sm:$0xff]  ;;  %v315_v45 = vld [vmem:[%s1351_s2 + $0x68] sm:$0xff] }
  0x10   :  { %v314_v46 = vld [vmem:[%s1351_s2 + $0x60] sm:$0xff]  ;;  %v317_v47 = vld [vmem:[%s1351_s2 + $0x78] sm:$0xff]  ;;  %v316_v48 = vld [vmem:[%s1351_s2 + $0x70] sm:$0xff] }
  0x11   :  { %v319_v49 = vld [vmem:[%s1351_s2 + $0x88] sm:$0xff]  ;;  %v318_v50 = vld [vmem:[%s1351_s2 + $0x80] sm:$0xff]  ;;  %v321_v51 = vld [vmem:[%s1351_s2 + $0x98] sm:$0xff] }
  0x12   :  { %157 = vperm.xlu1 %962, %v87_v9   ;;  %152 = vperm.xlu0 %961, %v86_v10   ;;  %v320_v52 = vld [vmem:[%s1351_s2 + $0x90] sm:$0xff]  ;;  %v323_v53 = vld [vmem:[%s1351_s2 + $0xa8] sm:$0xff]  ;;  %v322_v54 = vld [vmem:[%s1351_s2 + $0xa0] sm:$0xff] }
  0x13   :  { %v325_v55 = vld [vmem:[%s1351_s2 + $0xb8] sm:$0xff]  ;;  %v324_v56 = vld [vmem:[%s1351_s2 + $0xb0] sm:$0xff]  ;;  %v327_v57 = vld [vmem:[%s1351_s2 + $0xc8] sm:$0xff] }
  0x14   :  { %v326_v58 = vld [vmem:[%s1351_s2 + $0xc0] sm:$0xff]  ;;  %v329_v59 = vld [vmem:[%s1351_s2 + $0xd8] sm:$0xff]  ;;  %v328_v60 = vld [vmem:[%s1351_s2 + $0xd0] sm:$0xff] }
  0x15   :  { %v331_v61 = vld [vmem:[%s1351_s2 + $0xe8] sm:$0xff]  ;;  %v330_v62 = vld [vmem:[%s1351_s2 + $0xe0] sm:$0xff]  ;;  %v333_v63 = vld [vmem:[%s1351_s2 + $0xf8] sm:$0xff] }
  0x16   :  { %167 = vperm.xlu1 %962, %v89_v11   ;;  %162 = vperm.xlu0 %961, %v88_v12   ;;  %v332_v0 = vld [vmem:[%s1351_s2 + $0xf0] sm:$0xff] }
  0x1a   :  { %177 = vperm.xlu1 %962, %v91_v13   ;;  %172 = vperm.xlu0 %961, %v90_v14  }
  0x1e   :  { %187 = vperm.xlu1 %962, %v93_v15   ;;  %182 = vperm.xlu0 %961, %v92_v16  }
  0x22   :  { %197 = vperm.xlu1 %962, %v95_v17   ;;  %192 = vperm.xlu0 %961, %v94_v18  }
  0x26   :  { %207 = vperm.xlu1 %962, %v97_v19   ;;  %202 = vperm.xlu0 %961, %v96_v20  }
  0x2a   :  { %217 = vperm.xlu1 %962, %v99_v21   ;;  %212 = vperm.xlu0 %961, %v98_v22  }
  0x2e   :  { %227 = vperm.xlu1 %962, %v101_v23   ;;  %222 = vperm.xlu0 %961, %v100_v24  }
  0x32   :  { %237 = vperm.xlu1 %962, %v103_v25   ;;  %232 = vperm.xlu0 %961, %v102_v26  }
  0x36   :  { %247 = vperm.xlu1 %962, %v105_v27   ;;  %242 = vperm.xlu0 %961, %v104_v28  }
  0x3a   :  { %257 = vperm.xlu1 %962, %v107_v29   ;;  %252 = vperm.xlu0 %961, %v106_v30   ;;  %v787_v29 = vld [vmem:[%s1352_s0] sm:$0xff]  }
  0x3e   :  { %267 = vperm.xlu1 %962, %v109_v31   ;;  %262 = vperm.xlu0 %961, %v108_v32   ;;  %v788_v32 = vunpack.c.l.bf16 %v787_v29 }
  0x42   :  { %341 = vperm.xlu1 %962, %v303_v33   ;;  %336 = vperm.xlu0 %961, %v302_v34   ;;  %v789_v33 = vunpack.c.h.bf16 %v787_v29  ;;  %v930_v34 = vld [vmem:[%s1352_s0 + $0x8] sm:$0xff]  }
  0x46   :  { %351 = vperm.xlu1 %962, %v305_v35   ;;  %346 = vperm.xlu0 %961, %v304_v36  }
  0x4a   :  { %361 = vperm.xlu1 %962, %v307_v37   ;;  %356 = vperm.xlu0 %961, %v306_v38   ;;  %v792_v37 = vunpack.c.l.bf16 %v930_v34 }
  0x4e   :  { %371 = vperm.xlu1 %962, %v309_v39   ;;  %366 = vperm.xlu0 %961, %v308_v40   ;;  %v793_v39 = vunpack.c.h.bf16 %v930_v34  ;;  %v934_v34 = vld [vmem:[%s1352_s0 + $0x28] sm:$0xff]  }
  0x52   :  { %381 = vperm.xlu1 %962, %v311_v41   ;;  %376 = vperm.xlu0 %961, %v310_v42   ;;  %v931_v41 = vld [vmem:[%s1352_s0 + $0x10] sm:$0xff]  }
  0x56   :  { %391 = vperm.xlu1 %962, %v313_v43   ;;  %386 = vperm.xlu0 %961, %v312_v44  }
  0x5a   :  { %401 = vperm.xlu1 %962, %v315_v45   ;;  %396 = vperm.xlu0 %961, %v314_v46   ;;  %v797_v46 = vunpack.c.h.bf16 %v931_v41 }
  0x5e   :  { %411 = vperm.xlu1 %962, %v317_v47   ;;  %406 = vperm.xlu0 %961, %v316_v48   ;;  %v796_v47 = vunpack.c.l.bf16 %v931_v41 }
  0x62   :  { %421 = vperm.xlu1 %962, %v319_v49   ;;  %416 = vperm.xlu0 %961, %v318_v50   ;;  %v932_v50 = vld [vmem:[%s1352_s0 + $0x18] sm:$0xff]  }
  0x66   :  { %431 = vperm.xlu1 %962, %v321_v51   ;;  %426 = vperm.xlu0 %961, %v320_v52  }
  0x6a   :  { %441 = vperm.xlu1 %962, %v323_v53   ;;  %436 = vperm.xlu0 %961, %v322_v54  }
  0x6e   :  { %451 = vperm.xlu1 %962, %v325_v55   ;;  %446 = vperm.xlu0 %961, %v324_v56  }
  0x72   :  { %461 = vperm.xlu1 %962, %v327_v57   ;;  %456 = vperm.xlu0 %961, %v326_v58   ;;  %v801_v58 = vunpack.c.h.bf16 %v932_v50 }
  0x76   :  { %471 = vperm.xlu1 %962, %v329_v59   ;;  %466 = vperm.xlu0 %961, %v328_v60   ;;  %v800_v59 = vunpack.c.l.bf16 %v932_v50 }
  0x7a   :  { %481 = vperm.xlu1 %962, %v331_v61   ;;  %476 = vperm.xlu0 %961, %v330_v62   ;;  %v933_v62 = vld [vmem:[%s1352_s0 + $0x20] sm:$0xff]  }
  0x7d   :  { %v123_v1 = vpop.permute.xlu1 %122  ;;  %v113_v2 = vpop.permute.xlu0 %112 }
  0x7e   :  { %491 = vperm.xlu1 %962, %v333_v63   ;;  %486 = vperm.xlu0 %961, %v332_v0   ;;  %v270_v38 = vmul.f32 %v788_v32, %v113_v2  ;;  %v272_v48 = vmul.f32 %v792_v37, %v123_v1  ;;  %v805_v32 = vunpack.c.h.bf16 %v933_v62 }
  0x81   :  { %v128_v3 = vpop.permute.xlu1 %127  ;;  %v118_v4 = vpop.permute.xlu0 %117 }
  0x82   :  { %v271_v40 = vmul.f32 %v789_v33, %v118_v4  ;;  %v273_v49 = vmul.f32 %v793_v39, %v128_v3  ;;  %v804_v33 = vunpack.c.l.bf16 %v933_v62 }
  0x85   :  { %v138_v5 = vpop.permute.xlu1 %137  ;;  %v133_v6 = vpop.permute.xlu0 %132 }
  0x86   :  { %v275_v60 = vmul.f32 %v797_v46, %v138_v5  ;;  %v274_v61 = vmul.f32 %v796_v47, %v133_v6  ;;  %v935_v46 = vld [vmem:[%s1352_s0 + $0x30] sm:$0xff]  }
  0x89   :  { %v1176_v7 = vpop.permute.xlu1 %147  ;;  %v1178_v8 = vpop.permute.xlu0 %142 }
  0x8a   :  { %v277_v5 = vmul.f32 %v801_v58, %v1176_v7  ;;  %v276_v6 = vmul.f32 %v800_v59, %v1178_v8 }
  0x8d   :  { %v1180_v9 = vpop.permute.xlu1 %157  ;;  %v1182_v10 = vpop.permute.xlu0 %152 }
  0x8e   :  { %v279_v7 = vmul.f32 %v805_v32, %v1180_v9  ;;  %v278_v8 = vmul.f32 %v804_v33, %v1182_v10 }
  0x91   :  { %v1184_v11 = vpop.permute.xlu1 %167  ;;  %v1186_v12 = vpop.permute.xlu0 %162 }
  0x95   :  { %v1188_v13 = vpop.permute.xlu1 %177  ;;  %v1190_v14 = vpop.permute.xlu0 %172 }
  0x99   :  { %v1192_v15 = vpop.permute.xlu1 %187  ;;  %v1194_v16 = vpop.permute.xlu0 %182 }
  0x9d   :  { %v1196_v17 = vpop.permute.xlu1 %197  ;;  %v1198_v18 = vpop.permute.xlu0 %192 }
  0xa1   :  { %v1200_v19 = vpop.permute.xlu1 %207  ;;  %v1202_v20 = vpop.permute.xlu0 %202 }
  0xa5   :  { %v1204_v21 = vpop.permute.xlu1 %217  ;;  %v1206_v22 = vpop.permute.xlu0 %212 }
  0xa9   :  { %v1208_v23 = vpop.permute.xlu1 %227  ;;  %v1210_v24 = vpop.permute.xlu0 %222 }
  0xad   :  { %v1212_v25 = vpop.permute.xlu1 %237  ;;  %v1214_v26 = vpop.permute.xlu0 %232 }
  0xb1   :  { %v1216_v27 = vpop.permute.xlu1 %247  ;;  %v1218_v28 = vpop.permute.xlu0 %242 }
  0xb5   :  { %v1223_v30 = vpop.permute.xlu1 %257  ;;  %v1225_v31 = vpop.permute.xlu0 %252 }
  0xb9   :  { %v1230_v35 = vpop.permute.xlu1 %267  ;;  %v1232_v36 = vpop.permute.xlu0 %262 }
  0xbd   :  { %v342_v42 = vpop.permute.xlu1 %341  ;;  %v337_v43 = vpop.permute.xlu0 %336 }
  0xbe   :  { %v495_v44 = vadd.f32 %v342_v42, %v271_v40  ;;  %v494_v45 = vadd.f32 %v337_v43, %v270_v38 }
  0xc0   :  { %v527_v51 = vmax.f32 %v495_v44, 0.0  ;;  %v526_v52 = vmax.f32 %v494_v45, 0.0  ;;  %v809_v44 = vunpack.c.h.bf16 %v934_v34  ;;  %v808_v45 = vunpack.c.l.bf16 %v934_v34 }
  0xc1   :  { %v352_v53 = vpop.permute.xlu1 %351  ;;  %v347_v54 = vpop.permute.xlu0 %346 }
  0xc2   :  { %v853_v55 = vpack.c.bf16 %v527_v51, %v526_v52  ;;  %v497_v56 = vadd.f32 %v352_v53, %v273_v49  ;;  %v496_v57 = vadd.f32 %v347_v54, %v272_v48  ;;  %v813_v54 = vunpack.c.h.bf16 %v935_v46 }
  0xc3   :  { %v281_v9 = vmul.f32 %v809_v44, %v1184_v11  ;;  %v280_v10 = vmul.f32 %v808_v45, %v1186_v12 }
  0xc4   :  { %854 = vst [vmem:[%s1353_s3] sm:$0xff] %v853_v55   ;;  %v529_v63 = vmax.f32 %v497_v56, 0.0  ;;  %v528_v0 = vmax.f32 %v496_v57, 0.0  ;;  %v812_v55 = vunpack.c.l.bf16 %v935_v46  ;;  %v936_v56 = vld [vmem:[%s1352_s0 + $0x38] sm:$0xff]   ;;  %v283_v11 = vmul.f32 %v813_v54, %v1188_v13  ;;  %v939_v46 = vld [vmem:[%s1352_s0 + $0x50] sm:$0xff]  }
  0xc5   :  { %v362_v1 = vpop.permute.xlu1 %361  ;;  %v357_v2 = vpop.permute.xlu0 %356  ;;  %v829_v54 = vunpack.c.h.bf16 %v939_v46 }
  0xc6   :  { %v858_v3 = vpack.c.bf16 %v529_v63, %v528_v0  ;;  %v499_v4 = vadd.f32 %v362_v1, %v275_v60  ;;  %v498_v29 = vadd.f32 %v357_v2, %v274_v61  ;;  %v817_v0 = vunpack.c.h.bf16 %v936_v56  ;;  %v937_v2 = vld [vmem:[%s1352_s0 + $0x40] sm:$0xff]  }
  0xc7   :  { %v816_v1 = vunpack.c.l.bf16 %v936_v56  ;;  %v282_v12 = vmul.f32 %v812_v55, %v1190_v14  ;;  %v821_v34 = vunpack.c.h.bf16 %v937_v2  ;;  %v828_v55 = vunpack.c.l.bf16 %v939_v46 }
  0xc8   :  { %945 = vst [vmem:[%s1353_s3 + $0x8] sm:$0xff] %v858_v3   ;;  %v531_v37 = vmax.f32 %v499_v4, 0.0  ;;  %v530_v38 = vmax.f32 %v498_v29, 0.0  ;;  %v285_v13 = vmul.f32 %v817_v0, %v1192_v15  ;;  %v941_v0 = vld [vmem:[%s1352_s0 + $0x60] sm:$0xff]  }
  0xc9   :  { %v372_v39 = vpop.permute.xlu1 %371  ;;  %v367_v40 = vpop.permute.xlu0 %366  ;;  %v284_v14 = vmul.f32 %v816_v1, %v1194_v16  ;;  %v287_v15 = vmul.f32 %v821_v34, %v1196_v17 }
  0xca   :  { %v863_v41 = vpack.c.bf16 %v531_v37, %v530_v38  ;;  %v501_v42 = vadd.f32 %v372_v39, %v277_v5  ;;  %v500_v43 = vadd.f32 %v367_v40, %v276_v6  ;;  %v820_v37 = vunpack.c.l.bf16 %v937_v2  ;;  %v938_v38 = vld [vmem:[%s1352_s0 + $0x48] sm:$0xff]  }
  0xcc   :  { %946 = vst [vmem:[%s1353_s3 + $0x10] sm:$0xff] %v863_v41   ;;  %v533_v47 = vmax.f32 %v501_v42, 0.0  ;;  %v532_v48 = vmax.f32 %v500_v43, 0.0  ;;  %v286_v16 = vmul.f32 %v820_v37, %v1198_v18 }
  0xcd   :  { %v382_v49 = vpop.permute.xlu1 %381  ;;  %v377_v50 = vpop.permute.xlu0 %376 }
  0xce   :  { %v868_v51 = vpack.c.bf16 %v533_v47, %v532_v48  ;;  %v503_v52 = vadd.f32 %v382_v49, %v279_v7  ;;  %v502_v53 = vadd.f32 %v377_v50, %v278_v8  ;;  %v825_v7 = vunpack.c.h.bf16 %v938_v38 }
  0xcf   :  { %v824_v8 = vunpack.c.l.bf16 %v938_v38 }
  0xd0   :  { %947 = vst [vmem:[%s1353_s3 + $0x18] sm:$0xff] %v868_v51   ;;  %v535_v57 = vmax.f32 %v503_v52, 0.0  ;;  %v534_v58 = vmax.f32 %v502_v53, 0.0  ;;  %v289_v17 = vmul.f32 %v825_v7, %v1200_v19  ;;  %v291_v19 = vmul.f32 %v829_v54, %v1204_v21 }
  0xd1   :  { %v392_v59 = vpop.permute.xlu1 %391  ;;  %v387_v60 = vpop.permute.xlu0 %386  ;;  %v288_v18 = vmul.f32 %v824_v8, %v1202_v20  ;;  %v290_v20 = vmul.f32 %v828_v55, %v1206_v22 }
  0xd2   :  { %v873_v61 = vpack.c.bf16 %v535_v57, %v534_v58  ;;  %v505_v62 = vadd.f32 %v392_v59, %v281_v9  ;;  %v504_v63 = vadd.f32 %v387_v60, %v280_v10  ;;  %v940_v9 = vld [vmem:[%s1352_s0 + $0x58] sm:$0xff]  }
  0xd4   :  { %948 = vst [vmem:[%s1353_s3 + $0x20] sm:$0xff] %v873_v61   ;;  %v537_v3 = vmax.f32 %v505_v62, 0.0  ;;  %v536_v4 = vmax.f32 %v504_v63, 0.0  ;;  %v833_v62 = vunpack.c.h.bf16 %v940_v9  ;;  %v832_v63 = vunpack.c.l.bf16 %v940_v9 }
  0xd5   :  { %v402_v29 = vpop.permute.xlu1 %401  ;;  %v397_v32 = vpop.permute.xlu0 %396 }
  0xd6   :  { %v878_v33 = vpack.c.bf16 %v537_v3, %v536_v4  ;;  %v507_v5 = vadd.f32 %v402_v29, %v283_v11  ;;  %v506_v6 = vadd.f32 %v397_v32, %v282_v12  ;;  %v837_v32 = vunpack.c.h.bf16 %v941_v0 }
  0xd7   :  { %v293_v21 = vmul.f32 %v833_v62, %v1208_v23  ;;  %v292_v22 = vmul.f32 %v832_v63, %v1210_v24 }
  0xd8   :  { %949 = vst [vmem:[%s1353_s3 + $0x28] sm:$0xff] %v878_v33   ;;  %v539_v39 = vmax.f32 %v507_v5, 0.0  ;;  %v538_v40 = vmax.f32 %v506_v6, 0.0  ;;  %v836_v33 = vunpack.c.l.bf16 %v941_v0  ;;  %v942_v5 = vld [vmem:[%s1352_s0 + $0x68] sm:$0xff]   ;;  %v295_v23 = vmul.f32 %v837_v32, %v1212_v25 }
  0xd9   :  { %v412_v41 = vpop.permute.xlu1 %411  ;;  %v407_v42 = vpop.permute.xlu0 %406 }
  0xda   :  { %v883_v43 = vpack.c.bf16 %v539_v39, %v538_v40  ;;  %v509_v44 = vadd.f32 %v412_v41, %v285_v13  ;;  %v508_v45 = vadd.f32 %v407_v42, %v284_v14  ;;  %v841_v40 = vunpack.c.h.bf16 %v942_v5  ;;  %v943_v42 = vld [vmem:[%s1352_s0 + $0x70] sm:$0xff]  }
  0xdb   :  { %v840_v41 = vunpack.c.l.bf16 %v942_v5  ;;  %v294_v24 = vmul.f32 %v836_v33, %v1214_v26  ;;  %v845_v46 = vunpack.c.h.bf16 %v943_v42 }
  0xdc   :  { %950 = vst [vmem:[%s1353_s3 + $0x30] sm:$0xff] %v883_v43   ;;  %v541_v47 = vmax.f32 %v509_v44, 0.0  ;;  %v540_v48 = vmax.f32 %v508_v45, 0.0  ;;  %v297_v25 = vmul.f32 %v841_v40, %v1216_v27 }
  0xdd   :  { %v422_v49 = vpop.permute.xlu1 %421  ;;  %v417_v50 = vpop.permute.xlu0 %416  ;;  %v296_v26 = vmul.f32 %v840_v41, %v1218_v28  ;;  %v299_v27 = vmul.f32 %v845_v46, %v1223_v30 }
  0xde   :  { %v888_v51 = vpack.c.bf16 %v541_v47, %v540_v48  ;;  %v511_v52 = vadd.f32 %v422_v49, %v287_v15  ;;  %v510_v53 = vadd.f32 %v417_v50, %v286_v16  ;;  %v844_v47 = vunpack.c.l.bf16 %v943_v42  ;;  %v944_v48 = vld [vmem:[%s1352_s0 + $0x78] sm:$0xff]  }
  0xe0   :  { %951 = vst [vmem:[%s1353_s3 + $0x38] sm:$0xff] %v888_v51   ;;  %v543_v10 = vmax.f32 %v511_v52, 0.0  ;;  %v542_v56 = vmax.f32 %v510_v53, 0.0  ;;  %v298_v28 = vmul.f32 %v844_v47, %v1225_v31 }
  0xe1   :  { %v432_v57 = vpop.permute.xlu1 %431  ;;  %v427_v58 = vpop.permute.xlu0 %426 }
  0xe2   :  { %v893_v59 = vpack.c.bf16 %v543_v10, %v542_v56  ;;  %v513_v60 = vadd.f32 %v432_v57, %v289_v17  ;;  %v512_v61 = vadd.f32 %v427_v58, %v288_v18  ;;  %v849_v17 = vunpack.c.h.bf16 %v944_v48 }
  0xe3   :  { %v848_v18 = vunpack.c.l.bf16 %v944_v48 }
  0xe4   :  { %952 = vst [vmem:[%s1353_s3 + $0x40] sm:$0xff] %v893_v59   ;;  %v545_v1 = vmax.f32 %v513_v60, 0.0  ;;  %v544_v11 = vmax.f32 %v512_v61, 0.0  ;;  %v301_v61 = vmul.f32 %v849_v17, %v1230_v35 }
  0xe5   :  { %v442_v12 = vpop.permute.xlu1 %441  ;;  %v437_v2 = vpop.permute.xlu0 %436  ;;  %v300_v62 = vmul.f32 %v848_v18, %v1232_v36 }
  0xe6   :  { %v898_v3 = vpack.c.bf16 %v545_v1, %v544_v11  ;;  %v515_v4 = vadd.f32 %v442_v12, %v291_v19  ;;  %v514_v29 = vadd.f32 %v437_v2, %v290_v20 }
  0xe8   :  { %953 = vst [vmem:[%s1353_s3 + $0x48] sm:$0xff] %v898_v3   ;;  %v547_v6 = vmax.f32 %v515_v4, 0.0  ;;  %v546_v34 = vmax.f32 %v514_v29, 0.0 }
  0xe9   :  { %v452_v37 = vpop.permute.xlu1 %451  ;;  %v447_v13 = vpop.permute.xlu0 %446 }
  0xea   :  { %v903_v14 = vpack.c.bf16 %v547_v6, %v546_v34  ;;  %v517_v38 = vadd.f32 %v452_v37, %v293_v21  ;;  %v516_v39 = vadd.f32 %v447_v13, %v292_v22 }
  0xec   :  { %954 = vst [vmem:[%s1353_s3 + $0x50] sm:$0xff] %v903_v14   ;;  %v549_v43 = vmax.f32 %v517_v38, 0.0  ;;  %v548_v44 = vmax.f32 %v516_v39, 0.0 }
  0xed   :  { %v462_v45 = vpop.permute.xlu1 %461  ;;  %v457_v7 = vpop.permute.xlu0 %456 }
  0xee   :  { %v908_v8 = vpack.c.bf16 %v549_v43, %v548_v44  ;;  %v519_v15 = vadd.f32 %v462_v45, %v295_v23  ;;  %v518_v16 = vadd.f32 %v457_v7, %v294_v24 }
  0xf0   :  { %955 = vst [vmem:[%s1353_s3 + $0x58] sm:$0xff] %v908_v8   ;;  %v551_v49 = vmax.f32 %v519_v15, 0.0  ;;  %v550_v50 = vmax.f32 %v518_v16, 0.0 }
  0xf1   :  { %v472_v51 = vpop.permute.xlu1 %471  ;;  %v467_v52 = vpop.permute.xlu0 %466 }
  0xf2   :  { %v913_v53 = vpack.c.bf16 %v551_v49, %v550_v50  ;;  %v521_v54 = vadd.f32 %v472_v51, %v297_v25  ;;  %v520_v55 = vadd.f32 %v467_v52, %v296_v26 }
  0xf4   :  { %956 = vst [vmem:[%s1353_s3 + $0x60] sm:$0xff] %v913_v53   ;;  %v553_v9 = vmax.f32 %v521_v54, 0.0  ;;  %v552_v10 = vmax.f32 %v520_v55, 0.0 }
  0xf5   :  { %v482_v56 = vpop.permute.xlu1 %481  ;;  %v477_v57 = vpop.permute.xlu0 %476 }
  0xf6   :  { %v918_v58 = vpack.c.bf16 %v553_v9, %v552_v10  ;;  %v523_v59 = vadd.f32 %v482_v56, %v299_v27  ;;  %v522_v60 = vadd.f32 %v477_v57, %v298_v28 }
  0xf8   :  { %957 = vst [vmem:[%s1353_s3 + $0x68] sm:$0xff] %v918_v58   ;;  %v555_v30 = vmax.f32 %v523_v59, 0.0  ;;  %v554_v31 = vmax.f32 %v522_v60, 0.0 }
  0xf9   :  { %v492_v63 = vpop.permute.xlu1 %491  ;;  %v487_v19 = vpop.permute.xlu0 %486 }
  0xfa   :  { %v923_v20 = vpack.c.bf16 %v555_v30, %v554_v31  ;;  %v525_v0 = vadd.f32 %v492_v63, %v301_v61  ;;  %v524_v1 = vadd.f32 %v487_v19, %v300_v62 }
  0xfc   :  { %958 = vst [vmem:[%s1353_s3 + $0x70] sm:$0xff] %v923_v20   ;;  %v557_v11 = vmax.f32 %v525_v0, 0.0  ;;  %v556_v12 = vmax.f32 %v524_v1, 0.0 }
  0xfe   :  { %v928_v35 = vpack.c.bf16 %v557_v11, %v556_v12 }
 0x100   :  { %959 = vst [vmem:[%s1353_s3 + $0x78] sm:$0xff] %v928_v35  }

// kernel: generator_forward.11
= control target key start
LH: loop header
LB: loop body
LE: loop exit
PB: predicated region body
PF: predicated region fallthrough
CT: control target
= control target key end

     0   :  { %s5562_s1 = inlined_call_operand.vmem [shape: bf16[1152,128], index: 1, kind: input, shape index: {}]   ;;  %s5563_s0 = inlined_call_operand.vmem [shape: bf16[256,1152], index: 0, kind: input, shape index: {}]   ;;  %s5564_s2 = inlined_call_operand.vmem [shape: bf16[256,128], index: 2, kind: output, shape index: {0}]   ;;  %s5565_s3 = inlined_call_operand.vmem [shape: f32[256,128], index: 3, kind: output, shape index: {1}]  }
   0x1   :  { %v3797_v0 = vld [vmem:[%s5562_s1 + $0x78] sm:$0xff]   ;;  %v3799_v2 = vld [vmem:[%s5562_s1 + $0x70] sm:$0xff]   ;;  %v3801_v4 = vld [vmem:[%s5562_s1 + $0x68] sm:$0xff]  }
   0x2   :  { %v3798_v1 = vld [vmem:[%s5562_s1 + $0x38] sm:$0xff]   ;;  %3261 = vmatprep.subr.bf16.mxu0 %v3797_v0  ;;  %3781 = vmatprep.subr.bf16.mxu1 %v3797_v0  ;;  %v3800_v3 = vld [vmem:[%s5562_s1 + $0x30] sm:$0xff]   ;;  %v3802_v5 = vld [vmem:[%s5562_s1 + $0x28] sm:$0xff]  }
   0x3   :  { %3262 = vmatpush3.bf16.msra.mxu0 %v3798_v1  ;;  %3789 = vmatpush3.bf16.msra.mxu1 %v3798_v1  ;;  %v3803_v6 = vld [vmem:[%s5562_s1 + $0x60] sm:$0xff]   ;;  %v3805_v8 = vld [vmem:[%s5562_s1 + $0x58] sm:$0xff]   ;;  %v3807_v10 = vld [vmem:[%s5562_s1 + $0x50] sm:$0xff]  }
   0x4   :  { %3263 = vmatprep.subr.bf16.mxu0 %v3799_v2  ;;  %3782 = vmatprep.subr.bf16.mxu1 %v3799_v2  ;;  %v3804_v7 = vld [vmem:[%s5562_s1 + $0x20] sm:$0xff]   ;;  %v3806_v9 = vld [vmem:[%s5562_s1 + $0x18] sm:$0xff]   ;;  %v3808_v13 = vld [vmem:[%s5562_s1 + $0x10] sm:$0xff]  }
   0x5   :  { %v3815_v11 = vld [vmem:[%s5563_s0 + $0x4] ss:$36 sps:$4 sm:$0xff]   ;;  %v3819_v18 = vld [vmem:[%s5562_s1 + $0xf8] sm:$0xff]   ;;  %v3823_v24 = vld [vmem:[%s5562_s1 + $0xf0] sm:$0xff]  }
   0x6   :  { %v3818_v12 = vld [vmem:[%s5563_s0 + $0x364] ss:$36 sps:$4 sm:$0xff]   ;;  %1586 = vmatprep.mubr.bf16.mxu0 %v3815_v11  ;;  %v3820_v21 = vld [vmem:[%s5562_s1 + $0x178] sm:$0xff]   ;;  %v3825_v25 = vld [vmem:[%s5563_s0 + $0x4c] ss:$36 sps:$4 sm:$0xff]  }
   0x7   :  { %3264 = vmatpush3.bf16.msra.mxu0 %v3800_v3  ;;  %3790 = vmatpush3.bf16.msra.mxu1 %v3800_v3  ;;  %v3809_v14 = vld [vmem:[%s5562_s1 + $0x48] sm:$0xff]   ;;  %v3811_v16 = vld [vmem:[%s5562_s1 + $0x40] sm:$0xff]   ;;  %v3821_v22 = vld [vmem:[%s5562_s1 + $0xb8] sm:$0xff]  }
   0x8   :  { %3265 = vmatprep.subr.bf16.mxu0 %v3801_v4  ;;  %3783 = vmatprep.subr.bf16.mxu1 %v3801_v4  ;;  %v3810_v15 = vld [vmem:[%s5562_s1 + $0x8] sm:$0xff]   ;;  %v3812_v17 = vld [vmem:[%s5562_s1] sm:$0xff]   ;;  %v3822_v23 = vld [vmem:[%s5562_s1 + $0x138] sm:$0xff]  }
   0x9   :  { %1682 = vmatprep.mubr.bf16.mxu1 %v3818_v12  ;;  %v3813_v19 = vld [vmem:[%s5563_s0] ss:$36 sps:$4 sm:$0xff]   ;;  %v3827_v26 = vld [vmem:[%s5563_s0 + $0x3ac] ss:$36 sps:$4 sm:$0xff]   ;;  %v3837_v35 = vld [vmem:[%s5563_s0 + $0x94] ss:$36 sps:$4 sm:$0xff]  }
   0xa   :  { %v3816_v20 = vld [vmem:[%s5563_s0 + $0x360] ss:$36 sps:$4 sm:$0xff]   ;;  %v3834_v27 = vld [vmem:[%s5562_s1 + $0x170] sm:$0xff]   ;;  %v3829_v30 = vld [vmem:[%s5563_s0 + $0x48] ss:$36 sps:$4 sm:$0xff]  }
   0xb   :  { %3266 = vmatpush3.bf16.msra.mxu0 %v3802_v5  ;;  %3791 = vmatpush3.bf16.msra.mxu1 %v3802_v5  ;;  %v3824_v28 = vld [vmem:[%s5562_s1 + $0xb0] sm:$0xff]   ;;  %v3830_v31 = vld [vmem:[%s5563_s0 + $0x3a8] ss:$36 sps:$4 sm:$0xff]   ;;  %v3833_v34 = vld [vmem:[%s5562_s1 + $0xe0] sm:$0xff]  }
   0xc   :  { %3267 = vmatprep.subr.bf16.mxu0 %v3803_v6  ;;  %3784 = vmatprep.subr.bf16.mxu1 %v3803_v6  ;;  %v3836_v29 = vld [vmem:[%s5562_s1 + $0x130] sm:$0xff]   ;;  %v3831_v32 = vld [vmem:[%s5562_s1 + $0xe8] sm:$0xff]   ;;  %v3835_v37 = vld [vmem:[%s5562_s1 + $0xa0] sm:$0xff]  }
   0xd   :  { %v3832_v33 = vld [vmem:[%s5562_s1 + $0xa8] sm:$0xff]   ;;  %v3839_v36 = vld [vmem:[%s5563_s0 + $0x3f4] ss:$36 sps:$4 sm:$0xff]   ;;  %v3847_v45 = vld [vmem:[%s5563_s0 + $0xdc] ss:$36 sps:$4 sm:$0xff]  }
   0xe   :  { %v3843_v38 = vld [vmem:[%s5562_s1 + $0xd8] sm:$0xff]   ;;  %v3841_v39 = vld [vmem:[%s5563_s0 + $0x90] ss:$36 sps:$4 sm:$0xff]   ;;  %v3854_v41 = vld [vmem:[%s5562_s1 + $0x168] sm:$0xff]  }
   0xf   :  { %3268 = vmatpush3.bf16.msra.mxu0 %v3804_v7  ;;  %3792 = vmatpush3.bf16.msra.mxu1 %v3804_v7  ;;  %v3842_v40 = vld [vmem:[%s5563_s0 + $0x3f0] ss:$36 sps:$4 sm:$0xff]   ;;  %v3844_v42 = vld [vmem:[%s5562_s1 + $0x98] sm:$0xff]   ;;  %v3856_v44 = vld [vmem:[%s5562_s1 + $0x128] sm:$0xff]  }
  0x10   :  { %3269 = vmatprep.subr.bf16.mxu0 %v3805_v8  ;;  %3785 = vmatprep.subr.bf16.mxu1 %v3805_v8  ;;  %v3845_v43 = vld [vmem:[%s5562_s1 + $0xd0] sm:$0xff]   ;;  %v3849_v46 = vld [vmem:[%s5563_s0 + $0x43c] ss:$36 sps:$4 sm:$0xff]   ;;  %v3853_v48 = vld [vmem:[%s5562_s1 + $0xc8] sm:$0xff]  }
  0x11   :  { %v3846_v47 = vld [vmem:[%s5562_s1 + $0x90] sm:$0xff]   ;;  %v3851_v49 = vld [vmem:[%s5563_s0 + $0xd8] ss:$36 sps:$4 sm:$0xff]   ;;  %v3865_v50 = vld [vmem:[%s5562_s1 + $0x160] sm:$0xff]  }
  0x12   :  { %v3866_v51 = vld [vmem:[%s5562_s1 + $0x120] sm:$0xff]   ;;  %v3852_v52 = vld [vmem:[%s5563_s0 + $0x438] ss:$36 sps:$4 sm:$0xff]   ;;  %v3855_v53 = vld [vmem:[%s5562_s1 + $0x88] sm:$0xff]  }
  0x13   :  { %3270 = vmatpush3.bf16.msra.mxu0 %v3806_v9  ;;  %3793 = vmatpush3.bf16.msra.mxu1 %v3806_v9  ;;  %v3857_v54 = vld [vmem:[%s5562_s1 + $0xc0] sm:$0xff]   ;;  %v3863_v56 = vld [vmem:[%s5563_s0 + $0xc] ss:$36 sps:$4 sm:$0xff]   ;;  %v3879_v58 = vld [vmem:[%s5562_s1 + $0x158] sm:$0xff]  }
  0x14   :  { %3271 = vmatprep.subr.bf16.mxu0 %v3807_v10  ;;  %3786 = vmatprep.subr.bf16.mxu1 %v3807_v10  ;;  %v3859_v55 = vld [vmem:[%s5563_s0 + $0x124] ss:$36 sps:$4 sm:$0xff]   ;;  %v3880_v59 = vld [vmem:[%s5562_s1 + $0x118] sm:$0xff]   ;;  %v3867_v62 = vld [vmem:[%s5563_s0 + $0x16c] ss:$36 sps:$4 sm:$0xff]  }
  0x15   :  { %v3858_v57 = vld [vmem:[%s5562_s1 + $0x80] sm:$0xff]   ;;  %v3861_v60 = vld [vmem:[%s5563_s0 + $0x8] ss:$36 sps:$4 sm:$0xff]   ;;  %v3869_v63 = vld [vmem:[%s5563_s0 + $0x54] ss:$36 sps:$4 sm:$0xff]  }
  0x16   :  { %v3864_v61 = vld [vmem:[%s5563_s0 + $0x120] ss:$36 sps:$4 sm:$0xff]   ;;  %v3887_v0 = vld [vmem:[%s5562_s1 + $0x150] sm:$0xff]   ;;  %v3871_v2 = vld [vmem:[%s5563_s0 + $0x168] ss:$36 sps:$4 sm:$0xff]  }
  0x17   :  { %3272 = vmatpush3.bf16.msra.mxu0 %v3808_v13  ;;  %3794 = vmatpush3.bf16.msra.mxu1 %v3808_v13  ;;  %v3888_v1 = vld [vmem:[%s5562_s1 + $0x110] sm:$0xff]   ;;  %v3875_v5 = vld [vmem:[%s5563_s0 + $0x9c] ss:$36 sps:$4 sm:$0xff]   ;;  %v3901_v6 = vld [vmem:[%s5562_s1 + $0x148] sm:$0xff]  }
  0x18   :  { %3273 = vmatprep.subr.bf16.mxu0 %v3809_v14  ;;  %3787 = vmatprep.subr.bf16.mxu1 %v3809_v14  ;;  %v3872_v3 = vld [vmem:[%s5563_s0 + $0x50] ss:$36 sps:$4 sm:$0xff]   ;;  %v3902_v7 = vld [vmem:[%s5562_s1 + $0x108] sm:$0xff]   ;;  %v3878_v9 = vld [vmem:[%s5563_s0 + $0x98] ss:$36 sps:$4 sm:$0xff]  }
  0x19   :  { %v3873_v4 = vld [vmem:[%s5563_s0 + $0x1b4] ss:$36 sps:$4 sm:$0xff]   ;;  %v3881_v11 = vld [vmem:[%s5563_s0 + $0x1fc] ss:$36 sps:$4 sm:$0xff]   ;;  %v3883_v12 = vld [vmem:[%s5563_s0 + $0xe4] ss:$36 sps:$4 sm:$0xff]  }
  0x1a   :  { %v3877_v8 = vld [vmem:[%s5563_s0 + $0x1b0] ss:$36 sps:$4 sm:$0xff]   ;;  %v3909_v10 = vld [vmem:[%s5562_s1 + $0x1f8] sm:$0xff]   ;;  %v3911_v14 = vld [vmem:[%s5562_s1 + $0x140] sm:$0xff]  }
  0x1b   :  { %3274 = vmatpush3.bf16.msra.mxu0 %v3810_v15  ;;  %3795 = vmatpush3.bf16.msra.mxu1 %v3810_v15  ;;  %v3910_v13 = vld [vmem:[%s5562_s1 + $0x1b8] sm:$0xff]   ;;  %v3912_v15 = vld [vmem:[%s5562_s1 + $0x100] sm:$0xff]  }
  0x1c   :  { %3275 = vmatprep.subr.bf16.mxu0 %v3811_v16  ;;  %3788 = vmatprep.subr.bf16.mxu1 %v3811_v16  ;;  %v3885_v16 = vld [vmem:[%s5563_s0 + $0x1f8] ss:$36 sps:$4 sm:$0xff]  }
  0x1f   :  { %3276 = vmatpush3.bf16.msra.mxu0 %v3812_v17  ;;  %3796 = vmatpush3.bf16.msra.mxu1 %v3812_v17  ;;  %v3886_v17 = vld [vmem:[%s5563_s0 + $0xe0] ss:$36 sps:$4 sm:$0xff]  }
  0x20   :  { %3373 = vmatprep.subr.bf16.mxu1 %v3819_v18  ;;  %3485 = vmatprep.subr.bf16.mxu0 %v3820_v21  ;;  %v3889_v18 = vld [vmem:[%s5563_s0 + $0x244] ss:$36 sps:$4 sm:$0xff]   ;;  %v4355_v21 = vld [vmem:[%s5562_s1 + $0x238] sm:$0xff]  }
  0x22   :  { %1587 = vmatmul.mubr.bf16.vlgmr.msra.gmra.mxu0 %v3813_v19  ;;  %1683 = vmatmul.mubr.bf16.vlgmr.msra.gmra.mxu1 %v3816_v20  ;;  %v3891_v19 = vld [vmem:[%s5563_s0 + $0x12c] ss:$36 sps:$4 sm:$0xff]  }
  0x23   :  { %3374 = vmatpush3.bf16.msra.mxu1 %v3821_v22  ;;  %3486 = vmatpush3.bf16.msra.mxu0 %v3822_v23  ;;  %v3925_v20 = vld [vmem:[%s5562_s1 + $0x1f0] sm:$0xff]   ;;  %v3893_v23 = vld [vmem:[%s5563_s0 + $0x240] ss:$36 sps:$4 sm:$0xff]  }
  0x24   :  { %3375 = vmatprep.subr.bf16.mxu1 %v3823_v24  ;;  %1594 = vmatprep.mubr.bf16.mxu0 %v3825_v25  ;;  %v3927_v22 = vld [vmem:[%s5562_s1 + $0x1b0] sm:$0xff]   ;;  %v3894_v24 = vld [vmem:[%s5563_s0 + $0x128] ss:$36 sps:$4 sm:$0xff]  }
  0x25   :  { %1690 = vmatprep.mubr.bf16.mxu1 %v3827_v26  ;;  %3487 = vmatprep.subr.bf16.mxu0 %v3834_v27  ;;  %v3895_v25 = vld [vmem:[%s5563_s0 + $0x28c] ss:$36 sps:$4 sm:$0xff]   ;;  %v3897_v27 = vld [vmem:[%s5563_s0 + $0x174] ss:$36 sps:$4 sm:$0xff]  }
  0x26   :  { %v3940_v26 = vld [vmem:[%s5562_s1 + $0x1e8] sm:$0xff]  }
  0x27   :  { %3376 = vmatpush3.bf16.msra.mxu1 %v3824_v28  ;;  %3488 = vmatpush3.bf16.msra.mxu0 %v3836_v29  ;;  %v3942_v28 = vld [vmem:[%s5562_s1 + $0x1a8] sm:$0xff]  }
  0x28   :  { %3377 = vmatprep.subr.bf16.mxu1 %v3831_v32  ;;  %3489 = vmatprep.subr.bf16.mxu0 %v3854_v41  ;;  %v3899_v29 = vld [vmem:[%s5563_s0 + $0x288] ss:$36 sps:$4 sm:$0xff]   ;;  %v3955_v32 = vld [vmem:[%s5562_s1 + $0x1e0] sm:$0xff]   ;;  %v3973_v41 = vld [vmem:[%s5562_s1 + $0x1d0] sm:$0xff]  }
  0x2a   :  { %1595 = vmatmul.mubr.bf16.gmra.mxu0 %v3829_v30  ;;  %1691 = vmatmul.mubr.bf16.gmra.mxu1 %v3830_v31  ;;  %v3900_v30 = vld [vmem:[%s5563_s0 + $0x170] ss:$36 sps:$4 sm:$0xff]  }
  0x2b   :  { %3378 = vmatpush3.bf16.msra.mxu1 %v3832_v33  ;;  %1602 = vmatprep.mubr.bf16.mxu0 %v3837_v35  ;;  %v3903_v31 = vld [vmem:[%s5563_s0 + $0x2d4] ss:$36 sps:$4 sm:$0xff]   ;;  %v3905_v33 = vld [vmem:[%s5563_s0 + $0x1bc] ss:$36 sps:$4 sm:$0xff]  }
  0x2c   :  { %3379 = vmatprep.subr.bf16.mxu1 %v3833_v34  ;;  %1698 = vmatprep.mubr.bf16.mxu1 %v3839_v36  ;;  %v3957_v34 = vld [vmem:[%s5562_s1 + $0x1a0] sm:$0xff]   ;;  %v3907_v35 = vld [vmem:[%s5563_s0 + $0x2d0] ss:$36 sps:$4 sm:$0xff]   ;;  %v3908_v36 = vld [vmem:[%s5563_s0 + $0x1b8] ss:$36 sps:$4 sm:$0xff]  }
  0x2d   :  { %3490 = vmatpush3.bf16.msra.mxu0 %v3856_v44  ;;  %v3974_v44 = vld [vmem:[%s5562_s1 + $0x190] sm:$0xff]  }
  0x2e   :  { %3491 = vmatprep.subr.bf16.mxu0 %v3865_v50  ;;  %v3984_v50 = vld [vmem:[%s5562_s1 + $0x180] sm:$0xff]  }
  0x2f   :  { %3380 = vmatpush3.bf16.msra.mxu1 %v3835_v37  ;;  %v3913_v37 = vld [vmem:[%s5563_s0 + $0x31c] ss:$36 sps:$4 sm:$0xff]  }
  0x30   :  { %3381 = vmatprep.subr.bf16.mxu1 %v3843_v38  ;;  %v3970_v38 = vld [vmem:[%s5562_s1 + $0x1d8] sm:$0xff]  }
  0x31   :  { %3492 = vmatpush3.bf16.msra.mxu0 %v3866_v51  ;;  %v3921_v51 = vld [vmem:[%s5563_s0 + $0x10] ss:$36 sps:$4 sm:$0xff]  }
  0x32   :  { %1603 = vmatmul.mubr.bf16.gmra.mxu0 %v3841_v39  ;;  %1699 = vmatmul.mubr.bf16.gmra.mxu1 %v3842_v40  ;;  %v3915_v39 = vld [vmem:[%s5563_s0 + $0x204] ss:$36 sps:$4 sm:$0xff]   ;;  %v3972_v40 = vld [vmem:[%s5562_s1 + $0x198] sm:$0xff]  }
  0x33   :  { %3382 = vmatpush3.bf16.msra.mxu1 %v3844_v42  ;;  %1610 = vmatprep.mubr.bf16.mxu0 %v3847_v45  ;;  %v3917_v42 = vld [vmem:[%s5563_s0 + $0x318] ss:$36 sps:$4 sm:$0xff]   ;;  %v3919_v45 = vld [vmem:[%s5563_s0 + $0x24c] ss:$36 sps:$4 sm:$0xff]  }
  0x34   :  { %3383 = vmatprep.subr.bf16.mxu1 %v3845_v43  ;;  %1706 = vmatprep.mubr.bf16.mxu1 %v3849_v46  ;;  %v3918_v43 = vld [vmem:[%s5563_s0 + $0x200] ss:$36 sps:$4 sm:$0xff]   ;;  %v3981_v46 = vld [vmem:[%s5562_s1 + $0x1c8] sm:$0xff]  }
  0x35   :  { %3493 = vmatprep.subr.bf16.mxu0 %v3879_v58  ;;  %v3933_v58 = vld [vmem:[%s5563_s0 + $0x58] ss:$36 sps:$4 sm:$0xff]  }
  0x36   :  { %3494 = vmatpush3.bf16.msra.mxu0 %v3880_v59  ;;  %v3934_v59 = vld [vmem:[%s5563_s0 + $0x2dc] ss:$36 sps:$4 sm:$0xff]  }
  0x37   :  { %3384 = vmatpush3.bf16.msra.mxu1 %v3846_v47  ;;  %3495 = vmatprep.subr.bf16.mxu0 %v3887_v0  ;;  %v3923_v47 = vld [vmem:[%s5563_s0 + $0x14] ss:$36 sps:$4 sm:$0xff]   ;;  %v3939_v0 = vld [vmem:[%s5563_s0 + $0xa0] ss:$36 sps:$4 sm:$0xff]  }
  0x38   :  { %3385 = vmatprep.subr.bf16.mxu1 %v3853_v48  ;;  %v3982_v48 = vld [vmem:[%s5562_s1 + $0x188] sm:$0xff]  }
  0x3a   :  { %1611 = vmatmul.mubr.bf16.gmra.mxu0 %v3851_v49  ;;  %1707 = vmatmul.mubr.bf16.gmra.mxu1 %v3852_v52  ;;  %v3983_v49 = vld [vmem:[%s5562_s1 + $0x1c0] sm:$0xff]   ;;  %v3924_v52 = vld [vmem:[%s5563_s0 + $0x248] ss:$36 sps:$4 sm:$0xff]  }
  0x3b   :  { %3386 = vmatpush3.bf16.msra.mxu1 %v3855_v53  ;;  %1618 = vmatprep.mubr.bf16.mxu0 %v3859_v55  ;;  %v3928_v53 = vld [vmem:[%s5563_s0 + $0x294] ss:$36 sps:$4 sm:$0xff]  }
  0x3c   :  { %3387 = vmatprep.subr.bf16.mxu1 %v3857_v54  ;;  %1747 = vmatprep.mubr.bf16.mxu1 %v3863_v56  ;;  %v3930_v54 = vld [vmem:[%s5563_s0 + $0x5c] ss:$36 sps:$4 sm:$0xff]   ;;  %v3941_v55 = vld [vmem:[%s5562_s1 + $0x230] sm:$0xff]   ;;  %v3956_v56 = vld [vmem:[%s5562_s1 + $0x228] sm:$0xff]  }
  0x3d   :  { %3496 = vmatpush3.bf16.msra.mxu0 %v3888_v1  ;;  %v3943_v1 = vld [vmem:[%s5563_s0 + $0x324] ss:$36 sps:$4 sm:$0xff]  }
  0x3e   :  { %3497 = vmatprep.subr.bf16.mxu0 %v3901_v6  ;;  %v4017_v6 = vld [vmem:[%s5562_s1 + $0x208] sm:$0xff]  }
  0x3f   :  { %3388 = vmatpush3.bf16.msra.mxu1 %v3858_v57  ;;  %v3932_v57 = vld [vmem:[%s5563_s0 + $0x290] ss:$36 sps:$4 sm:$0xff]  }
  0x40   :  { %3597 = vmatprep.subr.bf16.mxu1 %v3909_v10  ;;  %v3953_v10 = vld [vmem:[%s5563_s0 + $0x368] ss:$36 sps:$4 sm:$0xff]  }
  0x41   :  { %3498 = vmatpush3.bf16.msra.mxu0 %v3902_v7  ;;  %v3949_v7 = vld [vmem:[%s5563_s0 + $0x36c] ss:$36 sps:$4 sm:$0xff]  }
  0x42   :  { %1619 = vmatmul.mubr.bf16.gmra.mxu0 %v3864_v61  ;;  %1748 = vmatmul.mubr.bf16.vlgmr.msra.gmra.mxu1 %v3861_v60  ;;  %v3936_v60 = vld [vmem:[%s5563_s0 + $0xa4] ss:$36 sps:$4 sm:$0xff]  }
  0x43   :  { %1626 = vmatprep.mubr.bf16.mxu0 %v3867_v62  ;;  %1755 = vmatprep.mubr.bf16.mxu1 %v3869_v63  ;;  %v3971_v61 = vld [vmem:[%s5562_s1 + $0x220] sm:$0xff]   ;;  %v3991_v62 = vld [vmem:[%s5562_s1 + $0x218] sm:$0xff]  }
  0x44   :  { %3598 = vmatpush3.bf16.msra.mxu1 %v3910_v13  ;;  %3499 = vmatprep.subr.bf16.mxu0 %v3911_v14  ;;  %v3938_v63 = vld [vmem:[%s5563_s0 + $0x2d8] ss:$36 sps:$4 sm:$0xff]   ;;  %v3962_v14 = vld [vmem:[%s5563_s0 + $0x3b0] ss:$36 sps:$4 sm:$0xff]  }
  0x45   :  { %3500 = vmatpush3.bf16.msra.mxu0 %v3912_v15  ;;  %3599 = vmatprep.subr.bf16.mxu1 %v3925_v20  ;;  %v3960_v13 = vld [vmem:[%s5563_s0 + $0x17c] ss:$36 sps:$4 sm:$0xff]   ;;  %v3975_v20 = vld [vmem:[%s5563_s0 + $0x444] ss:$36 sps:$4 sm:$0xff]  }
  0x46   :  { %3733 = vmatprep.subr.bf16.mxu0 %v4355_v21  ;;  %v3963_v15 = vld [vmem:[%s5563_s0 + $0x178] ss:$36 sps:$4 sm:$0xff]  }
  0x48   :  { %3600 = vmatpush3.bf16.msra.mxu1 %v3927_v22  ;;  %v3979_v22 = vld [vmem:[%s5563_s0 + $0x440] ss:$36 sps:$4 sm:$0xff]  }
  0x49   :  { %3601 = vmatprep.subr.bf16.mxu1 %v3940_v26  ;;  %v3987_v26 = vld [vmem:[%s5563_s0 + $0x18] ss:$36 sps:$4 sm:$0xff]  }
  0x4a   :  { %1627 = vmatmul.mubr.bf16.gmra.mxu0 %v3871_v2  ;;  %1756 = vmatmul.mubr.bf16.gmra.mxu1 %v3872_v3  ;;  %v3945_v2 = vld [vmem:[%s5563_s0 + $0xec] ss:$36 sps:$4 sm:$0xff]  }
  0x4b   :  { %1634 = vmatprep.mubr.bf16.mxu0 %v3873_v4  ;;  %1763 = vmatprep.mubr.bf16.mxu1 %v3875_v5  ;;  %v4004_v3 = vld [vmem:[%s5562_s1 + $0x210] sm:$0xff]   ;;  %v3947_v4 = vld [vmem:[%s5563_s0 + $0x320] ss:$36 sps:$4 sm:$0xff]   ;;  %v3948_v5 = vld [vmem:[%s5563_s0 + $0xe8] ss:$36 sps:$4 sm:$0xff]  }
  0x4c   :  { %3602 = vmatpush3.bf16.msra.mxu1 %v3942_v28  ;;  %v3992_v28 = vld [vmem:[%s5563_s0 + $0x29c] ss:$36 sps:$4 sm:$0xff]  }
  0x4d   :  { %3603 = vmatprep.subr.bf16.mxu1 %v3955_v32  ;;  %v3998_v32 = vld [vmem:[%s5563_s0 + $0x2e4] ss:$36 sps:$4 sm:$0xff]  }
  0x50   :  { %3604 = vmatpush3.bf16.msra.mxu1 %v3957_v34  ;;  %v4002_v34 = vld [vmem:[%s5563_s0 + $0x2e0] ss:$36 sps:$4 sm:$0xff]  }
  0x51   :  { %3605 = vmatprep.subr.bf16.mxu1 %v3970_v38  ;;  %v4009_v38 = vld [vmem:[%s5563_s0 + $0x328] ss:$36 sps:$4 sm:$0xff]  }
  0x52   :  { %1635 = vmatmul.mubr.bf16.gmra.mxu0 %v3877_v8  ;;  %1764 = vmatmul.mubr.bf16.gmra.mxu1 %v3878_v9  ;;  %v3951_v8 = vld [vmem:[%s5563_s0 + $0x134] ss:$36 sps:$4 sm:$0xff]   ;;  %v4030_v9 = vld [vmem:[%s5562_s1 + $0x200] sm:$0xff]  }
  0x53   :  { %1642 = vmatprep.mubr.bf16.mxu0 %v3881_v11  ;;  %1771 = vmatprep.mubr.bf16.mxu1 %v3883_v12  ;;  %v3954_v11 = vld [vmem:[%s5563_s0 + $0x130] ss:$36 sps:$4 sm:$0xff]  }
  0x54   :  { %3606 = vmatpush3.bf16.msra.mxu1 %v3972_v40  ;;  %v3958_v12 = vld [vmem:[%s5563_s0 + $0x3b4] ss:$36 sps:$4 sm:$0xff]  }
  0x55   :  { %3607 = vmatprep.subr.bf16.mxu1 %v3973_v41  ;;  %v4011_v40 = vld [vmem:[%s5563_s0 + $0x374] ss:$36 sps:$4 sm:$0xff]   ;;  %v4013_v41 = vld [vmem:[%s5563_s0 + $0x13c] ss:$36 sps:$4 sm:$0xff]  }
  0x58   :  { %3608 = vmatpush3.bf16.msra.mxu1 %v3974_v44  ;;  %v4018_v44 = vld [vmem:[%s5563_s0 + $0x3bc] ss:$36 sps:$4 sm:$0xff]  }
  0x59   :  { %3609 = vmatprep.subr.bf16.mxu1 %v3981_v46 }
  0x5a   :  { %1643 = vmatmul.mubr.bf16.gmra.mxu0 %v3885_v16  ;;  %1772 = vmatmul.mubr.bf16.gmra.mxu1 %v3886_v17  ;;  %v3964_v16 = vld [vmem:[%s5563_s0 + $0x3fc] ss:$36 sps:$4 sm:$0xff]   ;;  %v3966_v17 = vld [vmem:[%s5563_s0 + $0x1c4] ss:$36 sps:$4 sm:$0xff]  }
  0x5b   :  { %1650 = vmatprep.mubr.bf16.mxu0 %v3889_v18  ;;  %1779 = vmatprep.mubr.bf16.mxu1 %v3891_v19  ;;  %v3968_v18 = vld [vmem:[%s5563_s0 + $0x3f8] ss:$36 sps:$4 sm:$0xff]   ;;  %v3969_v19 = vld [vmem:[%s5563_s0 + $0x1c0] ss:$36 sps:$4 sm:$0xff]  }
  0x5c   :  { %3610 = vmatpush3.bf16.msra.mxu1 %v3982_v48 }
  0x5d   :  { %3611 = vmatprep.subr.bf16.mxu1 %v3983_v49 }
  0x60   :  { %3612 = vmatpush3.bf16.msra.mxu1 %v3984_v50 }
  0x62   :  { %1651 = vmatmul.mubr.bf16.gmra.mxu0 %v3893_v23  ;;  %1780 = vmatmul.mubr.bf16.gmra.mxu1 %v3894_v24  ;;  %v3980_v23 = vld [vmem:[%s5563_s0 + $0x208] ss:$36 sps:$4 sm:$0xff]   ;;  %v3985_v24 = vld [vmem:[%s5563_s0 + $0x254] ss:$36 sps:$4 sm:$0xff]  }
  0x63   :  { %1658 = vmatprep.mubr.bf16.mxu0 %v3895_v25  ;;  %1787 = vmatprep.mubr.bf16.mxu1 %v3897_v27  ;;  %v3989_v25 = vld [vmem:[%s5563_s0 + $0x1c] ss:$36 sps:$4 sm:$0xff]   ;;  %v3990_v27 = vld [vmem:[%s5563_s0 + $0x250] ss:$36 sps:$4 sm:$0xff]  }
  0x6a   :  { %1659 = vmatmul.mubr.bf16.gmra.mxu0 %v3899_v29  ;;  %1788 = vmatmul.mubr.bf16.gmra.mxu1 %v3900_v30  ;;  %v3994_v29 = vld [vmem:[%s5563_s0 + $0x64] ss:$36 sps:$4 sm:$0xff]   ;;  %v3996_v30 = vld [vmem:[%s5563_s0 + $0x298] ss:$36 sps:$4 sm:$0xff]  }
  0x6b   :  { %1666 = vmatprep.mubr.bf16.mxu0 %v3903_v31  ;;  %1795 = vmatprep.mubr.bf16.mxu1 %v3905_v33  ;;  %v3997_v31 = vld [vmem:[%s5563_s0 + $0x60] ss:$36 sps:$4 sm:$0xff]   ;;  %v4000_v33 = vld [vmem:[%s5563_s0 + $0xac] ss:$36 sps:$4 sm:$0xff]  }
  0x72   :  { %1667 = vmatmul.mubr.bf16.gmra.mxu0 %v3907_v35  ;;  %1796 = vmatmul.mubr.bf16.gmra.mxu1 %v3908_v36  ;;  %v4003_v35 = vld [vmem:[%s5563_s0 + $0xa8] ss:$36 sps:$4 sm:$0xff]  }
  0x73   :  { %1674 = vmatprep.mubr.bf16.mxu0 %v3913_v37  ;;  %1803 = vmatprep.mubr.bf16.mxu1 %v3915_v39  ;;  %v4005_v36 = vld [vmem:[%s5563_s0 + $0x32c] ss:$36 sps:$4 sm:$0xff]   ;;  %v4007_v37 = vld [vmem:[%s5563_s0 + $0xf4] ss:$36 sps:$4 sm:$0xff]  }
  0x74   :  { %v4010_v39 = vld [vmem:[%s5563_s0 + $0xf0] ss:$36 sps:$4 sm:$0xff]  }
  0x7a   :  { %1675 = vmatmul.mubr.bf16.gmra.mxu0 %v3917_v42  ;;  %1804 = vmatmul.mubr.bf16.gmra.mxu1 %v3918_v43  ;;  %v4015_v42 = vld [vmem:[%s5563_s0 + $0x370] ss:$36 sps:$4 sm:$0xff]   ;;  %v4016_v43 = vld [vmem:[%s5563_s0 + $0x138] ss:$36 sps:$4 sm:$0xff]  }
  0x7b   :  { %1811 = vmatprep.mubr.bf16.mxu1 %v3919_v45  ;;  %1908 = vmatprep.mubr.bf16.mxu0 %v3923_v47  ;;  %v4020_v45 = vld [vmem:[%s5563_s0 + $0x184] ss:$36 sps:$4 sm:$0xff]  }
  0x82   :  { %1812 = vmatmul.mubr.bf16.gmra.mxu1 %v3924_v52  ;;  %1909 = vmatmul.mubr.bf16.vlgmr.msra.gmra.mxu0 %v3921_v51 }
  0x83   :  { %3734 = vmatpush3.bf16.msra.mxu0 %v4355_v21  ;;  %1819 = vmatprep.mubr.bf16.mxu1 %v3928_v53  ;;  %v3977_v21 = vld [vmem:[%s5563_s0 + $0x20c] ss:$36 sps:$4 sm:$0xff]  }
  0x84   :  { %1916 = vmatprep.mubr.bf16.mxu0 %v3930_v54  ;;  %3735 = vmatprep.subr.bf16.mxu0 %v3941_v55  ;;  %v4022_v54 = vld [vmem:[%s5563_s0 + $0x3b8] ss:$36 sps:$4 sm:$0xff]  }
  0x87   :  { %3736 = vmatpush3.bf16.msra.mxu0 %v3941_v55  ;;  %v4023_v55 = vld [vmem:[%s5563_s0 + $0x180] ss:$36 sps:$4 sm:$0xff]  }
  0x88   :  { %3737 = vmatprep.subr.bf16.mxu0 %v3956_v56 }
  0x8a   :  { %1820 = vmatmul.mubr.bf16.gmra.mxu1 %v3932_v57  ;;  %1917 = vmatmul.mubr.bf16.gmra.mxu0 %v3933_v58  ;;  %v4026_v57 = vld [vmem:[%s5563_s0 + $0x1cc] ss:$36 sps:$4 sm:$0xff]  }
  0x8b   :  { %1827 = vmatprep.mubr.bf16.mxu1 %v3934_v59  ;;  %1924 = vmatprep.mubr.bf16.mxu0 %v3936_v60 }
  0x8c   :  { %3738 = vmatpush3.bf16.msra.mxu0 %v3956_v56  ;;  %v4024_v56 = vld [vmem:[%s5563_s0 + $0x404] ss:$36 sps:$4 sm:$0xff]  }
  0x8d   :  { %3739 = vmatprep.subr.bf16.mxu0 %v3971_v61 }
  0x90   :  { %3740 = vmatpush3.bf16.msra.mxu0 %v3971_v61 }
  0x91   :  { %3741 = vmatprep.subr.bf16.mxu0 %v3991_v62 }
  0x92   :  { %1828 = vmatmul.mubr.bf16.gmra.mxu1 %v3938_v63  ;;  %1925 = vmatmul.mubr.bf16.gmra.mxu0 %v3939_v0 }
  0x93   :  { %1835 = vmatprep.mubr.bf16.mxu1 %v3943_v1  ;;  %1932 = vmatprep.mubr.bf16.mxu0 %v3945_v2 }
  0x94   :  { %3742 = vmatpush3.bf16.msra.mxu0 %v3991_v62 }
  0x95   :  { %3743 = vmatprep.subr.bf16.mxu0 %v4004_v3 }
  0x98   :  { %3744 = vmatpush3.bf16.msra.mxu0 %v4004_v3 }
  0x99   :  { %3745 = vmatprep.subr.bf16.mxu0 %v4017_v6 }
  0x9a   :  { %1836 = vmatmul.mubr.bf16.gmra.mxu1 %v3947_v4  ;;  %1933 = vmatmul.mubr.bf16.gmra.mxu0 %v3948_v5 }
  0x9b   :  { %1843 = vmatprep.mubr.bf16.mxu1 %v3949_v7  ;;  %1940 = vmatprep.mubr.bf16.mxu0 %v3951_v8  ;;  %v4029_v7 = vld [vmem:[%s5563_s0 + $0x1c8] ss:$36 sps:$4 sm:$0xff]  }
  0x9c   :  { %3746 = vmatpush3.bf16.msra.mxu0 %v4017_v6  ;;  %v4028_v6 = vld [vmem:[%s5563_s0 + $0x400] ss:$36 sps:$4 sm:$0xff]   ;;  %v4031_v8 = vld [vmem:[%s5563_s0 + $0x44c] ss:$36 sps:$4 sm:$0xff]  }
  0x9d   :  { %3747 = vmatprep.subr.bf16.mxu0 %v4030_v9 }
  0xa0   :  { %3748 = vmatpush3.bf16.msra.mxu0 %v4030_v9  ;;  %v4033_v9 = vld [vmem:[%s5563_s0 + $0x214] ss:$36 sps:$4 sm:$0xff]  }
  0xa2   :  { %1844 = vmatmul.mubr.bf16.gmra.mxu1 %v3953_v10  ;;  %1941 = vmatmul.mubr.bf16.gmra.mxu0 %v3954_v11 }
  0xa3   :  { %1851 = vmatprep.mubr.bf16.mxu1 %v3958_v12  ;;  %1948 = vmatprep.mubr.bf16.mxu0 %v3960_v13 }
  0xaa   :  { %1852 = vmatmul.mubr.bf16.gmra.mxu1 %v3962_v14  ;;  %1949 = vmatmul.mubr.bf16.gmra.mxu0 %v3963_v15 }
  0xab   :  { %1859 = vmatprep.mubr.bf16.mxu1 %v3964_v16  ;;  %1956 = vmatprep.mubr.bf16.mxu0 %v3966_v17 }
  0xb2   :  { %1860 = vmatmul.mubr.bf16.gmra.mxu1 %v3968_v18  ;;  %1957 = vmatmul.mubr.bf16.gmra.mxu0 %v3969_v19 }
  0xb3   :  { %1867 = vmatprep.mubr.bf16.mxu1 %v3975_v20  ;;  %1964 = vmatprep.mubr.bf16.mxu0 %v3977_v21 }
  0xba   :  { %1868 = vmatmul.mubr.bf16.gmra.mxu1 %v3979_v22  ;;  %1965 = vmatmul.mubr.bf16.gmra.mxu0 %v3980_v23  ;;  %v4035_v22 = vld [vmem:[%s5563_s0 + $0x448] ss:$36 sps:$4 sm:$0xff]   ;;  %v4036_v23 = vld [vmem:[%s5563_s0 + $0x210] ss:$36 sps:$4 sm:$0xff]  }
  0xbb   :  { %1972 = vmatprep.mubr.bf16.mxu0 %v3985_v24  ;;  %2069 = vmatprep.mubr.bf16.mxu1 %v3989_v25  ;;  %v4039_v24 = vld [vmem:[%s5563_s0 + $0x25c] ss:$36 sps:$4 sm:$0xff]  }
  0xbc   :  { %v4040_v25 = vld [vmem:[%s5563_s0 + $0x20] ss:$36 sps:$4 sm:$0xff]  }
  0xc2   :  { %1973 = vmatmul.mubr.bf16.gmra.mxu0 %v3990_v27  ;;  %2070 = vmatmul.mubr.bf16.vlgmr.msra.gmra.mxu1 %v3987_v26 }
  0xc3   :  { %1980 = vmatprep.mubr.bf16.mxu0 %v3992_v28  ;;  %2077 = vmatprep.mubr.bf16.mxu1 %v3994_v29 }
  0xca   :  { %1981 = vmatmul.mubr.bf16.gmra.mxu0 %v3996_v30  ;;  %2078 = vmatmul.mubr.bf16.gmra.mxu1 %v3997_v31 }
  0xcb   :  { %1988 = vmatprep.mubr.bf16.mxu0 %v3998_v32  ;;  %2085 = vmatprep.mubr.bf16.mxu1 %v4000_v33 }
  0xd2   :  { %1989 = vmatmul.mubr.bf16.gmra.mxu0 %v4002_v34  ;;  %2086 = vmatmul.mubr.bf16.gmra.mxu1 %v4003_v35 }
  0xd3   :  { %1996 = vmatprep.mubr.bf16.mxu0 %v4005_v36  ;;  %2093 = vmatprep.mubr.bf16.mxu1 %v4007_v37 }
  0xda   :  { %1997 = vmatmul.mubr.bf16.gmra.mxu0 %v4009_v38  ;;  %2094 = vmatmul.mubr.bf16.gmra.mxu1 %v4010_v39  ;;  %v4037_v38 = vld [vmem:[%s5563_s0 + $0x258] ss:$36 sps:$4 sm:$0xff]   ;;  %v4041_v39 = vld [vmem:[%s5563_s0 + $0x68] ss:$36 sps:$4 sm:$0xff]  }
  0xdb   :  { %2004 = vmatprep.mubr.bf16.mxu0 %v4011_v40  ;;  %2101 = vmatprep.mubr.bf16.mxu1 %v4013_v41  ;;  %v4044_v40 = vld [vmem:[%s5563_s0 + $0x2a4] ss:$36 sps:$4 sm:$0xff]   ;;  %v4045_v41 = vld [vmem:[%s5563_s0 + $0xb0] ss:$36 sps:$4 sm:$0xff]  }
  0xe2   :  { %v3277_v46 = vpop.f32.mrf.mxu0  ;;  %v3349_v47 = vpop.f32.mrf.mxu1  ;;  %2005 = vmatmul.mubr.bf16.gmra.mxu0 %v4015_v42  ;;  %2102 = vmatmul.mubr.bf16.gmra.mxu1 %v4016_v43 }
  0xe3   :  { %2012 = vmatprep.mubr.bf16.mxu0 %v4018_v44  ;;  %2109 = vmatprep.mubr.bf16.mxu1 %v4020_v45 }
  0xe4   :  { %v3278_v48 = vpop.f32.mrf.mxu0  ;;  %v3350_v49 = vpop.f32.mrf.mxu1 }
  0xe5   :  { %v4623_v50 = vadd.f32 %v3278_v48, %v3277_v46  ;;  %v4625_v51 = vadd.f32 %v3350_v49, %v3349_v47 }
  0xe6   :  { %v3280_v52 = vpop.f32.mrf.mxu0  ;;  %v3352_v53 = vpop.f32.mrf.mxu1 }
  0xe8   :  { %v3281_v58 = vpop.f32.mrf.mxu0  ;;  %v3353_v59 = vpop.f32.mrf.mxu1 }
  0xe9   :  { %v4639_v60 = vadd.f32 %v3281_v58, %v3280_v52  ;;  %v4641_v61 = vadd.f32 %v3353_v59, %v3352_v53  ;;  %v4049_v59 = vld [vmem:[%s5563_s0 + $0x2ec] ss:$36 sps:$4 sm:$0xff]  }
  0xea   :  { %v3283_v62 = vpop.f32.mrf.mxu0  ;;  %v3355_v63 = vpop.f32.mrf.mxu1  ;;  %2013 = vmatmul.mubr.bf16.gmra.mxu0 %v4022_v54  ;;  %2110 = vmatmul.mubr.bf16.gmra.mxu1 %v4023_v55 }
  0xeb   :  { %2020 = vmatprep.mubr.bf16.mxu0 %v4024_v56  ;;  %2117 = vmatprep.mubr.bf16.mxu1 %v4026_v57  ;;  %v4042_v56 = vld [vmem:[%s5563_s0 + $0x2a0] ss:$36 sps:$4 sm:$0xff]   ;;  %v4046_v57 = vld [vmem:[%s5563_s0 + $0xf8] ss:$36 sps:$4 sm:$0xff]  }
  0xec   :  { %v3284_v0 = vpop.f32.mrf.mxu0  ;;  %v3356_v1 = vpop.f32.mrf.mxu1 }
  0xed   :  { %v4643_v2 = vadd.f32 %v3284_v0, %v3283_v62  ;;  %v4645_v3 = vadd.f32 %v3356_v1, %v3355_v63  ;;  %v4050_v62 = vld [vmem:[%s5563_s0 + $0x140] ss:$36 sps:$4 sm:$0xff]  }
  0xee   :  { %v3286_v4 = vpop.f32.mrf.mxu0  ;;  %v3358_v5 = vpop.f32.mrf.mxu1 }
  0xf0   :  { %v3287_v10 = vpop.f32.mrf.mxu0  ;;  %v3359_v11 = vpop.f32.mrf.mxu1 }
  0xf1   :  { %v4659_v12 = vadd.f32 %v3287_v10, %v3286_v4  ;;  %v4661_v13 = vadd.f32 %v3359_v11, %v3358_v5 }
  0xf2   :  { %v3289_v14 = vpop.f32.mrf.mxu0  ;;  %v3361_v15 = vpop.f32.mrf.mxu1  ;;  %2021 = vmatmul.mubr.bf16.gmra.mxu0 %v4028_v6  ;;  %2118 = vmatmul.mubr.bf16.gmra.mxu1 %v4029_v7 }
  0xf3   :  { %2028 = vmatprep.mubr.bf16.mxu0 %v4031_v8  ;;  %2125 = vmatprep.mubr.bf16.mxu1 %v4033_v9 }
  0xf4   :  { %v3290_v16 = vpop.f32.mrf.mxu0  ;;  %v3362_v17 = vpop.f32.mrf.mxu1 }
  0xf5   :  { %v4663_v18 = vadd.f32 %v3290_v16, %v3289_v14  ;;  %v4665_v19 = vadd.f32 %v3362_v17, %v3361_v15  ;;  %v4047_v15 = vld [vmem:[%s5563_s0 + $0x2e8] ss:$36 sps:$4 sm:$0xff]   ;;  %v4054_v17 = vld [vmem:[%s5563_s0 + $0x334] ss:$36 sps:$4 sm:$0xff]  }
  0xf6   :  { %v3292_v20 = vpop.f32.mrf.mxu0  ;;  %v3364_v21 = vpop.f32.mrf.mxu1  ;;  %v4051_v16 = vld [vmem:[%s5563_s0 + $0x188] ss:$36 sps:$4 sm:$0xff]  }
  0xf8   :  { %v3293_v26 = vpop.f32.mrf.mxu0  ;;  %v3365_v27 = vpop.f32.mrf.mxu1 }
  0xf9   :  { %v4679_v28 = vadd.f32 %v3293_v26, %v3292_v20  ;;  %v4681_v29 = vadd.f32 %v3365_v27, %v3364_v21  ;;  %v4055_v20 = vld [vmem:[%s5563_s0 + $0x1d0] ss:$36 sps:$4 sm:$0xff]  }
  0xfa   :  { %v3295_v30 = vpop.f32.mrf.mxu0  ;;  %v3367_v31 = vpop.f32.mrf.mxu1  ;;  %2029 = vmatmul.mubr.bf16.gmra.mxu0 %v4035_v22  ;;  %2126 = vmatmul.mubr.bf16.gmra.mxu1 %v4036_v23 }
  0xfb   :  { %2133 = vmatprep.mubr.bf16.mxu1 %v4039_v24  ;;  %3749 = vmatprep.mubr.bf16.mxu0 %v4040_v25 }
  0xfc   :  { %v3296_v32 = vpop.f32.mrf.mxu0  ;;  %v3368_v33 = vpop.f32.mrf.mxu1 }
  0xfd   :  { %v4683_v34 = vadd.f32 %v3296_v32, %v3295_v30  ;;  %v4685_v35 = vadd.f32 %v3368_v33, %v3367_v31 }
  0xfe   :  { %v3298_v36 = vpop.f32.mrf.mxu0  ;;  %v3370_v37 = vpop.f32.mrf.mxu1 }
 0x100   :  { %v3299_v42 = vpop.f32.mrf.mxu0  ;;  %v3371_v43 = vpop.f32.mrf.mxu1 }
 0x101   :  { %v4699_v44 = vadd.f32 %v3299_v42, %v3298_v36  ;;  %v4701_v45 = vadd.f32 %v3371_v43, %v3370_v37  ;;  %v4052_v37 = vld [vmem:[%s5563_s0 + $0x330] ss:$36 sps:$4 sm:$0xff]  }
 0x102   :  { %v3301_v46 = vpop.f32.mrf.mxu0  ;;  %v3389_v47 = vpop.f32.mrf.mxu1  ;;  %2134 = vmatmul.mubr.bf16.gmra.mxu1 %v4037_v38  ;;  %3750 = vmatmul.mubr.bf16.vlgmr.msra.gmra.mxu0 %v4041_v39  ;;  %v4056_v38 = vld [vmem:[%s5563_s0 + $0x218] ss:$36 sps:$4 sm:$0xff]  }
 0x103   :  { %2141 = vmatprep.mubr.bf16.mxu1 %v4044_v40  ;;  %3753 = vmatprep.mubr.bf16.mxu0 %v4045_v41  ;;  %v4059_v39 = vld [vmem:[%s5563_s0 + $0x37c] ss:$36 sps:$4 sm:$0xff]  }
 0x104   :  { %v3302_v48 = vpop.f32.mrf.mxu0  ;;  %v3390_v49 = vpop.f32.mrf.mxu1  ;;  %v4060_v40 = vld [vmem:[%s5563_s0 + $0x260] ss:$36 sps:$4 sm:$0xff]  }
 0x105   :  { %v4703_v52 = vadd.f32 %v3302_v48, %v3301_v46  ;;  %v3391_v53 = vadd.f32 %v3390_v49, %v3389_v47 }
 0x106   :  { %v3304_v54 = vpop.f32.mrf.mxu0  ;;  %v3392_v55 = vpop.f32.mrf.mxu1 }
 0x107   :  { %v4712_v58 = vadd.f32 %v3391_v53, %v4623_v50 }
 0x108   :  { %v3305_v63 = vpop.f32.mrf.mxu0  ;;  %v3393_v0 = vpop.f32.mrf.mxu1 }
 0x109   :  { %v4720_v1 = vadd.f32 %v3305_v63, %v3304_v54  ;;  %v3394_v4 = vadd.f32 %v3393_v0, %v3392_v55  ;;  %v4064_v63 = vld [vmem:[%s5563_s0 + $0x3c4] ss:$36 sps:$4 sm:$0xff]   ;;  %v4065_v0 = vld [vmem:[%s5563_s0 + $0x2f0] ss:$36 sps:$4 sm:$0xff]  }
 0x10a   :  { %v3307_v5 = vpop.f32.mrf.mxu0  ;;  %v3395_v6 = vpop.f32.mrf.mxu1  ;;  %2142 = vmatmul.mubr.bf16.gmra.mxu1 %v4042_v56  ;;  %3754 = vmatmul.mubr.bf16.gmra.mxu0 %v4046_v57 }
 0x10b   :  { %v4723_v50 = vadd.f32 %v3394_v4, %v4639_v60  ;;  %2149 = vmatprep.mubr.bf16.mxu1 %v4049_v59  ;;  %3757 = vmatprep.mubr.bf16.mxu0 %v4050_v62  ;;  %v4057_v59 = vld [vmem:[%s5563_s0 + $0x378] ss:$36 sps:$4 sm:$0xff]   ;;  %v4061_v62 = vld [vmem:[%s5563_s0 + $0x2a8] ss:$36 sps:$4 sm:$0xff]  }
 0x10c   :  { %v3308_v7 = vpop.f32.mrf.mxu0  ;;  %v3396_v8 = vpop.f32.mrf.mxu1 }
 0x10d   :  { %v4725_v9 = vadd.f32 %v3308_v7, %v3307_v5  ;;  %v3397_v10 = vadd.f32 %v3396_v8, %v3395_v6 }
 0x10e   :  { %v3310_v11 = vpop.f32.mrf.mxu0  ;;  %v3398_v14 = vpop.f32.mrf.mxu1 }
 0x10f   :  { %v4734_v60 = vadd.f32 %v3397_v10, %v4643_v2 }
 0x110   :  { %v3311_v21 = vpop.f32.mrf.mxu0  ;;  %v3399_v22 = vpop.f32.mrf.mxu1 }
 0x111   :  { %v4742_v23 = vadd.f32 %v3311_v21, %v3310_v11  ;;  %v3400_v24 = vadd.f32 %v3399_v22, %v3398_v14  ;;  %v4062_v21 = vld [vmem:[%s5563_s0 + $0x3c0] ss:$36 sps:$4 sm:$0xff]   ;;  %v4066_v22 = vld [vmem:[%s5563_s0 + $0x338] ss:$36 sps:$4 sm:$0xff]  }
 0x112   :  { %v3313_v25 = vpop.f32.mrf.mxu0  ;;  %v3401_v26 = vpop.f32.mrf.mxu1  ;;  %2150 = vmatmul.mubr.bf16.gmra.mxu1 %v4047_v15  ;;  %3758 = vmatmul.mubr.bf16.gmra.mxu0 %v4051_v16 }
 0x113   :  { %v4745_v2 = vadd.f32 %v3400_v24, %v4659_v12  ;;  %2157 = vmatprep.mubr.bf16.mxu1 %v4054_v17  ;;  %3761 = vmatprep.mubr.bf16.mxu0 %v4055_v20  ;;  %v4069_v24 = vld [vmem:[%s5563_s0 + $0x40c] ss:$36 sps:$4 sm:$0xff]  }
 0x114   :  { %v3314_v27 = vpop.f32.mrf.mxu0  ;;  %v3402_v30 = vpop.f32.mrf.mxu1 }
 0x115   :  { %v4747_v31 = vadd.f32 %v3314_v27, %v3313_v25  ;;  %v3403_v32 = vadd.f32 %v3402_v30, %v3401_v26  ;;  %v4070_v25 = vld [vmem:[%s5563_s0 + $0x380] ss:$36 sps:$4 sm:$0xff]  }
 0x116   :  { %v3316_v33 = vpop.f32.mrf.mxu0  ;;  %v3404_v36 = vpop.f32.mrf.mxu1 }
 0x117   :  { %v4756_v12 = vadd.f32 %v3403_v32, %v4663_v18 }
 0x118   :  { %v3317_v41 = vpop.f32.mrf.mxu0  ;;  %v3405_v42 = vpop.f32.mrf.mxu1 }
 0x119   :  { %v4764_v43 = vadd.f32 %v3317_v41, %v3316_v33  ;;  %v3406_v46 = vadd.f32 %v3405_v42, %v3404_v36 }
 0x11a   :  { %v3319_v47 = vpop.f32.mrf.mxu0  ;;  %v3407_v48 = vpop.f32.mrf.mxu1  ;;  %2158 = vmatmul.mubr.bf16.gmra.mxu1 %v4052_v37  ;;  %3762 = vmatmul.mubr.bf16.gmra.mxu0 %v4056_v38 }
 0x11b   :  { %v4767_v18 = vadd.f32 %v3406_v46, %v4679_v28  ;;  %2165 = vmatprep.mubr.bf16.mxu1 %v4059_v39  ;;  %3765 = vmatprep.mubr.bf16.mxu0 %v4060_v40  ;;  %v4067_v46 = vld [vmem:[%s5563_s0 + $0x408] ss:$36 sps:$4 sm:$0xff]  }
 0x11c   :  { %v3320_v49 = vpop.f32.mrf.mxu0  ;;  %v3408_v53 = vpop.f32.mrf.mxu1 }
 0x11d   :  { %v4769_v54 = vadd.f32 %v3320_v49, %v3319_v47  ;;  %v3409_v55 = vadd.f32 %v3408_v53, %v3407_v48  ;;  %v4071_v47 = vld [vmem:[%s5563_s0 + $0x3c8] ss:$36 sps:$4 sm:$0xff]   ;;  %v4074_v48 = vld [vmem:[%s5563_s0 + $0x454] ss:$36 sps:$4 sm:$0xff]  }
 0x11e   :  { %v3322_v56 = vpop.f32.mrf.mxu0  ;;  %v3410_v57 = vpop.f32.mrf.mxu1  ;;  %v4075_v49 = vld [vmem:[%s5563_s0 + $0x410] ss:$36 sps:$4 sm:$0xff]  }
 0x11f   :  { %v4778_v28 = vadd.f32 %v3409_v55, %v4683_v34 }
 0x120   :  { %v3323_v4 = vpop.f32.mrf.mxu0  ;;  %v3411_v5 = vpop.f32.mrf.mxu1 }
 0x121   :  { %v4786_v6 = vadd.f32 %v3323_v4, %v3322_v56  ;;  %v3412_v7 = vadd.f32 %v3411_v5, %v3410_v57 }
 0x122   :  { %v3325_v8 = vpop.f32.mrf.mxu0  ;;  %v3413_v10 = vpop.f32.mrf.mxu1  ;;  %2166 = vmatmul.mubr.bf16.gmra.mxu1 %v4057_v59  ;;  %3766 = vmatmul.mubr.bf16.gmra.mxu0 %v4061_v62 }
 0x123   :  { %v4789_v34 = vadd.f32 %v3412_v7, %v4699_v44  ;;  %2173 = vmatprep.mubr.bf16.mxu1 %v4064_v63  ;;  %3769 = vmatprep.mubr.bf16.mxu0 %v4065_v0 }
 0x124   :  { %v3326_v11 = vpop.f32.mrf.mxu0  ;;  %v3414_v14 = vpop.f32.mrf.mxu1 }
 0x125   :  { %v4791_v15 = vadd.f32 %v3326_v11, %v3325_v8  ;;  %v3415_v16 = vadd.f32 %v3414_v14, %v3413_v10  ;;  %v4072_v10 = vld [vmem:[%s5563_s0 + $0x450] ss:$36 sps:$4 sm:$0xff]   ;;  %v4076_v11 = vld [vmem:[%s5563_s0 + $0x458] ss:$36 sps:$4 sm:$0xff]  }
 0x126   :  { %v3328_v17 = vpop.f32.mrf.mxu0  ;;  %v3416_v20 = vpop.f32.mrf.mxu1 }
 0x127   :  { %v4800_v44 = vadd.f32 %v3415_v16, %v4703_v52 }
 0x128   :  { %v3329_v26 = vpop.f32.mrf.mxu0  ;;  %v3417_v27 = vpop.f32.mrf.mxu1 }
 0x129   :  { %v4808_v30 = vadd.f32 %v3329_v26, %v3328_v17  ;;  %v3418_v32 = vadd.f32 %v3417_v27, %v3416_v20 }
 0x12a   :  { %v3331_v33 = vpop.f32.mrf.mxu0  ;;  %v3419_v36 = vpop.f32.mrf.mxu1  ;;  %2174 = vmatmul.mubr.bf16.gmra.mxu1 %v4062_v21  ;;  %3770 = vmatmul.mubr.bf16.gmra.mxu0 %v4066_v22 }
 0x12b   :  { %v4811_v52 = vadd.f32 %v3418_v32, %v4720_v1  ;;  %2181 = vmatprep.mubr.bf16.mxu1 %v4069_v24  ;;  %3773 = vmatprep.mubr.bf16.mxu0 %v4070_v25 }
 0x12c   :  { %v3332_v37 = vpop.f32.mrf.mxu0  ;;  %v3420_v38 = vpop.f32.mrf.mxu1 }
 0x12d   :  { %v4813_v39 = vadd.f32 %v3332_v37, %v3331_v33  ;;  %v3421_v40 = vadd.f32 %v3420_v38, %v3419_v36 }
 0x12e   :  { %v3334_v41 = vpop.f32.mrf.mxu0  ;;  %v3422_v42 = vpop.f32.mrf.mxu1 }
 0x12f   :  { %v4822_v1 = vadd.f32 %v3421_v40, %v4725_v9 }
 0x130   :  { %v3335_v53 = vpop.f32.mrf.mxu0  ;;  %v3423_v55 = vpop.f32.mrf.mxu1 }
 0x131   :  { %v4830_v56 = vadd.f32 %v3335_v53, %v3334_v41  ;;  %v3424_v57 = vadd.f32 %v3423_v55, %v3422_v42 }
 0x132   :  { %v3337_v59 = vpop.f32.mrf.mxu0  ;;  %v3425_v62 = vpop.f32.mrf.mxu1  ;;  %2182 = vmatmul.mubr.bf16.gmra.mxu1 %v4067_v46  ;;  %3774 = vmatmul.mubr.bf16.gmra.mxu0 %v4071_v47 }
 0x133   :  { %v4833_v9 = vadd.f32 %v3424_v57, %v4742_v23  ;;  %2189 = vmatprep.mubr.bf16.mxu1 %v4074_v48  ;;  %3777 = vmatprep.mubr.bf16.mxu0 %v4075_v49 }
 0x134   :  { %v3338_v63 = vpop.f32.mrf.mxu0  ;;  %v3426_v0 = vpop.f32.mrf.mxu1 }
 0x135   :  { %v4835_v4 = vadd.f32 %v3338_v63, %v3337_v59  ;;  %v3427_v5 = vadd.f32 %v3426_v0, %v3425_v62 }
 0x136   :  { %v3340_v7 = vpop.f32.mrf.mxu0  ;;  %v3428_v8 = vpop.f32.mrf.mxu1 }
 0x137   :  { %v4844_v23 = vadd.f32 %v3427_v5, %v4747_v31 }
 0x138   :  { %v3341_v14 = vpop.f32.mrf.mxu0  ;;  %v3429_v16 = vpop.f32.mrf.mxu1 }
 0x139   :  { %v4846_v17 = vadd.f32 %v3341_v14, %v3340_v7  ;;  %v3430_v20 = vadd.f32 %v3429_v16, %v3428_v8 }
 0x13a   :  { %v3343_v21 = vpop.f32.mrf.mxu0  ;;  %v3431_v22 = vpop.f32.mrf.mxu1  ;;  %2190 = vmatmul.mubr.bf16.gmra.mxu1 %v4072_v10  ;;  %3778 = vmatmul.mubr.bf16.gmra.mxu0 %v4076_v11 }
 0x13b   :  { %v4849_v24 = vadd.f32 %v3430_v20, %v4764_v43 }
 0x13c   :  { %v3344_v25 = vpop.f32.mrf.mxu0  ;;  %v3432_v26 = vpop.f32.mrf.mxu1 }
 0x13d   :  { %v4851_v27 = vadd.f32 %v3344_v25, %v3343_v21  ;;  %v3433_v32 = vadd.f32 %v3432_v26, %v3431_v22 }
 0x13e   :  { %v3346_v33 = vpop.f32.mrf.mxu0  ;;  %v3434_v31 = vpop.f32.mrf.mxu1 }
 0x13f   :  { %v4854_v36 = vadd.f32 %v3433_v32, %v4769_v54 }
 0x140   :  { %v3347_v37 = vpop.f32.mrf.mxu0  ;;  %v3435_v38 = vpop.f32.mrf.mxu1 }
 0x141   :  { %v4856_v40 = vadd.f32 %v3347_v37, %v3346_v33  ;;  %v3436_v41 = vadd.f32 %v3435_v38, %v3434_v31 }
 0x142   :  { %v3437_v42 = vpop.f32.mrf.mxu1  ;;  %v3501_v46 = vpop.f32.mrf.mxu0 }
 0x143   :  { %v4859_v43 = vadd.f32 %v3436_v41, %v4786_v6 }
 0x144   :  { %v3438_v47 = vpop.f32.mrf.mxu1  ;;  %v3502_v48 = vpop.f32.mrf.mxu0 }
 0x145   :  { %v3439_v49 = vadd.f32 %v3438_v47, %v3437_v42  ;;  %v3503_v53 = vadd.f32 %v3502_v48, %v3501_v46 }
 0x146   :  { %v3440_v55 = vpop.f32.mrf.mxu1  ;;  %v3504_v57 = vpop.f32.mrf.mxu0 }
 0x147   :  { %v4862_v59 = vadd.f32 %v3439_v49, %v4791_v15  ;;  %v4865_v54 = vadd.f32 %v3503_v53, %v4712_v58 }
 0x148   :  { %v3441_v62 = vpop.f32.mrf.mxu1  ;;  %v3505_v63 = vpop.f32.mrf.mxu0 }
 0x149   :  { %v3442_v0 = vadd.f32 %v3441_v62, %v3440_v55  ;;  %v3506_v5 = vadd.f32 %v3505_v63, %v3504_v57 }
 0x14a   :  { %v3443_v7 = vpop.f32.mrf.mxu1  ;;  %v3507_v8 = vpop.f32.mrf.mxu0 }
 0x14b   :  { %v4868_v6 = vadd.f32 %v3442_v0, %v4808_v30  ;;  %v4871_v10 = vadd.f32 %v3506_v5, %v4723_v50 }
 0x14c   :  { %v3444_v11 = vpop.f32.mrf.mxu1  ;;  %v3508_v14 = vpop.f32.mrf.mxu0 }
 0x14d   :  { %v3445_v16 = vadd.f32 %v3444_v11, %v3443_v7  ;;  %v3509_v15 = vadd.f32 %v3508_v14, %v3507_v8 }
 0x14e   :  { %v3446_v20 = vpop.f32.mrf.mxu1  ;;  %v3510_v21 = vpop.f32.mrf.mxu0 }
 0x14f   :  { %v4874_v58 = vadd.f32 %v3445_v16, %v4813_v39  ;;  %v4877_v22 = vadd.f32 %v3509_v15, %v4734_v60 }
 0x150   :  { %v3447_v25 = vpop.f32.mrf.mxu1  ;;  %v3511_v26 = vpop.f32.mrf.mxu0 }
 0x151   :  { %v3448_v32 = vadd.f32 %v3447_v25, %v3446_v20  ;;  %v3512_v30 = vadd.f32 %v3511_v26, %v3510_v21 }
 0x152   :  { %v3449_v33 = vpop.f32.mrf.mxu1  ;;  %v3513_v31 = vpop.f32.mrf.mxu0 }
 0x153   :  { %v4880_v50 = vadd.f32 %v3448_v32, %v4830_v56  ;;  %v4883_v37 = vadd.f32 %v3512_v30, %v4745_v2 }
 0x154   :  { %v3450_v38 = vpop.f32.mrf.mxu1  ;;  %v3514_v41 = vpop.f32.mrf.mxu0 }
 0x155   :  { %v3451_v42 = vadd.f32 %v3450_v38, %v3449_v33  ;;  %v3515_v39 = vadd.f32 %v3514_v41, %v3513_v31 }
 0x156   :  { %v3452_v46 = vpop.f32.mrf.mxu1  ;;  %v3516_v47 = vpop.f32.mrf.mxu0 }
 0x157   :  { %v4886_v60 = vadd.f32 %v3451_v42, %v4835_v4  ;;  %v4889_v48 = vadd.f32 %v3515_v39, %v4756_v12 }
 0x158   :  { %v3453_v49 = vpop.f32.mrf.mxu1  ;;  %v3517_v53 = vpop.f32.mrf.mxu0 }
 0x159   :  { %v3454_v55 = vadd.f32 %v3453_v49, %v3452_v46  ;;  %v3518_v56 = vadd.f32 %v3517_v53, %v3516_v47 }
 0x15a   :  { %v3455_v57 = vpop.f32.mrf.mxu1  ;;  %v3519_v62 = vpop.f32.mrf.mxu0 }
 0x15b   :  { %v4892_v2 = vadd.f32 %v3454_v55, %v4846_v17  ;;  %v4895_v63 = vadd.f32 %v3518_v56, %v4767_v18 }
 0x15c   :  { %v3456_v0 = vpop.f32.mrf.mxu1  ;;  %v3520_v5 = vpop.f32.mrf.mxu0 }
 0x15d   :  { %v3457_v7 = vadd.f32 %v3456_v0, %v3455_v57  ;;  %v3521_v4 = vadd.f32 %v3520_v5, %v3519_v62 }
 0x15e   :  { %v3458_v8 = vpop.f32.mrf.mxu1  ;;  %v3522_v11 = vpop.f32.mrf.mxu0 }
 0x15f   :  { %v4898_v12 = vadd.f32 %v3457_v7, %v4851_v27  ;;  %v4901_v14 = vadd.f32 %v3521_v4, %v4778_v28 }
 0x160   :  { %v3459_v16 = vpop.f32.mrf.mxu1  ;;  %v3523_v15 = vpop.f32.mrf.mxu0 }
 0x161   :  { %v3460_v20 = vadd.f32 %v3459_v16, %v3458_v8  ;;  %v3524_v17 = vadd.f32 %v3523_v15, %v3522_v11 }
 0x162   :  { %v3461_v21 = vpop.f32.mrf.mxu1  ;;  %v3525_v25 = vpop.f32.mrf.mxu0 }
 0x163   :  { %v4904_v18 = vadd.f32 %v3460_v20, %v4856_v40  ;;  %v4907_v26 = vadd.f32 %v3524_v17, %v4789_v34 }
 0x164   :  { %v3462_v32 = vpop.f32.mrf.mxu1  ;;  %v3526_v30 = vpop.f32.mrf.mxu0 }
 0x165   :  { %v3463_v33 = vadd.f32 %v3462_v32, %v3461_v21  ;;  %v3527_v27 = vadd.f32 %v3526_v30, %v3525_v25 }
 0x166   :  { %v3464_v31 = vpop.f32.mrf.mxu1  ;;  %v3528_v38 = vpop.f32.mrf.mxu0 }
 0x167   :  { %v4910_v28 = vadd.f32 %v3463_v33, %v4625_v51  ;;  %v4913_v41 = vadd.f32 %v3527_v27, %v4800_v44 }
 0x168   :  { %v3465_v42 = vpop.f32.mrf.mxu1  ;;  %v3529_v39 = vpop.f32.mrf.mxu0 }
 0x169   :  { %v3466_v46 = vadd.f32 %v3465_v42, %v3464_v31  ;;  %v3530_v40 = vadd.f32 %v3529_v39, %v3528_v38 }
 0x16a   :  { %v3467_v47 = vpop.f32.mrf.mxu1  ;;  %v3531_v49 = vpop.f32.mrf.mxu0 }
 0x16b   :  { %v4916_v34 = vadd.f32 %v3466_v46, %v4641_v61  ;;  %v4919_v53 = vadd.f32 %v3530_v40, %v4811_v52 }
 0x16c   :  { %v3468_v55 = vpop.f32.mrf.mxu1  ;;  %v3532_v56 = vpop.f32.mrf.mxu0 }
 0x16d   :  { %v3469_v57 = vadd.f32 %v3468_v55, %v3467_v47  ;;  %v3533_v51 = vadd.f32 %v3532_v56, %v3531_v49 }
 0x16e   :  { %v3470_v62 = vpop.f32.mrf.mxu1  ;;  %v3534_v0 = vpop.f32.mrf.mxu0 }
 0x16f   :  { %v4922_v44 = vadd.f32 %v3469_v57, %v4645_v3  ;;  %v4925_v5 = vadd.f32 %v3533_v51, %v4822_v1 }
 0x170   :  { %v3471_v7 = vpop.f32.mrf.mxu1  ;;  %v3535_v4 = vpop.f32.mrf.mxu0 }
 0x171   :  { %v3472_v8 = vadd.f32 %v3471_v7, %v3470_v62  ;;  %v3536_v61 = vadd.f32 %v3535_v4, %v3534_v0 }
 0x172   :  { %v3473_v11 = vpop.f32.mrf.mxu1  ;;  %v3537_v16 = vpop.f32.mrf.mxu0 }
 0x173   :  { %v4928_v52 = vadd.f32 %v3472_v8, %v4661_v13  ;;  %v4931_v15 = vadd.f32 %v3536_v61, %v4833_v9 }
 0x174   :  { %v3474_v20 = vpop.f32.mrf.mxu1  ;;  %v3538_v17 = vpop.f32.mrf.mxu0 }
 0x175   :  { %v3475_v21 = vadd.f32 %v3474_v20, %v3473_v11  ;;  %v3539_v3 = vadd.f32 %v3538_v17, %v3537_v16 }
 0x176   :  { %v3476_v25 = vpop.f32.mrf.mxu1  ;;  %v3540_v32 = vpop.f32.mrf.mxu0 }
 0x177   :  { %v4934_v1 = vadd.f32 %v3475_v21, %v4665_v19  ;;  %v4937_v30 = vadd.f32 %v3539_v3, %v4844_v23 }
 0x178   :  { %v3477_v33 = vpop.f32.mrf.mxu1  ;;  %v3541_v27 = vpop.f32.mrf.mxu0 }
 0x179   :  { %v3478_v31 = vadd.f32 %v3477_v33, %v3476_v25  ;;  %v3542_v13 = vadd.f32 %v3541_v27, %v3540_v32 }
 0x17a   :  { %v3479_v38 = vpop.f32.mrf.mxu1  ;;  %v3543_v42 = vpop.f32.mrf.mxu0 }
 0x17b   :  { %v4940_v9 = vadd.f32 %v3478_v31, %v4681_v29  ;;  %v4943_v39 = vadd.f32 %v3542_v13, %v4849_v24 }
 0x17c   :  { %v3480_v46 = vpop.f32.mrf.mxu1  ;;  %v3544_v40 = vpop.f32.mrf.mxu0 }
 0x17d   :  { %v3481_v47 = vadd.f32 %v3480_v46, %v3479_v38  ;;  %v3545_v19 = vadd.f32 %v3544_v40, %v3543_v42 }
 0x17e   :  { %v3482_v49 = vpop.f32.mrf.mxu1  ;;  %v3546_v55 = vpop.f32.mrf.mxu0 }
 0x17f   :  { %v4946_v23 = vadd.f32 %v3481_v47, %v4685_v35  ;;  %v4949_v56 = vadd.f32 %v3545_v19, %v4854_v36 }
 0x180   :  { %v3483_v57 = vpop.f32.mrf.mxu1  ;;  %v3547_v51 = vpop.f32.mrf.mxu0 }
 0x181   :  { %v3484_v62 = vadd.f32 %v3483_v57, %v3482_v49  ;;  %v3548_v29 = vadd.f32 %v3547_v51, %v3546_v55 }
 0x182   :  { %v3549_v0 = vpop.f32.mrf.mxu0  ;;  %v4951_v7 = vpop.f32.mrf.mxu1 }
 0x183   :  { %v4954_v24 = vadd.f32 %v3484_v62, %v4701_v45  ;;  %v4957_v4 = vadd.f32 %v3548_v29, %v4859_v43 }
 0x184   :  { %v3550_v8 = vpop.f32.mrf.mxu0  ;;  %v4959_v61 = vpop.f32.mrf.mxu1 }
 0x185   :  { %v3551_v35 = vadd.f32 %v3550_v8, %v3549_v0 }
 0x186   :  { %v3552_v11 = vpop.f32.mrf.mxu0  ;;  %v4961_v36 = vpop.f32.mrf.mxu1 }
 0x187   :  { %v4964_v16 = vadd.f32 %v3551_v35, %v4862_v59 }
 0x188   :  { %v3553_v20 = vpop.f32.mrf.mxu0  ;;  %v4966_v17 = vpop.f32.mrf.mxu1 }
 0x189   :  { %v3554_v21 = vadd.f32 %v3553_v20, %v3552_v11 }
 0x18a   :  { %v3555_v3 = vpop.f32.mrf.mxu0  ;;  %v4968_v45 = vpop.f32.mrf.mxu1 }
 0x18b   :  { %v4971_v43 = vadd.f32 %v3554_v21, %v4868_v6 }
 0x18c   :  { %v3556_v25 = vpop.f32.mrf.mxu0  ;;  %v4973_v32 = vpop.f32.mrf.mxu1 }
 0x18d   :  { %5566 = vst [vmem:[#allocation3_spill] sm:$0xff] %v4971_v43  ;;  %v3557_v33 = vadd.f32 %v3556_v25, %v3555_v3 }
 0x18e   :  { %v3558_v27 = vpop.f32.mrf.mxu0  ;;  %v4975_v31 = vpop.f32.mrf.mxu1 }
 0x18f   :  { %v4978_v59 = vadd.f32 %v3557_v33, %v4874_v58 }
 0x190   :  { %v3559_v13 = vpop.f32.mrf.mxu0  ;;  %v4980_v38 = vpop.f32.mrf.mxu1 }
 0x191   :  { %v3560_v42 = vadd.f32 %v3559_v13, %v3558_v27 }
 0x192   :  { %v3561_v46 = vpop.f32.mrf.mxu0  ;;  %v4982_v40 = vpop.f32.mrf.mxu1 }
 0x193   :  { %v4985_v6 = vadd.f32 %v3560_v42, %v4880_v50 }
 0x194   :  { %v3562_v47 = vpop.f32.mrf.mxu0  ;;  %v4987_v19 = vpop.f32.mrf.mxu1 }
 0x195   :  { %v3563_v49 = vadd.f32 %v3562_v47, %v3561_v46 }
 0x196   :  { %v3564_v55 = vpop.f32.mrf.mxu0  ;;  %v4989_v57 = vpop.f32.mrf.mxu1 }
 0x197   :  { %v4992_v58 = vadd.f32 %v3563_v49, %v4886_v60 }
 0x198   :  { %v3565_v51 = vpop.f32.mrf.mxu0  ;;  %v4994_v62 = vpop.f32.mrf.mxu1 }
 0x199   :  { %5567 = vst [vmem:[#allocation4_spill] sm:$0xff] %v4992_v58  ;;  %v3566_v29 = vadd.f32 %v3565_v51, %v3564_v55 }
 0x19a   :  { %v3567_v0 = vpop.f32.mrf.mxu0  ;;  %v4996_v8 = vpop.f32.mrf.mxu1 }
 0x19b   :  { %v4999_v50 = vadd.f32 %v3566_v29, %v4892_v2 }
 0x19c   :  { %v3568_v35 = vpop.f32.mrf.mxu0  ;;  %v5001_v11 = vpop.f32.mrf.mxu1 }
 0x19d   :  { %5568 = vst [vmem:[#allocation5_spill] sm:$0xff] %v4999_v50  ;;  %v3569_v20 = vadd.f32 %v3568_v35, %v3567_v0 }
 0x19e   :  { %v3570_v21 = vpop.f32.mrf.mxu0  ;;  %v5003_v3 = vpop.f32.mrf.mxu1 }
 0x19f   :  { %v5006_v60 = vadd.f32 %v3569_v20, %v4898_v12 }
 0x1a0   :  { %v3571_v25 = vpop.f32.mrf.mxu0  ;;  %v5008_v33 = vpop.f32.mrf.mxu1 }
 0x1a1   :  { %5569 = vst [vmem:[#allocation6_spill] sm:$0xff] %v5006_v60  ;;  %v3572_v27 = vadd.f32 %v3571_v25, %v3570_v21 }
 0x1a2   :  { %v3573_v13 = vpop.f32.mrf.mxu0  ;;  %v5010_v42 = vpop.f32.mrf.mxu1 }
 0x1a3   :  { %v5013_v2 = vadd.f32 %v3572_v27, %v4904_v18 }
 0x1a4   :  { %v3574_v46 = vpop.f32.mrf.mxu0  ;;  %v5015_v47 = vpop.f32.mrf.mxu1 }
 0x1a5   :  { %5570 = vst [vmem:[#allocation7_spill] sm:$0xff] %v5013_v2  ;;  %v3575_v49 = vadd.f32 %v3574_v46, %v3573_v13 }
 0x1a6   :  { %v3576_v55 = vpop.f32.mrf.mxu0  ;;  %v5017_v51 = vpop.f32.mrf.mxu1 }
 0x1a7   :  { %v5020_v12 = vadd.f32 %v3575_v49, %v4910_v28 }
 0x1a8   :  { %v3577_v29 = vpop.f32.mrf.mxu0  ;;  %v5022_v0 = vpop.f32.mrf.mxu1 }
 0x1a9   :  { %5571 = vst [vmem:[#allocation8_spill] sm:$0xff] %v5020_v12  ;;  %v3578_v35 = vadd.f32 %v3577_v29, %v3576_v55 }
 0x1aa   :  { %v3579_v20 = vpop.f32.mrf.mxu0  ;;  %v5024_v21 = vpop.f32.mrf.mxu1 }
 0x1ab   :  { %v5027_v18 = vadd.f32 %v3578_v35, %v4916_v34 }
 0x1ac   :  { %v3580_v25 = vpop.f32.mrf.mxu0  ;;  %v5029_v27 = vpop.f32.mrf.mxu1 }
 0x1ad   :  { %5572 = vst [vmem:[#allocation9_spill] sm:$0xff] %v5027_v18  ;;  %v3581_v13 = vadd.f32 %v3580_v25, %v3579_v20 }
 0x1ae   :  { %v3582_v46 = vpop.f32.mrf.mxu0  ;;  %v5031_v50 = vpop.f32.mrf.mxu1 }
 0x1af   :  { %v5034_v28 = vadd.f32 %v3581_v13, %v4922_v44 }
 0x1b0   :  { %v3583_v49 = vpop.f32.mrf.mxu0  ;;  %v5036_v12 = vpop.f32.mrf.mxu1 }
 0x1b1   :  { %5573 = vst [vmem:[#allocation10_spill] sm:$0xff] %v5034_v28  ;;  %v3584_v55 = vadd.f32 %v3583_v49, %v3582_v46 }
 0x1b2   :  { %v3585_v29 = vpop.f32.mrf.mxu0  ;;  %v5038_v58 = vpop.f32.mrf.mxu1 }
 0x1b3   :  { %v5041_v34 = vadd.f32 %v3584_v55, %v4928_v52 }
 0x1b4   :  { %v3586_v35 = vpop.f32.mrf.mxu0  ;;  %v5043_v18 = vpop.f32.mrf.mxu1 }
 0x1b5   :  { %5574 = vst [vmem:[#allocation11_spill] sm:$0xff] %v5041_v34  ;;  %v3587_v20 = vadd.f32 %v3586_v35, %v3585_v29  ;;  %v3621_v29 = vadd.f32 %v4973_v32, %v4968_v45 }
 0x1b6   :  { %v3588_v25 = vpop.f32.mrf.mxu0  ;;  %v5045_v2 = vpop.f32.mrf.mxu1 }
 0x1b7   :  { %v5048_v44 = vadd.f32 %v3587_v20, %v4934_v1  ;;  %v3615_v20 = vadd.f32 %v4959_v61, %v4951_v7 }
 0x1b8   :  { %v3589_v13 = vpop.f32.mrf.mxu0  ;;  %v5050_v28 = vpop.f32.mrf.mxu1 }
 0x1b9   :  { %5575 = vst [vmem:[#allocation12_spill] sm:$0xff] %v5048_v44  ;;  %v3590_v46 = vadd.f32 %v3589_v13, %v3588_v25  ;;  %v2072_v61 = vadd.f32 %v3615_v20, %v4865_v54 }
 0x1ba   :  { %v3591_v49 = vpop.f32.mrf.mxu0  ;;  %v5052_v60 = vpop.f32.mrf.mxu1 }
 0x1bb   :  { %v5055_v52 = vadd.f32 %v3590_v46, %v4940_v9  ;;  %v3624_v9 = vadd.f32 %v4980_v38, %v4975_v31 }
 0x1bc   :  { %v3592_v55 = vpop.f32.mrf.mxu0  ;;  %v5057_v34 = vpop.f32.mrf.mxu1 }
 0x1bd   :  { %5576 = vst [vmem:[#allocation13_spill] sm:$0xff] %v5055_v52  ;;  %v3593_v35 = vadd.f32 %v3592_v55, %v3591_v49  ;;  %v2080_v52 = vadd.f32 %v3621_v29, %v4877_v22  ;;  %v3618_v49 = vadd.f32 %v4966_v17, %v4961_v36 }
 0x1be   :  { %v3594_v43 = vpop.f32.mrf.mxu0  ;;  %v5061_v1 = vpop.f32.mrf.mxu1 }
 0x1bf   :  { %v5066_v25 = vadd.f32 %v3593_v35, %v4946_v23  ;;  %v2075_v36 = vadd.f32 %v3618_v49, %v4871_v10  ;;  %v3630_v10 = vadd.f32 %v4994_v62, %v4989_v57 }
 0x1c0   :  { %v3595_v13 = vpop.f32.mrf.mxu0  ;;  %v5068_v44 = vpop.f32.mrf.mxu1 }
 0x1c1   :  { %5577 = vst [vmem:[#allocation14_spill] sm:$0xff] %v5066_v25  ;;  %v3596_v46 = vadd.f32 %v3595_v13, %v3594_v43  ;;  %v2083_v43 = vadd.f32 %v3624_v9, %v4883_v37  ;;  %v3627_v13 = vadd.f32 %v4987_v19, %v4982_v40 }
 0x1c2   :  { %v5073_v45 = vpop.f32.mrf.mxu1  ;;  %v3751_v32 = vpop.f32.mrf.mxu0 }
 0x1c3   :  { %v5078_v7 = vadd.f32 %v3596_v46, %v4954_v24  ;;  %v2241_v23 = vadd.f32 %v3751_v32, %v2080_v52  ;;  %v3633_v24 = vadd.f32 %v5001_v11, %v4996_v8  ;;  %v3636_v52 = vadd.f32 %v5008_v33, %v5003_v3 }
 0x1c4   :  { %v5081_v55 = vpop.f32.mrf.mxu1  ;;  %v2232_v35 = vpop.f32.mrf.mxu0  ;;  %v2088_v62 = vadd.f32 %v3627_v13, %v4889_v48  ;;  %v3657_v13 = vadd.f32 %v5057_v34, %v5052_v60  ;;  %v3654_v60 = vadd.f32 %v5050_v28, %v5045_v2 }
 0x1c5   :  { %v2233_v25 = vadd.f32 %v2232_v35, %v2072_v61  ;;  %2622 = vadd.xlane.f32.xlu1 %v2241_v23  ;;  %v2684_v37 = vmul.f32 %v2241_v23, %v2241_v23  ;;  %v2096_v40 = vadd.f32 %v3633_v24, %v4901_v14  ;;  %v2099_v19 = vadd.f32 %v3636_v52, %v4907_v26 }
 0x1c6   :  { %v5084_v22 = vpop.f32.mrf.mxu1  ;;  %v3752_v31 = vpop.f32.mrf.mxu0  ;;  %v2091_v35 = vadd.f32 %v3630_v10, %v4895_v63  ;;  %v3648_v26 = vadd.f32 %v5036_v12, %v5031_v50  ;;  %v3639_v52 = vadd.f32 %v5015_v47, %v5010_v42  ;;  %v3642_v63 = vadd.f32 %v5022_v0, %v5017_v51 }
 0x1c7   :  { %v2244_v38 = vadd.f32 %v3752_v31, %v2083_v43  ;;  %2618 = vadd.xlane.f32.xlu0 %v2233_v25  ;;  %v2682_v57 = vmul.f32 %v2233_v25, %v2233_v25  ;;  %v3645_v31 = vadd.f32 %v5029_v27, %v5024_v21 }
 0x1c8   :  { %v5089_v17 = vpop.f32.mrf.mxu1  ;;  %v2235_v54 = vpop.f32.mrf.mxu0  ;;  %v2115_v42 = vadd.f32 %v3648_v26, %v4931_v15  ;;  %v3660_v15 = vadd.f32 %v5068_v44, %v5061_v1 }
 0x1c9   :  { %v3174_v29 = vpack.c.bf16 %v2244_v38, %v2241_v23  ;;  %v2236_v20 = vadd.f32 %v2235_v54, %v2075_v36  ;;  %2624 = vadd.xlane.f32.xlu1 %v2244_v38  ;;  %v2685_v11 = vmul.f32 %v2244_v38, %v2244_v38  ;;  %v2112_v27 = vadd.f32 %v3645_v31, %v4925_v5 }
 0x1ca   :  { %v5095_v9 = vpop.f32.mrf.mxu1  ;;  %v3755_v46 = vpop.f32.mrf.mxu0  ;;  %v2131_v2 = vadd.f32 %v3660_v15, %v4957_v4 }
 0x1cb   :  { %3246 = vst [vmem:[%s5564_s2 + $0x8] sm:$0xff] %v3174_v29   ;;  %v3169_v8 = vpack.c.bf16 %v2236_v20, %v2233_v25  ;;  %2718 = vadd.xlane.f32.xlu0 %v2684_v37  ;;  %v2257_v23 = vadd.f32 %v3755_v46, %v2096_v40  ;;  %v2683_v43 = vmul.f32 %v2236_v20, %v2236_v20 }
 0x1cc   :  { %v5102_v3 = vpop.f32.mrf.mxu1  ;;  %v2248_v33 = vpop.f32.mrf.mxu0  ;;  %v2104_v29 = vadd.f32 %v3639_v52, %v4913_v41  ;;  %v2107_v37 = vadd.f32 %v3642_v63, %v4919_v53  ;;  %v3651_v53 = vadd.f32 %v5043_v18, %v5038_v58  ;;  %v2128_v58 = vadd.f32 %v3657_v13, %v4949_v56  ;;  %v5578_v63 = vld [vmem:[#allocation3_spill] sm:$0xff] }
 0x1cd   :  { %3170 = vst [vmem:[%s5564_s2] sm:$0xff] %v3169_v8   ;;  %2720 = vadd.xlane.f32.xlu1 %v2685_v11  ;;  %v2249_v25 = vadd.f32 %v2248_v33, %v2088_v62  ;;  %v2688_v18 = vmul.f32 %v2257_v23, %v2257_v23 }
 0x1ce   :  { %v5110_v32 = vpop.f32.mrf.mxu1  ;;  %v3756_v49 = vpop.f32.mrf.mxu0  ;;  %v2120_v28 = vadd.f32 %v3651_v53, %v4937_v30 }
 0x1cf   :  { %v2260_v61 = vadd.f32 %v3756_v49, %v2099_v19  ;;  %2714 = vadd.xlane.f32.xlu0 %v2682_v57 }
 0x1d0   :  { %v3671_v38 = vpop.f32.mrf.mxu1  ;;  %v2251_v14 = vpop.f32.mrf.mxu0 }
 0x1d1   :  { %v3184_v36 = vpack.c.bf16 %v2260_v61, %v2257_v23  ;;  %v2252_v48 = vadd.f32 %v2251_v14, %v2091_v35  ;;  %2716 = vadd.xlane.f32.xlu1 %v2683_v43  ;;  %v2689_v44 = vmul.f32 %v2260_v61, %v2260_v61  ;;  %v3669_v43 = vadd.f32 %v5102_v3, %v5095_v9 }
 0x1d2   :  { %v5117_v24 = vpop.f32.mrf.mxu1  ;;  %v3759_v54 = vpop.f32.mrf.mxu0  ;;  %v2686_v14 = vmul.f32 %v2249_v25, %v2249_v25  ;;  %v3672_v4 = vadd.f32 %v3671_v38, %v5110_v32  ;;  %v3666_v9 = vadd.f32 %v5089_v17, %v5084_v22 }
 0x1d3   :  { %3248 = vst [vmem:[%s5564_s2 + $0x18] sm:$0xff] %v3184_v36   ;;  %v3179_v21 = vpack.c.bf16 %v2252_v48, %v2249_v25  ;;  %2620 = vadd.xlane.f32.xlu0 %v2236_v20  ;;  %v5135_v0 = vadd.f32 %v3759_v54, %v2112_v27  ;;  %v2687_v35 = vmul.f32 %v2252_v48, %v2252_v48 }
 0x1d4   :  { %v5126_v50 = vpop.f32.mrf.mxu1  ;;  %v2264_v12 = vpop.f32.mrf.mxu0 }
 0x1d5   :  { %3247 = vst [vmem:[%s5564_s2 + $0x10] sm:$0xff] %v3179_v21   ;;  %2632 = vadd.xlane.f32.xlu1 %v2260_v61  ;;  %v5147_v10 = vadd.f32 %v2264_v12, %v2104_v29  ;;  %v2123_v61 = vadd.f32 %v3654_v60, %v4943_v39  ;;  %v3663_v39 = vadd.f32 %v5081_v55, %v5073_v45  ;;  %v5581_v60 = vld [vmem:[#allocation4_spill] sm:$0xff] }
 0x1d6   :  { %v5133_v47 = vpop.f32.mrf.mxu1  ;;  %v3760_v51 = vpop.f32.mrf.mxu0  ;;  %v2147_v45 = vadd.f32 %v3672_v4, %v4985_v6  ;;  %v2139_v21 = vadd.f32 %v3666_v9, %v5578_v63 }
 0x1d7   :  { %v5138_v20 = vadd.f32 %v3760_v51, %v2115_v42  ;;  %2630 = vadd.xlane.f32.xlu0 %v2257_v23 }
 0x1d8   :  { %v5143_v46 = vpop.f32.mrf.mxu1  ;;  %v2267_v5 = vpop.f32.mrf.mxu0 }
 0x1d9   :  { %v3194_v8 = vpack.c.bf16 %v5138_v20, %v5135_v0  ;;  %v5151_v41 = vadd.f32 %v2267_v5, %v2107_v37  ;;  %2628 = vadd.xlane.f32.xlu1 %v2252_v48  ;;  %v2136_v48 = vadd.f32 %v3663_v39, %v4964_v16  ;;  %v3675_v16 = vadd.f32 %v5126_v50, %v5117_v24  ;;  %v5579_v24 = vld [vmem:[#allocation6_spill] sm:$0xff] }
 0x1da   :  { %v3679_v11 = vpop.f32.mrf.mxu1  ;;  %v3763_v33 = vpop.f32.mrf.mxu0  ;;  %v3678_v5 = vadd.f32 %v5143_v46, %v5133_v47  ;;  %v5580_v47 = vld [vmem:[#allocation7_spill] sm:$0xff]  ;;  %v5583_v39 = vld [vmem:[#allocation10_spill] sm:$0xff] }
 0x1db   :  { %3250 = vst [vmem:[%s5564_s2 + $0x28] sm:$0xff] %v3194_v8   ;;  %v3189_v34 = vpack.c.bf16 %v5151_v41, %v5147_v10  ;;  %2626 = vadd.xlane.f32.xlu0 %v2249_v25  ;;  %v5168_v62 = vadd.f32 %v3763_v33, %v2128_v58  ;;  %v2144_v25 = vadd.f32 %v3669_v43, %v4978_v59  ;;  %v5582_v58 = vld [vmem:[#allocation5_spill] sm:$0xff] }
 0x1dc   :  { %v3680_v1 = vpop.f32.mrf.mxu1  ;;  %v2280_v40 = vpop.f32.mrf.mxu0  ;;  %v2693_v8 = vmul.f32 %v5138_v20, %v5138_v20  ;;  %v2692_v33 = vmul.f32 %v5135_v0, %v5135_v0 }
 0x1dd   :  { %3249 = vst [vmem:[%s5564_s2 + $0x20] sm:$0xff] %v3189_v34   ;;  %2728 = vadd.xlane.f32.xlu1 %v2689_v44  ;;  %v5176_v23 = vadd.f32 %v2280_v40, %v2120_v28  ;;  %v3681_v12 = vadd.f32 %v3680_v1, %v3679_v11  ;;  %v2152_v34 = vadd.f32 %v3675_v16, %v5581_v60  ;;  %v5588_v60 = vld [vmem:[#allocation13_spill] sm:$0xff] }
 0x1de   :  { %v3682_v19 = vpop.f32.mrf.mxu1  ;;  %v3764_v57 = vpop.f32.mrf.mxu0 }
 0x1df   :  { %v5170_v49 = vadd.f32 %v3764_v57, %v2131_v2  ;;  %2726 = vadd.xlane.f32.xlu0 %v2688_v18  ;;  %v2160_v50 = vadd.f32 %v3681_v12, %v5579_v24  ;;  %v2155_v2 = vadd.f32 %v3678_v5, %v5582_v58  ;;  %v2691_v18 = vmul.f32 %v5151_v41, %v5151_v41 }
 0x1e0   :  { %v3683_v56 = vpop.f32.mrf.mxu1  ;;  %v2283_v31 = vpop.f32.mrf.mxu0  ;;  %v2696_v24 = vmul.f32 %v5168_v62, %v5168_v62  ;;  %v2694_v58 = vmul.f32 %v5176_v23, %v5176_v23 }
 0x1e1   :  { %v3204_v30 = vpack.c.bf16 %v5170_v49, %v5168_v62  ;;  %v5180_v26 = vadd.f32 %v2283_v31, %v2123_v61  ;;  %2724 = vadd.xlane.f32.xlu1 %v2687_v35  ;;  %v3684_v59 = vadd.f32 %v3683_v56, %v3682_v19 }
 0x1e2   :  { %v3685_v36 = vpop.f32.mrf.mxu1  ;;  %v3767_v54 = vpop.f32.mrf.mxu0 }
 0x1e3   :  { %3252 = vst [vmem:[%s5564_s2 + $0x38] sm:$0xff] %v3204_v30   ;;  %v3199_v3 = vpack.c.bf16 %v5180_v26, %v5176_v23  ;;  %2722 = vadd.xlane.f32.xlu0 %v2686_v14  ;;  %v5197_v17 = vadd.f32 %v3767_v54, %v2144_v25  ;;  %v2163_v46 = vadd.f32 %v3684_v59, %v5580_v47 }
 0x1e4   :  { %v3686_v32 = vpop.f32.mrf.mxu1  ;;  %v2296_v38 = vpop.f32.mrf.mxu0 }
 0x1e5   :  { %3251 = vst [vmem:[%s5564_s2 + $0x30] sm:$0xff] %v3199_v3   ;;  %2640 = vadd.xlane.f32.xlu1 %v5138_v20  ;;  %v5204_v51 = vadd.f32 %v2296_v38, %v2136_v48  ;;  %v3687_v4 = vadd.f32 %v3686_v32, %v3685_v36  ;;  %v5584_v36 = vld [vmem:[#allocation11_spill] sm:$0xff]  ;;  %v5586_v48 = vld [vmem:[#allocation9_spill] sm:$0xff] }
 0x1e6   :  { %v3688_v55 = vpop.f32.mrf.mxu1  ;;  %v3768_v22 = vpop.f32.mrf.mxu0 }
 0x1e7   :  { %v5200_v52 = vadd.f32 %v3768_v22, %v2147_v45  ;;  %2638 = vadd.xlane.f32.xlu0 %v5135_v0  ;;  %v2690_v0 = vmul.f32 %v5147_v10, %v5147_v10  ;;  %v5585_v45 = vld [vmem:[#allocation8_spill] sm:$0xff] }
 0x1e8   :  { %v3689_v27 = vpop.f32.mrf.mxu1  ;;  %v2299_v42 = vpop.f32.mrf.mxu0 }
 0x1e9   :  { %v3214_v6 = vpack.c.bf16 %v5200_v52, %v5197_v17  ;;  %v5208_v29 = vadd.f32 %v2299_v42, %v2139_v21  ;;  %2636 = vadd.xlane.f32.xlu1 %v5151_v41  ;;  %v3690_v30 = vadd.f32 %v3689_v27, %v3688_v55  ;;  %v2168_v55 = vadd.f32 %v3687_v4, %v5585_v45 }
 0x1ea   :  { %v3691_v37 = vpop.f32.mrf.mxu1  ;;  %v3771_v13 = vpop.f32.mrf.mxu0 }
 0x1eb   :  { %3254 = vst [vmem:[%s5564_s2 + $0x48] sm:$0xff] %v3214_v6   ;;  %v3209_v15 = vpack.c.bf16 %v5208_v29, %v5204_v51  ;;  %2634 = vadd.xlane.f32.xlu0 %v5147_v10  ;;  %v5231_v40 = vadd.f32 %v3771_v13, %v2160_v50  ;;  %v2171_v63 = vadd.f32 %v3690_v30, %v5586_v48 }
 0x1ec   :  { %v3692_v53 = vpop.f32.mrf.mxu1  ;;  %v2312_v11 = vpop.f32.mrf.mxu0 }
 0x1ed   :  { %3253 = vst [vmem:[%s5564_s2 + $0x40] sm:$0xff] %v3209_v15   ;;  %2736 = vadd.xlane.f32.xlu1 %v2693_v8  ;;  %v3693_v28 = vadd.f32 %v3692_v53, %v3691_v37  ;;  %v5240_v61 = vadd.f32 %v2312_v11, %v2152_v34  ;;  %v2697_v15 = vmul.f32 %v5170_v49, %v5170_v49 }
 0x1ee   :  { %v3694_v44 = vpop.f32.mrf.mxu1  ;;  %v3772_v1 = vpop.f32.mrf.mxu0 }
 0x1ef   :  { %v5233_v20 = vadd.f32 %v3772_v1, %v2163_v46  ;;  %2734 = vadd.xlane.f32.xlu0 %v2692_v33  ;;  %v2176_v9 = vadd.f32 %v3693_v28, %v5583_v39  ;;  %v5587_v46 = vld [vmem:[#allocation12_spill] sm:$0xff] }
 0x1f0   :  { %v3695_v19 = vpop.f32.mrf.mxu1  ;;  %v2315_v57 = vpop.f32.mrf.mxu0 }
 0x1f1   :  { %v3224_v35 = vpack.c.bf16 %v5233_v20, %v5231_v40  ;;  %v3696_v43 = vadd.f32 %v3695_v19, %v3694_v44  ;;  %v5244_v56 = vadd.f32 %v2315_v57, %v2155_v2  ;;  %2732 = vadd.xlane.f32.xlu1 %v2691_v18  ;;  %v5589_v2 = vld [vmem:[#allocation14_spill] sm:$0xff] }
 0x1f2   :  { %v3697_v31 = vpop.f32.mrf.mxu1  ;;  %v3775_v14 = vpop.f32.mrf.mxu0 }
 0x1f3   :  { %3256 = vst [vmem:[%s5564_s2 + $0x58] sm:$0xff] %v3224_v35   ;;  %v3219_v10 = vpack.c.bf16 %v5244_v56, %v5240_v61  ;;  %2730 = vadd.xlane.f32.xlu0 %v2690_v0  ;;  %v2179_v3 = vadd.f32 %v3696_v43, %v5584_v36  ;;  %v5257_v25 = vadd.f32 %v3775_v14, %v2176_v9 }
 0x1f4   :  { %v3698_v41 = vpop.f32.mrf.mxu1  ;;  %v2328_v54 = vpop.f32.mrf.mxu0  ;;  %v2698_v14 = vmul.f32 %v5204_v51, %v5204_v51 }
 0x1f5   :  { %3255 = vst [vmem:[%s5564_s2 + $0x50] sm:$0xff] %v3219_v10   ;;  %2648 = vadd.xlane.f32.xlu1 %v5170_v49  ;;  %v5264_v27 = vadd.f32 %v2328_v54, %v2168_v55  ;;  %v3699_v37 = vadd.f32 %v3698_v41, %v3697_v31  ;;  %v2695_v49 = vmul.f32 %v5180_v26, %v5180_v26  ;;  %v2778_v54 = vlaneseq }
 0x1f6   :  { %v3700_v32 = vpop.f32.mrf.mxu1  ;;  %v3776_v38 = vpop.f32.mrf.mxu0  ;;  %v2699_v31 = vmul.f32 %v5208_v29, %v5208_v29 }
 0x1f7   :  { %v5260_v22 = vadd.f32 %v3776_v38, %v2179_v3  ;;  %2646 = vadd.xlane.f32.xlu0 %v5168_v62  ;;  %v2184_v33 = vadd.f32 %v3699_v37, %v5587_v46  ;;  %v5334_v9 = vand.u32 127, %v2778_v54 }
 0x1f8   :  { %v3701_v21 = vpop.f32.mrf.mxu1  ;;  %v2331_v12 = vpop.f32.mrf.mxu0 }
 0x1f9   :  { %v3234_v42 = vpack.c.bf16 %v5260_v22, %v5257_v25  ;;  %v5268_v59 = vadd.f32 %v2331_v12, %v2171_v63  ;;  %2644 = vadd.xlane.f32.xlu1 %v5180_v26  ;;  %v3702_v13 = vadd.f32 %v3701_v21, %v3700_v32  ;;  %vm2781_vm0 = vcmp.eq.s32.totalorder %v5334_v9, 1 }
 0x1fa   :  { %v3703_v6 = vpop.f32.mrf.mxu1  ;;  %v3779_v16 = vpop.f32.mrf.mxu0  ;;  %vm2780_vm1 = vcmp.eq.s32.totalorder %v5334_v9, 0 }
 0x1fb   :  { %3258 = vst [vmem:[%s5564_s2 + $0x68] sm:$0xff] %v3234_v42   ;;  %v3229_v5 = vpack.c.bf16 %v5268_v59, %v5264_v27  ;;  %2642 = vadd.xlane.f32.xlu0 %v5176_v23  ;;  %v2187_v34 = vadd.f32 %v3702_v13, %v5588_v60  ;;  %v2700_v23 = vmul.f32 %v5197_v17, %v5197_v17 }
 0x1fc   :  { %v3704_v8 = vpop.f32.mrf.mxu1  ;;  %v2344_v53 = vpop.f32.mrf.mxu0 }
 0x1fd   :  { %3257 = vst [vmem:[%s5564_s2 + $0x60] sm:$0xff] %v3229_v5   ;;  %v3705_v11 = vadd.f32 %v3704_v8, %v3703_v6  ;;  %2744 = vadd.xlane.f32.xlu1 %v2697_v15  ;;  %v2345_v28 = vadd.f32 %v2344_v53, %v2184_v33 }
 0x1fe   :  { %v3706_v50 = vpop.f32.mrf.mxu1  ;;  %v3780_v47 = vpop.f32.mrf.mxu0 }
 0x1ff   :  { %2742 = vadd.xlane.f32.xlu0 %v2696_v24  ;;  %v2192_v18 = vadd.f32 %v3705_v11, %v5589_v2  ;;  %v2710_v30 = vmul.f32 %v2345_v28, %v2345_v28 }
 0x200   :  { %v3707_v44 = vpop.f32.mrf.mxu1  ;;  %v2347_v1 = vpop.f32.mrf.mxu0 }
 0x201   :  { %v3708_v19 = vadd.f32 %v3707_v44, %v3706_v50  ;;  %v2348_v62 = vadd.f32 %v2347_v1, %v2187_v34  ;;  %2740 = vadd.xlane.f32.xlu1 %v2695_v49  ;;  %v2353_v35 = vadd.f32 %v3779_v16, %v2192_v18 }
 0x203   :  { %v2195_v57 = vadd.f32 %v3708_v19, %v5078_v7  ;;  %v3239_v0 = vpack.c.bf16 %v2348_v62, %v2345_v28  ;;  %2738 = vadd.xlane.f32.xlu0 %v2694_v58  ;;  %v2701_v7 = vmul.f32 %v5200_v52, %v5200_v52  ;;  %v2711_v4 = vmul.f32 %v2348_v62, %v2348_v62 }
 0x204   :  { %v2712_v41 = vmul.f32 %v2353_v35, %v2353_v35 }
 0x205   :  { %v2356_v43 = vadd.f32 %v3780_v47, %v2195_v57  ;;  %3259 = vst [vmem:[%s5564_s2 + $0x70] sm:$0xff] %v3239_v0   ;;  %2656 = vadd.xlane.f32.xlu1 %v5200_v52  ;;  %v2704_v52 = vmul.f32 %v5231_v40, %v5231_v40 }
 0x207   :  { %v3244_v26 = vpack.c.bf16 %v2356_v43, %v2353_v35  ;;  %2654 = vadd.xlane.f32.xlu0 %v5197_v17  ;;  %v2705_v17 = vmul.f32 %v5233_v20, %v5233_v20  ;;  %v2713_v10 = vmul.f32 %v2356_v43, %v2356_v43 }
 0x209   :  { %3260 = vst [vmem:[%s5564_s2 + $0x78] sm:$0xff] %v3244_v26   ;;  %2652 = vadd.xlane.f32.xlu1 %v5208_v29  ;;  %v2702_v29 = vmul.f32 %v5240_v61, %v5240_v61 }
 0x20b   :  { %2650 = vadd.xlane.f32.xlu0 %v5204_v51  ;;  %v2703_v51 = vmul.f32 %v5244_v56, %v5244_v56 }
 0x20d   :  { %2752 = vadd.xlane.f32.xlu1 %v2701_v7 }
 0x20f   :  { %2750 = vadd.xlane.f32.xlu0 %v2700_v23 }
 0x211   :  { %2748 = vadd.xlane.f32.xlu1 %v2699_v31 }
 0x213   :  { %2746 = vadd.xlane.f32.xlu0 %v2698_v14 }
 0x215   :  { %2664 = vadd.xlane.f32.xlu1 %v5233_v20  ;;  %v2708_v20 = vmul.f32 %v5257_v25, %v5257_v25 }
 0x217   :  { %2662 = vadd.xlane.f32.xlu0 %v5231_v40  ;;  %v2709_v40 = vmul.f32 %v5260_v22, %v5260_v22 }
 0x219   :  { %2660 = vadd.xlane.f32.xlu1 %v5244_v56  ;;  %v2706_v56 = vmul.f32 %v5264_v27, %v5264_v27 }
 0x21b   :  { %2658 = vadd.xlane.f32.xlu0 %v5240_v61  ;;  %v2707_v61 = vmul.f32 %v5268_v59, %v5268_v59 }
 0x21d   :  { %2760 = vadd.xlane.f32.xlu1 %v2705_v17 }
 0x21f   :  { %2758 = vadd.xlane.f32.xlu0 %v2704_v52 }
 0x221   :  { %2756 = vadd.xlane.f32.xlu1 %v2703_v51 }
 0x223   :  { %2754 = vadd.xlane.f32.xlu0 %v2702_v29 }
 0x225   :  { %2672 = vadd.xlane.f32.xlu1 %v5260_v22 }
 0x227   :  { %2670 = vadd.xlane.f32.xlu0 %v5257_v25 }
 0x229   :  { %2668 = vadd.xlane.f32.xlu1 %v5268_v59 }
 0x22b   :  { %2666 = vadd.xlane.f32.xlu0 %v5264_v27 }
 0x22d   :  { %2768 = vadd.xlane.f32.xlu1 %v2709_v40 }
 0x22f   :  { %2766 = vadd.xlane.f32.xlu0 %v2708_v20 }
 0x231   :  { %2764 = vadd.xlane.f32.xlu1 %v2707_v61 }
 0x233   :  { %2762 = vadd.xlane.f32.xlu0 %v2706_v56 }
 0x235   :  { %2676 = vadd.xlane.f32.xlu1 %v2348_v62 }
 0x237   :  { %2674 = vadd.xlane.f32.xlu0 %v2345_v28 }
 0x239   :  { %2772 = vadd.xlane.f32.xlu1 %v2711_v4 }
 0x23b   :  { %2770 = vadd.xlane.f32.xlu0 %v2710_v30 }
 0x23d   :  { %2776 = vadd.xlane.f32.xlu1 %v2713_v10 }
 0x23f   :  { %2774 = vadd.xlane.f32.xlu0 %v2712_v41 }
 0x241   :  { %2680 = vadd.xlane.f32.xlu1 %v2356_v43 }
 0x243   :  { %2678 = vadd.xlane.f32.xlu0 %v2353_v35 }
 0x24e   :  { %v2623_v39 = vpop.xlane.xlu1 %2622 }
 0x250   :  { %v2619_v36 = vpop.xlane.xlu0 %2618 }
 0x252   :  { %v2625_v3 = vpop.xlane.xlu1 %2624 }
 0x254   :  { %v2719_v32 = vpop.xlane.xlu0 %2718 }
 0x255   :  { %v2784_v38 = vsel %vm2781_vm0, %v2719_v32, 0.0 }
 0x256   :  { %v2816_v25 = vsel %vm2780_vm1, %v2623_v39, %v2784_v38  ;;  %v2721_v45 = vpop.xlane.xlu1 %2720 }
 0x257   :  { %2848 = vst [vmem:[%s5565_s3 + $0x10] sm:$0xff] %v2816_v25  ;;  %v2785_v55 = vsel %vm2781_vm0, %v2721_v45, 0.0 }
 0x258   :  { %v2817_v22 = vsel %vm2780_vm1, %v2625_v3, %v2785_v55  ;;  %v2715_v48 = vpop.xlane.xlu0 %2714 }
 0x259   :  { %2849 = vst [vmem:[%s5565_s3 + $0x18] sm:$0xff] %v2817_v22  ;;  %v2782_v63 = vsel %vm2781_vm0, %v2715_v48, 0.0 }
 0x25a   :  { %v2814_v21 = vsel %vm2780_vm1, %v2619_v36, %v2782_v63  ;;  %v2717_v12 = vpop.xlane.xlu1 %2716 }
 0x25b   :  { %2846 = vst [vmem:[%s5565_s3] sm:$0xff] %v2814_v21  ;;  %v2783_v27 = vsel %vm2781_vm0, %v2717_v12, 0.0 }
 0x25c   :  { %v2621_v42 = vpop.xlane.xlu0 %2620 }
 0x25d   :  { %v2815_v59 = vsel %vm2780_vm1, %v2621_v42, %v2783_v27 }
 0x25e   :  { %2847 = vst [vmem:[%s5565_s3 + $0x8] sm:$0xff] %v2815_v59  ;;  %v2633_v6 = vpop.xlane.xlu1 %2632 }
 0x260   :  { %v2631_v16 = vpop.xlane.xlu0 %2630 }
 0x262   :  { %v2629_v37 = vpop.xlane.xlu1 %2628 }
 0x264   :  { %v2627_v13 = vpop.xlane.xlu0 %2626 }
 0x266   :  { %v2729_v5 = vpop.xlane.xlu1 %2728 }
 0x267   :  { %v2789_v15 = vsel %vm2781_vm0, %v2729_v5, 0.0 }
 0x268   :  { %v2821_v8 = vsel %vm2780_vm1, %v2633_v6, %v2789_v15  ;;  %v2727_v53 = vpop.xlane.xlu0 %2726 }
 0x269   :  { %2853 = vst [vmem:[%s5565_s3 + $0x38] sm:$0xff] %v2821_v8  ;;  %v2788_v11 = vsel %vm2781_vm0, %v2727_v53, 0.0 }
 0x26a   :  { %v2820_v24 = vsel %vm2780_vm1, %v2631_v16, %v2788_v11  ;;  %v2725_v50 = vpop.xlane.xlu1 %2724 }
 0x26b   :  { %2852 = vst [vmem:[%s5565_s3 + $0x30] sm:$0xff] %v2820_v24  ;;  %v2787_v47 = vsel %vm2781_vm0, %v2725_v50, 0.0 }
 0x26c   :  { %v2819_v46 = vsel %vm2780_vm1, %v2629_v37, %v2787_v47  ;;  %v2723_v33 = vpop.xlane.xlu0 %2722 }
 0x26d   :  { %2851 = vst [vmem:[%s5565_s3 + $0x28] sm:$0xff] %v2819_v46  ;;  %v2786_v60 = vsel %vm2781_vm0, %v2723_v33, 0.0 }
 0x26e   :  { %v2818_v34 = vsel %vm2780_vm1, %v2627_v13, %v2786_v60  ;;  %v2641_v49 = vpop.xlane.xlu1 %2640 }
 0x26f   :  { %2850 = vst [vmem:[%s5565_s3 + $0x20] sm:$0xff] %v2818_v34 }
 0x270   :  { %v2639_v44 = vpop.xlane.xlu0 %2638 }
 0x272   :  { %v2637_v1 = vpop.xlane.xlu1 %2636 }
 0x274   :  { %v2635_v58 = vpop.xlane.xlu0 %2634 }
 0x276   :  { %v2737_v2 = vpop.xlane.xlu1 %2736 }
 0x277   :  { %v2793_v18 = vsel %vm2781_vm0, %v2737_v2, 0.0 }
 0x278   :  { %v2825_v28 = vsel %vm2780_vm1, %v2641_v49, %v2793_v18  ;;  %v2735_v19 = vpop.xlane.xlu0 %2734 }
 0x279   :  { %2857 = vst [vmem:[%s5565_s3 + $0x58] sm:$0xff] %v2825_v28  ;;  %v2792_v62 = vsel %vm2781_vm0, %v2735_v19, 0.0 }
 0x27a   :  { %v2824_v57 = vsel %vm2780_vm1, %v2639_v44, %v2792_v62  ;;  %v2733_v0 = vpop.xlane.xlu1 %2732 }
 0x27b   :  { %2856 = vst [vmem:[%s5565_s3 + $0x50] sm:$0xff] %v2824_v57  ;;  %v2791_v35 = vsel %vm2781_vm0, %v2733_v0, 0.0 }
 0x27c   :  { %v2823_v43 = vsel %vm2780_vm1, %v2637_v1, %v2791_v35  ;;  %v2731_v26 = vpop.xlane.xlu0 %2730 }
 0x27d   :  { %2855 = vst [vmem:[%s5565_s3 + $0x48] sm:$0xff] %v2823_v43  ;;  %v2790_v7 = vsel %vm2781_vm0, %v2731_v26, 0.0 }
 0x27e   :  { %v2822_v23 = vsel %vm2780_vm1, %v2635_v58, %v2790_v7  ;;  %v2649_v31 = vpop.xlane.xlu1 %2648 }
 0x27f   :  { %2854 = vst [vmem:[%s5565_s3 + $0x40] sm:$0xff] %v2822_v23 }
 0x280   :  { %v2647_v14 = vpop.xlane.xlu0 %2646 }
 0x282   :  { %v2645_v17 = vpop.xlane.xlu1 %2644 }
 0x284   :  { %v2643_v52 = vpop.xlane.xlu0 %2642 }
 0x286   :  { %v2745_v51 = vpop.xlane.xlu1 %2744 }
 0x287   :  { %v2797_v29 = vsel %vm2781_vm0, %v2745_v51, 0.0 }
 0x288   :  { %v2829_v40 = vsel %vm2780_vm1, %v2649_v31, %v2797_v29  ;;  %v2743_v20 = vpop.xlane.xlu0 %2742 }
 0x289   :  { %2861 = vst [vmem:[%s5565_s3 + $0x78] sm:$0xff] %v2829_v40  ;;  %v2796_v61 = vsel %vm2781_vm0, %v2743_v20, 0.0 }
 0x28a   :  { %v2828_v56 = vsel %vm2780_vm1, %v2647_v14, %v2796_v61  ;;  %v2741_v4 = vpop.xlane.xlu1 %2740 }
 0x28b   :  { %2860 = vst [vmem:[%s5565_s3 + $0x70] sm:$0xff] %v2828_v56  ;;  %v2795_v30 = vsel %vm2781_vm0, %v2741_v4, 0.0 }
 0x28c   :  { %v2827_v10 = vsel %vm2780_vm1, %v2645_v17, %v2795_v30  ;;  %v2739_v41 = vpop.xlane.xlu0 %2738 }
 0x28d   :  { %2859 = vst [vmem:[%s5565_s3 + $0x68] sm:$0xff] %v2827_v10  ;;  %v2794_v54 = vsel %vm2781_vm0, %v2739_v41, 0.0 }
 0x28e   :  { %v2826_v39 = vsel %vm2780_vm1, %v2643_v52, %v2794_v54  ;;  %v2657_v36 = vpop.xlane.xlu1 %2656 }
 0x28f   :  { %2858 = vst [vmem:[%s5565_s3 + $0x60] sm:$0xff] %v2826_v39 }
 0x290   :  { %v2655_v3 = vpop.xlane.xlu0 %2654 }
 0x292   :  { %v2653_v32 = vpop.xlane.xlu1 %2652 }
 0x294   :  { %v2651_v38 = vpop.xlane.xlu0 %2650 }
 0x296   :  { %v2753_v25 = vpop.xlane.xlu1 %2752 }
 0x297   :  { %v2801_v45 = vsel %vm2781_vm0, %v2753_v25, 0.0 }
 0x298   :  { %v2833_v55 = vsel %vm2780_vm1, %v2657_v36, %v2801_v45  ;;  %v2751_v22 = vpop.xlane.xlu0 %2750 }
 0x299   :  { %2865 = vst [vmem:[%s5565_s3 + $0x98] sm:$0xff] %v2833_v55  ;;  %v2800_v48 = vsel %vm2781_vm0, %v2751_v22, 0.0 }
 0x29a   :  { %v2832_v63 = vsel %vm2780_vm1, %v2655_v3, %v2800_v48  ;;  %v2749_v21 = vpop.xlane.xlu1 %2748 }
 0x29b   :  { %2864 = vst [vmem:[%s5565_s3 + $0x90] sm:$0xff] %v2832_v63  ;;  %v2799_v12 = vsel %vm2781_vm0, %v2749_v21, 0.0 }
 0x29c   :  { %v2831_v27 = vsel %vm2780_vm1, %v2653_v32, %v2799_v12  ;;  %v2747_v42 = vpop.xlane.xlu0 %2746 }
 0x29d   :  { %2863 = vst [vmem:[%s5565_s3 + $0x88] sm:$0xff] %v2831_v27  ;;  %v2798_v59 = vsel %vm2781_vm0, %v2747_v42, 0.0 }
 0x29e   :  { %v2830_v6 = vsel %vm2780_vm1, %v2651_v38, %v2798_v59  ;;  %v2665_v16 = vpop.xlane.xlu1 %2664 }
 0x29f   :  { %2862 = vst [vmem:[%s5565_s3 + $0x80] sm:$0xff] %v2830_v6 }
 0x2a0   :  { %v2663_v37 = vpop.xlane.xlu0 %2662 }
 0x2a2   :  { %v2661_v13 = vpop.xlane.xlu1 %2660 }
 0x2a4   :  { %v2659_v5 = vpop.xlane.xlu0 %2658 }
 0x2a6   :  { %v2761_v15 = vpop.xlane.xlu1 %2760 }
 0x2a7   :  { %v2805_v8 = vsel %vm2781_vm0, %v2761_v15, 0.0 }
 0x2a8   :  { %v2837_v53 = vsel %vm2780_vm1, %v2665_v16, %v2805_v8  ;;  %v2759_v11 = vpop.xlane.xlu0 %2758 }
 0x2a9   :  { %2869 = vst [vmem:[%s5565_s3 + $0xb8] sm:$0xff] %v2837_v53  ;;  %v2804_v24 = vsel %vm2781_vm0, %v2759_v11, 0.0 }
 0x2aa   :  { %v2836_v50 = vsel %vm2780_vm1, %v2663_v37, %v2804_v24  ;;  %v2757_v47 = vpop.xlane.xlu1 %2756 }
 0x2ab   :  { %2868 = vst [vmem:[%s5565_s3 + $0xb0] sm:$0xff] %v2836_v50  ;;  %v2803_v46 = vsel %vm2781_vm0, %v2757_v47, 0.0 }
 0x2ac   :  { %v2835_v33 = vsel %vm2780_vm1, %v2661_v13, %v2803_v46  ;;  %v2755_v60 = vpop.xlane.xlu0 %2754 }
 0x2ad   :  { %2867 = vst [vmem:[%s5565_s3 + $0xa8] sm:$0xff] %v2835_v33  ;;  %v2802_v34 = vsel %vm2781_vm0, %v2755_v60, 0.0 }
 0x2ae   :  { %v2834_v49 = vsel %vm2780_vm1, %v2659_v5, %v2802_v34  ;;  %v2673_v44 = vpop.xlane.xlu1 %2672 }
 0x2af   :  { %2866 = vst [vmem:[%s5565_s3 + $0xa0] sm:$0xff] %v2834_v49 }
 0x2b0   :  { %v2671_v1 = vpop.xlane.xlu0 %2670 }
 0x2b2   :  { %v2669_v58 = vpop.xlane.xlu1 %2668 }
 0x2b4   :  { %v2667_v2 = vpop.xlane.xlu0 %2666 }
 0x2b6   :  { %v2769_v18 = vpop.xlane.xlu1 %2768 }
 0x2b7   :  { %v2809_v28 = vsel %vm2781_vm0, %v2769_v18, 0.0 }
 0x2b8   :  { %v2841_v19 = vsel %vm2780_vm1, %v2673_v44, %v2809_v28  ;;  %v2767_v62 = vpop.xlane.xlu0 %2766 }
 0x2b9   :  { %2873 = vst [vmem:[%s5565_s3 + $0xd8] sm:$0xff] %v2841_v19  ;;  %v2808_v57 = vsel %vm2781_vm0, %v2767_v62, 0.0 }
 0x2ba   :  { %v2840_v0 = vsel %vm2780_vm1, %v2671_v1, %v2808_v57  ;;  %v2765_v35 = vpop.xlane.xlu1 %2764 }
 0x2bb   :  { %2872 = vst [vmem:[%s5565_s3 + $0xd0] sm:$0xff] %v2840_v0  ;;  %v2807_v43 = vsel %vm2781_vm0, %v2765_v35, 0.0 }
 0x2bc   :  { %v2839_v26 = vsel %vm2780_vm1, %v2669_v58, %v2807_v43  ;;  %v2763_v7 = vpop.xlane.xlu0 %2762 }
 0x2bd   :  { %2871 = vst [vmem:[%s5565_s3 + $0xc8] sm:$0xff] %v2839_v26  ;;  %v2806_v23 = vsel %vm2781_vm0, %v2763_v7, 0.0 }
 0x2be   :  { %v2838_v31 = vsel %vm2780_vm1, %v2667_v2, %v2806_v23  ;;  %v2677_v14 = vpop.xlane.xlu1 %2676 }
 0x2bf   :  { %2870 = vst [vmem:[%s5565_s3 + $0xc0] sm:$0xff] %v2838_v31 }
 0x2c0   :  { %v2675_v17 = vpop.xlane.xlu0 %2674 }
 0x2c2   :  { %v2773_v52 = vpop.xlane.xlu1 %2772 }
 0x2c3   :  { %v2811_v51 = vsel %vm2781_vm0, %v2773_v52, 0.0 }
 0x2c4   :  { %v2843_v29 = vsel %vm2780_vm1, %v2677_v14, %v2811_v51  ;;  %v2771_v40 = vpop.xlane.xlu0 %2770 }
 0x2c5   :  { %2875 = vst [vmem:[%s5565_s3 + $0xe8] sm:$0xff] %v2843_v29  ;;  %v2810_v20 = vsel %vm2781_vm0, %v2771_v40, 0.0 }
 0x2c6   :  { %v2842_v61 = vsel %vm2780_vm1, %v2675_v17, %v2810_v20  ;;  %v2777_v56 = vpop.xlane.xlu1 %2776 }
 0x2c7   :  { %2874 = vst [vmem:[%s5565_s3 + $0xe0] sm:$0xff] %v2842_v61  ;;  %v2813_v30 = vsel %vm2781_vm0, %v2777_v56, 0.0 }
 0x2c8   :  { %v2775_v4 = vpop.xlane.xlu0 %2774 }
 0x2c9   :  { %v2812_v54 = vsel %vm2781_vm0, %v2775_v4, 0.0 }
 0x2ca   :  { %v2681_v10 = vpop.xlane.xlu1 %2680 }
 0x2cb   :  { %v2845_v41 = vsel %vm2780_vm1, %v2681_v10, %v2813_v30 }
 0x2cc   :  { %2877 = vst [vmem:[%s5565_s3 + $0xf8] sm:$0xff] %v2845_v41  ;;  %v2679_v39 = vpop.xlane.xlu0 %2678 }
 0x2cd   :  { %v2844_v36 = vsel %vm2780_vm1, %v2679_v39, %v2812_v54 }
 0x2ce   :  { %2876 = vst [vmem:[%s5565_s3 + $0xf0] sm:$0xff] %v2844_v36 }

// kernel: tile.48
= control target key start
LH: loop header
LB: loop body
LE: loop exit
PB: predicated region body
PF: predicated region fallthrough
CT: control target
= control target key end

     0   :  { %s22_s0 = inlined_call_operand.vmem [shape: f32[32], index: 0, kind: input, shape index: {}]   ;;  %s23_s1 = inlined_call_operand.vmem [shape: f32[4,32], index: 1, kind: output, shape index: {}]  }
   0x1   :  { %v4_v0 = vld [vmem:[%s22_s0] ss:$0 sm:$0xff] }
   0x2   :  { %5 = vst [vmem:[%s23_s1] sm:$0xf] %v4_v0 }

// kernel: generator_forward.13
= control target key start
LH: loop header
LB: loop body
LE: loop exit
PB: predicated region body
PF: predicated region fallthrough
CT: control target
= control target key end

     0   :  { %s2116_s1 = inlined_call_operand.vmem [shape: bf16[640,128], index: 1, kind: input, shape index: {}]   ;;  %s2117_s0 = inlined_call_operand.vmem [shape: bf16[128,640], index: 0, kind: input, shape index: {}]   ;;  %s2118_s2 = inlined_call_operand.vmem [shape: bf16[128,128], index: 2, kind: output, shape index: {0}]   ;;  %s2119_s3 = inlined_call_operand.vmem [shape: f32[128,128], index: 3, kind: output, shape index: {1}]  }
   0x1   :  { %v1539_v0 = vld [vmem:[%s2116_s1 + $0x78] sm:$0xff]   ;;  %v1543_v4 = vld [vmem:[%s2116_s1 + $0x70] sm:$0xff]   ;;  %v1547_v8 = vld [vmem:[%s2116_s1 + $0x68] sm:$0xff]  }
   0x2   :  { %v1540_v1 = vld [vmem:[%s2116_s1 + $0xf8] sm:$0xff]   ;;  %1347 = vmatprep.subr.bf16.mxu0 %v1539_v0  ;;  %v1544_v5 = vld [vmem:[%s2116_s1 + $0xf0] sm:$0xff]   ;;  %v1548_v9 = vld [vmem:[%s2116_s1 + $0xe8] sm:$0xff]  }
   0x3   :  { %v1541_v2 = vld [vmem:[%s2116_s1 + $0x38] sm:$0xff]   ;;  %1411 = vmatprep.subr.bf16.mxu1 %v1540_v1  ;;  %v1545_v6 = vld [vmem:[%s2116_s1 + $0x30] sm:$0xff]   ;;  %v1549_v10 = vld [vmem:[%s2116_s1 + $0x28] sm:$0xff]  }
   0x4   :  { %v1542_v3 = vld [vmem:[%s2116_s1 + $0xb8] sm:$0xff]   ;;  %1348 = vmatpush3.bf16.msra.mxu0 %v1541_v2  ;;  %v1546_v7 = vld [vmem:[%s2116_s1 + $0xb0] sm:$0xff]   ;;  %v1550_v11 = vld [vmem:[%s2116_s1 + $0xa8] sm:$0xff]  }
   0x5   :  { %1412 = vmatpush3.bf16.msra.mxu1 %v1542_v3  ;;  %1349 = vmatprep.subr.bf16.mxu0 %v1543_v4  ;;  %v1551_v12 = vld [vmem:[%s2116_s1 + $0x60] sm:$0xff]   ;;  %v1555_v16 = vld [vmem:[%s2116_s1 + $0x58] sm:$0xff]   ;;  %v1559_v20 = vld [vmem:[%s2116_s1 + $0x50] sm:$0xff]  }
   0x6   :  { %1413 = vmatprep.subr.bf16.mxu1 %v1544_v5  ;;  %v1552_v13 = vld [vmem:[%s2116_s1 + $0xe0] sm:$0xff]   ;;  %v1556_v17 = vld [vmem:[%s2116_s1 + $0xd8] sm:$0xff]   ;;  %v1560_v21 = vld [vmem:[%s2116_s1 + $0xd0] sm:$0xff]  }
   0x7   :  { %v1553_v14 = vld [vmem:[%s2116_s1 + $0x20] sm:$0xff]   ;;  %v1557_v18 = vld [vmem:[%s2116_s1 + $0x18] sm:$0xff]   ;;  %v1561_v22 = vld [vmem:[%s2116_s1 + $0x10] sm:$0xff]  }
   0x8   :  { %1350 = vmatpush3.bf16.msra.mxu0 %v1545_v6  ;;  %v1554_v15 = vld [vmem:[%s2116_s1 + $0xa0] sm:$0xff]   ;;  %v1558_v19 = vld [vmem:[%s2116_s1 + $0x98] sm:$0xff]   ;;  %v1562_v23 = vld [vmem:[%s2116_s1 + $0x90] sm:$0xff]  }
   0x9   :  { %1414 = vmatpush3.bf16.msra.mxu1 %v1546_v7  ;;  %1351 = vmatprep.subr.bf16.mxu0 %v1547_v8  ;;  %v1563_v24 = vld [vmem:[%s2116_s1 + $0x48] sm:$0xff]   ;;  %v1567_v28 = vld [vmem:[%s2116_s1 + $0x40] sm:$0xff]   ;;  %v1577_v36 = vld [vmem:[%s2116_s1 + $0x138] sm:$0xff]  }
   0xa   :  { %1415 = vmatprep.subr.bf16.mxu1 %v1548_v9  ;;  %v1564_v25 = vld [vmem:[%s2116_s1 + $0xc8] sm:$0xff]   ;;  %v1568_v29 = vld [vmem:[%s2116_s1 + $0xc0] sm:$0xff]   ;;  %v1584_v39 = vld [vmem:[%s2116_s1 + $0x130] sm:$0xff]  }
   0xb   :  { %v1565_v26 = vld [vmem:[%s2116_s1 + $0x8] sm:$0xff]   ;;  %v1569_v30 = vld [vmem:[%s2116_s1] sm:$0xff]   ;;  %v1587_v43 = vld [vmem:[%s2117_s0 + $0x5c] ss:$20 sps:$4 sm:$0xff]  }
   0xc   :  { %1352 = vmatpush3.bf16.msra.mxu0 %v1549_v10  ;;  %v1566_v27 = vld [vmem:[%s2116_s1 + $0x88] sm:$0xff]   ;;  %v1570_v31 = vld [vmem:[%s2116_s1 + $0x80] sm:$0xff]   ;;  %v1592_v48 = vld [vmem:[%s2117_s0 + $0x7c] ss:$20 sps:$4 sm:$0xff]  }
   0xd   :  { %1416 = vmatpush3.bf16.msra.mxu1 %v1550_v11  ;;  %1353 = vmatprep.subr.bf16.mxu0 %v1551_v12  ;;  %v1571_v32 = vld [vmem:[%s2117_s0] ss:$20 sps:$4 sm:$0xff]   ;;  %v1573_v33 = vld [vmem:[%s2117_s0 + $0x4] ss:$20 sps:$4 sm:$0xff]   ;;  %v1574_v34 = vld [vmem:[%s2117_s0 + $0x8] ss:$20 sps:$4 sm:$0xff]  }
   0xe   :  { %1417 = vmatprep.subr.bf16.mxu1 %v1552_v13  ;;  %v1576_v35 = vld [vmem:[%s2117_s0 + $0xc] ss:$20 sps:$4 sm:$0xff]   ;;  %658 = vmatprep.mubr.bf16.mxu0 %v1573_v33  ;;  %v1580_v38 = vld [vmem:[%s2117_s0 + $0x34] ss:$20 sps:$4 sm:$0xff]   ;;  %v1583_v41 = vld [vmem:[%s2117_s0 + $0x30] ss:$20 sps:$4 sm:$0xff]  }
   0xf   :  { %755 = vmatprep.mubr.bf16.mxu1 %v1576_v35  ;;  %v1578_v37 = vld [vmem:[%s2117_s0 + $0x2c] ss:$20 sps:$4 sm:$0xff]   ;;  %v1582_v40 = vld [vmem:[%s2117_s0 + $0x28] ss:$20 sps:$4 sm:$0xff]   ;;  %v1589_v46 = vld [vmem:[%s2117_s0 + $0x50] ss:$20 sps:$4 sm:$0xff]  }
  0x10   :  { %1354 = vmatpush3.bf16.msra.mxu0 %v1553_v14  ;;  %v1585_v42 = vld [vmem:[%s2117_s0 + $0x54] ss:$20 sps:$4 sm:$0xff]   ;;  %v1598_v45 = vld [vmem:[%s2116_s1 + $0x120] sm:$0xff]   ;;  %v1590_v47 = vld [vmem:[%s2117_s0 + $0x58] ss:$20 sps:$4 sm:$0xff]  }
  0x11   :  { %1418 = vmatpush3.bf16.msra.mxu1 %v1554_v15  ;;  %1355 = vmatprep.subr.bf16.mxu0 %v1555_v16  ;;  %v1591_v44 = vld [vmem:[%s2116_s1 + $0x128] sm:$0xff]   ;;  %v1594_v49 = vld [vmem:[%s2117_s0 + $0x84] ss:$20 sps:$4 sm:$0xff]   ;;  %v1612_v51 = vld [vmem:[%s2116_s1 + $0x110] sm:$0xff]  }
  0x12   :  { %1419 = vmatprep.subr.bf16.mxu1 %v1556_v17  ;;  %v1605_v50 = vld [vmem:[%s2116_s1 + $0x118] sm:$0xff]   ;;  %v1597_v53 = vld [vmem:[%s2117_s0 + $0x80] ss:$20 sps:$4 sm:$0xff]   ;;  %v1619_v56 = vld [vmem:[%s2116_s1 + $0x108] sm:$0xff]  }
  0x13   :  { %v1596_v52 = vld [vmem:[%s2117_s0 + $0x78] ss:$20 sps:$4 sm:$0xff]   ;;  %v1626_v57 = vld [vmem:[%s2116_s1 + $0x100] sm:$0xff]   ;;  %v1604_v59 = vld [vmem:[%s2117_s0 + $0xa8] ss:$20 sps:$4 sm:$0xff]  }
  0x14   :  { %1356 = vmatpush3.bf16.msra.mxu0 %v1557_v18  ;;  %v1599_v54 = vld [vmem:[%s2117_s0 + $0xa4] ss:$20 sps:$4 sm:$0xff]   ;;  %v1601_v55 = vld [vmem:[%s2117_s0 + $0xac] ss:$20 sps:$4 sm:$0xff]   ;;  %v1608_v61 = vld [vmem:[%s2117_s0 + $0xd4] ss:$20 sps:$4 sm:$0xff]  }
  0x15   :  { %1420 = vmatpush3.bf16.msra.mxu1 %v1558_v19  ;;  %1357 = vmatprep.subr.bf16.mxu0 %v1559_v20  ;;  %v1603_v58 = vld [vmem:[%s2117_s0 + $0xa0] ss:$20 sps:$4 sm:$0xff]   ;;  %v1610_v62 = vld [vmem:[%s2117_s0 + $0xc8] ss:$20 sps:$4 sm:$0xff]   ;;  %v1611_v63 = vld [vmem:[%s2117_s0 + $0xd0] ss:$20 sps:$4 sm:$0xff]  }
  0x16   :  { %1421 = vmatprep.subr.bf16.mxu1 %v1560_v21  ;;  %v1606_v60 = vld [vmem:[%s2117_s0 + $0xcc] ss:$20 sps:$4 sm:$0xff]   ;;  %v1613_v0 = vld [vmem:[%s2117_s0 + $0xf4] ss:$20 sps:$4 sm:$0xff]   ;;  %v1615_v1 = vld [vmem:[%s2117_s0 + $0xfc] ss:$20 sps:$4 sm:$0xff]  }
  0x17   :  { %v1617_v2 = vld [vmem:[%s2117_s0 + $0xf0] ss:$20 sps:$4 sm:$0xff]   ;;  %v1618_v3 = vld [vmem:[%s2117_s0 + $0xf8] ss:$20 sps:$4 sm:$0xff]   ;;  %v1625_v7 = vld [vmem:[%s2117_s0 + $0x120] ss:$20 sps:$4 sm:$0xff]  }
  0x18   :  { %1358 = vmatpush3.bf16.msra.mxu0 %v1561_v22  ;;  %v1620_v4 = vld [vmem:[%s2117_s0 + $0x11c] ss:$20 sps:$4 sm:$0xff]   ;;  %v1622_v5 = vld [vmem:[%s2117_s0 + $0x124] ss:$20 sps:$4 sm:$0xff]   ;;  %v1631_v12 = vld [vmem:[%s2117_s0 + $0x60] ss:$20 sps:$4 sm:$0xff]  }
  0x19   :  { %1422 = vmatpush3.bf16.msra.mxu1 %v1562_v23  ;;  %1359 = vmatprep.subr.bf16.mxu0 %v1563_v24  ;;  %v1624_v6 = vld [vmem:[%s2117_s0 + $0x118] ss:$20 sps:$4 sm:$0xff]   ;;  %v1627_v8 = vld [vmem:[%s2117_s0 + $0x10] ss:$20 sps:$4 sm:$0xff]   ;;  %v1632_v13 = vld [vmem:[%s2117_s0 + $0x100] ss:$20 sps:$4 sm:$0xff]  }
  0x1a   :  { %1423 = vmatprep.subr.bf16.mxu1 %v1564_v25  ;;  %v1628_v9 = vld [vmem:[%s2117_s0 + $0xb0] ss:$20 sps:$4 sm:$0xff]   ;;  %v1629_v10 = vld [vmem:[%s2117_s0 + $0x38] ss:$20 sps:$4 sm:$0xff]   ;;  %v1633_v14 = vld [vmem:[%s2117_s0 + $0x88] ss:$20 sps:$4 sm:$0xff]  }
  0x1b   :  { %v1630_v11 = vld [vmem:[%s2117_s0 + $0xd8] ss:$20 sps:$4 sm:$0xff]   ;;  %v1634_v15 = vld [vmem:[%s2117_s0 + $0x128] ss:$20 sps:$4 sm:$0xff]  }
  0x1c   :  { %1360 = vmatpush3.bf16.msra.mxu0 %v1565_v26 }
  0x1d   :  { %1424 = vmatpush3.bf16.msra.mxu1 %v1566_v27  ;;  %1361 = vmatprep.subr.bf16.mxu0 %v1567_v28 }
  0x1e   :  { %1425 = vmatprep.subr.bf16.mxu1 %v1568_v29 }
  0x20   :  { %1362 = vmatpush3.bf16.msra.mxu0 %v1569_v30 }
  0x21   :  { %1426 = vmatpush3.bf16.msra.mxu1 %v1570_v31  ;;  %1491 = vmatprep.subr.bf16.mxu0 %v1577_v36 }
  0x22   :  { %1523 = vmatprep.subr.bf16.mxu1 %v1577_v36 }
  0x23   :  { %659 = vmatmul.mubr.bf16.vlgmr.msra.gmra.mxu0 %v1571_v32 }
  0x24   :  { %756 = vmatmul.mubr.bf16.vlgmr.msra.gmra.mxu1 %v1574_v34  ;;  %1492 = vmatpush3.bf16.msra.mxu0 %v1577_v36 }
  0x25   :  { %666 = vmatprep.mubr.bf16.mxu0 %v1578_v37  ;;  %763 = vmatprep.mubr.bf16.mxu1 %v1580_v38 }
  0x26   :  { %1531 = vmatpush3.bf16.msra.mxu1 %v1577_v36  ;;  %1493 = vmatprep.subr.bf16.mxu0 %v1584_v39 }
  0x27   :  { %1524 = vmatprep.subr.bf16.mxu1 %v1584_v39 }
  0x28   :  { %1494 = vmatpush3.bf16.msra.mxu0 %v1584_v39 }
  0x29   :  { %1495 = vmatprep.subr.bf16.mxu0 %v1591_v44 }
  0x2a   :  { %1532 = vmatpush3.bf16.msra.mxu1 %v1584_v39 }
  0x2b   :  { %667 = vmatmul.mubr.bf16.gmra.mxu0 %v1582_v40  ;;  %1525 = vmatprep.subr.bf16.mxu1 %v1591_v44 }
  0x2c   :  { %764 = vmatmul.mubr.bf16.gmra.mxu1 %v1583_v41  ;;  %674 = vmatprep.mubr.bf16.mxu0 %v1585_v42 }
  0x2d   :  { %771 = vmatprep.mubr.bf16.mxu1 %v1587_v43  ;;  %1496 = vmatpush3.bf16.msra.mxu0 %v1591_v44 }
  0x2e   :  { %1533 = vmatpush3.bf16.msra.mxu1 %v1591_v44  ;;  %1497 = vmatprep.subr.bf16.mxu0 %v1598_v45 }
  0x2f   :  { %1526 = vmatprep.subr.bf16.mxu1 %v1598_v45 }
  0x31   :  { %1498 = vmatpush3.bf16.msra.mxu0 %v1598_v45 }
  0x32   :  { %1534 = vmatpush3.bf16.msra.mxu1 %v1598_v45  ;;  %1499 = vmatprep.subr.bf16.mxu0 %v1605_v50 }
  0x33   :  { %675 = vmatmul.mubr.bf16.gmra.mxu0 %v1589_v46  ;;  %1527 = vmatprep.subr.bf16.mxu1 %v1605_v50 }
  0x34   :  { %772 = vmatmul.mubr.bf16.gmra.mxu1 %v1590_v47  ;;  %682 = vmatprep.mubr.bf16.mxu0 %v1592_v48 }
  0x35   :  { %779 = vmatprep.mubr.bf16.mxu1 %v1594_v49  ;;  %1500 = vmatpush3.bf16.msra.mxu0 %v1605_v50 }
  0x36   :  { %1535 = vmatpush3.bf16.msra.mxu1 %v1605_v50  ;;  %1501 = vmatprep.subr.bf16.mxu0 %v1612_v51 }
  0x37   :  { %1528 = vmatprep.subr.bf16.mxu1 %v1612_v51 }
  0x39   :  { %1502 = vmatpush3.bf16.msra.mxu0 %v1612_v51 }
  0x3a   :  { %1536 = vmatpush3.bf16.msra.mxu1 %v1612_v51  ;;  %1503 = vmatprep.subr.bf16.mxu0 %v1619_v56 }
  0x3b   :  { %683 = vmatmul.mubr.bf16.gmra.mxu0 %v1596_v52  ;;  %1529 = vmatprep.subr.bf16.mxu1 %v1619_v56 }
  0x3c   :  { %780 = vmatmul.mubr.bf16.gmra.mxu1 %v1597_v53  ;;  %690 = vmatprep.mubr.bf16.mxu0 %v1599_v54 }
  0x3d   :  { %787 = vmatprep.mubr.bf16.mxu1 %v1601_v55  ;;  %1504 = vmatpush3.bf16.msra.mxu0 %v1619_v56 }
  0x3e   :  { %1537 = vmatpush3.bf16.msra.mxu1 %v1619_v56  ;;  %1505 = vmatprep.subr.bf16.mxu0 %v1626_v57 }
  0x3f   :  { %1530 = vmatprep.subr.bf16.mxu1 %v1626_v57 }
  0x41   :  { %1506 = vmatpush3.bf16.msra.mxu0 %v1626_v57 }
  0x42   :  { %1538 = vmatpush3.bf16.msra.mxu1 %v1626_v57 }
  0x43   :  { %691 = vmatmul.mubr.bf16.gmra.mxu0 %v1603_v58 }
  0x44   :  { %788 = vmatmul.mubr.bf16.gmra.mxu1 %v1604_v59  ;;  %698 = vmatprep.mubr.bf16.mxu0 %v1606_v60 }
  0x45   :  { %795 = vmatprep.mubr.bf16.mxu1 %v1608_v61 }
  0x4b   :  { %699 = vmatmul.mubr.bf16.gmra.mxu0 %v1610_v62 }
  0x4c   :  { %796 = vmatmul.mubr.bf16.gmra.mxu1 %v1611_v63  ;;  %706 = vmatprep.mubr.bf16.mxu0 %v1613_v0 }
  0x4d   :  { %803 = vmatprep.mubr.bf16.mxu1 %v1615_v1 }
  0x53   :  { %707 = vmatmul.mubr.bf16.gmra.mxu0 %v1617_v2 }
  0x54   :  { %804 = vmatmul.mubr.bf16.gmra.mxu1 %v1618_v3  ;;  %714 = vmatprep.mubr.bf16.mxu0 %v1620_v4 }
  0x55   :  { %811 = vmatprep.mubr.bf16.mxu1 %v1622_v5 }
  0x5b   :  { %715 = vmatmul.mubr.bf16.gmra.mxu0 %v1624_v6 }
  0x5c   :  { %812 = vmatmul.mubr.bf16.gmra.mxu1 %v1625_v7  ;;  %1507 = vmatprep.mubr.bf16.mxu0 %v1627_v8 }
  0x5d   :  { %1515 = vmatprep.mubr.bf16.mxu1 %v1628_v9 }
  0x63   :  { %1508 = vmatmul.mubr.bf16.vlgmr.msra.gmra.mxu0 %v1629_v10 }
  0x64   :  { %1516 = vmatmul.mubr.bf16.vlgmr.msra.gmra.mxu1 %v1630_v11  ;;  %1511 = vmatprep.mubr.bf16.mxu0 %v1631_v12 }
  0x65   :  { %1519 = vmatprep.mubr.bf16.mxu1 %v1632_v13 }
  0x6b   :  { %1512 = vmatmul.mubr.bf16.gmra.mxu0 %v1633_v14 }
  0x6c   :  { %1520 = vmatmul.mubr.bf16.gmra.mxu1 %v1634_v15 }
  0xe3   :  { %v1363_v16 = vpop.f32.mrf.mxu0 }
  0xe4   :  { %v1427_v17 = vpop.f32.mrf.mxu1 }
  0xe5   :  { %v1364_v18 = vpop.f32.mrf.mxu0 }
  0xe6   :  { %v1365_v19 = vadd.f32 %v1364_v18, %v1363_v16  ;;  %v1428_v20 = vpop.f32.mrf.mxu1 }
  0xe7   :  { %v1429_v21 = vadd.f32 %v1428_v20, %v1427_v17  ;;  %v1366_v22 = vpop.f32.mrf.mxu0 }
  0xe8   :  { %v1430_v23 = vpop.f32.mrf.mxu1 }
  0xe9   :  { %v1367_v24 = vpop.f32.mrf.mxu0  ;;  %v1895_v25 = vadd.f32 %v1429_v21, %v1365_v19 }
  0xea   :  { %v1431_v26 = vpop.f32.mrf.mxu1  ;;  %v1368_v18 = vadd.f32 %v1367_v24, %v1366_v22 }
  0xeb   :  { %2120 = vst [vmem:[#allocation3_spill] sm:$0xff] %v1895_v25  ;;  %v1369_v27 = vpop.f32.mrf.mxu0  ;;  %v1432_v19 = vadd.f32 %v1431_v26, %v1430_v23 }
  0xec   :  { %v1433_v28 = vpop.f32.mrf.mxu1 }
  0xed   :  { %v1370_v29 = vpop.f32.mrf.mxu0 }
  0xee   :  { %v1434_v30 = vpop.f32.mrf.mxu1  ;;  %v1371_v14 = vadd.f32 %v1370_v29, %v1369_v27 }
  0xef   :  { %v1372_v31 = vpop.f32.mrf.mxu0  ;;  %v1435_v15 = vadd.f32 %v1434_v30, %v1433_v28  ;;  %v761_v28 = vadd.f32 %v1432_v19, %v1368_v18 }
  0xf0   :  { %v1436_v32 = vpop.f32.mrf.mxu1 }
  0xf1   :  { %v1373_v33 = vpop.f32.mrf.mxu0 }
  0xf2   :  { %v1437_v34 = vpop.f32.mrf.mxu1  ;;  %v1374_v21 = vadd.f32 %v1373_v33, %v1372_v31 }
  0xf3   :  { %v1897_v35 = vpop.f32.mrf.mxu0 }
  0xf4   :  { %v1899_v36 = vpop.f32.mrf.mxu1 }
  0xf5   :  { %v1901_v37 = vpop.f32.mrf.mxu0 }
  0xf6   :  { %v1903_v38 = vpop.f32.mrf.mxu1  ;;  %v1377_v22 = vadd.f32 %v1901_v37, %v1897_v35 }
  0xf7   :  { %v1905_v39 = vpop.f32.mrf.mxu0  ;;  %v1441_v30 = vadd.f32 %v1903_v38, %v1899_v36 }
  0xf8   :  { %v1907_v40 = vpop.f32.mrf.mxu1 }
  0xf9   :  { %2121 = vst [vmem:[#allocation4_spill] sm:$0xff] %v1907_v40  ;;  %v1909_v41 = vpop.f32.mrf.mxu0 }
  0xfa   :  { %v1911_v42 = vpop.f32.mrf.mxu1  ;;  %v1380_v31 = vadd.f32 %v1909_v41, %v1905_v39 }
  0xfb   :  { %2122 = vst [vmem:[#allocation5_spill] sm:$0xff] %v1911_v42  ;;  %v1913_v43 = vpop.f32.mrf.mxu0 }
  0xfc   :  { %v1915_v44 = vpop.f32.mrf.mxu1 }
  0xfd   :  { %v1917_v45 = vpop.f32.mrf.mxu0 }
  0xfe   :  { %v1919_v46 = vpop.f32.mrf.mxu1 }
  0xff   :  { %v1921_v47 = vpop.f32.mrf.mxu0  ;;  %v1447_v35 = vadd.f32 %v1919_v46, %v1915_v44  ;;  %v2133_v44 = vld [vmem:[#allocation3_spill] sm:$0xff] }
 0x100   :  { %v1923_v48 = vpop.f32.mrf.mxu1 }
 0x101   :  { %v1925_v49 = vpop.f32.mrf.mxu0 }
 0x102   :  { %v1927_v50 = vpop.f32.mrf.mxu1  ;;  %v1386_v37 = vadd.f32 %v1925_v49, %v1921_v47 }
 0x103   :  { %2123 = vst [vmem:[#allocation6_spill] sm:$0xff] %v1927_v50  ;;  %v1387_v51 = vpop.f32.mrf.mxu0 }
 0x104   :  { %v1451_v52 = vpop.f32.mrf.mxu1 }
 0x105   :  { %v1388_v53 = vpop.f32.mrf.mxu0 }
 0x106   :  { %v1452_v54 = vpop.f32.mrf.mxu1  ;;  %v1389_v40 = vadd.f32 %v1388_v53, %v1387_v51  ;;  %v1383_v51 = vadd.f32 %v1917_v45, %v1913_v43 }
 0x107   :  { %v1390_v55 = vpop.f32.mrf.mxu0  ;;  %v1453_v25 = vadd.f32 %v1452_v54, %v1451_v52 }
 0x108   :  { %v1454_v56 = vpop.f32.mrf.mxu1 }
 0x109   :  { %v1391_v57 = vpop.f32.mrf.mxu0  ;;  %v790_v39 = vadd.f32 %v1453_v25, %v1389_v40 }
 0x10a   :  { %v1455_v58 = vpop.f32.mrf.mxu1  ;;  %v1392_v23 = vadd.f32 %v1391_v57, %v1390_v55  ;;  %v2132_v36 = vld [vmem:[#allocation6_spill] sm:$0xff] }
 0x10b   :  { %v1393_v59 = vpop.f32.mrf.mxu0  ;;  %v1456_v24 = vadd.f32 %v1455_v58, %v1454_v56  ;;  %v1450_v38 = vadd.f32 %v2132_v36, %v1923_v48 }
 0x10c   :  { %v1457_v60 = vpop.f32.mrf.mxu1 }
 0x10d   :  { %v1394_v61 = vpop.f32.mrf.mxu0  ;;  %v793_v45 = vadd.f32 %v1456_v24, %v1392_v23  ;;  %v785_v19 = vadd.f32 %v1450_v38, %v1386_v37  ;;  %v774_v23 = vadd.f32 %v1441_v30, %v1377_v22 }
 0x10e   :  { %v1458_v62 = vpop.f32.mrf.mxu1 }
 0x10f   :  { %v1396_v63 = vpop.f32.mrf.mxu0 }
 0x110   :  { %v1460_v0 = vpop.f32.mrf.mxu1 }
 0x111   :  { %v1397_v1 = vpop.f32.mrf.mxu0 }
 0x112   :  { %v1461_v2 = vpop.f32.mrf.mxu1 }
 0x113   :  { %v1929_v3 = vpop.f32.mrf.mxu0  ;;  %v1462_v42 = vadd.f32 %v1461_v2, %v1460_v0 }
 0x114   :  { %2124 = vst [vmem:[#allocation7_spill] sm:$0xff] %v1929_v3  ;;  %v1931_v4 = vpop.f32.mrf.mxu1  ;;  %v766_v3 = vadd.f32 %v1435_v15, %v1371_v14 }
 0x115   :  { %2125 = vst [vmem:[#allocation8_spill] sm:$0xff] %v1931_v4  ;;  %v1933_v5 = vpop.f32.mrf.mxu0 }
 0x116   :  { %2126 = vst [vmem:[#allocation9_spill] sm:$0xff] %v1933_v5  ;;  %v1935_v6 = vpop.f32.mrf.mxu1  ;;  %v1459_v5 = vadd.f32 %v1458_v62, %v1457_v60  ;;  %v2134_v62 = vld [vmem:[#allocation4_spill] sm:$0xff] }
 0x117   :  { %2127 = vst [vmem:[#allocation10_spill] sm:$0xff] %v1935_v6  ;;  %v1937_v7 = vpop.f32.mrf.mxu0  ;;  %v1438_v6 = vadd.f32 %v1437_v34, %v1436_v32 }
 0x118   :  { %2128 = vst [vmem:[#allocation11_spill] sm:$0xff] %v1937_v7  ;;  %v1939_v8 = vpop.f32.mrf.mxu1  ;;  %v1395_v7 = vadd.f32 %v1394_v61, %v1393_v59 }
 0x119   :  { %2129 = vst [vmem:[#allocation12_spill] sm:$0xff] %v1939_v8  ;;  %v1941_v9 = vpop.f32.mrf.mxu0  ;;  %v769_v29 = vadd.f32 %v1438_v6, %v1374_v21 }
 0x11a   :  { %2130 = vst [vmem:[#allocation13_spill] sm:$0xff] %v1941_v9  ;;  %v1943_v10 = vpop.f32.mrf.mxu1  ;;  %v1398_v9 = vadd.f32 %v1397_v1, %v1396_v63  ;;  %v798_v32 = vadd.f32 %v1459_v5, %v1395_v7  ;;  %v2135_v63 = vld [vmem:[#allocation5_spill] sm:$0xff] }
 0x11b   :  { %2131 = vst [vmem:[#allocation14_spill] sm:$0xff] %v1943_v10  ;;  %v1405_v11 = vpop.f32.mrf.mxu0  ;;  %v1444_v0 = vadd.f32 %v2135_v63, %v2134_v62  ;;  %v2136_v1 = vld [vmem:[#allocation7_spill] sm:$0xff] }
 0x11c   :  { %v1469_v12 = vpop.f32.mrf.mxu1  ;;  %v801_v53 = vadd.f32 %v1462_v42, %v1398_v9  ;;  %v2138_v6 = vld [vmem:[#allocation8_spill] sm:$0xff] }
 0x11d   :  { %v1406_v13 = vpop.f32.mrf.mxu0  ;;  %v2137_v2 = vld [vmem:[#allocation9_spill] sm:$0xff] }
 0x11e   :  { %v1470_v16 = vpop.f32.mrf.mxu1  ;;  %v1407_v56 = vadd.f32 %v1406_v13, %v1405_v11  ;;  %v2139_v7 = vld [vmem:[#allocation10_spill] sm:$0xff] }
 0x11f   :  { %v1408_v17 = vpop.f32.mrf.mxu0  ;;  %v1471_v57 = vadd.f32 %v1470_v16, %v1469_v12  ;;  %v2140_v9 = vld [vmem:[#allocation11_spill] sm:$0xff] }
 0x120   :  { %v1472_v20 = vpop.f32.mrf.mxu1  ;;  %v2142_v12 = vld [vmem:[#allocation12_spill] sm:$0xff] }
 0x121   :  { %v1409_v4 = vpop.f32.mrf.mxu0 }
 0x122   :  { %v1473_v8 = vpop.f32.mrf.mxu1  ;;  %v1410_v59 = vadd.f32 %v1409_v4, %v1408_v17  ;;  %v2143_v13 = vld [vmem:[#allocation14_spill] sm:$0xff]  ;;  %v782_v17 = vadd.f32 %v1447_v35, %v1383_v51 }
 0x123   :  { %v1509_v10 = vpop.f32.mrf.mxu0  ;;  %v1474_v49 = vadd.f32 %v1473_v8, %v1472_v20  ;;  %v1465_v8 = vadd.f32 %v2139_v7, %v2138_v6  ;;  %v1468_v14 = vadd.f32 %v2143_v13, %v2142_v12  ;;  %v814_v20 = vadd.f32 %v1471_v57, %v1407_v56 }
 0x124   :  { %v863_v50 = vadd.f32 %v1509_v10, %v766_v3  ;;  %v1517_v27 = vpop.f32.mrf.mxu1  ;;  %v1401_v3 = vadd.f32 %v2137_v2, %v2136_v1  ;;  %v2141_v10 = vld [vmem:[#allocation13_spill] sm:$0xff] }
 0x125   :  { %v854_v26 = vpop.f32.mrf.mxu0  ;;  %v895_v54 = vadd.f32 %v1517_v27, %v798_v32  ;;  %v1404_v11 = vadd.f32 %v2141_v10, %v2140_v9  ;;  %v817_v27 = vadd.f32 %v1474_v49, %v1410_v59  ;;  %v1128_v49 = vlaneseq }
 0x126   :  { %v886_v33 = vpop.f32.mrf.mxu1  ;;  %1052 = vadd.xlane.f32.xlu0 %v863_v50  ;;  %v1082_v34 = vmul.f32 %v863_v50, %v863_v50  ;;  %v855_v46 = vadd.f32 %v854_v26, %v2133_v44 }
 0x127   :  { %v1510_v52 = vpop.f32.mrf.mxu0  ;;  %v887_v48 = vadd.f32 %v886_v33, %v790_v39  ;;  %v1090_v5 = vmul.f32 %v895_v54, %v895_v54  ;;  %v806_v33 = vadd.f32 %v1465_v8, %v1401_v3  ;;  %v809_v35 = vadd.f32 %v1468_v14, %v1404_v11 }
 0x128   :  { %v866_v41 = vadd.f32 %v1510_v52, %v769_v29  ;;  %v1518_v55 = vpop.f32.mrf.mxu1  ;;  %1100 = vadd.xlane.f32.xlu1 %v1082_v34  ;;  %v777_v29 = vadd.f32 %v1444_v0, %v1380_v31 }
 0x129   :  { %v898_v58 = vadd.f32 %v1518_v55, %v801_v53  ;;  %v857_v43 = vpop.f32.mrf.mxu0  ;;  %v1088_v56 = vmul.f32 %v887_v48, %v887_v48 }
 0x12a   :  { %v1308_v60 = vpack.c.bf16 %v866_v41, %v863_v50  ;;  %v1960_v47 = vadd.f32 %v857_v43, %v761_v28  ;;  %v889_v42 = vpop.f32.mrf.mxu1  ;;  %1068 = vadd.xlane.f32.xlu0 %v895_v54  ;;  %v1083_v38 = vmul.f32 %v866_v41, %v866_v41 }
 0x12b   :  { %v1328_v61 = vpack.c.bf16 %v898_v58, %v895_v54  ;;  %v890_v25 = vadd.f32 %v889_v42, %v793_v45  ;;  %v1513_v40 = vpop.f32.mrf.mxu0  ;;  %v1091_v31 = vmul.f32 %v898_v58, %v898_v58 }
 0x12c   :  { %1340 = vst [vmem:[%s2118_s2 + $0x8] sm:$0xff] %v1308_v60   ;;  %v1303_v50 = vpack.c.bf16 %v1960_v47, %v855_v46  ;;  %v1521_v4 = vpop.f32.mrf.mxu1  ;;  %1054 = vadd.xlane.f32.xlu1 %v866_v41  ;;  %v879_v28 = vadd.f32 %v1513_v40, %v782_v17  ;;  %v1080_v41 = vmul.f32 %v855_v46, %v855_v46 }
 0x12d   :  { %1344 = vst [vmem:[%s2118_s2 + $0x28] sm:$0xff] %v1328_v61   ;;  %v1323_v15 = vpack.c.bf16 %v890_v25, %v887_v48  ;;  %v870_v16 = vpop.f32.mrf.mxu0  ;;  %v911_v32 = vadd.f32 %v1521_v4, %v814_v20  ;;  %v1081_v57 = vmul.f32 %v1960_v47, %v1960_v47  ;;  %v1089_v43 = vmul.f32 %v890_v25, %v890_v25 }
 0x12e   :  { %1304 = vst [vmem:[%s2118_s2] sm:$0xff] %v1303_v50   ;;  %v902_v18 = vpop.f32.mrf.mxu1  ;;  %1116 = vadd.xlane.f32.xlu0 %v1090_v5  ;;  %v871_v52 = vadd.f32 %v870_v16, %v774_v23 }
 0x12f   :  { %1343 = vst [vmem:[%s2118_s2 + $0x20] sm:$0xff] %v1323_v15   ;;  %v1514_v21 = vpop.f32.mrf.mxu0  ;;  %v903_v54 = vadd.f32 %v902_v18, %v806_v33  ;;  %v1094_v59 = vmul.f32 %v911_v32, %v911_v32 }
 0x130   :  { %v882_v24 = vadd.f32 %v1514_v21, %v785_v19  ;;  %v1522_v26 = vpop.f32.mrf.mxu1  ;;  %1070 = vadd.xlane.f32.xlu1 %v898_v58  ;;  %v1086_v58 = vmul.f32 %v879_v28, %v879_v28 }
 0x131   :  { %v914_v34 = vadd.f32 %v1522_v26, %v817_v27  ;;  %v873_v51 = vpop.f32.mrf.mxu0 }
 0x132   :  { %v1318_v37 = vpack.c.bf16 %v882_v24, %v879_v28  ;;  %v874_v53 = vadd.f32 %v873_v51, %v777_v29  ;;  %v905_v36 = vpop.f32.mrf.mxu1  ;;  %1048 = vadd.xlane.f32.xlu0 %v855_v46  ;;  %v1087_v45 = vmul.f32 %v882_v24, %v882_v24  ;;  %v1084_v46 = vmul.f32 %v871_v52, %v871_v52 }
 0x133   :  { %v1338_v39 = vpack.c.bf16 %v914_v34, %v911_v32  ;;  %v906_v55 = vadd.f32 %v905_v36, %v809_v35  ;;  %v1095_v44 = vmul.f32 %v914_v34, %v914_v34 }
 0x134   :  { %1342 = vst [vmem:[%s2118_s2 + $0x18] sm:$0xff] %v1318_v37   ;;  %v1313_v22 = vpack.c.bf16 %v874_v53, %v871_v52  ;;  %1102 = vadd.xlane.f32.xlu1 %v1083_v38  ;;  %v1085_v60 = vmul.f32 %v874_v53, %v874_v53 }
 0x135   :  { %1346 = vst [vmem:[%s2118_s2 + $0x38] sm:$0xff] %v1338_v39   ;;  %v1333_v30 = vpack.c.bf16 %v906_v55, %v903_v54  ;;  %v1093_v42 = vmul.f32 %v906_v55, %v906_v55 }
 0x136   :  { %1341 = vst [vmem:[%s2118_s2 + $0x10] sm:$0xff] %v1313_v22   ;;  %1064 = vadd.xlane.f32.xlu0 %v887_v48  ;;  %v2000_v48 = vand.u32 127, %v1128_v49 }
 0x137   :  { %1345 = vst [vmem:[%s2118_s2 + $0x30] sm:$0xff] %v1333_v30  }
 0x138   :  { %1118 = vadd.xlane.f32.xlu1 %v1091_v31  ;;  %vm1131_vm0 = vcmp.eq.s32.totalorder %v2000_v48, 1  ;;  %vm1130_vm1 = vcmp.eq.s32.totalorder %v2000_v48, 0 }
 0x13a   :  { %1096 = vadd.xlane.f32.xlu0 %v1080_v41 }
 0x13c   :  { %1050 = vadd.xlane.f32.xlu1 %v1960_v47  ;;  %v1092_v47 = vmul.f32 %v903_v54, %v903_v54 }
 0x13e   :  { %1112 = vadd.xlane.f32.xlu0 %v1088_v56 }
 0x140   :  { %1066 = vadd.xlane.f32.xlu1 %v890_v25 }
 0x142   :  { %1098 = vadd.xlane.f32.xlu0 %v1081_v57 }
 0x144   :  { %1114 = vadd.xlane.f32.xlu1 %v1089_v43 }
 0x146   :  { %1060 = vadd.xlane.f32.xlu0 %v879_v28 }
 0x148   :  { %1062 = vadd.xlane.f32.xlu1 %v882_v24 }
 0x14a   :  { %1108 = vadd.xlane.f32.xlu0 %v1086_v58 }
 0x14c   :  { %1110 = vadd.xlane.f32.xlu1 %v1087_v45 }
 0x14e   :  { %1124 = vadd.xlane.f32.xlu0 %v1094_v59 }
 0x150   :  { %1126 = vadd.xlane.f32.xlu1 %v1095_v44 }
 0x152   :  { %1056 = vadd.xlane.f32.xlu0 %v871_v52 }
 0x154   :  { %1058 = vadd.xlane.f32.xlu1 %v874_v53 }
 0x156   :  { %1072 = vadd.xlane.f32.xlu0 %v903_v54 }
 0x158   :  { %1074 = vadd.xlane.f32.xlu1 %v906_v55 }
 0x15a   :  { %1104 = vadd.xlane.f32.xlu0 %v1084_v46 }
 0x15c   :  { %1106 = vadd.xlane.f32.xlu1 %v1085_v60 }
 0x15e   :  { %1120 = vadd.xlane.f32.xlu0 %v1092_v47 }
 0x160   :  { %1122 = vadd.xlane.f32.xlu1 %v1093_v42 }
 0x162   :  { %1076 = vadd.xlane.f32.xlu0 %v911_v32 }
 0x164   :  { %1078 = vadd.xlane.f32.xlu1 %v914_v34 }
 0x1af   :  { %v1053_v61 = vpop.xlane.xlu0 %1052 }
 0x1b1   :  { %v1101_v25 = vpop.xlane.xlu1 %1100 }
 0x1b2   :  { %v1134_v40 = vsel %vm1131_vm0, %v1101_v25, 0.0 }
 0x1b3   :  { %v1150_v62 = vsel %vm1130_vm1, %v1053_v61, %v1134_v40  ;;  %v1069_v63 = vpop.xlane.xlu0 %1068 }
 0x1b4   :  { %1166 = vst [vmem:[%s2119_s3 + $0x10] sm:$0xff] %v1150_v62 }
 0x1b5   :  { %v1055_v0 = vpop.xlane.xlu1 %1054 }
 0x1b7   :  { %v1117_v1 = vpop.xlane.xlu0 %1116 }
 0x1b8   :  { %v1142_v2 = vsel %vm1131_vm0, %v1117_v1, 0.0 }
 0x1b9   :  { %v1158_v3 = vsel %vm1130_vm1, %v1069_v63, %v1142_v2  ;;  %v1071_v50 = vpop.xlane.xlu1 %1070 }
 0x1ba   :  { %1174 = vst [vmem:[%s2119_s3 + $0x50] sm:$0xff] %v1158_v3 }
 0x1bb   :  { %v1049_v4 = vpop.xlane.xlu0 %1048 }
 0x1bd   :  { %v1103_v5 = vpop.xlane.xlu1 %1102 }
 0x1be   :  { %v1135_v6 = vsel %vm1131_vm0, %v1103_v5, 0.0 }
 0x1bf   :  { %v1151_v7 = vsel %vm1130_vm1, %v1055_v0, %v1135_v6  ;;  %v1065_v8 = vpop.xlane.xlu0 %1064 }
 0x1c0   :  { %1167 = vst [vmem:[%s2119_s3 + $0x18] sm:$0xff] %v1151_v7 }
 0x1c1   :  { %v1119_v9 = vpop.xlane.xlu1 %1118 }
 0x1c2   :  { %v1143_v10 = vsel %vm1131_vm0, %v1119_v9, 0.0 }
 0x1c3   :  { %v1159_v11 = vsel %vm1130_vm1, %v1071_v50, %v1143_v10  ;;  %v1097_v12 = vpop.xlane.xlu0 %1096 }
 0x1c4   :  { %1175 = vst [vmem:[%s2119_s3 + $0x58] sm:$0xff] %v1159_v11  ;;  %v1132_v13 = vsel %vm1131_vm0, %v1097_v12, 0.0 }
 0x1c5   :  { %v1148_v14 = vsel %vm1130_vm1, %v1049_v4, %v1132_v13  ;;  %v1051_v15 = vpop.xlane.xlu1 %1050 }
 0x1c6   :  { %1164 = vst [vmem:[%s2119_s3] sm:$0xff] %v1148_v14 }
 0x1c7   :  { %v1113_v16 = vpop.xlane.xlu0 %1112 }
 0x1c8   :  { %v1140_v17 = vsel %vm1131_vm0, %v1113_v16, 0.0 }
 0x1c9   :  { %v1156_v18 = vsel %vm1130_vm1, %v1065_v8, %v1140_v17  ;;  %v1067_v19 = vpop.xlane.xlu1 %1066 }
 0x1ca   :  { %1172 = vst [vmem:[%s2119_s3 + $0x40] sm:$0xff] %v1156_v18 }
 0x1cb   :  { %v1099_v20 = vpop.xlane.xlu0 %1098 }
 0x1cc   :  { %v1133_v21 = vsel %vm1131_vm0, %v1099_v20, 0.0 }
 0x1cd   :  { %v1149_v27 = vsel %vm1130_vm1, %v1051_v15, %v1133_v21  ;;  %v1115_v28 = vpop.xlane.xlu1 %1114 }
 0x1ce   :  { %1165 = vst [vmem:[%s2119_s3 + $0x8] sm:$0xff] %v1149_v27  ;;  %v1141_v23 = vsel %vm1131_vm0, %v1115_v28, 0.0 }
 0x1cf   :  { %v1157_v24 = vsel %vm1130_vm1, %v1067_v19, %v1141_v23  ;;  %v1061_v26 = vpop.xlane.xlu0 %1060 }
 0x1d0   :  { %1173 = vst [vmem:[%s2119_s3 + $0x48] sm:$0xff] %v1157_v24 }
 0x1d1   :  { %v1063_v29 = vpop.xlane.xlu1 %1062 }
 0x1d3   :  { %v1109_v32 = vpop.xlane.xlu0 %1108 }
 0x1d4   :  { %v1138_v33 = vsel %vm1131_vm0, %v1109_v32, 0.0 }
 0x1d5   :  { %v1154_v34 = vsel %vm1130_vm1, %v1061_v26, %v1138_v33  ;;  %v1111_v51 = vpop.xlane.xlu1 %1110 }
 0x1d6   :  { %1170 = vst [vmem:[%s2119_s3 + $0x30] sm:$0xff] %v1154_v34  ;;  %v1139_v35 = vsel %vm1131_vm0, %v1111_v51, 0.0 }
 0x1d7   :  { %v1155_v52 = vsel %vm1130_vm1, %v1063_v29, %v1139_v35  ;;  %v1125_v37 = vpop.xlane.xlu0 %1124 }
 0x1d8   :  { %1171 = vst [vmem:[%s2119_s3 + $0x38] sm:$0xff] %v1155_v52  ;;  %v1146_v44 = vsel %vm1131_vm0, %v1125_v37, 0.0 }
 0x1d9   :  { %v1127_v53 = vpop.xlane.xlu1 %1126 }
 0x1da   :  { %v1147_v42 = vsel %vm1131_vm0, %v1127_v53, 0.0 }
 0x1db   :  { %v1057_v36 = vpop.xlane.xlu0 %1056 }
 0x1dd   :  { %v1059_v38 = vpop.xlane.xlu1 %1058 }
 0x1df   :  { %v1073_v54 = vpop.xlane.xlu0 %1072 }
 0x1e1   :  { %v1075_v39 = vpop.xlane.xlu1 %1074 }
 0x1e3   :  { %v1105_v55 = vpop.xlane.xlu0 %1104 }
 0x1e4   :  { %v1136_v22 = vsel %vm1131_vm0, %v1105_v55, 0.0 }
 0x1e5   :  { %v1152_v30 = vsel %vm1130_vm1, %v1057_v36, %v1136_v22  ;;  %v1107_v31 = vpop.xlane.xlu1 %1106 }
 0x1e6   :  { %1168 = vst [vmem:[%s2119_s3 + $0x20] sm:$0xff] %v1152_v30  ;;  %v1137_v41 = vsel %vm1131_vm0, %v1107_v31, 0.0 }
 0x1e7   :  { %v1153_v56 = vsel %vm1130_vm1, %v1059_v38, %v1137_v41  ;;  %v1121_v57 = vpop.xlane.xlu0 %1120 }
 0x1e8   :  { %1169 = vst [vmem:[%s2119_s3 + $0x28] sm:$0xff] %v1153_v56  ;;  %v1144_v43 = vsel %vm1131_vm0, %v1121_v57, 0.0 }
 0x1e9   :  { %v1160_v58 = vsel %vm1130_vm1, %v1073_v54, %v1144_v43  ;;  %v1123_v45 = vpop.xlane.xlu1 %1122 }
 0x1ea   :  { %1176 = vst [vmem:[%s2119_s3 + $0x60] sm:$0xff] %v1160_v58  ;;  %v1145_v59 = vsel %vm1131_vm0, %v1123_v45, 0.0 }
 0x1eb   :  { %v1161_v46 = vsel %vm1130_vm1, %v1075_v39, %v1145_v59  ;;  %v1077_v60 = vpop.xlane.xlu0 %1076 }
 0x1ec   :  { %1177 = vst [vmem:[%s2119_s3 + $0x68] sm:$0xff] %v1161_v46  ;;  %v1162_v47 = vsel %vm1130_vm1, %v1077_v60, %v1146_v44 }
 0x1ed   :  { %1178 = vst [vmem:[%s2119_s3 + $0x70] sm:$0xff] %v1162_v47  ;;  %v1079_v49 = vpop.xlane.xlu1 %1078 }
 0x1ee   :  { %v1163_v61 = vsel %vm1130_vm1, %v1079_v49, %v1147_v42 }
 0x1ef   :  { %1179 = vst [vmem:[%s2119_s3 + $0x78] sm:$0xff] %v1163_v61 }

// kernel: generator_forward.15
= control target key start
LH: loop header
LB: loop body
LE: loop exit
PB: predicated region body
PF: predicated region fallthrough
CT: control target
= control target key end

     0   :  { %s1757_s12 = smov 0   ;;  %s1759_s13 = smov 0   ;;  %s2085_s0 = inlined_call_operand.vmem [shape: bf16[64,384], index: 0, kind: input, shape index: {}]   ;;  %s2086_s1 = inlined_call_operand.vmem [shape: bf16[384,512], index: 1, kind: input, shape index: {}]   ;;  %s2087_s2 = inlined_call_operand.vmem [shape: bf16[64,512], index: 2, kind: output, shape index: {0}]   ;;  %s2088_s3 = inlined_call_operand.vmem [shape: f32[64,256], index: 3, kind: output, shape index: {1}]  }
   0x1   :  { %s1761_s14 = smov 0   ;;  %s1763_s15 = smov 0  }
   0x2   :  { %s1765_s16 = smov 0  }
   0x3 LB: > { %s29_s17 = sadd.s32 1, %s1730_s15  ;;  %s1470_s18 = sadd.s32 4294967295, %s1734_s16   ;;  %s1734_s16 = sphi %s1765_s16, %s14_s16   ;;  %s1730_s15 = sphi %s1763_s15, %s2093_s15   ;;  %s1726_s14 = sphi %s1761_s14, %s2092_s14   ;;  %s1722_s13 = sphi %s1759_s13, %s2091_s13   ;;  %s1718_s12 = sphi %s1757_s12, %s2090_s12  }
   0x4   : > { %p31_p0 = scmp.ge.s32.totalorder %s29_s17, 2  ;;  %p75_p1 = scmp.ne.s32.totalorder %s1722_s13, %s1718_s12 }
   0x5   : > { %p76_p2 = scmp.eq.s32.totalorder %s1734_s16, 0  ;;  %p107_p4 = scmp.eq.s32.totalorder %s1470_s18, 1 }
   0x6   : > { %s2095_s17 = smov (%p31_p0, %s29_s17), 0  ;;  %s68_s20 = sadd.s32 1, %s1722_s13 }
   0x7   : > { %p77_p3 = por %p76_p2, %p75_p1  ;;  %s64_s19 = ssub.s32 %s1730_s15, %s2095_s17 }
   0x8   : > { %p66_p5 = scmp.eq.s32.totalorder %s64_s19, 0  ;;  %p1792_p6 = por %p107_p4, %p75_p1 }
   0x9   : > { %p1474_p7 = scmp.ge.s32.totalorder %s1734_s16, 2 }
   0xa   : > { %s1797_s22 = scalar_select %p66_p5, %s1722_s13, %s68_s20  }
   0xb   : > { %167 = sbr.rel (%p1474_p7) target bundleno = 44 (0x2c), region = 20 }
  0x10   : > { %170 = sbr.rel (!%p77_p3) target bundleno = 44 (0x2c), region = 24  ;;  %s172_s23 = sand.u32 (%p77_p3), 1, %s1722_s13  }
  0x11   : > { %s1555_s24 = sshll.u32 (%p77_p3), %s1730_s15, 3  ;;  %s1565_s25 = smul.u32 (%p77_p3), 384, %s172_s23 }
  0x12   : > { %s1805_s28 = scalar_lea.vmem (%p77_p3), %s2086_s1, %s1555_s24 }
  0x13   : > { %v303_v0 = vld [vmem:[%s1805_s28] sm:$0xff] (%p77_p3)  ;;  %v305_v1 = vld [vmem:[%s1805_s28 + $0x10] sm:$0xff] (%p77_p3)  ;;  %s1813_s29 = scalar_lea.vmem (%p77_p3), [#allocation3], %s1565_s25 }
  0x14   : > { %v307_v2 = vld [vmem:[%s1805_s28 + $0x20] sm:$0xff] (%p77_p3)  ;;  %v309_v3 = vld [vmem:[%s1805_s28 + $0x30] sm:$0xff] (%p77_p3)  ;;  %304 = vst [vmem:[%s1813_s29] sm:$0xff] (%p77_p3), %v303_v0  ;;  %306 = vst [vmem:[%s1813_s29 + $0x8] sm:$0xff] (%p77_p3), %v305_v1 }
  0x15   : > { %v311_v4 = vld [vmem:[%s1805_s28 + $0x40] sm:$0xff]  ;;  %v313_v5 = vld [vmem:[%s1805_s28 + $0x50] sm:$0xff]  ;;  %308 = vst [vmem:[%s1813_s29 + $0x10] sm:$0xff] %v307_v2  ;;  %310 = vst [vmem:[%s1813_s29 + $0x18] sm:$0xff] %v309_v3 }
  0x16   : > { %312 = vst [vmem:[%s1813_s29 + $0x20] sm:$0xff] %v311_v4  ;;  %314 = vst [vmem:[%s1813_s29 + $0x28] sm:$0xff] %v313_v5  ;;  %v315_v6 = vld [vmem:[%s1805_s28 + $0x60] sm:$0xff]  ;;  %v317_v7 = vld [vmem:[%s1805_s28 + $0x70] sm:$0xff] }
  0x17   : > { %v319_v8 = vld [vmem:[%s1805_s28 + $0x80] sm:$0xff]  ;;  %316 = vst [vmem:[%s1813_s29 + $0x30] sm:$0xff] %v315_v6  ;;  %318 = vst [vmem:[%s1813_s29 + $0x38] sm:$0xff] %v317_v7  ;;  %v321_v9 = vld [vmem:[%s1805_s28 + $0x90] sm:$0xff] }
  0x18   : > { %320 = vst [vmem:[%s1813_s29 + $0x40] sm:$0xff] %v319_v8  ;;  %v323_v10 = vld [vmem:[%s1805_s28 + $0xa0] sm:$0xff]  ;;  %v325_v11 = vld [vmem:[%s1805_s28 + $0xb0] sm:$0xff]  ;;  %322 = vst [vmem:[%s1813_s29 + $0x48] sm:$0xff] %v321_v9 }
  0x19   : > { %324 = vst [vmem:[%s1813_s29 + $0x50] sm:$0xff] %v323_v10  ;;  %326 = vst [vmem:[%s1813_s29 + $0x58] sm:$0xff] %v325_v11  ;;  %v327_v12 = vld [vmem:[%s1805_s28 + $0xc0] sm:$0xff]  ;;  %v329_v13 = vld [vmem:[%s1805_s28 + $0xd0] sm:$0xff] }
  0x1a   : > { %v331_v14 = vld [vmem:[%s1805_s28 + $0xe0] sm:$0xff]  ;;  %328 = vst [vmem:[%s1813_s29 + $0x60] sm:$0xff] %v327_v12  ;;  %330 = vst [vmem:[%s1813_s29 + $0x68] sm:$0xff] %v329_v13  ;;  %v333_v15 = vld [vmem:[%s1805_s28 + $0xf0] sm:$0xff] }
  0x1b   : > { %332 = vst [vmem:[%s1813_s29 + $0x70] sm:$0xff] %v331_v14  ;;  %v335_v16 = vld [vmem:[%s1805_s28 + $0x100] sm:$0xff]  ;;  %v337_v17 = vld [vmem:[%s1805_s28 + $0x110] sm:$0xff]  ;;  %334 = vst [vmem:[%s1813_s29 + $0x78] sm:$0xff] %v333_v15 }
  0x1c   : > { %336 = vst [vmem:[%s1813_s29 + $0x80] sm:$0xff] %v335_v16  ;;  %338 = vst [vmem:[%s1813_s29 + $0x88] sm:$0xff] %v337_v17  ;;  %v339_v18 = vld [vmem:[%s1805_s28 + $0x120] sm:$0xff]  ;;  %v341_v19 = vld [vmem:[%s1805_s28 + $0x130] sm:$0xff] }
  0x1d   : > { %v343_v20 = vld [vmem:[%s1805_s28 + $0x140] sm:$0xff]  ;;  %340 = vst [vmem:[%s1813_s29 + $0x90] sm:$0xff] %v339_v18  ;;  %342 = vst [vmem:[%s1813_s29 + $0x98] sm:$0xff] %v341_v19  ;;  %v345_v21 = vld [vmem:[%s1805_s28 + $0x150] sm:$0xff] }
  0x1e   : > { %344 = vst [vmem:[%s1813_s29 + $0xa0] sm:$0xff] %v343_v20  ;;  %v347_v22 = vld [vmem:[%s1805_s28 + $0x160] sm:$0xff]  ;;  %v349_v23 = vld [vmem:[%s1805_s28 + $0x170] sm:$0xff]  ;;  %346 = vst [vmem:[%s1813_s29 + $0xa8] sm:$0xff] %v345_v21 }
  0x1f   : > { %348 = vst [vmem:[%s1813_s29 + $0xb0] sm:$0xff] %v347_v22  ;;  %350 = vst [vmem:[%s1813_s29 + $0xb8] sm:$0xff] %v349_v23  ;;  %v351_v24 = vld [vmem:[%s1805_s28 + $0x180] sm:$0xff]  ;;  %v353_v25 = vld [vmem:[%s1805_s28 + $0x190] sm:$0xff] }
  0x20   : > { %v355_v26 = vld [vmem:[%s1805_s28 + $0x1a0] sm:$0xff]  ;;  %352 = vst [vmem:[%s1813_s29 + $0xc0] sm:$0xff] %v351_v24  ;;  %354 = vst [vmem:[%s1813_s29 + $0xc8] sm:$0xff] %v353_v25  ;;  %v357_v27 = vld [vmem:[%s1805_s28 + $0x1b0] sm:$0xff] }
  0x21   : > { %356 = vst [vmem:[%s1813_s29 + $0xd0] sm:$0xff] %v355_v26  ;;  %v359_v28 = vld [vmem:[%s1805_s28 + $0x1c0] sm:$0xff]  ;;  %v361_v29 = vld [vmem:[%s1805_s28 + $0x1d0] sm:$0xff]  ;;  %358 = vst [vmem:[%s1813_s29 + $0xd8] sm:$0xff] %v357_v27 }
  0x22   : > { %360 = vst [vmem:[%s1813_s29 + $0xe0] sm:$0xff] %v359_v28  ;;  %362 = vst [vmem:[%s1813_s29 + $0xe8] sm:$0xff] %v361_v29  ;;  %v363_v30 = vld [vmem:[%s1805_s28 + $0x1e0] sm:$0xff]  ;;  %v365_v31 = vld [vmem:[%s1805_s28 + $0x1f0] sm:$0xff] }
  0x23   : > { %v367_v32 = vld [vmem:[%s1805_s28 + $0x200] sm:$0xff]  ;;  %364 = vst [vmem:[%s1813_s29 + $0xf0] sm:$0xff] %v363_v30  ;;  %366 = vst [vmem:[%s1813_s29 + $0xf8] sm:$0xff] %v365_v31  ;;  %v369_v33 = vld [vmem:[%s1805_s28 + $0x210] sm:$0xff] }
  0x24   : > { %368 = vst [vmem:[%s1813_s29 + $0x100] sm:$0xff] %v367_v32  ;;  %v371_v34 = vld [vmem:[%s1805_s28 + $0x220] sm:$0xff]  ;;  %v373_v35 = vld [vmem:[%s1805_s28 + $0x230] sm:$0xff]  ;;  %370 = vst [vmem:[%s1813_s29 + $0x108] sm:$0xff] %v369_v33 }
  0x25   : > { %372 = vst [vmem:[%s1813_s29 + $0x110] sm:$0xff] %v371_v34  ;;  %374 = vst [vmem:[%s1813_s29 + $0x118] sm:$0xff] %v373_v35  ;;  %v375_v36 = vld [vmem:[%s1805_s28 + $0x240] sm:$0xff]  ;;  %v377_v37 = vld [vmem:[%s1805_s28 + $0x250] sm:$0xff] }
  0x26   : > { %v379_v38 = vld [vmem:[%s1805_s28 + $0x260] sm:$0xff]  ;;  %376 = vst [vmem:[%s1813_s29 + $0x120] sm:$0xff] %v375_v36  ;;  %378 = vst [vmem:[%s1813_s29 + $0x128] sm:$0xff] %v377_v37  ;;  %v381_v39 = vld [vmem:[%s1805_s28 + $0x270] sm:$0xff] }
  0x27   : > { %380 = vst [vmem:[%s1813_s29 + $0x130] sm:$0xff] %v379_v38  ;;  %v383_v40 = vld [vmem:[%s1805_s28 + $0x280] sm:$0xff]  ;;  %v385_v41 = vld [vmem:[%s1805_s28 + $0x290] sm:$0xff]  ;;  %382 = vst [vmem:[%s1813_s29 + $0x138] sm:$0xff] %v381_v39 }
  0x28   : > { %384 = vst [vmem:[%s1813_s29 + $0x140] sm:$0xff] %v383_v40  ;;  %386 = vst [vmem:[%s1813_s29 + $0x148] sm:$0xff] %v385_v41  ;;  %v387_v42 = vld [vmem:[%s1805_s28 + $0x2a0] sm:$0xff]  ;;  %v389_v43 = vld [vmem:[%s1805_s28 + $0x2b0] sm:$0xff] }
  0x29   : > { %v391_v44 = vld [vmem:[%s1805_s28 + $0x2c0] sm:$0xff]  ;;  %388 = vst [vmem:[%s1813_s29 + $0x150] sm:$0xff] %v387_v42  ;;  %390 = vst [vmem:[%s1813_s29 + $0x158] sm:$0xff] %v389_v43  ;;  %v393_v45 = vld [vmem:[%s1805_s28 + $0x2d0] sm:$0xff] }
  0x2a   : > { %392 = vst [vmem:[%s1813_s29 + $0x160] sm:$0xff] %v391_v44  ;;  %v395_v46 = vld [vmem:[%s1805_s28 + $0x2e0] sm:$0xff]  ;;  %v397_v47 = vld [vmem:[%s1805_s28 + $0x2f0] sm:$0xff]  ;;  %394 = vst [vmem:[%s1813_s29 + $0x168] sm:$0xff] %v393_v45 }
  0x2b   : > { %396 = vst [vmem:[%s1813_s29 + $0x170] sm:$0xff] %v395_v46  ;;  %398 = vst [vmem:[%s1813_s29 + $0x178] sm:$0xff] %v397_v47 }
  0x2c PF: > { %p1477_p8 = scmp.ge.s32.totalorder %s1734_s16, 1  ;;  %p403_p9 = scmp.lt.s32.totalorder %s1734_s16, 3 }
  0x2e   : > { %p404_p10 = pnand %p1477_p8, %p403_p9 }
  0x2f   : > { %s410_s30 = sand.u32 (!%p404_p10), 1, %s1718_s12  }
  0x30   : > { %407 = sbr.rel (%p404_p10) target bundleno = 500 (0x1f4), region = 62  ;;  %s2002_s18 = sshll.u32 (!%p404_p10), %s410_s30, 6 }
  0x31   : > { %s1566_s4 = smul.u32 (!%p404_p10), 384, %s410_s30  ;;  %s2005_s19 = scalar_lea.vmem (!%p404_p10), [#allocation4], %s2002_s18 }
  0x32   : > { %s2018_s12 = scalar_lea.vmem (!%p404_p10), [#allocation5], %s2002_s18 }
  0x33   : > { %s1914_s7 = scalar_lea.vmem (!%p404_p10), [#allocation3], %s1566_s4 }
  0x35   : > { %v1736_v48 = vmov 0   ;;  %v1683_v49 = vld [vmem:[%s2085_s0 + $0x4] ss:$12 sps:$4 sm:$0xff]   ;;  %v1608_v50 = vld [vmem:[%s1914_s7 + $0x74] ss:$8 sps:$4 sm:$0xff]   ;;  %s1564_s30 = sshll.u32 (%p1792_p6), %s1726_s14, 3 }
  0x36   : > { %964 = vmatprep.mubr.bf16.mxu1 %v1736_v48  ;;  %891 = vmatprep.mubr.bf16.mxu0 %v1683_v49  ;;  %v1610_v51 = vld [vmem:[%s1914_s7 + $0x70] ss:$8 sps:$4 sm:$0xff]   ;;  %v1611_v52 = vld [vmem:[%s1914_s7 + $0x64] ss:$8 sps:$4 sm:$0xff]   ;;  %v1613_v53 = vld [vmem:[%s1914_s7 + $0x60] ss:$8 sps:$4 sm:$0xff]   ;;  %s1220_s24 = scalar_lea.vmem (%p1792_p6), %s2087_s2, %s1564_s30 }
  0x37   : > { %859 = vmatprep.subr.bf16.mxu0 %v1608_v50  ;;  %v1614_v54 = vld [vmem:[%s1914_s7 + $0x54] ss:$8 sps:$4 sm:$0xff]   ;;  %v1616_v55 = vld [vmem:[%s1914_s7 + $0x50] ss:$8 sps:$4 sm:$0xff]   ;;  %v1617_v56 = vld [vmem:[%s1914_s7 + $0x44] ss:$8 sps:$4 sm:$0xff]  }
  0x38   : > { %860 = vmatpush1.bf16.msra.mxu0 %v1610_v51  ;;  %v1629_v57 = vld [vmem:[%s1914_s7 + $0x174] ss:$8 sps:$4 sm:$0xff]   ;;  %v1631_v58 = vld [vmem:[%s1914_s7 + $0x170] ss:$8 sps:$4 sm:$0xff]   ;;  %v1619_v59 = vld [vmem:[%s1914_s7 + $0x40] ss:$8 sps:$4 sm:$0xff]  }
  0x39   : > { %861 = vmatprep.subr.bf16.mxu0 %v1611_v52  ;;  %v1620_v60 = vld [vmem:[%s1914_s7 + $0x34] ss:$8 sps:$4 sm:$0xff]   ;;  %932 = vmatprep.subr.bf16.mxu1 %v1629_v57  ;;  %v1635_v61 = vld [vmem:[%s1914_s7 + $0x164] ss:$8 sps:$4 sm:$0xff]   ;;  %v1637_v62 = vld [vmem:[%s1914_s7 + $0x160] ss:$8 sps:$4 sm:$0xff]  }
  0x3a   : > { %933 = vmatpush1.bf16.msra.mxu1 %v1631_v58  ;;  %v1622_v63 = vld [vmem:[%s1914_s7 + $0x30] ss:$8 sps:$4 sm:$0xff]   ;;  %v1641_v0 = vld [vmem:[%s1914_s7 + $0x154] ss:$8 sps:$4 sm:$0xff]   ;;  %v1623_v1 = vld [vmem:[%s1914_s7 + $0x24] ss:$8 sps:$4 sm:$0xff]  }
  0x3b   : > { %934 = vmatprep.subr.bf16.mxu1 %v1635_v61  ;;  %v1643_v2 = vld [vmem:[%s1914_s7 + $0x150] ss:$8 sps:$4 sm:$0xff]   ;;  %v1647_v3 = vld [vmem:[%s1914_s7 + $0x144] ss:$8 sps:$4 sm:$0xff]   ;;  %v1625_v4 = vld [vmem:[%s1914_s7 + $0x20] ss:$8 sps:$4 sm:$0xff]  }
  0x3c   : > { %862 = vmatpush1.bf16.msra.mxu0 %v1613_v53  ;;  %v1626_v5 = vld [vmem:[%s1914_s7 + $0x14] ss:$8 sps:$4 sm:$0xff]   ;;  %v1649_v6 = vld [vmem:[%s1914_s7 + $0x140] ss:$8 sps:$4 sm:$0xff]   ;;  %v1628_v8 = vld [vmem:[%s1914_s7 + $0x10] ss:$8 sps:$4 sm:$0xff]  }
  0x3d   : > { %863 = vmatprep.subr.bf16.mxu0 %v1614_v54  ;;  %v1653_v7 = vld [vmem:[%s1914_s7 + $0x134] ss:$8 sps:$4 sm:$0xff]   ;;  %v1632_v9 = vld [vmem:[%s1914_s7 + $0x4] ss:$8 sps:$4 sm:$0xff]   ;;  %v1655_v10 = vld [vmem:[%s1914_s7 + $0x130] ss:$8 sps:$4 sm:$0xff]  }
  0x3e   : > { %935 = vmatpush1.bf16.msra.mxu1 %v1637_v62  ;;  %v1659_v11 = vld [vmem:[%s1914_s7 + $0x124] ss:$8 sps:$4 sm:$0xff]   ;;  %v1634_v12 = vld [vmem:[%s1914_s7] ss:$8 sps:$4 sm:$0xff]   ;;  %v1638_v13 = vld [vmem:[%s1914_s7 + $0xf4] ss:$8 sps:$4 sm:$0xff]  }
  0x3f   : > { %936 = vmatprep.subr.bf16.mxu1 %v1641_v0  ;;  %v1661_v14 = vld [vmem:[%s1914_s7 + $0x120] ss:$8 sps:$4 sm:$0xff]   ;;  %v1665_v15 = vld [vmem:[%s1914_s7 + $0x114] ss:$8 sps:$4 sm:$0xff]   ;;  %v1640_v16 = vld [vmem:[%s1914_s7 + $0xf0] ss:$8 sps:$4 sm:$0xff]  }
  0x40   : > { %864 = vmatpush1.bf16.msra.mxu0 %v1616_v55  ;;  %v1644_v17 = vld [vmem:[%s1914_s7 + $0xe4] ss:$8 sps:$4 sm:$0xff]   ;;  %v1667_v18 = vld [vmem:[%s1914_s7 + $0x110] ss:$8 sps:$4 sm:$0xff]   ;;  %v1646_v20 = vld [vmem:[%s1914_s7 + $0xe0] ss:$8 sps:$4 sm:$0xff]  }
  0x41   : > { %865 = vmatprep.subr.bf16.mxu0 %v1617_v56  ;;  %v1671_v19 = vld [vmem:[%s1914_s7 + $0x104] ss:$8 sps:$4 sm:$0xff]   ;;  %v1650_v21 = vld [vmem:[%s1914_s7 + $0xd4] ss:$8 sps:$4 sm:$0xff]   ;;  %v1673_v22 = vld [vmem:[%s1914_s7 + $0x100] ss:$8 sps:$4 sm:$0xff]  }
  0x42   : > { %937 = vmatpush1.bf16.msra.mxu1 %v1643_v2  ;;  %v1652_v23 = vld [vmem:[%s1914_s7 + $0xd0] ss:$8 sps:$4 sm:$0xff]   ;;  %v1656_v24 = vld [vmem:[%s1914_s7 + $0xc4] ss:$8 sps:$4 sm:$0xff]   ;;  %v1677_v25 = vld [vmem:[%s2085_s0 + $0x8] ss:$12 sps:$4 sm:$0xff]  }
  0x43   : > { %938 = vmatprep.subr.bf16.mxu1 %v1647_v3  ;;  %v1658_v26 = vld [vmem:[%s1914_s7 + $0xc0] ss:$8 sps:$4 sm:$0xff]   ;;  %v1662_v27 = vld [vmem:[%s1914_s7 + $0xb4] ss:$8 sps:$4 sm:$0xff]   ;;  %v1664_v28 = vld [vmem:[%s1914_s7 + $0xb0] ss:$8 sps:$4 sm:$0xff]  }
  0x44   : > { %866 = vmatpush1.bf16.msra.mxu0 %v1619_v59  ;;  %v1668_v29 = vld [vmem:[%s1914_s7 + $0xa4] ss:$8 sps:$4 sm:$0xff]   ;;  %v1670_v31 = vld [vmem:[%s1914_s7 + $0xa0] ss:$8 sps:$4 sm:$0xff]   ;;  %v1674_v32 = vld [vmem:[%s1914_s7 + $0x94] ss:$8 sps:$4 sm:$0xff]  }
  0x45   : > { %867 = vmatprep.subr.bf16.mxu0 %v1620_v60  ;;  %v1684_v30 = vld [vmem:[%s2085_s0 + $0x20] ss:$12 sps:$4 sm:$0xff]   ;;  %v1676_v33 = vld [vmem:[%s1914_s7 + $0x90] ss:$8 sps:$4 sm:$0xff]   ;;  %v1685_v38 = vld [vmem:[%s2085_s0 + $0x1c] ss:$12 sps:$4 sm:$0xff]  }
  0x46   : > { %939 = vmatpush1.bf16.msra.mxu1 %v1649_v6  ;;  %v1678_v34 = vld [vmem:[%s1914_s7 + $0x84] ss:$8 sps:$4 sm:$0xff]   ;;  %v1680_v36 = vld [vmem:[%s1914_s7 + $0x80] ss:$8 sps:$4 sm:$0xff]   ;;  %v1692_v39 = vld [vmem:[%s2085_s0 + $0x50] ss:$12 sps:$4 sm:$0xff]  }
  0x47   : > { %940 = vmatprep.subr.bf16.mxu1 %v1653_v7  ;;  %v1688_v35 = vld [vmem:[%s2085_s0 + $0x38] ss:$12 sps:$4 sm:$0xff]   ;;  %v1681_v37 = vld [vmem:[%s2085_s0] ss:$12 sps:$4 sm:$0xff]   ;;  %v1691_v42 = vld [vmem:[%s2085_s0 + $0x30] ss:$12 sps:$4 sm:$0xff]  }
  0x48   : > { %868 = vmatpush1.bf16.msra.mxu0 %v1622_v63  ;;  %v1687_v40 = vld [vmem:[%s2085_s0 + $0x18] ss:$12 sps:$4 sm:$0xff]   ;;  %v1689_v41 = vld [vmem:[%s2085_s0 + $0x34] ss:$12 sps:$4 sm:$0xff]  }
  0x49   : > { %869 = vmatprep.subr.bf16.mxu0 %v1623_v1  ;;  %v1693_v43 = vld [vmem:[%s2085_s0 + $0x4c] ss:$12 sps:$4 sm:$0xff]   ;;  %v1695_v44 = vld [vmem:[%s2085_s0 + $0x48] ss:$12 sps:$4 sm:$0xff]  }
  0x4a   : > { %941 = vmatpush1.bf16.msra.mxu1 %v1655_v10 }
  0x4b   : > { %942 = vmatprep.subr.bf16.mxu1 %v1659_v11 }
  0x4c   : > { %870 = vmatpush1.bf16.msra.mxu0 %v1625_v4 }
  0x4d   : > { %871 = vmatprep.subr.bf16.mxu0 %v1626_v5 }
  0x4e   : > { %943 = vmatpush1.bf16.msra.mxu1 %v1661_v14 }
  0x4f   : > { %944 = vmatprep.subr.bf16.mxu1 %v1665_v15 }
  0x50   : > { %872 = vmatpush1.bf16.msra.mxu0 %v1628_v8 }
  0x51   : > { %873 = vmatprep.subr.bf16.mxu0 %v1632_v9 }
  0x52   : > { %945 = vmatpush1.bf16.msra.mxu1 %v1667_v18 }
  0x53   : > { %946 = vmatprep.subr.bf16.mxu1 %v1671_v19 }
  0x54   : > { %874 = vmatpush1.bf16.msra.mxu0 %v1634_v12 }
  0x55   : > { %875 = vmatprep.subr.bf16.mxu0 %v1638_v13 }
  0x56   : > { %947 = vmatpush1.bf16.msra.mxu1 %v1673_v22 }
  0x58   : > { %876 = vmatpush2.bf16.msra.mxu0 %v1640_v16 }
  0x59   : > { %877 = vmatprep.subr.bf16.mxu0 %v1644_v17  ;;  %965 = vmatmul.mubr.bf16.vlgmr.msra.gmra.mxu1 %v1677_v25 }
  0x5a   : > { %974 = vmatprep.mubr.bf16.mxu1 %v1736_v48 }
  0x5c   : > { %878 = vmatpush2.bf16.msra.mxu0 %v1646_v20 }
  0x5d   : > { %879 = vmatprep.subr.bf16.mxu0 %v1650_v21 }
  0x60   : > { %880 = vmatpush2.bf16.msra.mxu0 %v1652_v23 }
  0x61   : > { %881 = vmatprep.subr.bf16.mxu0 %v1656_v24  ;;  %975 = vmatmul.mubr.bf16.gmra.mxu1 %v1684_v30 }
  0x62   : > { %984 = vmatprep.mubr.bf16.mxu1 %v1736_v48 }
  0x64   : > { %882 = vmatpush2.bf16.msra.mxu0 %v1658_v26 }
  0x65   : > { %883 = vmatprep.subr.bf16.mxu0 %v1662_v27 }
  0x68   : > { %884 = vmatpush2.bf16.msra.mxu0 %v1664_v28 }
  0x69   : > { %885 = vmatprep.subr.bf16.mxu0 %v1668_v29  ;;  %985 = vmatmul.mubr.bf16.gmra.mxu1 %v1688_v35 }
  0x6a   : > { %994 = vmatprep.mubr.bf16.mxu1 %v1736_v48 }
  0x6c   : > { %886 = vmatpush2.bf16.msra.mxu0 %v1670_v31 }
  0x6d   : > { %887 = vmatprep.subr.bf16.mxu0 %v1674_v32 }
  0x70   : > { %888 = vmatpush2.bf16.msra.mxu0 %v1676_v33 }
  0x71   : > { %889 = vmatprep.subr.bf16.mxu0 %v1678_v34  ;;  %995 = vmatmul.mubr.bf16.gmra.mxu1 %v1692_v39 }
  0x74   : > { %890 = vmatpush2.bf16.msra.mxu0 %v1680_v36 }
  0x77   : > { %892 = vmatmul.mubr.bf16.vlgmr.msra.gmra.mxu0 %v1681_v37 }
  0x78   : > { %901 = vmatprep.mubr.bf16.mxu0 %v1685_v38 }
  0x7f   : > { %902 = vmatmul.mubr.bf16.gmra.mxu0 %v1687_v40 }
  0x80   : > { %911 = vmatprep.mubr.bf16.mxu0 %v1689_v41 }
  0x87   : > { %912 = vmatmul.mubr.bf16.gmra.mxu0 %v1691_v42 }
  0x88   : > { %921 = vmatprep.mubr.bf16.mxu0 %v1693_v43 }
  0x8f   : > { %922 = vmatmul.mubr.bf16.gmra.mxu0 %v1695_v44 }
 0x119   : > { %v966_v45 = vpop.f32.mrf.mxu1 }
 0x11b   : > { %v968_v46 = vpop.f32.mrf.mxu1 }
 0x11d   : > { %v970_v47 = vpop.f32.mrf.mxu1 }
 0x11f   : > { %v972_v48 = vpop.f32.mrf.mxu1 }
 0x121   : > { %v976_v49 = vpop.f32.mrf.mxu1 }
 0x123   : > { %v978_v50 = vpop.f32.mrf.mxu1 }
 0x125   : > { %v980_v51 = vpop.f32.mrf.mxu1 }
 0x127   : > { %v982_v52 = vpop.f32.mrf.mxu1 }
 0x129   : > { %v986_v56 = vpop.f32.mrf.mxu1 }
 0x12b   : > { %v988_v0 = vpop.f32.mrf.mxu1 }
 0x12d   : > { %v990_v10 = vpop.f32.mrf.mxu1 }
 0x12f   : > { %v992_v19 = vpop.f32.mrf.mxu1 }
 0x131   : > { %v996_v27 = vpop.f32.mrf.mxu1 }
 0x133   : > { %v998_v37 = vpop.f32.mrf.mxu1 }
 0x137   : > { %v893_v53 = vpop.f32.mrf.mxu0 }
 0x138   : > { %v967_v54 = vadd.f32 %v966_v45, %v893_v53 }
 0x139   : > { %v895_v55 = vpop.f32.mrf.mxu0 }
 0x13a   : > { %v969_v57 = vadd.f32 %v968_v46, %v895_v55  ;;  %v1136_v63 = vmul.f32 %v967_v54, %v967_v54 }
 0x13b   : > { %v897_v58 = vpop.f32.mrf.mxu0 }
 0x13c   : > { %v1556_v59 = vpack.c.bf16 %v969_v57, %v967_v54  ;;  %v1112_v60 = vadd.f32 %v969_v57, %v967_v54  ;;  %v1137_v61 = vmul.f32 %v969_v57, %v969_v57  ;;  %v971_v1 = vadd.f32 %v970_v47, %v897_v58  ;;  %v1000_v47 = vpop.f32.mrf.mxu1 }
 0x13d   : > { %v899_v62 = vpop.f32.mrf.mxu0 }
 0x13e   : > { %1104 = vst [vmem:[%s2005_s19] sm:$0xff] %v1556_v59  ;;  %v973_v2 = vadd.f32 %v972_v48, %v899_v62  ;;  %1113 = vadd.xlane.f32.xlu0 %v1112_v60  ;;  %v1152_v4 = vadd.f32 %v1137_v61, %v1136_v63  ;;  %v1138_v12 = vmul.f32 %v971_v1, %v971_v1  ;;  %v1002_v58 = vpop.f32.mrf.mxu1 }
 0x13f   : > { %v903_v3 = vpop.f32.mrf.mxu0 }
 0x140   : > { %v1557_v5 = vpack.c.bf16 %v973_v2, %v971_v1  ;;  %v977_v6 = vadd.f32 %v976_v49, %v903_v3  ;;  %v1115_v7 = vadd.f32 %v973_v2, %v971_v1  ;;  %v1139_v8 = vmul.f32 %v973_v2, %v973_v2 }
 0x141   : > { %v905_v9 = vpop.f32.mrf.mxu0 }
 0x142   : > { %1105 = vst [vmem:[%s2005_s19 + $0x8] sm:$0xff] %v1557_v5  ;;  %v979_v11 = vadd.f32 %v978_v50, %v905_v9  ;;  %1153 = vadd.xlane.f32.xlu0 %v1152_v4  ;;  %1116 = vadd.xlane.f32.xlu1 %v1115_v7  ;;  %v1155_v15 = vadd.f32 %v1139_v8, %v1138_v12  ;;  %v1176_v5 = vlaneseq }
 0x143   : > { %v907_v13 = vpop.f32.mrf.mxu0  ;;  %v1140_v16 = vmul.f32 %v977_v6, %v977_v6 }
 0x144   : > { %v1558_v14 = vpack.c.bf16 %v979_v11, %v977_v6  ;;  %v1141_v17 = vmul.f32 %v979_v11, %v979_v11  ;;  %v981_v20 = vadd.f32 %v980_v51, %v907_v13  ;;  %v1118_v25 = vadd.f32 %v979_v11, %v977_v6 }
 0x145   : > { %v909_v18 = vpop.f32.mrf.mxu0  ;;  %v1177_v6 = vand.u32 127, %v1176_v5 }
 0x146   : > { %1106 = vst [vmem:[%s2005_s19 + $0x10] sm:$0xff] %v1558_v14  ;;  %v983_v21 = vadd.f32 %v982_v52, %v909_v18  ;;  %1156 = vadd.xlane.f32.xlu0 %v1155_v15  ;;  %v1158_v22 = vadd.f32 %v1141_v17, %v1140_v16  ;;  %v1142_v35 = vmul.f32 %v981_v20, %v981_v20 }
 0x147   : > { %v913_v23 = vpop.f32.mrf.mxu0  ;;  %vm1179_vm0 = vcmp.eq.s32.totalorder %v1177_v6, 1  ;;  %vm1178_vm1 = vcmp.eq.s32.totalorder %v1177_v6, 0 }
 0x148   : > { %v1559_v24 = vpack.c.bf16 %v983_v21, %v981_v20  ;;  %1159 = vadd.xlane.f32.xlu1 %v1158_v22  ;;  %v987_v28 = vadd.f32 %v986_v56, %v913_v23  ;;  %v1121_v30 = vadd.f32 %v983_v21, %v981_v20  ;;  %v1143_v31 = vmul.f32 %v983_v21, %v983_v21 }
 0x149   : > { %v915_v26 = vpop.f32.mrf.mxu0 }
 0x14a   : > { %1107 = vst [vmem:[%s2005_s19 + $0x18] sm:$0xff] %v1559_v24  ;;  %v989_v29 = vadd.f32 %v988_v0, %v915_v26  ;;  %1119 = vadd.xlane.f32.xlu0 %v1118_v25  ;;  %v1161_v41 = vadd.f32 %v1143_v31, %v1142_v35  ;;  %v1144_v42 = vmul.f32 %v987_v28, %v987_v28 }
 0x14b   : > { %v917_v32 = vpop.f32.mrf.mxu0 }
 0x14c   : > { %v1560_v33 = vpack.c.bf16 %v989_v29, %v987_v28  ;;  %1122 = vadd.xlane.f32.xlu1 %v1121_v30  ;;  %v1124_v34 = vadd.f32 %v989_v29, %v987_v28  ;;  %v1145_v36 = vmul.f32 %v989_v29, %v989_v29  ;;  %v991_v39 = vadd.f32 %v990_v10, %v917_v32 }
 0x14d   : > { %v919_v38 = vpop.f32.mrf.mxu0 }
 0x14e   : > { %1108 = vst [vmem:[%s2005_s19 + $0x20] sm:$0xff] %v1560_v33  ;;  %v993_v40 = vadd.f32 %v992_v19, %v919_v38  ;;  %1125 = vadd.xlane.f32.xlu0 %v1124_v34  ;;  %v1164_v46 = vadd.f32 %v1145_v36, %v1144_v42  ;;  %v1146_v53 = vmul.f32 %v991_v39, %v991_v39 }
 0x14f   : > { %v923_v43 = vpop.f32.mrf.mxu0 }
 0x150   : > { %v1561_v44 = vpack.c.bf16 %v993_v40, %v991_v39  ;;  %v997_v45 = vadd.f32 %v996_v27, %v923_v43  ;;  %1162 = vadd.xlane.f32.xlu1 %v1161_v41  ;;  %v1127_v50 = vadd.f32 %v993_v40, %v991_v39  ;;  %v1147_v51 = vmul.f32 %v993_v40, %v993_v40  ;;  %v1263_v39 = vld [vmem:[%s2005_s19] sm:$0xff] (%p1792_p6)  ;;  %v1265_v40 = vld [vmem:[%s2005_s19 + $0x8] sm:$0xff] (%p1792_p6)  ;;  %v1267_v41 = vld [vmem:[%s2005_s19 + $0x10] sm:$0xff] (%p1792_p6) }
 0x151   : > { %v925_v48 = vpop.f32.mrf.mxu0  ;;  %v1269_v42 = vld [vmem:[%s2005_s19 + $0x18] sm:$0xff] (%p1792_p6)  ;;  %1264 = vst [vmem:[%s1220_s24] sm:$0xff] (%p1792_p6), %v1263_v39  ;;  %1266 = vst [vmem:[%s1220_s24 + $0x10] sm:$0xff] (%p1792_p6), %v1265_v40 }
 0x152   : > { %1109 = vst [vmem:[%s2005_s19 + $0x28] sm:$0xff] %v1561_v44  ;;  %v999_v49 = vadd.f32 %v998_v37, %v925_v48  ;;  %1165 = vadd.xlane.f32.xlu0 %v1164_v46  ;;  %v1148_v56 = vmul.f32 %v997_v45, %v997_v45  ;;  %v1167_v61 = vadd.f32 %v1147_v51, %v1146_v53  ;;  %1268 = vst [vmem:[%s1220_s24 + $0x20] sm:$0xff] (%p1792_p6), %v1267_v41 }
 0x153   : > { %v927_v52 = vpop.f32.mrf.mxu0  ;;  %1270 = vst [vmem:[%s1220_s24 + $0x30] sm:$0xff] (%p1792_p6), %v1269_v42 }
 0x154   : > { %v1562_v54 = vpack.c.bf16 %v999_v49, %v997_v45  ;;  %v1001_v55 = vadd.f32 %v1000_v47, %v927_v52  ;;  %1128 = vadd.xlane.f32.xlu1 %v1127_v50  ;;  %v1149_v57 = vmul.f32 %v999_v49, %v999_v49  ;;  %v1130_v2 = vadd.f32 %v999_v49, %v997_v45 }
 0x155   : > { %v929_v59 = vpop.f32.mrf.mxu0  ;;  %v1271_v43 = vld [vmem:[%s2005_s19 + $0x20] sm:$0xff] (%p1792_p6) }
 0x156   : > { %1110 = vst [vmem:[%s2005_s19 + $0x30] sm:$0xff] %v1562_v54  ;;  %v1003_v60 = vadd.f32 %v1002_v58, %v929_v59  ;;  %v1170_v62 = vadd.f32 %v1149_v57, %v1148_v56  ;;  %v1150_v0 = vmul.f32 %v1001_v55, %v1001_v55  ;;  %1272 = vst [vmem:[%s1220_s24 + $0x40] sm:$0xff] (%p1792_p6), %v1271_v43 }
 0x158   : > { %v1563_v63 = vpack.c.bf16 %v1003_v60, %v1001_v55  ;;  %1168 = vadd.xlane.f32.xlu1 %v1167_v61  ;;  %1171 = vadd.xlane.f32.xlu0 %v1170_v62  ;;  %v1151_v1 = vmul.f32 %v1003_v60, %v1003_v60  ;;  %v1133_v4 = vadd.f32 %v1003_v60, %v1001_v55 }
 0x159   : > { %v1273_v44 = vld [vmem:[%s2005_s19 + $0x28] sm:$0xff] (%p1792_p6) }
 0x15a   : > { %1111 = vst [vmem:[%s2005_s19 + $0x38] sm:$0xff] %v1563_v63  ;;  %v1173_v3 = vadd.f32 %v1151_v1, %v1150_v0  ;;  %1274 = vst [vmem:[%s1220_s24 + $0x50] sm:$0xff] (%p1792_p6), %v1273_v44 }
 0x15c   : > { %1131 = vadd.xlane.f32.xlu0 %v1130_v2  ;;  %1174 = vadd.xlane.f32.xlu1 %v1173_v3 }
 0x15d   : > { %v1275_v45 = vld [vmem:[%s2005_s19 + $0x30] sm:$0xff] (%p1792_p6) }
 0x15e   : > { %1276 = vst [vmem:[%s1220_s24 + $0x60] sm:$0xff] (%p1792_p6), %v1275_v45 }
 0x160   : > { %1134 = vadd.xlane.f32.xlu1 %v1133_v4 }
 0x161   : > { %v1277_v46 = vld [vmem:[%s2005_s19 + $0x38] sm:$0xff] (%p1792_p6) }
 0x162   : > { %1278 = vst [vmem:[%s1220_s24 + $0x70] sm:$0xff] (%p1792_p6), %v1277_v46 }
 0x1c7   : > { %v1114_v7 = vpop.xlane.xlu0 %1113 }
 0x1cb   : > { %v1154_v8 = vpop.xlane.xlu0 %1153  ;;  %v1117_v11 = vpop.xlane.xlu1 %1116 }
 0x1cc   : > { %v1180_v9 = vsel %vm1179_vm0, %v1154_v8, 0.0 }
 0x1cd   : > { %v1188_v10 = vsel %vm1178_vm1, %v1114_v7, %v1180_v9 }
 0x1ce   : > { %1196 = vst [vmem:[%s2018_s12] sm:$0xff] %v1188_v10 }
 0x1cf   : > { %v1157_v12 = vpop.xlane.xlu0 %1156 }
 0x1d0   : > { %v1181_v13 = vsel %vm1179_vm0, %v1157_v12, 0.0 }
 0x1d1   : > { %v1189_v14 = vsel %vm1178_vm1, %v1117_v11, %v1181_v13  ;;  %v1160_v15 = vpop.xlane.xlu1 %1159 }
 0x1d2   : > { %1197 = vst [vmem:[%s2018_s12 + $0x8] sm:$0xff] %v1189_v14  ;;  %v1182_v16 = vsel %vm1179_vm0, %v1160_v15, 0.0 }
 0x1d3   : > { %v1120_v17 = vpop.xlane.xlu0 %1119 }
 0x1d4   : > { %v1190_v18 = vsel %vm1178_vm1, %v1120_v17, %v1182_v16 }
 0x1d5   : > { %1198 = vst [vmem:[%s2018_s12 + $0x10] sm:$0xff] %v1190_v18  ;;  %v1123_v19 = vpop.xlane.xlu1 %1122 }
 0x1d7   : > { %v1126_v20 = vpop.xlane.xlu0 %1125 }
 0x1d9   : > { %v1163_v21 = vpop.xlane.xlu1 %1162 }
 0x1da   : > { %v1183_v22 = vsel %vm1179_vm0, %v1163_v21, 0.0 }
 0x1db   : > { %v1191_v23 = vsel %vm1178_vm1, %v1123_v19, %v1183_v22  ;;  %v1166_v24 = vpop.xlane.xlu0 %1165 }
 0x1dc   : > { %1199 = vst [vmem:[%s2018_s12 + $0x18] sm:$0xff] %v1191_v23  ;;  %v1184_v25 = vsel %vm1179_vm0, %v1166_v24, 0.0 }
 0x1dd   : > { %v1192_v26 = vsel %vm1178_vm1, %v1126_v20, %v1184_v25  ;;  %v1129_v27 = vpop.xlane.xlu1 %1128 }
 0x1de   : > { %1200 = vst [vmem:[%s2018_s12 + $0x20] sm:$0xff] %v1192_v26 }
 0x1e1   : > { %v1169_v28 = vpop.xlane.xlu1 %1168  ;;  %v1172_v29 = vpop.xlane.xlu0 %1171 }
 0x1e2   : > { %v1185_v30 = vsel %vm1179_vm0, %v1169_v28, 0.0  ;;  %v1186_v32 = vsel %vm1179_vm0, %v1172_v29, 0.0 }
 0x1e3   : > { %v1193_v31 = vsel %vm1178_vm1, %v1129_v27, %v1185_v30 }
 0x1e4   : > { %1201 = vst [vmem:[%s2018_s12 + $0x28] sm:$0xff] %v1193_v31 }
 0x1e5   : > { %v1132_v33 = vpop.xlane.xlu0 %1131  ;;  %v1175_v34 = vpop.xlane.xlu1 %1174 }
 0x1e6   : > { %v1194_v35 = vsel %vm1178_vm1, %v1132_v33, %v1186_v32  ;;  %v1187_v36 = vsel %vm1179_vm0, %v1175_v34, 0.0 }
 0x1e7   : > { %1202 = vst [vmem:[%s2018_s12 + $0x30] sm:$0xff] %v1194_v35  ;;  %1214 = sbr.rel (!%p1792_p6) target bundleno = 492 (0x1ec), region = 78 }
 0x1e9   : > { %v1135_v37 = vpop.xlane.xlu1 %1134 }
 0x1ea   : > { %v1195_v38 = vsel %vm1178_vm1, %v1135_v37, %v1187_v36 }
 0x1eb   : > { %1203 = vst [vmem:[%s2018_s12 + $0x38] sm:$0xff] %v1195_v38 }
 0x1ec PF: > { %1284 = sbr.rel (!%p1792_p6) target bundleno = 500 (0x1f4), region = 116  ;;  %s1552_s25 = sshll.u32 (%p1792_p6), %s1726_s14, 3  ;;  %v1332_v47 = vld [vmem:[%s2018_s12] sm:$0xff] (%p1792_p6)  ;;  %v1334_v48 = vld [vmem:[%s2018_s12 + $0x8] sm:$0xff] (%p1792_p6)  ;;  %v1336_v49 = vld [vmem:[%s2018_s12 + $0x10] sm:$0xff] (%p1792_p6) }
 0x1ed   : > { %s1289_s28 = scalar_lea.vmem (%p1792_p6), %s2088_s3, %s1552_s25  ;;  %v1338_v50 = vld [vmem:[%s2018_s12 + $0x18] sm:$0xff] (%p1792_p6)  ;;  %v1340_v51 = vld [vmem:[%s2018_s12 + $0x20] sm:$0xff] (%p1792_p6)  ;;  %v1342_v52 = vld [vmem:[%s2018_s12 + $0x28] sm:$0xff] (%p1792_p6) }
 0x1ee   : > { %1333 = vst [vmem:[%s1289_s28] sm:$0xff] (%p1792_p6), %v1332_v47  ;;  %1335 = vst [vmem:[%s1289_s28 + $0x10] sm:$0xff] (%p1792_p6), %v1334_v48  ;;  %v1344_v53 = vld [vmem:[%s2018_s12 + $0x30] sm:$0xff] (%p1792_p6) }
 0x1ef   : > { %1337 = vst [vmem:[%s1289_s28 + $0x20] sm:$0xff] (%p1792_p6), %v1336_v49  ;;  %1339 = vst [vmem:[%s1289_s28 + $0x30] sm:$0xff] (%p1792_p6), %v1338_v50 }
 0x1f0   : > { %1341 = vst [vmem:[%s1289_s28 + $0x40] sm:$0xff] (%p1792_p6), %v1340_v51  ;;  %1343 = vst [vmem:[%s1289_s28 + $0x50] sm:$0xff] (%p1792_p6), %v1342_v52 }
 0x1f1   : > { %1345 = vst [vmem:[%s1289_s28 + $0x60] sm:$0xff] %v1344_v53 }
 0x1f2   : > { %v1346_v54 = vld [vmem:[%s2018_s12 + $0x38] sm:$0xff] }
 0x1f3   : > { %1347 = vst [vmem:[%s1289_s28 + $0x70] sm:$0xff] %v1346_v54 }
 0x1f4 PF: > { %s14_s16 = sadd.s32 1, %s1734_s16   ;;  %s2090_s12 = smov %s1722_s13 }
 0x1f5   : > { %p11_p11 = scmp.ge.s32.totalorder %s14_s16, 4   ;;  %s2091_s13 = smov %s1797_s22 }
 0x1f6   : > { %s2092_s14 = smov %s1730_s15  ;;  %s2093_s15 = smov %s2095_s17 }
 0x1f7   :  { %13 = sbr.rel (!%p11_p11) target bundleno = 3 (0x3), region = 200 }

// kernel: tile.58
= control target key start
LH: loop header
LB: loop body
LE: loop exit
PB: predicated region body
PF: predicated region fallthrough
CT: control target
= control target key end

     0   :  { %s22_s0 = inlined_call_operand.vmem [shape: f32[16], index: 0, kind: input, shape index: {}]   ;;  %s23_s1 = inlined_call_operand.vmem [shape: f32[4,16], index: 1, kind: output, shape index: {}]  }
   0x1   :  { %v4_v0 = vld [vmem:[%s22_s0] ss:$0 sm:$0xff] }
   0x2   :  { %5 = vst [vmem:[%s23_s1] sm:$0xf] %v4_v0 }

// kernel: generator_forward.16
= control target key start
LH: loop header
LB: loop body
LE: loop exit
PB: predicated region body
PF: predicated region fallthrough
CT: control target
= control target key end

     0   :  { %s687_s12 = smov 0   ;;  %s689_s13 = smov 0   ;;  %s835_s0 = inlined_call_operand.vmem [shape: bf16[64,512], index: 0, kind: input, shape index: {}]   ;;  %s836_s1 = inlined_call_operand.vmem [shape: f32[64,1], index: 1, kind: input, shape index: {}]   ;;  %s837_s2 = inlined_call_operand.vmem [shape: f32[64,1], index: 2, kind: input, shape index: {}]   ;;  %s838_s3 = inlined_call_operand.vmem [shape: bf16[64,512], index: 3, kind: output, shape index: {}]  }
   0x1   :  { %s691_s14 = smov 0  }
   0x2 LB: > { %s582_s15 = sadd.s32 4294967295, %s664_s14   ;;  %s704_s16 = sadd.s32 1, %s664_s14   ;;  %s664_s14 = sphi %s691_s14, %s842_s14   ;;  %s660_s13 = sphi %s689_s13, %s841_s13   ;;  %s656_s12 = sphi %s687_s12, %s840_s12  }
   0x3   : > { %s17_s17 = ssub.s32 %s664_s14, %s704_s16  ;;  %s20_s18 = sadd.s32 1, %s660_s13 }
   0x4   : > { %p18_p0 = scmp.eq.s32.totalorder %s17_s17, 0  ;;  %p27_p1 = scmp.ne.s32.totalorder %s660_s13, %s656_s12 }
   0x5   : > { %p28_p2 = scmp.eq.s32.totalorder %s664_s14, 0  ;;  %p99_p3 = scmp.eq.s32.totalorder %s582_s15, 1 }
   0x6   : > { %s715_s19 = scalar_select %p18_p0, %s660_s13, %s20_s18  }
   0x7   : > { %p29_p4 = por %p28_p2, %p27_p1  ;;  %p717_p5 = por %p99_p3, %p27_p1 }
   0x8   : > { %p585_p6 = scmp.ge.s32.totalorder %s664_s14, 2 }
   0xa   : > { %127 = sbr.rel (%p585_p6) target bundleno = 23 (0x17), region = 24 }
   0xf   : > { %130 = sbr.rel (!%p29_p4) target bundleno = 23 (0x17), region = 28  ;;  %s132_s21 = sand.u32 (%p29_p4), 1, %s660_s13  }
  0x10   : > { %s605_s22 = sshll.u32 (%p29_p4), %s664_s14, 3  ;;  %s586_s23 = sshll.u32 (%p29_p4), %s132_s21, 6 }
  0x11   : > { %s137_s26 = scalar_lea.vmem (%p29_p4), %s835_s0, %s605_s22  ;;  %s134_s27 = scalar_lea.vmem (%p29_p4), [#allocation2], %s586_s23 }
  0x12   : > { %v180_v0 = vld [vmem:[%s137_s26] sm:$0xff] (%p29_p4)  ;;  %v182_v1 = vld [vmem:[%s137_s26 + $0x10] sm:$0xff] (%p29_p4) }
  0x13   : > { %v184_v2 = vld [vmem:[%s137_s26 + $0x20] sm:$0xff] (%p29_p4)  ;;  %181 = vst [vmem:[%s134_s27] sm:$0xff] (%p29_p4), %v180_v0  ;;  %183 = vst [vmem:[%s134_s27 + $0x8] sm:$0xff] (%p29_p4), %v182_v1  ;;  %v186_v3 = vld [vmem:[%s137_s26 + $0x30] sm:$0xff] (%p29_p4) }
  0x14   : > { %185 = vst [vmem:[%s134_s27 + $0x10] sm:$0xff] %v184_v2  ;;  %v188_v4 = vld [vmem:[%s137_s26 + $0x40] sm:$0xff]  ;;  %v190_v5 = vld [vmem:[%s137_s26 + $0x50] sm:$0xff]  ;;  %187 = vst [vmem:[%s134_s27 + $0x18] sm:$0xff] %v186_v3 }
  0x15   : > { %189 = vst [vmem:[%s134_s27 + $0x20] sm:$0xff] %v188_v4  ;;  %191 = vst [vmem:[%s134_s27 + $0x28] sm:$0xff] %v190_v5  ;;  %v192_v6 = vld [vmem:[%s137_s26 + $0x60] sm:$0xff]  ;;  %v194_v7 = vld [vmem:[%s137_s26 + $0x70] sm:$0xff] }
  0x16   : > { %193 = vst [vmem:[%s134_s27 + $0x30] sm:$0xff] %v192_v6  ;;  %195 = vst [vmem:[%s134_s27 + $0x38] sm:$0xff] %v194_v7 }
  0x17 PF: > { %p589_p7 = scmp.ge.s32.totalorder %s664_s14, 1  ;;  %p200_p8 = scmp.lt.s32.totalorder %s664_s14, 3 }
  0x19   : > { %p201_p9 = pnand %p589_p7, %p200_p8 }
  0x1a   : > { %s207_s18 = sand.u32 (!%p201_p9), 1, %s656_s12  }
  0x1b   : > { %204 = sbr.rel (%p201_p9) target bundleno = 202 (0xca), region = 66  ;;  %s778_s21 = sshll.u32 (!%p201_p9), %s207_s18, 6 }
  0x1c   : > { %s781_s22 = scalar_lea.vmem (!%p201_p9), [#allocation2], %s778_s21  ;;  %s796_s12 = scalar_lea.vmem (!%p201_p9), [#allocation3], %s778_s21 }
  0x20   : > { %v257_v8 = vld [vmem:[%s836_s1 + $0x10] sm:$0xff]  ;;  %v255_v9 = vld [vmem:[%s836_s1] sm:$0xff]  ;;  %v666_v10 = vmov 0   ;;  %v258_v11 = vld [vmem:[%s836_s1 + $0x18] sm:$0xff]  ;;  %s614_s23 = sshll.u32 (%p717_p5), %s582_s15, 3 }
  0x21   : > { %641 = vset.pattern.permute.xlu1 %v666_v10  ;;  %640 = vset.pattern.permute.xlu0 %v666_v10  ;;  %v256_v12 = vld [vmem:[%s836_s1 + $0x8] sm:$0xff]  ;;  %v259_v14 = vld [vmem:[%s836_s1 + $0x20] sm:$0xff]  ;;  %v262_v15 = vld [vmem:[%s836_s1 + $0x38] sm:$0xff]  ;;  %s464_s26 = scalar_lea.vmem (%p717_p5), %s838_s3, %s614_s23 }
  0x22   : > { %275 = vperm.xlu1 %641, %v257_v8   ;;  %265 = vperm.xlu0 %640, %v255_v9   ;;  %v260_v13 = vld [vmem:[%s836_s1 + $0x28] sm:$0xff]  ;;  %v261_v16 = vld [vmem:[%s836_s1 + $0x30] sm:$0xff]  ;;  %v319_v18 = vld [vmem:[%s837_s2] sm:$0xff] }
  0x23   : > { %v320_v17 = vld [vmem:[%s837_s2 + $0x8] sm:$0xff]  ;;  %v322_v19 = vld [vmem:[%s837_s2 + $0x18] sm:$0xff]  ;;  %v321_v20 = vld [vmem:[%s837_s2 + $0x10] sm:$0xff] }
  0x24   : > { %v324_v21 = vld [vmem:[%s837_s2 + $0x28] sm:$0xff]  ;;  %v323_v22 = vld [vmem:[%s837_s2 + $0x20] sm:$0xff]  ;;  %v326_v23 = vld [vmem:[%s837_s2 + $0x38] sm:$0xff] }
  0x25   : > { %v325_v24 = vld [vmem:[%s837_s2 + $0x30] sm:$0xff]  ;;  %v231_v29 = vld [vmem:[%s781_s22] sm:$0xff]  ;;  %v232_v30 = vld [vmem:[%s781_s22 + $0x8] sm:$0xff] }
  0x26   : > { %280 = vperm.xlu1 %641, %v258_v11   ;;  %270 = vperm.xlu0 %640, %v256_v12   ;;  %v239_v33 = vunpack.c.l.bf16 %v231_v29  ;;  %v240_v34 = vunpack.c.h.bf16 %v231_v29  ;;  %v234_v35 = vld [vmem:[%s781_s22 + $0x18] sm:$0xff]  ;;  %v241_v36 = vunpack.c.l.bf16 %v232_v30  ;;  %v242_v37 = vunpack.c.h.bf16 %v232_v30  ;;  %v233_v40 = vld [vmem:[%s781_s22 + $0x10] sm:$0xff]  ;;  %v236_v41 = vld [vmem:[%s781_s22 + $0x28] sm:$0xff] }
  0x27   : > { %v245_v42 = vunpack.c.l.bf16 %v234_v35  ;;  %v246_v43 = vunpack.c.h.bf16 %v234_v35  ;;  %v235_v48 = vld [vmem:[%s781_s22 + $0x20] sm:$0xff]  ;;  %v243_v49 = vunpack.c.l.bf16 %v233_v40  ;;  %v244_v50 = vunpack.c.h.bf16 %v233_v40  ;;  %v238_v55 = vld [vmem:[%s781_s22 + $0x38] sm:$0xff]  ;;  %v237_v0 = vld [vmem:[%s781_s22 + $0x30] sm:$0xff] }
  0x28   : > { %v249_v51 = vunpack.c.l.bf16 %v236_v41  ;;  %v250_v52 = vunpack.c.h.bf16 %v236_v41  ;;  %v247_v62 = vunpack.c.l.bf16 %v235_v48  ;;  %v248_v63 = vunpack.c.h.bf16 %v235_v48 }
  0x29   : > { %v253_v7 = vunpack.c.l.bf16 %v238_v55  ;;  %v254_v8 = vunpack.c.h.bf16 %v238_v55 }
  0x2a   : > { %290 = vperm.xlu1 %641, %v260_v13   ;;  %285 = vperm.xlu0 %640, %v259_v14  }
  0x2e   : > { %300 = vperm.xlu1 %641, %v262_v15   ;;  %295 = vperm.xlu0 %640, %v261_v16   ;;  %v251_v16 = vunpack.c.l.bf16 %v237_v0 }
  0x32   : > { %334 = vperm.xlu1 %641, %v320_v17   ;;  %329 = vperm.xlu0 %640, %v319_v18  }
  0x36   : > { %344 = vperm.xlu1 %641, %v322_v19   ;;  %339 = vperm.xlu0 %640, %v321_v20  }
  0x3a   : > { %354 = vperm.xlu1 %641, %v324_v21   ;;  %349 = vperm.xlu0 %640, %v323_v22  }
  0x3e   : > { %364 = vperm.xlu1 %641, %v326_v23   ;;  %359 = vperm.xlu0 %640, %v325_v24   ;;  %v252_v24 = vunpack.c.h.bf16 %v237_v0 }
  0x9d   : > { %v276_v25 = vpop.permute.xlu1 %275  ;;  %v266_v26 = vpop.permute.xlu0 %265 }
  0x9e   : > { %v303_v44 = vmul.f32 %v266_v26, %v239_v33  ;;  %v304_v45 = vmul.f32 %v266_v26, %v240_v34  ;;  %v307_v5 = vmul.f32 %v276_v25, %v243_v49  ;;  %v308_v6 = vmul.f32 %v276_v25, %v244_v50 }
  0xa1   : > { %v281_v27 = vpop.permute.xlu1 %280  ;;  %v271_v28 = vpop.permute.xlu0 %270 }
  0xa2   : > { %v305_v46 = vmul.f32 %v271_v28, %v241_v36  ;;  %v306_v47 = vmul.f32 %v271_v28, %v242_v37  ;;  %v309_v60 = vmul.f32 %v281_v27, %v245_v42  ;;  %v310_v61 = vmul.f32 %v281_v27, %v246_v43 }
  0xa5   : > { %v291_v31 = vpop.permute.xlu1 %290  ;;  %v286_v32 = vpop.permute.xlu0 %285 }
  0xa6   : > { %v313_v15 = vmul.f32 %v291_v31, %v249_v51  ;;  %v314_v19 = vmul.f32 %v291_v31, %v250_v52  ;;  %v311_v20 = vmul.f32 %v286_v32, %v247_v62  ;;  %v312_v23 = vmul.f32 %v286_v32, %v248_v63 }
  0xa9   : > { %v786_v38 = vpop.permute.xlu1 %300  ;;  %v788_v39 = vpop.permute.xlu0 %295 }
  0xaa   : > { %v317_v34 = vmul.f32 %v786_v38, %v253_v7  ;;  %v318_v35 = vmul.f32 %v786_v38, %v254_v8  ;;  %v315_v40 = vmul.f32 %v788_v39, %v251_v16  ;;  %v316_v43 = vmul.f32 %v788_v39, %v252_v24 }
  0xad   : > { %v335_v53 = vpop.permute.xlu1 %334  ;;  %v330_v54 = vpop.permute.xlu0 %329 }
  0xae   : > { %v369_v56 = vadd.f32 %v335_v53, %v305_v46  ;;  %v370_v57 = vadd.f32 %v335_v53, %v306_v47  ;;  %v367_v58 = vadd.f32 %v330_v54, %v303_v44  ;;  %v368_v59 = vadd.f32 %v330_v54, %v304_v45 }
  0xb0   : > { %v385_v1 = vmax.f32 %v369_v56, 0.0  ;;  %v386_v2 = vmax.f32 %v370_v57, 0.0  ;;  %v383_v3 = vmax.f32 %v367_v58, 0.0  ;;  %v384_v4 = vmax.f32 %v368_v59, 0.0 }
  0xb1   : > { %v345_v9 = vpop.permute.xlu1 %344  ;;  %v340_v10 = vpop.permute.xlu0 %339 }
  0xb2   : > { %v607_v11 = vpack.c.bf16 %v386_v2, %v385_v1  ;;  %v606_v12 = vpack.c.bf16 %v384_v4, %v383_v3  ;;  %v373_v13 = vadd.f32 %v345_v9, %v309_v60  ;;  %v374_v14 = vadd.f32 %v345_v9, %v310_v61 }
  0xb3   : > { %v371_v17 = vadd.f32 %v340_v10, %v307_v5  ;;  %v372_v18 = vadd.f32 %v340_v10, %v308_v6 }
  0xb4   : > { %448 = vst [vmem:[%s796_s12 + $0x8] sm:$0xff] %v607_v11  ;;  %447 = vst [vmem:[%s796_s12] sm:$0xff] %v606_v12  ;;  %v389_v21 = vmax.f32 %v373_v13, 0.0  ;;  %v390_v22 = vmax.f32 %v374_v14, 0.0 }
  0xb5   : > { %v387_v25 = vmax.f32 %v371_v17, 0.0  ;;  %v388_v26 = vmax.f32 %v372_v18, 0.0  ;;  %v355_v27 = vpop.permute.xlu1 %354  ;;  %v350_v28 = vpop.permute.xlu0 %349 }
  0xb6   : > { %v609_v29 = vpack.c.bf16 %v390_v22, %v389_v21  ;;  %v377_v30 = vadd.f32 %v355_v27, %v313_v15  ;;  %v378_v31 = vadd.f32 %v355_v27, %v314_v19  ;;  %v375_v33 = vadd.f32 %v350_v28, %v311_v20 }
  0xb7   : > { %v608_v36 = vpack.c.bf16 %v388_v26, %v387_v25  ;;  %v376_v37 = vadd.f32 %v350_v28, %v312_v23 }
  0xb8   : > { %450 = vst [vmem:[%s796_s12 + $0x18] sm:$0xff] %v609_v29  ;;  %v393_v32 = vmax.f32 %v377_v30, 0.0  ;;  %v394_v41 = vmax.f32 %v378_v31, 0.0  ;;  %v391_v42 = vmax.f32 %v375_v33, 0.0 }
  0xb9   : > { %449 = vst [vmem:[%s796_s12 + $0x10] sm:$0xff] %v608_v36  ;;  %v392_v44 = vmax.f32 %v376_v37, 0.0  ;;  %v365_v45 = vpop.permute.xlu1 %364  ;;  %v360_v46 = vpop.permute.xlu0 %359 }
  0xba   : > { %v611_v47 = vpack.c.bf16 %v394_v41, %v393_v32  ;;  %v381_v38 = vadd.f32 %v365_v45, %v317_v34  ;;  %v382_v48 = vadd.f32 %v365_v45, %v318_v35  ;;  %v379_v49 = vadd.f32 %v360_v46, %v315_v40 }
  0xbb   : > { %v610_v50 = vpack.c.bf16 %v392_v44, %v391_v42  ;;  %v380_v51 = vadd.f32 %v360_v46, %v316_v43  ;;  %v507_v57 = vld [vmem:[%s796_s12] sm:$0xff] (%p717_p5)  ;;  %v509_v58 = vld [vmem:[%s796_s12 + $0x8] sm:$0xff] (%p717_p5) }
  0xbc   : > { %452 = vst [vmem:[%s796_s12 + $0x28] sm:$0xff] %v611_v47  ;;  %v397_v52 = vmax.f32 %v381_v38, 0.0  ;;  %v398_v53 = vmax.f32 %v382_v48, 0.0  ;;  %v395_v54 = vmax.f32 %v379_v49, 0.0  ;;  %508 = vst [vmem:[%s464_s26] sm:$0xff] (%p717_p5), %v507_v57 }
  0xbd   : > { %451 = vst [vmem:[%s796_s12 + $0x20] sm:$0xff] %v610_v50  ;;  %v396_v55 = vmax.f32 %v380_v51, 0.0  ;;  %461 = sbr.rel (!%p717_p5) target bundleno = 202 (0xca), region = 74  ;;  %510 = vst [vmem:[%s464_s26 + $0x10] sm:$0xff] (%p717_p5), %v509_v58 }
  0xbe   : > { %v613_v56 = vpack.c.bf16 %v398_v53, %v397_v52 }
  0xbf   : > { %v612_v39 = vpack.c.bf16 %v396_v55, %v395_v54  ;;  %v513_v60 = vld [vmem:[%s796_s12 + $0x18] sm:$0xff] (%p717_p5) }
  0xc0   : > { %454 = vst [vmem:[%s796_s12 + $0x38] sm:$0xff] %v613_v56  ;;  %v511_v59 = vld [vmem:[%s796_s12 + $0x10] sm:$0xff] (%p717_p5)  ;;  %514 = vst [vmem:[%s464_s26 + $0x30] sm:$0xff] (%p717_p5), %v513_v60 }
  0xc1   : > { %453 = vst [vmem:[%s796_s12 + $0x30] sm:$0xff] %v612_v39  ;;  %512 = vst [vmem:[%s464_s26 + $0x20] sm:$0xff] (%p717_p5), %v511_v59 }
  0xc3   : > { %v517_v62 = vld [vmem:[%s796_s12 + $0x28] sm:$0xff] }
  0xc4   : > { %v515_v61 = vld [vmem:[%s796_s12 + $0x20] sm:$0xff]  ;;  %518 = vst [vmem:[%s464_s26 + $0x50] sm:$0xff] %v517_v62 }
  0xc5   : > { %516 = vst [vmem:[%s464_s26 + $0x40] sm:$0xff] %v515_v61 }
  0xc7   : > { %v521_v0 = vld [vmem:[%s796_s12 + $0x38] sm:$0xff] }
  0xc8   : > { %v519_v63 = vld [vmem:[%s796_s12 + $0x30] sm:$0xff]  ;;  %522 = vst [vmem:[%s464_s26 + $0x70] sm:$0xff] %v521_v0 }
  0xc9   : > { %520 = vst [vmem:[%s464_s26 + $0x60] sm:$0xff] %v519_v63 }
  0xca PF: > { %p10_p10 = scmp.ge.s32.totalorder %s704_s16, 4   ;;  %s840_s12 = smov %s660_s13 }
  0xcb   : > { %s841_s13 = smov %s715_s19  ;;  %s842_s14 = smov %s704_s16 }
  0xcc   :  { %12 = sbr.rel (!%p10_p10) target bundleno = 2 (0x2), region = 143 }

// kernel: tile.68
= control target key start
LH: loop header
LB: loop body
LE: loop exit
PB: predicated region body
PF: predicated region fallthrough
CT: control target
= control target key end

     0   :  { %s22_s0 = inlined_call_operand.vmem [shape: f32[3], index: 0, kind: input, shape index: {}]   ;;  %s23_s1 = inlined_call_operand.vmem [shape: f32[4,3], index: 1, kind: output, shape index: {}]  }
   0x1   :  { %v4_v0 = vld [vmem:[%s22_s0] ss:$0 sm:$0xff] }
   0x2   :  { %5 = vst [vmem:[%s23_s1] sm:$0xf] %v4_v0 }

// kernel: tile.69
= control target key start
LH: loop header
LB: loop body
LE: loop exit
PB: predicated region body
PF: predicated region fallthrough
CT: control target
= control target key end

     0   :  { %vm8_vm0 = vcmask 23552   ;;  %s40_s8 = smov 3   ;;  %s41_s9 = smov 6   ;;  %vm14_vm1 = vcmask 97352   ;;  %vm20_vm2 = vcmask 72752   ;;  %vm26_vm3 = vcmask 48152   ;;  %s58_s0 = inlined_call_operand.vmem [shape: f32[4,3], index: 0, kind: input, shape index: {}]   ;;  %s59_s1 = inlined_call_operand.vmem [shape: f32[12], index: 1, kind: output, shape index: {}]  }
   0x1   :  { %v5_v0 = vld [vmem:[%s58_s0] sm:$0xf]  ;;  %s39_s0 = smov 9  }
   0x2   :  { %6 = vst [vmem:[#allocation1] sm:$0xf] %v5_v0 }
   0x9   :  { %v11_v1 = vld [vmem:[#allocation1 + $0x3] sm:$0x1]   ;;  %v23_v2 = vld [vmem:[#allocation1 + $0x1] sm:$0x1]   ;;  %v7_v3 = vld [vmem:[#allocation1] sm:$0x1]  }
   0xa   :  { %12 = vrot.lane.b32.xlu0 %v11_v1, %s39_s0  ;;  %24 = vrot.lane.b32.xlu1 %v23_v2, %s40_s8  ;;  %v17_v4 = vld [vmem:[#allocation1 + $0x2] sm:$0x1]   ;;  %9 = vst.msk [vmem:[#allocation0] sm:$0x1] %vm8_vm0, %v7_v3  }
   0xe   :  { %18 = vrot.lane.b32.xlu0 %v17_v4, %s41_s9 }
  0x7c   :  { %v13_v5 = vpop.permute.xlu0 %12   ;;  %v25_v6 = vpop.permute.xlu1 %24  }
  0x7d   :  { %15 = vst.msk [vmem:[#allocation0] sm:$0x1] %vm14_vm1, %v13_v5  }
  0x80   :  { %v19_v7 = vpop.permute.xlu0 %18  }
  0x81   :  { %21 = vst.msk [vmem:[#allocation0] sm:$0x1] %vm20_vm2, %v19_v7  }
  0x82   :  { %27 = vst.msk [vmem:[#allocation0] sm:$0x1] %vm26_vm3, %v25_v6  }
  0x89   :  { %v32_v8 = vld [vmem:[#allocation0] sm:$0x1] }
  0x8a   :  { %35 = vst [vmem:[%s59_s1] sm:$0x1] %v32_v8 }

// kernel: generator_forward.17
= control target key start
LH: loop header
LB: loop body
LE: loop exit
PB: predicated region body
PF: predicated region fallthrough
CT: control target
= control target key end

     0   :  { %s2066_s12 = smov 0   ;;  %s2068_s13 = smov 0   ;;  %s2590_s0 = inlined_call_operand.vmem [shape: bf16[16,256], index: 0, kind: input, shape index: {}]   ;;  %s2591_s1 = inlined_call_operand.vmem [shape: bf16[256,2048], index: 1, kind: input, shape index: {}]   ;;  %s2592_s2 = inlined_call_operand.vmem [shape: f32[16,1], index: 2, kind: input, shape index: {}]   ;;  %s2593_s3 = inlined_call_operand.vmem [shape: f32[16,2048], index: 3, kind: output, shape index: {}]  }
   0x1   :  { %s2070_s14 = smov 0   ;;  %s2072_s15 = smov 0  }
   0x2   :  { %s2074_s16 = smov 0  }
   0x3 LB: > { %s28_s17 = sadd.s32 1, %s2039_s15  ;;  %s1779_s18 = sadd.s32 4294967295, %s2043_s16   ;;  %s2043_s16 = sphi %s2074_s16, %s13_s16   ;;  %s2039_s15 = sphi %s2072_s15, %s2598_s15   ;;  %s2035_s14 = sphi %s2070_s14, %s2597_s14   ;;  %s2031_s13 = sphi %s2068_s13, %s2596_s13   ;;  %s2027_s12 = sphi %s2066_s12, %s2595_s12  }
   0x4   : > { %p30_p0 = scmp.ge.s32.totalorder %s28_s17, 2  ;;  %p74_p1 = scmp.ne.s32.totalorder %s2031_s13, %s2027_s12 }
   0x5   : > { %p75_p2 = scmp.eq.s32.totalorder %s2043_s16, 0  ;;  %p132_p4 = scmp.eq.s32.totalorder %s1779_s18, 1 }
   0x6   : > { %s2600_s17 = smov (%p30_p0, %s28_s17), 0  ;;  %s67_s20 = sadd.s32 1, %s2031_s13 }
   0x7   : > { %p76_p3 = por %p75_p2, %p74_p1  ;;  %s63_s19 = ssub.s32 %s2039_s15, %s2600_s17 }
   0x8   : > { %p65_p5 = scmp.eq.s32.totalorder %s63_s19, 0  ;;  %p2101_p6 = por %p132_p4, %p74_p1 }
   0x9   : > { %p1784_p7 = scmp.ge.s32.totalorder %s2043_s16, 2 }
   0xa   : > { %s2106_s22 = scalar_select %p65_p5, %s2031_s13, %s67_s20  }
   0xb   : > { %173 = sbr.rel (%p1784_p7) target bundleno = 84 (0x54), region = 24 }
  0x10   : > { %176 = sbr.rel (!%p76_p3) target bundleno = 84 (0x54), region = 28  ;;  %s178_s23 = sand.u32 (%p76_p3), 1, %s2031_s13  }
  0x11   : > { %s1926_s24 = sshll.u32 (%p76_p3), %s2039_s15, 5  ;;  %s1785_s25 = sshll.u32 (%p76_p3), %s178_s23, 10 }
  0x12   : > { %s2114_s28 = scalar_lea.vmem (%p76_p3), %s2591_s1, %s1926_s24  ;;  %s2119_s29 = scalar_lea.vmem (%p76_p3), [#allocation3], %s1785_s25 }
  0x13   : > { %v199_v0 = vld [vmem:[%s2114_s28] sm:$0xff] (%p76_p3)  ;;  %v201_v1 = vld [vmem:[%s2114_s28 + $0x8] sm:$0xff] (%p76_p3)  ;;  %v203_v2 = vld [vmem:[%s2114_s28 + $0x10] sm:$0xff] (%p76_p3) }
  0x14   : > { %200 = vst [vmem:[%s2119_s29] sm:$0xff] (%p76_p3), %v199_v0  ;;  %202 = vst [vmem:[%s2119_s29 + $0x8] sm:$0xff] (%p76_p3), %v201_v1  ;;  %v205_v3 = vld [vmem:[%s2114_s28 + $0x18] sm:$0xff] (%p76_p3)  ;;  %v207_v4 = vld [vmem:[%s2114_s28 + $0x40] sm:$0xff] (%p76_p3) }
  0x15   : > { %204 = vst [vmem:[%s2119_s29 + $0x10] sm:$0xff] %v203_v2  ;;  %v209_v5 = vld [vmem:[%s2114_s28 + $0x48] sm:$0xff]  ;;  %206 = vst [vmem:[%s2119_s29 + $0x18] sm:$0xff] %v205_v3  ;;  %v211_v6 = vld [vmem:[%s2114_s28 + $0x50] sm:$0xff] }
  0x16   : > { %208 = vst [vmem:[%s2119_s29 + $0x20] sm:$0xff] %v207_v4  ;;  %210 = vst [vmem:[%s2119_s29 + $0x28] sm:$0xff] %v209_v5  ;;  %v213_v7 = vld [vmem:[%s2114_s28 + $0x58] sm:$0xff]  ;;  %v215_v8 = vld [vmem:[%s2114_s28 + $0x80] sm:$0xff] }
  0x17   : > { %212 = vst [vmem:[%s2119_s29 + $0x30] sm:$0xff] %v211_v6  ;;  %214 = vst [vmem:[%s2119_s29 + $0x38] sm:$0xff] %v213_v7  ;;  %v217_v9 = vld [vmem:[%s2114_s28 + $0x88] sm:$0xff]  ;;  %v219_v10 = vld [vmem:[%s2114_s28 + $0x90] sm:$0xff] }
  0x18   : > { %216 = vst [vmem:[%s2119_s29 + $0x40] sm:$0xff] %v215_v8  ;;  %v221_v11 = vld [vmem:[%s2114_s28 + $0x98] sm:$0xff]  ;;  %218 = vst [vmem:[%s2119_s29 + $0x48] sm:$0xff] %v217_v9  ;;  %v223_v12 = vld [vmem:[%s2114_s28 + $0xc0] sm:$0xff] }
  0x19   : > { %220 = vst [vmem:[%s2119_s29 + $0x50] sm:$0xff] %v219_v10  ;;  %222 = vst [vmem:[%s2119_s29 + $0x58] sm:$0xff] %v221_v11  ;;  %v225_v13 = vld [vmem:[%s2114_s28 + $0xc8] sm:$0xff]  ;;  %v227_v14 = vld [vmem:[%s2114_s28 + $0xd0] sm:$0xff] }
  0x1a   : > { %224 = vst [vmem:[%s2119_s29 + $0x60] sm:$0xff] %v223_v12  ;;  %226 = vst [vmem:[%s2119_s29 + $0x68] sm:$0xff] %v225_v13  ;;  %v229_v15 = vld [vmem:[%s2114_s28 + $0xd8] sm:$0xff]  ;;  %v231_v16 = vld [vmem:[%s2114_s28 + $0x100] sm:$0xff] }
  0x1b   : > { %228 = vst [vmem:[%s2119_s29 + $0x70] sm:$0xff] %v227_v14  ;;  %v233_v17 = vld [vmem:[%s2114_s28 + $0x108] sm:$0xff]  ;;  %230 = vst [vmem:[%s2119_s29 + $0x78] sm:$0xff] %v229_v15  ;;  %v235_v18 = vld [vmem:[%s2114_s28 + $0x110] sm:$0xff] }
  0x1c   : > { %232 = vst [vmem:[%s2119_s29 + $0x80] sm:$0xff] %v231_v16  ;;  %234 = vst [vmem:[%s2119_s29 + $0x88] sm:$0xff] %v233_v17  ;;  %v237_v19 = vld [vmem:[%s2114_s28 + $0x118] sm:$0xff]  ;;  %v239_v20 = vld [vmem:[%s2114_s28 + $0x140] sm:$0xff] }
  0x1d   : > { %236 = vst [vmem:[%s2119_s29 + $0x90] sm:$0xff] %v235_v18  ;;  %238 = vst [vmem:[%s2119_s29 + $0x98] sm:$0xff] %v237_v19  ;;  %v241_v21 = vld [vmem:[%s2114_s28 + $0x148] sm:$0xff]  ;;  %v243_v22 = vld [vmem:[%s2114_s28 + $0x150] sm:$0xff] }
  0x1e   : > { %240 = vst [vmem:[%s2119_s29 + $0xa0] sm:$0xff] %v239_v20  ;;  %v245_v23 = vld [vmem:[%s2114_s28 + $0x158] sm:$0xff]  ;;  %242 = vst [vmem:[%s2119_s29 + $0xa8] sm:$0xff] %v241_v21  ;;  %v247_v24 = vld [vmem:[%s2114_s28 + $0x180] sm:$0xff] }
  0x1f   : > { %244 = vst [vmem:[%s2119_s29 + $0xb0] sm:$0xff] %v243_v22  ;;  %246 = vst [vmem:[%s2119_s29 + $0xb8] sm:$0xff] %v245_v23  ;;  %v249_v25 = vld [vmem:[%s2114_s28 + $0x188] sm:$0xff]  ;;  %v251_v26 = vld [vmem:[%s2114_s28 + $0x190] sm:$0xff] }
  0x20   : > { %248 = vst [vmem:[%s2119_s29 + $0xc0] sm:$0xff] %v247_v24  ;;  %250 = vst [vmem:[%s2119_s29 + $0xc8] sm:$0xff] %v249_v25  ;;  %v253_v27 = vld [vmem:[%s2114_s28 + $0x198] sm:$0xff]  ;;  %v255_v28 = vld [vmem:[%s2114_s28 + $0x1c0] sm:$0xff] }
  0x21   : > { %252 = vst [vmem:[%s2119_s29 + $0xd0] sm:$0xff] %v251_v26  ;;  %v257_v29 = vld [vmem:[%s2114_s28 + $0x1c8] sm:$0xff]  ;;  %254 = vst [vmem:[%s2119_s29 + $0xd8] sm:$0xff] %v253_v27  ;;  %v259_v30 = vld [vmem:[%s2114_s28 + $0x1d0] sm:$0xff] }
  0x22   : > { %256 = vst [vmem:[%s2119_s29 + $0xe0] sm:$0xff] %v255_v28  ;;  %258 = vst [vmem:[%s2119_s29 + $0xe8] sm:$0xff] %v257_v29  ;;  %v261_v31 = vld [vmem:[%s2114_s28 + $0x1d8] sm:$0xff]  ;;  %v263_v32 = vld [vmem:[%s2114_s28 + $0x200] sm:$0xff] }
  0x23   : > { %260 = vst [vmem:[%s2119_s29 + $0xf0] sm:$0xff] %v259_v30  ;;  %262 = vst [vmem:[%s2119_s29 + $0xf8] sm:$0xff] %v261_v31  ;;  %v265_v33 = vld [vmem:[%s2114_s28 + $0x208] sm:$0xff]  ;;  %v267_v34 = vld [vmem:[%s2114_s28 + $0x210] sm:$0xff] }
  0x24   : > { %264 = vst [vmem:[%s2119_s29 + $0x100] sm:$0xff] %v263_v32  ;;  %v269_v35 = vld [vmem:[%s2114_s28 + $0x218] sm:$0xff]  ;;  %266 = vst [vmem:[%s2119_s29 + $0x108] sm:$0xff] %v265_v33  ;;  %v271_v36 = vld [vmem:[%s2114_s28 + $0x240] sm:$0xff] }
  0x25   : > { %268 = vst [vmem:[%s2119_s29 + $0x110] sm:$0xff] %v267_v34  ;;  %270 = vst [vmem:[%s2119_s29 + $0x118] sm:$0xff] %v269_v35  ;;  %v273_v37 = vld [vmem:[%s2114_s28 + $0x248] sm:$0xff]  ;;  %v275_v38 = vld [vmem:[%s2114_s28 + $0x250] sm:$0xff] }
  0x26   : > { %272 = vst [vmem:[%s2119_s29 + $0x120] sm:$0xff] %v271_v36  ;;  %274 = vst [vmem:[%s2119_s29 + $0x128] sm:$0xff] %v273_v37  ;;  %v277_v39 = vld [vmem:[%s2114_s28 + $0x258] sm:$0xff]  ;;  %v279_v40 = vld [vmem:[%s2114_s28 + $0x280] sm:$0xff] }
  0x27   : > { %276 = vst [vmem:[%s2119_s29 + $0x130] sm:$0xff] %v275_v38  ;;  %v281_v41 = vld [vmem:[%s2114_s28 + $0x288] sm:$0xff]  ;;  %278 = vst [vmem:[%s2119_s29 + $0x138] sm:$0xff] %v277_v39  ;;  %v283_v42 = vld [vmem:[%s2114_s28 + $0x290] sm:$0xff] }
  0x28   : > { %280 = vst [vmem:[%s2119_s29 + $0x140] sm:$0xff] %v279_v40  ;;  %282 = vst [vmem:[%s2119_s29 + $0x148] sm:$0xff] %v281_v41  ;;  %v285_v43 = vld [vmem:[%s2114_s28 + $0x298] sm:$0xff]  ;;  %v287_v44 = vld [vmem:[%s2114_s28 + $0x2c0] sm:$0xff] }
  0x29   : > { %284 = vst [vmem:[%s2119_s29 + $0x150] sm:$0xff] %v283_v42  ;;  %286 = vst [vmem:[%s2119_s29 + $0x158] sm:$0xff] %v285_v43  ;;  %v289_v45 = vld [vmem:[%s2114_s28 + $0x2c8] sm:$0xff]  ;;  %v291_v46 = vld [vmem:[%s2114_s28 + $0x2d0] sm:$0xff] }
  0x2a   : > { %288 = vst [vmem:[%s2119_s29 + $0x160] sm:$0xff] %v287_v44  ;;  %v293_v47 = vld [vmem:[%s2114_s28 + $0x2d8] sm:$0xff]  ;;  %290 = vst [vmem:[%s2119_s29 + $0x168] sm:$0xff] %v289_v45  ;;  %v295_v48 = vld [vmem:[%s2114_s28 + $0x300] sm:$0xff] }
  0x2b   : > { %292 = vst [vmem:[%s2119_s29 + $0x170] sm:$0xff] %v291_v46  ;;  %294 = vst [vmem:[%s2119_s29 + $0x178] sm:$0xff] %v293_v47  ;;  %v297_v49 = vld [vmem:[%s2114_s28 + $0x308] sm:$0xff]  ;;  %v299_v50 = vld [vmem:[%s2114_s28 + $0x310] sm:$0xff] }
  0x2c   : > { %296 = vst [vmem:[%s2119_s29 + $0x180] sm:$0xff] %v295_v48  ;;  %298 = vst [vmem:[%s2119_s29 + $0x188] sm:$0xff] %v297_v49  ;;  %v301_v51 = vld [vmem:[%s2114_s28 + $0x318] sm:$0xff]  ;;  %v303_v52 = vld [vmem:[%s2114_s28 + $0x340] sm:$0xff] }
  0x2d   : > { %300 = vst [vmem:[%s2119_s29 + $0x190] sm:$0xff] %v299_v50  ;;  %v305_v53 = vld [vmem:[%s2114_s28 + $0x348] sm:$0xff]  ;;  %302 = vst [vmem:[%s2119_s29 + $0x198] sm:$0xff] %v301_v51  ;;  %v307_v54 = vld [vmem:[%s2114_s28 + $0x350] sm:$0xff] }
  0x2e   : > { %304 = vst [vmem:[%s2119_s29 + $0x1a0] sm:$0xff] %v303_v52  ;;  %306 = vst [vmem:[%s2119_s29 + $0x1a8] sm:$0xff] %v305_v53  ;;  %v309_v55 = vld [vmem:[%s2114_s28 + $0x358] sm:$0xff]  ;;  %v311_v56 = vld [vmem:[%s2114_s28 + $0x380] sm:$0xff] }
  0x2f   : > { %308 = vst [vmem:[%s2119_s29 + $0x1b0] sm:$0xff] %v307_v54  ;;  %310 = vst [vmem:[%s2119_s29 + $0x1b8] sm:$0xff] %v309_v55  ;;  %v313_v57 = vld [vmem:[%s2114_s28 + $0x388] sm:$0xff]  ;;  %v315_v58 = vld [vmem:[%s2114_s28 + $0x390] sm:$0xff] }
  0x30   : > { %312 = vst [vmem:[%s2119_s29 + $0x1c0] sm:$0xff] %v311_v56  ;;  %v317_v59 = vld [vmem:[%s2114_s28 + $0x398] sm:$0xff]  ;;  %314 = vst [vmem:[%s2119_s29 + $0x1c8] sm:$0xff] %v313_v57  ;;  %v319_v60 = vld [vmem:[%s2114_s28 + $0x3c0] sm:$0xff] }
  0x31   : > { %316 = vst [vmem:[%s2119_s29 + $0x1d0] sm:$0xff] %v315_v58  ;;  %318 = vst [vmem:[%s2119_s29 + $0x1d8] sm:$0xff] %v317_v59  ;;  %v321_v61 = vld [vmem:[%s2114_s28 + $0x3c8] sm:$0xff]  ;;  %v323_v62 = vld [vmem:[%s2114_s28 + $0x3d0] sm:$0xff] }
  0x32   : > { %320 = vst [vmem:[%s2119_s29 + $0x1e0] sm:$0xff] %v319_v60  ;;  %322 = vst [vmem:[%s2119_s29 + $0x1e8] sm:$0xff] %v321_v61  ;;  %v325_v63 = vld [vmem:[%s2114_s28 + $0x3d8] sm:$0xff]  ;;  %v327_v0 = vld [vmem:[%s2114_s28 + $0x400] sm:$0xff] }
  0x33   : > { %324 = vst [vmem:[%s2119_s29 + $0x1f0] sm:$0xff] %v323_v62  ;;  %v329_v1 = vld [vmem:[%s2114_s28 + $0x408] sm:$0xff]  ;;  %326 = vst [vmem:[%s2119_s29 + $0x1f8] sm:$0xff] %v325_v63  ;;  %v331_v2 = vld [vmem:[%s2114_s28 + $0x410] sm:$0xff] }
  0x34   : > { %328 = vst [vmem:[%s2119_s29 + $0x200] sm:$0xff] %v327_v0  ;;  %330 = vst [vmem:[%s2119_s29 + $0x208] sm:$0xff] %v329_v1  ;;  %v333_v3 = vld [vmem:[%s2114_s28 + $0x418] sm:$0xff]  ;;  %v335_v4 = vld [vmem:[%s2114_s28 + $0x440] sm:$0xff] }
  0x35   : > { %332 = vst [vmem:[%s2119_s29 + $0x210] sm:$0xff] %v331_v2  ;;  %334 = vst [vmem:[%s2119_s29 + $0x218] sm:$0xff] %v333_v3  ;;  %v337_v5 = vld [vmem:[%s2114_s28 + $0x448] sm:$0xff]  ;;  %v339_v6 = vld [vmem:[%s2114_s28 + $0x450] sm:$0xff] }
  0x36   : > { %336 = vst [vmem:[%s2119_s29 + $0x220] sm:$0xff] %v335_v4  ;;  %v341_v7 = vld [vmem:[%s2114_s28 + $0x458] sm:$0xff]  ;;  %338 = vst [vmem:[%s2119_s29 + $0x228] sm:$0xff] %v337_v5  ;;  %v343_v8 = vld [vmem:[%s2114_s28 + $0x480] sm:$0xff] }
  0x37   : > { %340 = vst [vmem:[%s2119_s29 + $0x230] sm:$0xff] %v339_v6  ;;  %342 = vst [vmem:[%s2119_s29 + $0x238] sm:$0xff] %v341_v7  ;;  %v345_v9 = vld [vmem:[%s2114_s28 + $0x488] sm:$0xff]  ;;  %v347_v10 = vld [vmem:[%s2114_s28 + $0x490] sm:$0xff] }
  0x38   : > { %344 = vst [vmem:[%s2119_s29 + $0x240] sm:$0xff] %v343_v8  ;;  %346 = vst [vmem:[%s2119_s29 + $0x248] sm:$0xff] %v345_v9  ;;  %v349_v11 = vld [vmem:[%s2114_s28 + $0x498] sm:$0xff]  ;;  %v351_v12 = vld [vmem:[%s2114_s28 + $0x4c0] sm:$0xff] }
  0x39   : > { %348 = vst [vmem:[%s2119_s29 + $0x250] sm:$0xff] %v347_v10  ;;  %v353_v13 = vld [vmem:[%s2114_s28 + $0x4c8] sm:$0xff]  ;;  %350 = vst [vmem:[%s2119_s29 + $0x258] sm:$0xff] %v349_v11  ;;  %v355_v14 = vld [vmem:[%s2114_s28 + $0x4d0] sm:$0xff] }
  0x3a   : > { %352 = vst [vmem:[%s2119_s29 + $0x260] sm:$0xff] %v351_v12  ;;  %354 = vst [vmem:[%s2119_s29 + $0x268] sm:$0xff] %v353_v13  ;;  %v357_v15 = vld [vmem:[%s2114_s28 + $0x4d8] sm:$0xff]  ;;  %v359_v16 = vld [vmem:[%s2114_s28 + $0x500] sm:$0xff] }
  0x3b   : > { %356 = vst [vmem:[%s2119_s29 + $0x270] sm:$0xff] %v355_v14  ;;  %358 = vst [vmem:[%s2119_s29 + $0x278] sm:$0xff] %v357_v15  ;;  %v361_v17 = vld [vmem:[%s2114_s28 + $0x508] sm:$0xff]  ;;  %v363_v18 = vld [vmem:[%s2114_s28 + $0x510] sm:$0xff] }
  0x3c   : > { %360 = vst [vmem:[%s2119_s29 + $0x280] sm:$0xff] %v359_v16  ;;  %v365_v19 = vld [vmem:[%s2114_s28 + $0x518] sm:$0xff]  ;;  %362 = vst [vmem:[%s2119_s29 + $0x288] sm:$0xff] %v361_v17  ;;  %v367_v20 = vld [vmem:[%s2114_s28 + $0x540] sm:$0xff] }
  0x3d   : > { %364 = vst [vmem:[%s2119_s29 + $0x290] sm:$0xff] %v363_v18  ;;  %366 = vst [vmem:[%s2119_s29 + $0x298] sm:$0xff] %v365_v19  ;;  %v369_v21 = vld [vmem:[%s2114_s28 + $0x548] sm:$0xff]  ;;  %v371_v22 = vld [vmem:[%s2114_s28 + $0x550] sm:$0xff] }
  0x3e   : > { %368 = vst [vmem:[%s2119_s29 + $0x2a0] sm:$0xff] %v367_v20  ;;  %370 = vst [vmem:[%s2119_s29 + $0x2a8] sm:$0xff] %v369_v21  ;;  %v373_v23 = vld [vmem:[%s2114_s28 + $0x558] sm:$0xff]  ;;  %v375_v24 = vld [vmem:[%s2114_s28 + $0x580] sm:$0xff] }
  0x3f   : > { %372 = vst [vmem:[%s2119_s29 + $0x2b0] sm:$0xff] %v371_v22  ;;  %v377_v25 = vld [vmem:[%s2114_s28 + $0x588] sm:$0xff]  ;;  %374 = vst [vmem:[%s2119_s29 + $0x2b8] sm:$0xff] %v373_v23  ;;  %v379_v26 = vld [vmem:[%s2114_s28 + $0x590] sm:$0xff] }
  0x40   : > { %376 = vst [vmem:[%s2119_s29 + $0x2c0] sm:$0xff] %v375_v24  ;;  %378 = vst [vmem:[%s2119_s29 + $0x2c8] sm:$0xff] %v377_v25  ;;  %v381_v27 = vld [vmem:[%s2114_s28 + $0x598] sm:$0xff]  ;;  %v383_v28 = vld [vmem:[%s2114_s28 + $0x5c0] sm:$0xff] }
  0x41   : > { %380 = vst [vmem:[%s2119_s29 + $0x2d0] sm:$0xff] %v379_v26  ;;  %382 = vst [vmem:[%s2119_s29 + $0x2d8] sm:$0xff] %v381_v27  ;;  %v385_v29 = vld [vmem:[%s2114_s28 + $0x5c8] sm:$0xff]  ;;  %v387_v30 = vld [vmem:[%s2114_s28 + $0x5d0] sm:$0xff] }
  0x42   : > { %384 = vst [vmem:[%s2119_s29 + $0x2e0] sm:$0xff] %v383_v28  ;;  %v389_v31 = vld [vmem:[%s2114_s28 + $0x5d8] sm:$0xff]  ;;  %386 = vst [vmem:[%s2119_s29 + $0x2e8] sm:$0xff] %v385_v29  ;;  %v391_v32 = vld [vmem:[%s2114_s28 + $0x600] sm:$0xff] }
  0x43   : > { %388 = vst [vmem:[%s2119_s29 + $0x2f0] sm:$0xff] %v387_v30  ;;  %390 = vst [vmem:[%s2119_s29 + $0x2f8] sm:$0xff] %v389_v31  ;;  %v393_v33 = vld [vmem:[%s2114_s28 + $0x608] sm:$0xff]  ;;  %v395_v34 = vld [vmem:[%s2114_s28 + $0x610] sm:$0xff] }
  0x44   : > { %392 = vst [vmem:[%s2119_s29 + $0x300] sm:$0xff] %v391_v32  ;;  %394 = vst [vmem:[%s2119_s29 + $0x308] sm:$0xff] %v393_v33  ;;  %v397_v35 = vld [vmem:[%s2114_s28 + $0x618] sm:$0xff]  ;;  %v399_v36 = vld [vmem:[%s2114_s28 + $0x640] sm:$0xff] }
  0x45   : > { %396 = vst [vmem:[%s2119_s29 + $0x310] sm:$0xff] %v395_v34  ;;  %v401_v37 = vld [vmem:[%s2114_s28 + $0x648] sm:$0xff]  ;;  %398 = vst [vmem:[%s2119_s29 + $0x318] sm:$0xff] %v397_v35  ;;  %v403_v38 = vld [vmem:[%s2114_s28 + $0x650] sm:$0xff] }
  0x46   : > { %400 = vst [vmem:[%s2119_s29 + $0x320] sm:$0xff] %v399_v36  ;;  %402 = vst [vmem:[%s2119_s29 + $0x328] sm:$0xff] %v401_v37  ;;  %v405_v39 = vld [vmem:[%s2114_s28 + $0x658] sm:$0xff]  ;;  %v407_v40 = vld [vmem:[%s2114_s28 + $0x680] sm:$0xff] }
  0x47   : > { %404 = vst [vmem:[%s2119_s29 + $0x330] sm:$0xff] %v403_v38  ;;  %406 = vst [vmem:[%s2119_s29 + $0x338] sm:$0xff] %v405_v39  ;;  %v409_v41 = vld [vmem:[%s2114_s28 + $0x688] sm:$0xff]  ;;  %v411_v42 = vld [vmem:[%s2114_s28 + $0x690] sm:$0xff] }
  0x48   : > { %408 = vst [vmem:[%s2119_s29 + $0x340] sm:$0xff] %v407_v40  ;;  %v413_v43 = vld [vmem:[%s2114_s28 + $0x698] sm:$0xff]  ;;  %410 = vst [vmem:[%s2119_s29 + $0x348] sm:$0xff] %v409_v41  ;;  %v415_v44 = vld [vmem:[%s2114_s28 + $0x6c0] sm:$0xff] }
  0x49   : > { %412 = vst [vmem:[%s2119_s29 + $0x350] sm:$0xff] %v411_v42  ;;  %414 = vst [vmem:[%s2119_s29 + $0x358] sm:$0xff] %v413_v43  ;;  %v417_v45 = vld [vmem:[%s2114_s28 + $0x6c8] sm:$0xff]  ;;  %v419_v46 = vld [vmem:[%s2114_s28 + $0x6d0] sm:$0xff] }
  0x4a   : > { %416 = vst [vmem:[%s2119_s29 + $0x360] sm:$0xff] %v415_v44  ;;  %418 = vst [vmem:[%s2119_s29 + $0x368] sm:$0xff] %v417_v45  ;;  %v421_v47 = vld [vmem:[%s2114_s28 + $0x6d8] sm:$0xff]  ;;  %v423_v48 = vld [vmem:[%s2114_s28 + $0x700] sm:$0xff] }
  0x4b   : > { %420 = vst [vmem:[%s2119_s29 + $0x370] sm:$0xff] %v419_v46  ;;  %v425_v49 = vld [vmem:[%s2114_s28 + $0x708] sm:$0xff]  ;;  %422 = vst [vmem:[%s2119_s29 + $0x378] sm:$0xff] %v421_v47  ;;  %v427_v50 = vld [vmem:[%s2114_s28 + $0x710] sm:$0xff] }
  0x4c   : > { %424 = vst [vmem:[%s2119_s29 + $0x380] sm:$0xff] %v423_v48  ;;  %426 = vst [vmem:[%s2119_s29 + $0x388] sm:$0xff] %v425_v49  ;;  %v429_v51 = vld [vmem:[%s2114_s28 + $0x718] sm:$0xff]  ;;  %v431_v52 = vld [vmem:[%s2114_s28 + $0x740] sm:$0xff] }
  0x4d   : > { %428 = vst [vmem:[%s2119_s29 + $0x390] sm:$0xff] %v427_v50  ;;  %430 = vst [vmem:[%s2119_s29 + $0x398] sm:$0xff] %v429_v51  ;;  %v433_v53 = vld [vmem:[%s2114_s28 + $0x748] sm:$0xff]  ;;  %v435_v54 = vld [vmem:[%s2114_s28 + $0x750] sm:$0xff] }
  0x4e   : > { %432 = vst [vmem:[%s2119_s29 + $0x3a0] sm:$0xff] %v431_v52  ;;  %v437_v55 = vld [vmem:[%s2114_s28 + $0x758] sm:$0xff]  ;;  %434 = vst [vmem:[%s2119_s29 + $0x3a8] sm:$0xff] %v433_v53  ;;  %v439_v56 = vld [vmem:[%s2114_s28 + $0x780] sm:$0xff] }
  0x4f   : > { %436 = vst [vmem:[%s2119_s29 + $0x3b0] sm:$0xff] %v435_v54  ;;  %438 = vst [vmem:[%s2119_s29 + $0x3b8] sm:$0xff] %v437_v55  ;;  %v441_v57 = vld [vmem:[%s2114_s28 + $0x788] sm:$0xff]  ;;  %v443_v58 = vld [vmem:[%s2114_s28 + $0x790] sm:$0xff] }
  0x50   : > { %440 = vst [vmem:[%s2119_s29 + $0x3c0] sm:$0xff] %v439_v56  ;;  %442 = vst [vmem:[%s2119_s29 + $0x3c8] sm:$0xff] %v441_v57  ;;  %v445_v59 = vld [vmem:[%s2114_s28 + $0x798] sm:$0xff]  ;;  %v447_v60 = vld [vmem:[%s2114_s28 + $0x7c0] sm:$0xff] }
  0x51   : > { %444 = vst [vmem:[%s2119_s29 + $0x3d0] sm:$0xff] %v443_v58  ;;  %v449_v61 = vld [vmem:[%s2114_s28 + $0x7c8] sm:$0xff]  ;;  %446 = vst [vmem:[%s2119_s29 + $0x3d8] sm:$0xff] %v445_v59  ;;  %v451_v62 = vld [vmem:[%s2114_s28 + $0x7d0] sm:$0xff] }
  0x52   : > { %448 = vst [vmem:[%s2119_s29 + $0x3e0] sm:$0xff] %v447_v60  ;;  %450 = vst [vmem:[%s2119_s29 + $0x3e8] sm:$0xff] %v449_v61  ;;  %v453_v63 = vld [vmem:[%s2114_s28 + $0x7d8] sm:$0xff] }
  0x53   : > { %452 = vst [vmem:[%s2119_s29 + $0x3f0] sm:$0xff] %v451_v62  ;;  %454 = vst [vmem:[%s2119_s29 + $0x3f8] sm:$0xff] %v453_v63 }
  0x54 PF: > { %p1788_p8 = scmp.ge.s32.totalorder %s2043_s16, 1  ;;  %p459_p9 = scmp.lt.s32.totalorder %s2043_s16, 3 }
  0x56   : > { %p460_p10 = pnand %p1788_p8, %p459_p9 }
  0x57   : > { %s466_s30 = sand.u32 (!%p460_p10), 1, %s2027_s12  }
  0x58   : > { %463 = sbr.rel (%p460_p10) target bundleno = 451 (0x1c3), region = 51  ;;  %s1789_s6 = sshll.u32 (!%p460_p10), %s466_s30, 10 }
  0x59   : > { %s2386_s7 = scalar_lea.vmem (!%p460_p10), [#allocation3], %s1789_s6  ;;  %s1790_s20 = sshll.u32 (!%p460_p10), %s466_s30, 7 }
  0x5a   : > { %s2535_s23 = scalar_lea.vmem (!%p460_p10), [#allocation4], %s1790_s20 }
  0x5d   : > { %v2380_v0 = vld [vmem:[%s2590_s0 + $0x4] ss:$8 sps:$4 sm:$0xff]   ;;  %v2045_v27 = vmov 0   ;;  %s1927_s12 = sshll.u32 (%p2101_p6), %s2035_s14, 6 }
  0x5e   : > { %1364 = vmatprep.mubr.bf16.mxu0 %v2380_v0  ;;  %1407 = vmatprep.mubr.bf16.mxu1 %v2380_v0  ;;  %v610_v1 = vld [vmem:[%s2386_s7 + $0x1c0] sm:$0xff]  ;;  %v611_v3 = vld [vmem:[%s2386_s7 + $0x1c8] sm:$0xff]  ;;  %s1627_s26 = scalar_lea.vmem (%p2101_p6), %s2593_s3, %s1927_s12 }
  0x5f   : > { %v614_v2 = vld [vmem:[%s2386_s7 + $0x1e0] sm:$0xff]  ;;  %v615_v5 = vld [vmem:[%s2386_s7 + $0x1e8] sm:$0xff]  ;;  %1969 = vset.pattern.permute.xlu0 %v2045_v27 }
  0x60   : > { %v1850_v4 = vcombine.high %v610_v1, %v614_v2  ;;  %v1849_v6 = vcombine.low %v610_v1, %v614_v2  ;;  %v602_v7 = vld [vmem:[%s2386_s7 + $0x180] sm:$0xff]  ;;  %v1852_v9 = vcombine.high %v611_v3, %v615_v5  ;;  %v1851_v10 = vcombine.low %v611_v3, %v615_v5  ;;  %v603_v12 = vld [vmem:[%s2386_s7 + $0x188] sm:$0xff] }
  0x61   : > { %v606_v8 = vld [vmem:[%s2386_s7 + $0x1a0] sm:$0xff]  ;;  %v607_v13 = vld [vmem:[%s2386_s7 + $0x1a8] sm:$0xff] }
  0x62   : > { %v1842_v11 = vcombine.high %v602_v7, %v606_v8  ;;  %v594_v14 = vld [vmem:[%s2386_s7 + $0x140] sm:$0xff]  ;;  %1332 = vmatprep.subr.bf16.mxu0 %v1850_v4  ;;  %v1844_v15 = vcombine.high %v603_v12, %v607_v13  ;;  %v595_v17 = vld [vmem:[%s2386_s7 + $0x148] sm:$0xff]  ;;  %1375 = vmatprep.subr.bf16.mxu1 %v1852_v9  ;;  %v1841_v19 = vcombine.low %v602_v7, %v606_v8 }
  0x63   : > { %v598_v16 = vld [vmem:[%s2386_s7 + $0x160] sm:$0xff]  ;;  %v599_v18 = vld [vmem:[%s2386_s7 + $0x168] sm:$0xff]  ;;  %1333 = vmatpush1.bf16.msra.mxu0 %v1849_v6  ;;  %1376 = vmatpush1.bf16.msra.mxu1 %v1851_v10  ;;  %v1843_v20 = vcombine.low %v603_v12, %v607_v13 }
  0x64   : > { %1334 = vmatprep.subr.bf16.mxu0 %v1842_v11  ;;  %v1834_v21 = vcombine.high %v594_v14, %v598_v16  ;;  %1377 = vmatprep.subr.bf16.mxu1 %v1844_v15  ;;  %v1836_v22 = vcombine.high %v595_v17, %v599_v18  ;;  %v586_v23 = vld [vmem:[%s2386_s7 + $0x100] sm:$0xff]  ;;  %v587_v25 = vld [vmem:[%s2386_s7 + $0x108] sm:$0xff]  ;;  %v1833_v28 = vcombine.low %v594_v14, %v598_v16 }
  0x65   : > { %v590_v24 = vld [vmem:[%s2386_s7 + $0x120] sm:$0xff]  ;;  %v591_v26 = vld [vmem:[%s2386_s7 + $0x128] sm:$0xff]  ;;  %v1835_v29 = vcombine.low %v595_v17, %v599_v18 }
  0x66   : > { %v1826_v30 = vcombine.high %v586_v23, %v590_v24  ;;  %v1828_v31 = vcombine.high %v587_v25, %v591_v26  ;;  %v578_v32 = vld [vmem:[%s2386_s7 + $0xc0] sm:$0xff]  ;;  %v579_v34 = vld [vmem:[%s2386_s7 + $0xc8] sm:$0xff]  ;;  %v1825_v36 = vcombine.low %v586_v23, %v590_v24  ;;  %v1827_v37 = vcombine.low %v587_v25, %v591_v26 }
  0x67   : > { %1335 = vmatpush1.bf16.msra.mxu0 %v1841_v19  ;;  %1378 = vmatpush1.bf16.msra.mxu1 %v1843_v20  ;;  %v582_v33 = vld [vmem:[%s2386_s7 + $0xe0] sm:$0xff]  ;;  %v583_v35 = vld [vmem:[%s2386_s7 + $0xe8] sm:$0xff] }
  0x68   : > { %1336 = vmatprep.subr.bf16.mxu0 %v1834_v21  ;;  %1379 = vmatprep.subr.bf16.mxu1 %v1836_v22  ;;  %v1818_v38 = vcombine.high %v578_v32, %v582_v33  ;;  %v1820_v39 = vcombine.high %v579_v34, %v583_v35  ;;  %v570_v40 = vld [vmem:[%s2386_s7 + $0x80] sm:$0xff]  ;;  %v571_v42 = vld [vmem:[%s2386_s7 + $0x88] sm:$0xff]  ;;  %v1817_v44 = vcombine.low %v578_v32, %v582_v33 }
  0x69   : > { %v574_v41 = vld [vmem:[%s2386_s7 + $0xa0] sm:$0xff]  ;;  %v575_v43 = vld [vmem:[%s2386_s7 + $0xa8] sm:$0xff]  ;;  %v1819_v45 = vcombine.low %v579_v34, %v583_v35 }
  0x6a   : > { %v1810_v46 = vcombine.high %v570_v40, %v574_v41  ;;  %v1812_v47 = vcombine.high %v571_v42, %v575_v43  ;;  %v562_v48 = vld [vmem:[%s2386_s7 + $0x40] sm:$0xff]  ;;  %v563_v50 = vld [vmem:[%s2386_s7 + $0x48] sm:$0xff]  ;;  %v1809_v52 = vcombine.low %v570_v40, %v574_v41  ;;  %v1811_v53 = vcombine.low %v571_v42, %v575_v43 }
  0x6b   : > { %1337 = vmatpush1.bf16.msra.mxu0 %v1833_v28  ;;  %1380 = vmatpush1.bf16.msra.mxu1 %v1835_v29  ;;  %v566_v49 = vld [vmem:[%s2386_s7 + $0x60] sm:$0xff]  ;;  %v567_v51 = vld [vmem:[%s2386_s7 + $0x68] sm:$0xff] }
  0x6c   : > { %1338 = vmatprep.subr.bf16.mxu0 %v1826_v30  ;;  %1381 = vmatprep.subr.bf16.mxu1 %v1828_v31  ;;  %v1802_v54 = vcombine.high %v562_v48, %v566_v49  ;;  %v1804_v55 = vcombine.high %v563_v50, %v567_v51  ;;  %v554_v56 = vld [vmem:[%s2386_s7] sm:$0xff]  ;;  %v555_v58 = vld [vmem:[%s2386_s7 + $0x8] sm:$0xff]  ;;  %v1801_v60 = vcombine.low %v562_v48, %v566_v49 }
  0x6d   : > { %v558_v57 = vld [vmem:[%s2386_s7 + $0x20] sm:$0xff]  ;;  %v559_v59 = vld [vmem:[%s2386_s7 + $0x28] sm:$0xff]  ;;  %v1803_v61 = vcombine.low %v563_v50, %v567_v51 }
  0x6e   : > { %v1794_v62 = vcombine.high %v554_v56, %v558_v57  ;;  %v1796_v63 = vcombine.high %v555_v58, %v559_v59  ;;  %v674_v1 = vld [vmem:[%s2386_s7 + $0x3c0] sm:$0xff]  ;;  %v675_v3 = vld [vmem:[%s2386_s7 + $0x3c8] sm:$0xff]  ;;  %v1793_v5 = vcombine.low %v554_v56, %v558_v57  ;;  %v1795_v6 = vcombine.low %v555_v58, %v559_v59 }
  0x6f   : > { %1339 = vmatpush1.bf16.msra.mxu0 %v1825_v36  ;;  %1382 = vmatpush1.bf16.msra.mxu1 %v1827_v37  ;;  %v678_v2 = vld [vmem:[%s2386_s7 + $0x3e0] sm:$0xff]  ;;  %v679_v4 = vld [vmem:[%s2386_s7 + $0x3e8] sm:$0xff] }
  0x70   : > { %1340 = vmatprep.subr.bf16.mxu0 %v1818_v38  ;;  %1383 = vmatprep.subr.bf16.mxu1 %v1820_v39  ;;  %v1914_v7 = vcombine.high %v674_v1, %v678_v2  ;;  %v1916_v8 = vcombine.high %v675_v3, %v679_v4  ;;  %v666_v9 = vld [vmem:[%s2386_s7 + $0x380] sm:$0xff]  ;;  %v667_v11 = vld [vmem:[%s2386_s7 + $0x388] sm:$0xff]  ;;  %v1913_v13 = vcombine.low %v674_v1, %v678_v2 }
  0x71   : > { %v670_v10 = vld [vmem:[%s2386_s7 + $0x3a0] sm:$0xff]  ;;  %v671_v12 = vld [vmem:[%s2386_s7 + $0x3a8] sm:$0xff]  ;;  %v1915_v14 = vcombine.low %v675_v3, %v679_v4  ;;  %v612_v4 = vld [vmem:[%s2386_s7 + $0x1d0] sm:$0xff] }
  0x72   : > { %v1906_v15 = vcombine.high %v666_v9, %v670_v10  ;;  %v1908_v16 = vcombine.high %v667_v11, %v671_v12  ;;  %v658_v17 = vld [vmem:[%s2386_s7 + $0x340] sm:$0xff]  ;;  %v659_v19 = vld [vmem:[%s2386_s7 + $0x348] sm:$0xff]  ;;  %v1905_v21 = vcombine.low %v666_v9, %v670_v10  ;;  %v1907_v22 = vcombine.low %v667_v11, %v671_v12  ;;  %v604_v12 = vld [vmem:[%s2386_s7 + $0x190] sm:$0xff] }
  0x73   : > { %1341 = vmatpush1.bf16.msra.mxu0 %v1817_v44  ;;  %1384 = vmatpush1.bf16.msra.mxu1 %v1819_v45  ;;  %v662_v18 = vld [vmem:[%s2386_s7 + $0x360] sm:$0xff]  ;;  %v663_v20 = vld [vmem:[%s2386_s7 + $0x368] sm:$0xff] }
  0x74   : > { %1342 = vmatprep.subr.bf16.mxu0 %v1810_v46  ;;  %1385 = vmatprep.subr.bf16.mxu1 %v1812_v47  ;;  %v1898_v23 = vcombine.high %v658_v17, %v662_v18  ;;  %v1900_v24 = vcombine.high %v659_v19, %v663_v20  ;;  %v650_v25 = vld [vmem:[%s2386_s7 + $0x300] sm:$0xff]  ;;  %v651_v27 = vld [vmem:[%s2386_s7 + $0x308] sm:$0xff]  ;;  %v1897_v29 = vcombine.low %v658_v17, %v662_v18 }
  0x75   : > { %v654_v26 = vld [vmem:[%s2386_s7 + $0x320] sm:$0xff]  ;;  %v655_v28 = vld [vmem:[%s2386_s7 + $0x328] sm:$0xff]  ;;  %v1899_v30 = vcombine.low %v659_v19, %v663_v20 }
  0x76   : > { %v1890_v31 = vcombine.high %v650_v25, %v654_v26  ;;  %v1892_v32 = vcombine.high %v651_v27, %v655_v28  ;;  %v642_v33 = vld [vmem:[%s2386_s7 + $0x2c0] sm:$0xff]  ;;  %v643_v36 = vld [vmem:[%s2386_s7 + $0x2c8] sm:$0xff]  ;;  %v1889_v38 = vcombine.low %v650_v25, %v654_v26  ;;  %v1891_v40 = vcombine.low %v651_v27, %v655_v28 }
  0x77   : > { %1343 = vmatpush1.bf16.msra.mxu0 %v1809_v52  ;;  %1386 = vmatpush1.bf16.msra.mxu1 %v1811_v53  ;;  %v646_v34 = vld [vmem:[%s2386_s7 + $0x2e0] sm:$0xff]  ;;  %v647_v37 = vld [vmem:[%s2386_s7 + $0x2e8] sm:$0xff] }
  0x78   : > { %1344 = vmatprep.subr.bf16.mxu0 %v1802_v54  ;;  %1387 = vmatprep.subr.bf16.mxu1 %v1804_v55  ;;  %v1555_v35 = vld [vmem:[%s2592_s2] sm:$0xff]  ;;  %v1556_v39 = vld [vmem:[%s2592_s2 + $0x8] sm:$0xff]  ;;  %v1882_v41 = vcombine.high %v642_v33, %v646_v34  ;;  %v1884_v42 = vcombine.high %v643_v36, %v647_v37  ;;  %v1881_v47 = vcombine.low %v642_v33, %v646_v34 }
  0x79   : > { %1559 = vperm.xlu0 %1969, %v1555_v35   ;;  %v634_v43 = vld [vmem:[%s2386_s7 + $0x280] sm:$0xff]  ;;  %v635_v45 = vld [vmem:[%s2386_s7 + $0x288] sm:$0xff]  ;;  %v1883_v48 = vcombine.low %v643_v36, %v647_v37  ;;  %v580_v37 = vld [vmem:[%s2386_s7 + $0xd0] sm:$0xff] }
  0x7a   : > { %v638_v44 = vld [vmem:[%s2386_s7 + $0x2a0] sm:$0xff]  ;;  %v639_v46 = vld [vmem:[%s2386_s7 + $0x2a8] sm:$0xff] }
  0x7b   : > { %1345 = vmatpush1.bf16.msra.mxu0 %v1801_v60  ;;  %1388 = vmatpush1.bf16.msra.mxu1 %v1803_v61  ;;  %v1874_v49 = vcombine.high %v634_v43, %v638_v44  ;;  %v1876_v50 = vcombine.high %v635_v45, %v639_v46  ;;  %v626_v51 = vld [vmem:[%s2386_s7 + $0x240] sm:$0xff]  ;;  %v627_v53 = vld [vmem:[%s2386_s7 + $0x248] sm:$0xff]  ;;  %v1873_v55 = vcombine.low %v634_v43, %v638_v44  ;;  %v572_v44 = vld [vmem:[%s2386_s7 + $0x90] sm:$0xff] }
  0x7c   : > { %1346 = vmatprep.subr.bf16.mxu0 %v1794_v62  ;;  %1389 = vmatprep.subr.bf16.mxu1 %v1796_v63  ;;  %v630_v52 = vld [vmem:[%s2386_s7 + $0x260] sm:$0xff]  ;;  %v631_v54 = vld [vmem:[%s2386_s7 + $0x268] sm:$0xff]  ;;  %v1875_v56 = vcombine.low %v635_v45, %v639_v46  ;;  %v576_v45 = vld [vmem:[%s2386_s7 + $0xb0] sm:$0xff] }
  0x7d   : > { %1564 = vperm.xlu0 %1969, %v1556_v39   ;;  %v1866_v57 = vcombine.high %v626_v51, %v630_v52  ;;  %v1868_v58 = vcombine.high %v627_v53, %v631_v54  ;;  %v618_v59 = vld [vmem:[%s2386_s7 + $0x200] sm:$0xff]  ;;  %v619_v61 = vld [vmem:[%s2386_s7 + $0x208] sm:$0xff]  ;;  %v1865_v63 = vcombine.low %v626_v51, %v630_v52  ;;  %v1867_v1 = vcombine.low %v627_v53, %v631_v54  ;;  %v581_v39 = vld [vmem:[%s2386_s7 + $0xd8] sm:$0xff] }
  0x7e   : > { %v622_v60 = vld [vmem:[%s2386_s7 + $0x220] sm:$0xff]  ;;  %v623_v62 = vld [vmem:[%s2386_s7 + $0x228] sm:$0xff]  ;;  %v573_v46 = vld [vmem:[%s2386_s7 + $0x98] sm:$0xff] }
  0x7f   : > { %1347 = vmatpush1.bf16.msra.mxu0 %v1793_v5  ;;  %1390 = vmatpush1.bf16.msra.mxu1 %v1795_v6  ;;  %v1858_v2 = vcombine.high %v618_v59, %v622_v60  ;;  %v1860_v3 = vcombine.high %v619_v61, %v623_v62  ;;  %v616_v5 = vld [vmem:[%s2386_s7 + $0x1f0] sm:$0xff]  ;;  %v613_v6 = vld [vmem:[%s2386_s7 + $0x1d8] sm:$0xff]  ;;  %v1859_v9 = vcombine.low %v619_v61, %v623_v62 }
  0x80   : > { %1348 = vmatprep.subr.bf16.mxu0 %v1914_v7  ;;  %1391 = vmatprep.subr.bf16.mxu1 %v1916_v8  ;;  %v617_v7 = vld [vmem:[%s2386_s7 + $0x1f8] sm:$0xff]  ;;  %v1857_v8 = vcombine.low %v618_v59, %v622_v60  ;;  %v1854_v10 = vcombine.high %v612_v4, %v616_v5  ;;  %v1853_v17 = vcombine.low %v612_v4, %v616_v5  ;;  %v564_v52 = vld [vmem:[%s2386_s7 + $0x50] sm:$0xff] }
  0x81   : > { %v1856_v11 = vcombine.high %v613_v6, %v617_v7  ;;  %v1855_v18 = vcombine.low %v613_v6, %v617_v7  ;;  %v568_v53 = vld [vmem:[%s2386_s7 + $0x70] sm:$0xff]  ;;  %v565_v54 = vld [vmem:[%s2386_s7 + $0x58] sm:$0xff] }
  0x82   : > { %v556_v60 = vld [vmem:[%s2386_s7 + $0x10] sm:$0xff]  ;;  %v557_v62 = vld [vmem:[%s2386_s7 + $0x18] sm:$0xff] }
  0x83   : > { %1349 = vmatpush2.bf16.msra.mxu0 %v1913_v13  ;;  %1392 = vmatpush2.bf16.msra.mxu1 %v1915_v14  ;;  %v608_v13 = vld [vmem:[%s2386_s7 + $0x1b0] sm:$0xff]  ;;  %v2467_v14 = vld [vmem:[%s2590_s0] ss:$8 sps:$4 sm:$0xff]   ;;  %v677_v7 = vld [vmem:[%s2386_s7 + $0x3d8] sm:$0xff] }
  0x84   : > { %1350 = vmatprep.subr.bf16.mxu0 %v1906_v15  ;;  %1393 = vmatprep.subr.bf16.mxu1 %v1908_v16  ;;  %v605_v15 = vld [vmem:[%s2386_s7 + $0x198] sm:$0xff]  ;;  %v1846_v19 = vcombine.high %v604_v12, %v608_v13  ;;  %v1845_v25 = vcombine.low %v604_v12, %v608_v13  ;;  %v560_v61 = vld [vmem:[%s2386_s7 + $0x30] sm:$0xff] }
  0x85   : > { %v609_v16 = vld [vmem:[%s2386_s7 + $0x1b8] sm:$0xff]  ;;  %v676_v5 = vld [vmem:[%s2386_s7 + $0x3d0] sm:$0xff] }
  0x86   : > { %v1848_v20 = vcombine.high %v605_v15, %v609_v16  ;;  %v1847_v26 = vcombine.low %v605_v15, %v609_v16  ;;  %v680_v6 = vld [vmem:[%s2386_s7 + $0x3f0] sm:$0xff]  ;;  %v669_v16 = vld [vmem:[%s2386_s7 + $0x398] sm:$0xff] }
  0x87   : > { %1351 = vmatpush2.bf16.msra.mxu0 %v1905_v21  ;;  %1394 = vmatpush2.bf16.msra.mxu1 %v1907_v22  ;;  %v596_v21 = vld [vmem:[%s2386_s7 + $0x150] sm:$0xff] }
  0x88   : > { %1352 = vmatprep.subr.bf16.mxu0 %v1898_v23  ;;  %1395 = vmatprep.subr.bf16.mxu1 %v1900_v24  ;;  %v600_v22 = vld [vmem:[%s2386_s7 + $0x170] sm:$0xff]  ;;  %v597_v23 = vld [vmem:[%s2386_s7 + $0x158] sm:$0xff] }
  0x89   : > { %v601_v24 = vld [vmem:[%s2386_s7 + $0x178] sm:$0xff]  ;;  %v1838_v27 = vcombine.high %v596_v21, %v600_v22  ;;  %v1837_v33 = vcombine.low %v596_v21, %v600_v22  ;;  %v668_v13 = vld [vmem:[%s2386_s7 + $0x390] sm:$0xff] }
  0x8a   : > { %v1840_v28 = vcombine.high %v597_v23, %v601_v24  ;;  %v1839_v34 = vcombine.low %v597_v23, %v601_v24  ;;  %v672_v15 = vld [vmem:[%s2386_s7 + $0x3b0] sm:$0xff]  ;;  %v661_v24 = vld [vmem:[%s2386_s7 + $0x358] sm:$0xff] }
  0x8b   : > { %1353 = vmatpush2.bf16.msra.mxu0 %v1897_v29  ;;  %1396 = vmatpush2.bf16.msra.mxu1 %v1899_v30  ;;  %v588_v29 = vld [vmem:[%s2386_s7 + $0x110] sm:$0xff] }
  0x8c   : > { %1354 = vmatprep.subr.bf16.mxu0 %v1890_v31  ;;  %1397 = vmatprep.subr.bf16.mxu1 %v1892_v32  ;;  %v592_v30 = vld [vmem:[%s2386_s7 + $0x130] sm:$0xff]  ;;  %v589_v31 = vld [vmem:[%s2386_s7 + $0x118] sm:$0xff] }
  0x8d   : > { %v593_v32 = vld [vmem:[%s2386_s7 + $0x138] sm:$0xff]  ;;  %v1830_v35 = vcombine.high %v588_v29, %v592_v30  ;;  %v660_v22 = vld [vmem:[%s2386_s7 + $0x350] sm:$0xff] }
  0x8e   : > { %v1832_v36 = vcombine.high %v589_v31, %v593_v32  ;;  %v664_v23 = vld [vmem:[%s2386_s7 + $0x370] sm:$0xff] }
  0x8f   : > { %1355 = vmatpush2.bf16.msra.mxu0 %v1889_v38  ;;  %1398 = vmatpush2.bf16.msra.mxu1 %v1891_v40  ;;  %v584_v38 = vld [vmem:[%s2386_s7 + $0xf0] sm:$0xff]  ;;  %v585_v40 = vld [vmem:[%s2386_s7 + $0xf8] sm:$0xff] }
  0x90   : > { %1356 = vmatprep.subr.bf16.mxu0 %v1882_v41  ;;  %1399 = vmatprep.subr.bf16.mxu1 %v1884_v42  ;;  %v1829_v41 = vcombine.low %v588_v29, %v592_v30  ;;  %v1822_v42 = vcombine.high %v580_v37, %v584_v38  ;;  %v1824_v43 = vcombine.high %v581_v39, %v585_v40  ;;  %v652_v30 = vld [vmem:[%s2386_s7 + $0x310] sm:$0xff] }
  0x93   : > { %1357 = vmatpush2.bf16.msra.mxu0 %v1881_v47  ;;  %1400 = vmatpush2.bf16.msra.mxu1 %v1883_v48  ;;  %v577_v47 = vld [vmem:[%s2386_s7 + $0xb8] sm:$0xff]  ;;  %v1821_v48 = vcombine.low %v580_v37, %v584_v38  ;;  %v644_v38 = vld [vmem:[%s2386_s7 + $0x2d0] sm:$0xff] }
  0x94   : > { %1358 = vmatprep.subr.bf16.mxu0 %v1874_v49  ;;  %1401 = vmatprep.subr.bf16.mxu1 %v1876_v50  ;;  %v1823_v49 = vcombine.low %v581_v39, %v585_v40  ;;  %v1814_v50 = vcombine.high %v572_v44, %v576_v45  ;;  %v1816_v51 = vcombine.high %v573_v46, %v577_v47  ;;  %v648_v39 = vld [vmem:[%s2386_s7 + $0x2f0] sm:$0xff]  ;;  %v645_v40 = vld [vmem:[%s2386_s7 + $0x2d8] sm:$0xff] }
  0x97   : > { %1359 = vmatpush2.bf16.msra.mxu0 %v1873_v55  ;;  %1402 = vmatpush2.bf16.msra.mxu1 %v1875_v56  ;;  %v569_v55 = vld [vmem:[%s2386_s7 + $0x78] sm:$0xff]  ;;  %v1813_v56 = vcombine.low %v572_v44, %v576_v45  ;;  %v636_v45 = vld [vmem:[%s2386_s7 + $0x290] sm:$0xff] }
  0x98   : > { %1360 = vmatprep.subr.bf16.mxu0 %v1866_v57  ;;  %1403 = vmatprep.subr.bf16.mxu1 %v1868_v58  ;;  %v1815_v57 = vcombine.low %v573_v46, %v577_v47  ;;  %v1806_v58 = vcombine.high %v564_v52, %v568_v53  ;;  %v1808_v59 = vcombine.high %v565_v54, %v569_v55  ;;  %v640_v46 = vld [vmem:[%s2386_s7 + $0x2b0] sm:$0xff]  ;;  %v637_v47 = vld [vmem:[%s2386_s7 + $0x298] sm:$0xff] }
  0x9b   : > { %1361 = vmatpush2.bf16.msra.mxu0 %v1865_v63  ;;  %1404 = vmatpush2.bf16.msra.mxu1 %v1867_v1  ;;  %v561_v63 = vld [vmem:[%s2386_s7 + $0x38] sm:$0xff]  ;;  %v1805_v1 = vcombine.low %v564_v52, %v568_v53  ;;  %v628_v53 = vld [vmem:[%s2386_s7 + $0x250] sm:$0xff] }
  0x9c   : > { %1362 = vmatprep.subr.bf16.mxu0 %v1858_v2  ;;  %1405 = vmatprep.subr.bf16.mxu1 %v1860_v3  ;;  %v1807_v2 = vcombine.low %v565_v54, %v569_v55  ;;  %v1798_v3 = vcombine.high %v556_v60, %v560_v61  ;;  %v1800_v4 = vcombine.high %v557_v62, %v561_v63  ;;  %v632_v54 = vld [vmem:[%s2386_s7 + $0x270] sm:$0xff]  ;;  %v629_v55 = vld [vmem:[%s2386_s7 + $0x258] sm:$0xff] }
  0x9f   : > { %1363 = vmatpush2.bf16.msra.mxu0 %v1857_v8  ;;  %1406 = vmatpush2.bf16.msra.mxu1 %v1859_v9  ;;  %v681_v8 = vld [vmem:[%s2386_s7 + $0x3f8] sm:$0xff]  ;;  %v1797_v9 = vcombine.low %v556_v60, %v560_v61  ;;  %v620_v61 = vld [vmem:[%s2386_s7 + $0x210] sm:$0xff] }
  0xa0   : > { %1418 = vmatprep.subr.bf16.mxu0 %v1854_v10  ;;  %1461 = vmatprep.subr.bf16.mxu1 %v1856_v11  ;;  %v1799_v10 = vcombine.low %v557_v62, %v561_v63  ;;  %v1918_v11 = vcombine.high %v676_v5, %v680_v6  ;;  %v1920_v12 = vcombine.high %v677_v7, %v681_v8  ;;  %v624_v62 = vld [vmem:[%s2386_s7 + $0x230] sm:$0xff]  ;;  %v621_v63 = vld [vmem:[%s2386_s7 + $0x218] sm:$0xff] }
  0xa2   : > { %1365 = vmatmul.mubr.bf16.vlgmr.msra.gmra.mxu0 %v2467_v14  ;;  %1408 = vmatmul.mubr.bf16.vlgmr.msra.gmra.mxu1 %v2467_v14 }
  0xa3   : > { %1419 = vmatpush1.bf16.msra.mxu0 %v1853_v17  ;;  %1462 = vmatpush1.bf16.msra.mxu1 %v1855_v18  ;;  %v673_v17 = vld [vmem:[%s2386_s7 + $0x3b8] sm:$0xff]  ;;  %v1917_v18 = vcombine.low %v676_v5, %v680_v6  ;;  %v1861_v6 = vcombine.low %v620_v61, %v624_v62 }
  0xa4   : > { %1420 = vmatprep.subr.bf16.mxu0 %v1846_v19  ;;  %1463 = vmatprep.subr.bf16.mxu1 %v1848_v20  ;;  %v1919_v19 = vcombine.low %v677_v7, %v681_v8  ;;  %v1910_v20 = vcombine.high %v668_v13, %v672_v15  ;;  %v1912_v21 = vcombine.high %v669_v16, %v673_v17 }
  0xa5   : > { %1450 = vmatprep.mubr.bf16.mxu0 %v2380_v0  ;;  %1493 = vmatprep.mubr.bf16.mxu1 %v2380_v0  ;;  %v1831_v0 = vcombine.low %v589_v31, %v593_v32  ;;  %v656_v31 = vld [vmem:[%s2386_s7 + $0x330] sm:$0xff]  ;;  %v653_v32 = vld [vmem:[%s2386_s7 + $0x318] sm:$0xff] }
  0xa7   : > { %1421 = vmatpush1.bf16.msra.mxu0 %v1845_v25  ;;  %1464 = vmatpush1.bf16.msra.mxu1 %v1847_v26  ;;  %v665_v25 = vld [vmem:[%s2386_s7 + $0x378] sm:$0xff]  ;;  %v1909_v26 = vcombine.low %v668_v13, %v672_v15 }
  0xa8   : > { %1422 = vmatprep.subr.bf16.mxu0 %v1838_v27  ;;  %1465 = vmatprep.subr.bf16.mxu1 %v1840_v28  ;;  %v1911_v27 = vcombine.low %v669_v16, %v673_v17  ;;  %v1902_v28 = vcombine.high %v660_v22, %v664_v23  ;;  %v1904_v29 = vcombine.high %v661_v24, %v665_v25 }
  0xab   : > { %1423 = vmatpush1.bf16.msra.mxu0 %v1837_v33  ;;  %1466 = vmatpush1.bf16.msra.mxu1 %v1839_v34  ;;  %v657_v33 = vld [vmem:[%s2386_s7 + $0x338] sm:$0xff]  ;;  %v1901_v34 = vcombine.low %v660_v22, %v664_v23 }
  0xac   : > { %1424 = vmatprep.subr.bf16.mxu0 %v1830_v35  ;;  %1467 = vmatprep.subr.bf16.mxu1 %v1832_v36  ;;  %v1903_v35 = vcombine.low %v661_v24, %v665_v25  ;;  %v1894_v36 = vcombine.high %v652_v30, %v656_v31  ;;  %v1896_v37 = vcombine.high %v653_v32, %v657_v33 }
  0xaf   : > { %1425 = vmatpush1.bf16.msra.mxu0 %v1829_v41  ;;  %1468 = vmatpush1.bf16.msra.mxu1 %v1831_v0  ;;  %v649_v41 = vld [vmem:[%s2386_s7 + $0x2f8] sm:$0xff]  ;;  %v1893_v0 = vcombine.low %v652_v30, %v656_v31 }
  0xb0   : > { %1426 = vmatprep.subr.bf16.mxu0 %v1822_v42  ;;  %1469 = vmatprep.subr.bf16.mxu1 %v1824_v43  ;;  %v1895_v42 = vcombine.low %v653_v32, %v657_v33  ;;  %v1886_v43 = vcombine.high %v644_v38, %v648_v39  ;;  %v1888_v44 = vcombine.high %v645_v40, %v649_v41 }
  0xb3   : > { %1427 = vmatpush1.bf16.msra.mxu0 %v1821_v48  ;;  %1470 = vmatpush1.bf16.msra.mxu1 %v1823_v49  ;;  %v641_v48 = vld [vmem:[%s2386_s7 + $0x2b8] sm:$0xff]  ;;  %v1885_v49 = vcombine.low %v644_v38, %v648_v39 }
  0xb4   : > { %1428 = vmatprep.subr.bf16.mxu0 %v1814_v50  ;;  %1471 = vmatprep.subr.bf16.mxu1 %v1816_v51  ;;  %v1887_v50 = vcombine.low %v645_v40, %v649_v41  ;;  %v1878_v51 = vcombine.high %v636_v45, %v640_v46  ;;  %v1880_v52 = vcombine.high %v637_v47, %v641_v48 }
  0xb7   : > { %1429 = vmatpush1.bf16.msra.mxu0 %v1813_v56  ;;  %1472 = vmatpush1.bf16.msra.mxu1 %v1815_v57  ;;  %v633_v56 = vld [vmem:[%s2386_s7 + $0x278] sm:$0xff]  ;;  %v1877_v57 = vcombine.low %v636_v45, %v640_v46 }
  0xb8   : > { %1430 = vmatprep.subr.bf16.mxu0 %v1806_v58  ;;  %1473 = vmatprep.subr.bf16.mxu1 %v1808_v59  ;;  %v1879_v58 = vcombine.low %v637_v47, %v641_v48  ;;  %v1870_v59 = vcombine.high %v628_v53, %v632_v54  ;;  %v1872_v60 = vcombine.high %v629_v55, %v633_v56 }
  0xbb   : > { %1431 = vmatpush1.bf16.msra.mxu0 %v1805_v1  ;;  %1474 = vmatpush1.bf16.msra.mxu1 %v1807_v2  ;;  %v625_v1 = vld [vmem:[%s2386_s7 + $0x238] sm:$0xff]  ;;  %v1869_v2 = vcombine.low %v628_v53, %v632_v54 }
  0xbc   : > { %1432 = vmatprep.subr.bf16.mxu0 %v1798_v3  ;;  %1475 = vmatprep.subr.bf16.mxu1 %v1800_v4  ;;  %v1871_v3 = vcombine.low %v629_v55, %v633_v56  ;;  %v1862_v4 = vcombine.high %v620_v61, %v624_v62  ;;  %v1864_v5 = vcombine.high %v621_v63, %v625_v1 }
  0xbd   : > { %v1863_v7 = vcombine.low %v621_v63, %v625_v1 }
  0xbf   : > { %1433 = vmatpush1.bf16.msra.mxu0 %v1797_v9  ;;  %1476 = vmatpush1.bf16.msra.mxu1 %v1799_v10 }
  0xc0   : > { %1434 = vmatprep.subr.bf16.mxu0 %v1918_v11  ;;  %1477 = vmatprep.subr.bf16.mxu1 %v1920_v12 }
  0xc3   : > { %1435 = vmatpush2.bf16.msra.mxu0 %v1917_v18  ;;  %1478 = vmatpush2.bf16.msra.mxu1 %v1919_v19 }
  0xc4   : > { %1436 = vmatprep.subr.bf16.mxu0 %v1910_v20  ;;  %1479 = vmatprep.subr.bf16.mxu1 %v1912_v21 }
  0xc7   : > { %1437 = vmatpush2.bf16.msra.mxu0 %v1909_v26  ;;  %1480 = vmatpush2.bf16.msra.mxu1 %v1911_v27 }
  0xc8   : > { %1438 = vmatprep.subr.bf16.mxu0 %v1902_v28  ;;  %1481 = vmatprep.subr.bf16.mxu1 %v1904_v29 }
  0xcb   : > { %1439 = vmatpush2.bf16.msra.mxu0 %v1901_v34  ;;  %1482 = vmatpush2.bf16.msra.mxu1 %v1903_v35 }
  0xcc   : > { %1440 = vmatprep.subr.bf16.mxu0 %v1894_v36  ;;  %1483 = vmatprep.subr.bf16.mxu1 %v1896_v37 }
  0xcf   : > { %1441 = vmatpush2.bf16.msra.mxu0 %v1893_v0  ;;  %1484 = vmatpush2.bf16.msra.mxu1 %v1895_v42 }
  0xd0   : > { %1442 = vmatprep.subr.bf16.mxu0 %v1886_v43  ;;  %1485 = vmatprep.subr.bf16.mxu1 %v1888_v44 }
  0xd3   : > { %1443 = vmatpush2.bf16.msra.mxu0 %v1885_v49  ;;  %1486 = vmatpush2.bf16.msra.mxu1 %v1887_v50 }
  0xd4   : > { %1444 = vmatprep.subr.bf16.mxu0 %v1878_v51  ;;  %1487 = vmatprep.subr.bf16.mxu1 %v1880_v52 }
  0xd7   : > { %1445 = vmatpush2.bf16.msra.mxu0 %v1877_v57  ;;  %1488 = vmatpush2.bf16.msra.mxu1 %v1879_v58 }
  0xd8   : > { %1446 = vmatprep.subr.bf16.mxu0 %v1870_v59  ;;  %1489 = vmatprep.subr.bf16.mxu1 %v1872_v60 }
  0xdb   : > { %1447 = vmatpush2.bf16.msra.mxu0 %v1869_v2  ;;  %1490 = vmatpush2.bf16.msra.mxu1 %v1871_v3 }
  0xdc   : > { %1448 = vmatprep.subr.bf16.mxu0 %v1862_v4  ;;  %1491 = vmatprep.subr.bf16.mxu1 %v1864_v5 }
  0xdf   : > { %1449 = vmatpush2.bf16.msra.mxu0 %v1861_v6  ;;  %1492 = vmatpush2.bf16.msra.mxu1 %v1863_v7 }
  0xe2   : > { %1451 = vmatmul.mubr.bf16.vlgmr.msra.gmra.mxu0 %v2467_v14  ;;  %1494 = vmatmul.mubr.bf16.vlgmr.msra.gmra.mxu1 %v2467_v14 }
  0xf4   : > { %v1560_v8 = vpop.permute.xlu0 %1559 }
  0xf8   : > { %v1565_v15 = vpop.permute.xlu0 %1564 }
 0x162   : > { %v1366_v9 = vpop.f32.mrf.mxu0  ;;  %v1409_v11 = vpop.f32.mrf.mxu1 }
 0x163   : > { %v1567_v10 = vadd.f32 %v1560_v8, %v1366_v9  ;;  %v1569_v12 = vadd.f32 %v1560_v8, %v1409_v11 }
 0x164   : > { %v1368_v13 = vpop.f32.mrf.mxu0  ;;  %v1411_v17 = vpop.f32.mrf.mxu1 }
 0x165   : > { %1973 = vtanh.f32 %v1567_v10  ;;  %v1568_v16 = vadd.f32 %v1560_v8, %v1368_v13  ;;  %v1570_v18 = vadd.f32 %v1560_v8, %v1411_v17 }
 0x166   : > { %1975 = vtanh.f32 %v1569_v12  ;;  %v1370_v19 = vpop.f32.mrf.mxu0  ;;  %v1413_v21 = vpop.f32.mrf.mxu1 }
 0x167   : > { %1977 = vtanh.f32 %v1568_v16  ;;  %v1575_v20 = vadd.f32 %v1565_v15, %v1370_v19  ;;  %v1577_v22 = vadd.f32 %v1565_v15, %v1413_v21 }
 0x168   : > { %1979 = vtanh.f32 %v1570_v18  ;;  %v1372_v14 = vpop.f32.mrf.mxu0  ;;  %v1415_v24 = vpop.f32.mrf.mxu1 }
 0x169   : > { %1981 = vtanh.f32 %v1575_v20  ;;  %v1576_v23 = vadd.f32 %v1565_v15, %v1372_v14  ;;  %v1578_v25 = vadd.f32 %v1565_v15, %v1415_v24 }
 0x16a   : > { %1983 = vtanh.f32 %v1577_v22 }
 0x16b   : > { %1985 = vtanh.f32 %v1576_v23 }
 0x16c   : > { %1987 = vtanh.f32 %v1578_v25 }
 0x172   : > { %v1974_v26 = vpop.eup %1973 }
 0x173   : > { %v1976_v27 = vpop.eup %1975  ;;  %1599 = vst [vmem:[%s2535_s23] sm:$0xff] %v1974_v26 }
 0x174   : > { %v1978_v28 = vpop.eup %1977  ;;  %1601 = vst [vmem:[%s2535_s23 + $0x10] sm:$0xff] %v1976_v27 }
 0x175   : > { %v1980_v29 = vpop.eup %1979  ;;  %1600 = vst [vmem:[%s2535_s23 + $0x8] sm:$0xff] %v1978_v28 }
 0x176   : > { %v1982_v30 = vpop.eup %1981  ;;  %1602 = vst [vmem:[%s2535_s23 + $0x18] sm:$0xff] %v1980_v29 }
 0x177   : > { %v1984_v31 = vpop.eup %1983  ;;  %1607 = vst [vmem:[%s2535_s23 + $0x40] sm:$0xff] %v1982_v30 }
 0x178   : > { %v1986_v32 = vpop.eup %1985  ;;  %1609 = vst [vmem:[%s2535_s23 + $0x50] sm:$0xff] %v1984_v31 }
 0x179   : > { %v1988_v33 = vpop.eup %1987  ;;  %1608 = vst [vmem:[%s2535_s23 + $0x48] sm:$0xff] %v1986_v32 }
 0x17a   : > { %1610 = vst [vmem:[%s2535_s23 + $0x58] sm:$0xff] %v1988_v33  ;;  %v1640_v57 = vld [vmem:[%s2535_s23] sm:$0xff] (%p2101_p6) }
 0x17b   : > { %v1644_v59 = vld [vmem:[%s2535_s23 + $0x10] sm:$0xff] (%p2101_p6)  ;;  %1641 = vst [vmem:[%s1627_s26] sm:$0xff] (%p2101_p6), %v1640_v57 }
 0x17c   : > { %v1642_v58 = vld [vmem:[%s2535_s23 + $0x8] sm:$0xff] (%p2101_p6)  ;;  %1645 = vst [vmem:[%s1627_s26 + $0x10] sm:$0xff] (%p2101_p6), %v1644_v59 }
 0x17d   : > { %v1646_v60 = vld [vmem:[%s2535_s23 + $0x18] sm:$0xff] (%p2101_p6)  ;;  %1643 = vst [vmem:[%s1627_s26 + $0x8] sm:$0xff] (%p2101_p6), %v1642_v58 }
 0x17e   : > { %1647 = vst [vmem:[%s1627_s26 + $0x18] sm:$0xff] (%p2101_p6), %v1646_v60  ;;  %v1656_v2 = vld [vmem:[%s2535_s23 + $0x40] sm:$0xff] (%p2101_p6) }
 0x17f   : > { %1657 = vst [vmem:[%s1627_s26 + $0x80] sm:$0xff] (%p2101_p6), %v1656_v2  ;;  %v1660_v4 = vld [vmem:[%s2535_s23 + $0x50] sm:$0xff] (%p2101_p6) }
 0x180   : > { %v1658_v3 = vld [vmem:[%s2535_s23 + $0x48] sm:$0xff] (%p2101_p6)  ;;  %1661 = vst [vmem:[%s1627_s26 + $0x90] sm:$0xff] (%p2101_p6), %v1660_v4 }
 0x181   : > { %v1662_v5 = vld [vmem:[%s2535_s23 + $0x58] sm:$0xff] (%p2101_p6)  ;;  %1659 = vst [vmem:[%s1627_s26 + $0x88] sm:$0xff] (%p2101_p6), %v1658_v3 }
 0x182   : > { %1663 = vst [vmem:[%s1627_s26 + $0x98] sm:$0xff] (%p2101_p6), %v1662_v5 }
 0x1a2   : > { %v1452_v34 = vpop.f32.mrf.mxu0  ;;  %v1495_v36 = vpop.f32.mrf.mxu1 }
 0x1a3   : > { %v1571_v35 = vadd.f32 %v1560_v8, %v1452_v34  ;;  %v1573_v37 = vadd.f32 %v1560_v8, %v1495_v36 }
 0x1a4   : > { %v1454_v38 = vpop.f32.mrf.mxu0  ;;  %v1497_v40 = vpop.f32.mrf.mxu1 }
 0x1a5   : > { %1989 = vtanh.f32 %v1571_v35  ;;  %v1572_v39 = vadd.f32 %v1560_v8, %v1454_v38  ;;  %v1574_v41 = vadd.f32 %v1560_v8, %v1497_v40 }
 0x1a6   : > { %1991 = vtanh.f32 %v1573_v37  ;;  %v1456_v0 = vpop.f32.mrf.mxu0  ;;  %v1499_v43 = vpop.f32.mrf.mxu1 }
 0x1a7   : > { %1993 = vtanh.f32 %v1572_v39  ;;  %v1579_v42 = vadd.f32 %v1565_v15, %v1456_v0  ;;  %v1581_v44 = vadd.f32 %v1565_v15, %v1499_v43 }
 0x1a8   : > { %1995 = vtanh.f32 %v1574_v41  ;;  %v1458_v45 = vpop.f32.mrf.mxu0  ;;  %v1501_v47 = vpop.f32.mrf.mxu1 }
 0x1a9   : > { %1997 = vtanh.f32 %v1579_v42  ;;  %v1580_v46 = vadd.f32 %v1565_v15, %v1458_v45  ;;  %v1582_v48 = vadd.f32 %v1565_v15, %v1501_v47 }
 0x1aa   : > { %1999 = vtanh.f32 %v1581_v44 }
 0x1ab   : > { %2001 = vtanh.f32 %v1580_v46 }
 0x1ac   : > { %2003 = vtanh.f32 %v1582_v48 }
 0x1b2   : > { %v1990_v49 = vpop.eup %1989 }
 0x1b3   : > { %v1992_v50 = vpop.eup %1991  ;;  %1603 = vst [vmem:[%s2535_s23 + $0x20] sm:$0xff] %v1990_v49 }
 0x1b4   : > { %v1994_v51 = vpop.eup %1993  ;;  %1605 = vst [vmem:[%s2535_s23 + $0x30] sm:$0xff] %v1992_v50 }
 0x1b5   : > { %v1996_v52 = vpop.eup %1995  ;;  %1604 = vst [vmem:[%s2535_s23 + $0x28] sm:$0xff] %v1994_v51 }
 0x1b6   : > { %v1998_v53 = vpop.eup %1997  ;;  %1606 = vst [vmem:[%s2535_s23 + $0x38] sm:$0xff] %v1996_v52  ;;  %1621 = sbr.rel (!%p2101_p6) target bundleno = 451 (0x1c3), region = 67 }
 0x1b7   : > { %v2000_v54 = vpop.eup %1999  ;;  %1611 = vst [vmem:[%s2535_s23 + $0x60] sm:$0xff] %v1998_v53 }
 0x1b8   : > { %v2002_v55 = vpop.eup %2001  ;;  %1613 = vst [vmem:[%s2535_s23 + $0x70] sm:$0xff] %v2000_v54 }
 0x1b9   : > { %v2004_v56 = vpop.eup %2003  ;;  %1612 = vst [vmem:[%s2535_s23 + $0x68] sm:$0xff] %v2002_v55 }
 0x1ba   : > { %1614 = vst [vmem:[%s2535_s23 + $0x78] sm:$0xff] %v2004_v56  ;;  %v1648_v61 = vld [vmem:[%s2535_s23 + $0x20] sm:$0xff] (%p2101_p6) }
 0x1bb   : > { %1649 = vst [vmem:[%s1627_s26 + $0x20] sm:$0xff] %v1648_v61  ;;  %v1652_v63 = vld [vmem:[%s2535_s23 + $0x30] sm:$0xff] }
 0x1bc   : > { %v1650_v62 = vld [vmem:[%s2535_s23 + $0x28] sm:$0xff]  ;;  %1653 = vst [vmem:[%s1627_s26 + $0x30] sm:$0xff] %v1652_v63 }
 0x1bd   : > { %1651 = vst [vmem:[%s1627_s26 + $0x28] sm:$0xff] %v1650_v62  ;;  %v1654_v1 = vld [vmem:[%s2535_s23 + $0x38] sm:$0xff] }
 0x1be   : > { %1655 = vst [vmem:[%s1627_s26 + $0x38] sm:$0xff] %v1654_v1  ;;  %v1664_v6 = vld [vmem:[%s2535_s23 + $0x60] sm:$0xff] }
 0x1bf   : > { %v1668_v8 = vld [vmem:[%s2535_s23 + $0x70] sm:$0xff]  ;;  %1665 = vst [vmem:[%s1627_s26 + $0xa0] sm:$0xff] %v1664_v6 }
 0x1c0   : > { %v1666_v7 = vld [vmem:[%s2535_s23 + $0x68] sm:$0xff]  ;;  %1669 = vst [vmem:[%s1627_s26 + $0xb0] sm:$0xff] %v1668_v8 }
 0x1c1   : > { %1667 = vst [vmem:[%s1627_s26 + $0xa8] sm:$0xff] %v1666_v7  ;;  %v1670_v9 = vld [vmem:[%s2535_s23 + $0x78] sm:$0xff] }
 0x1c2   : > { %1671 = vst [vmem:[%s1627_s26 + $0xb8] sm:$0xff] %v1670_v9 }
 0x1c3 PF: > { %s13_s16 = sadd.s32 1, %s2043_s16   ;;  %s2595_s12 = smov %s2031_s13 }
 0x1c4   : > { %p10_p11 = scmp.ge.s32.totalorder %s13_s16, 4   ;;  %s2596_s13 = smov %s2106_s22 }
 0x1c5   : > { %s2597_s14 = smov %s2039_s15  ;;  %s2598_s15 = smov %s2600_s17 }
 0x1c6   :  { %12 = sbr.rel (!%p10_p11) target bundleno = 3 (0x3), region = 127 }

</bundles_post_ra>
